<compile_context>
chip_gen: v7x
topology: tpu7x:2x2x1
jax: 0.10.0
libtpu: 0.0.40
codegen_flags: <defaults>
</compile_context>

<pallas_src>
import jax
import jax.numpy as jnp
from jax.experimental import pallas as pl
from jax.experimental.pallas import tpu as pltpu

# ---------------------------------------------------------------------------
# Dimensions
# ---------------------------------------------------------------------------
REDUCED = 501 // 3                         # 167
IN_FEATURES = 6 * REDUCED                  # 1002
TRUE_DIMS = [IN_FEATURES, 1024, 512, 256, 128, 64, 32]   # fc1..fc6 in/out
PAD_DIMS = [1024, 1024, 512, 256, 128, 128, 128]          # padded to 128-multiples
OUT_DIM = 12
BN_EPS = 1e-5
N_BLOCKS = 6


# ---------------------------------------------------------------------------
# Fused Pallas kernel: 6 residual blocks + final projection, all in VMEM
# ---------------------------------------------------------------------------
def _fused_kernel(x_ref, *refs):
    # refs = [w0,b0, w1,b1, ..., w5,b5, w7,b7, o_ref]
    o_ref = refs[-1]
    h = x_ref[...]                                      # (TB, 1024) f32
    for i in range(N_BLOCKS):
        w = refs[2 * i][...]                            # (din_p, 2*dout_p) bf16
        b = refs[2 * i + 1][...]                        # (1, 2*dout_p) f32
        # One MXU matmul per block: [folded fc | shortcut] share the x load.
        y = jnp.dot(h.astype(jnp.bfloat16), w,
                    preferred_element_type=jnp.float32) + b
        half = w.shape[1] // 2                          # 128-aligned split
        # relu(bn(fc(x))) + shortcut(x)   (dropout = identity in eval mode)
        h = jnp.maximum(y[:, :half], 0.0) + y[:, half:]
    w7 = refs[2 * N_BLOCKS][...]                        # (128, 12) bf16
    b7 = refs[2 * N_BLOCKS + 1][...]                    # (1, 12) f32
    o_ref[...] = jnp.dot(h.astype(jnp.bfloat16), w7,
                         preferred_element_type=jnp.float32) + b7


# ---------------------------------------------------------------------------
# Parameter construction (PyTorch-Linear-style uniform init), with folding
# ---------------------------------------------------------------------------
def _linear_params(key, fan_in, fan_out):
    kw, kb = jax.random.split(key)
    bound = 1.0 / float(jnp.sqrt(float(fan_in)))
    w = jax.random.uniform(kw, (fan_in, fan_out), jnp.float32, -bound, bound)
    b = jax.random.uniform(kb, (fan_out,), jnp.float32, -bound, bound)
    return w, b


def make_params(seed=0):
    key = jax.random.PRNGKey(seed)
    raw_blocks, fused_blocks = [], []
    for i in range(N_BLOCKS):
        din_t, dout_t = TRUE_DIMS[i], TRUE_DIMS[i + 1]
        din_p, dout_p = PAD_DIMS[i], PAD_DIMS[i + 1]
        key, k_fc, k_sc = jax.random.split(key, 3)
        w_fc, b_fc = _linear_params(k_fc, din_t, dout_t)
        w_sc, b_sc = _linear_params(k_sc, din_t, dout_t)
        raw_blocks.append((w_fc, b_fc, w_sc, b_sc))

        # Eval-mode BatchNorm1d fold (gamma=1, beta=0, running_mean=0, var=1).
        scale = 1.0 / jnp.sqrt(jnp.ones((dout_t,), jnp.float32) + BN_EPS)
        shift = jnp.zeros((dout_t,), jnp.float32)
        w_main = w_fc * scale[None, :]
        b_main = b_fc * scale + shift

        # Concatenate [main | shortcut] along the output dim, zero-padded so
        # both halves start at 128-aligned lane offsets.
        wcat = jnp.zeros((din_p, 2 * dout_p), jnp.float32)
        wcat = wcat.at[:din_t, :dout_t].set(w_main)
        wcat = wcat.at[:din_t, dout_p:dout_p + dout_t].set(w_sc)
        bcat = jnp.zeros((1, 2 * dout_p), jnp.float32)
        bcat = bcat.at[0, :dout_t].set(b_main)
        bcat = bcat.at[0, dout_p:dout_p + dout_t].set(b_sc)
        fused_blocks.append((wcat.astype(jnp.bfloat16), bcat))

    key, k7 = jax.random.split(key)
    w7, b7 = _linear_params(k7, TRUE_DIMS[-1], OUT_DIM)
    w7p = jnp.zeros((PAD_DIMS[-1], OUT_DIM), jnp.float32)
    w7p = w7p.at[:TRUE_DIMS[-1], :].set(w7)
    return {
        "raw": {"blocks": raw_blocks, "final": (w7, b7)},
        "fused": {"blocks": fused_blocks,
                  "final": (w7p.astype(jnp.bfloat16), b7.reshape(1, -1))},
    }


# ---------------------------------------------------------------------------
# Forward pass
# ---------------------------------------------------------------------------
def _pool_flatten_pad(x):
    """AvgPool1d(k=3,s=3) + flatten + zero-pad 1002 -> 1024. (Tiny XLA glue op.)"""
    B = x.shape[0]
    xp = x[:, :, :REDUCED * 3].reshape(B, 6, REDUCED, 3).mean(axis=-1)
    h = xp.reshape(B, IN_FEATURES)
    return jnp.pad(h, ((0, 0), (0, PAD_DIMS[0] - IN_FEATURES)))


@jax.jit
def deep_fc_forward(x, fused):
    """x: (B, 6, 501) float32 -> (B, 12) float32."""
    B = x.shape[0]
    h = _pool_flatten_pad(x).astype(jnp.float32)

    # Pad batch to a multiple of 8 and pick a batch tile (full MXU rows if B large).
    B_pad = max(8, ((B + 7) // 8) * 8)
    TB = 8
    for cand in (256, 128, 64, 32, 16):
        if B_pad % cand == 0:
            TB = cand
            break
    h = jnp.pad(h, ((0, B_pad - B), (0, 0)))

    args = [h]
    in_specs = [pl.BlockSpec((TB, PAD_DIMS[0]), lambda i: (i, 0))]
    for (wcat, bcat) in fused["blocks"]:
        args += [wcat, bcat]
        in_specs += [pl.BlockSpec(wcat.shape, lambda i: (0, 0)),   # resident weight
                     pl.BlockSpec(bcat.shape, lambda i: (0, 0))]
    w7, b7 = fused["final"]
    args += [w7, b7]
    in_specs += [pl.BlockSpec(w7.shape, lambda i: (0, 0)),
                 pl.BlockSpec(b7.shape, lambda i: (0, 0))]

    out = pl.pallas_call(
        _fused_kernel,
        out_shape=jax.ShapeDtypeStruct((B_pad, OUT_DIM), jnp.float32),
        grid=(B_pad // TB,),
        in_specs=in_specs,
        out_specs=pl.BlockSpec((TB, OUT_DIM), lambda i: (i, 0)),
        compiler_params=pltpu.CompilerParams(
            dimension_semantics=("parallel",),       # v7x: 2 TCs split the batch
            vmem_limit_bytes=48 << 20),              # <= v7x 64 MiB physical
    )(*args)
    return out[:B]


def deep_fc_forward_ref(x, raw):
    """Pure-JAX f32 reference matching the PyTorch forward in eval mode."""
    B = x.shape[0]
    xp = x[:, :, :REDUCED * 3].reshape(B, 6, REDUCED, 3).mean(axis=-1)
    h = xp.reshape(B, IN_FEATURES)
    bn_scale = 1.0 / jnp.sqrt(1.0 + BN_EPS)   # gamma=1, beta=0, mean=0, var=1
    for (w_fc, b_fc, w_sc, b_sc) in raw["blocks"]:
        identity = h @ w_sc + b_sc
        main = jnp.maximum((h @ w_fc + b_fc) * bn_scale, 0.0)
        h = main + identity                   # dropout (eval) = identity
    w7, b7 = raw["final"]
    return h @ w7 + b7


# ---------------------------------------------------------------------------
if __name__ == "__main__":
    B = 4
    x = jax.random.normal(jax.random.PRNGKey(0), (B, 6, 501), jnp.float32)

    params = make_params(seed=0)

    out = deep_fc_forward(x, params["fused"])
    out = jax.block_until_ready(out)

    ref = deep_fc_forward_ref(x, params["raw"])
    assert out.shape == (B, OUT_DIM), out.shape
    max_err = float(jnp.max(jnp.abs(out - ref)))
    # Tolerance covers bf16 weight/activation rounding vs. the f32 reference.
    assert jnp.allclose(out, ref, rtol=2e-2, atol=2e-2), max_err

    print("KERNEL_OK")
</pallas_src>

<mosaic_0001>
module attributes {stable_mosaic.version = 11 : i64} {
  func.func @_fused_kernel(%arg0: i32, %arg1: memref<8x1024xf32, #tpu.memory_space<vmem>>, %arg2: memref<1024x2048xbf16, #tpu.memory_space<vmem>>, %arg3: memref<1x2048xf32, #tpu.memory_space<vmem>>, %arg4: memref<1024x1024xbf16, #tpu.memory_space<vmem>>, %arg5: memref<1x1024xf32, #tpu.memory_space<vmem>>, %arg6: memref<512x512xbf16, #tpu.memory_space<vmem>>, %arg7: memref<1x512xf32, #tpu.memory_space<vmem>>, %arg8: memref<256x256xbf16, #tpu.memory_space<vmem>>, %arg9: memref<1x256xf32, #tpu.memory_space<vmem>>, %arg10: memref<128x256xbf16, #tpu.memory_space<vmem>>, %arg11: memref<1x256xf32, #tpu.memory_space<vmem>>, %arg12: memref<128x256xbf16, #tpu.memory_space<vmem>>, %arg13: memref<1x256xf32, #tpu.memory_space<vmem>>, %arg14: memref<128x12xbf16, #tpu.memory_space<vmem>>, %arg15: memref<1x12xf32, #tpu.memory_space<vmem>>, %arg16: memref<8x12xf32, #tpu.memory_space<vmem>>) attributes {dimension_semantics = [#tpu.dimension_semantics<parallel>], iteration_bounds = array<i64: 1>, scalar_prefetch = 0 : i64, scratch_operands = 0 : i64, tpu.core_type = #tpu.core_type<tc>, window_params = [{transform_indices = @transform_0, window_bounds = array<i64: 8, 1024>}, {pipeline_mode = #tpu.pipeline_mode<synchronous>, transform_indices = @transform_1, window_bounds = array<i64: 1024, 2048>}, {pipeline_mode = #tpu.pipeline_mode<synchronous>, transform_indices = @transform_2, window_bounds = array<i64: 1, 2048>}, {pipeline_mode = #tpu.pipeline_mode<synchronous>, transform_indices = @transform_3, window_bounds = array<i64: 1024, 1024>}, {pipeline_mode = #tpu.pipeline_mode<synchronous>, transform_indices = @transform_4, window_bounds = array<i64: 1, 1024>}, {pipeline_mode = #tpu.pipeline_mode<synchronous>, transform_indices = @transform_5, window_bounds = array<i64: 512, 512>}, {pipeline_mode = #tpu.pipeline_mode<synchronous>, transform_indices = @transform_6, window_bounds = array<i64: 1, 512>}, {pipeline_mode = #tpu.pipeline_mode<synchronous>, transform_indices = @transform_7, window_bounds = array<i64: 256, 256>}, {pipeline_mode = #tpu.pipeline_mode<synchronous>, transform_indices = @transform_8, window_bounds = array<i64: 1, 256>}, {pipeline_mode = #tpu.pipeline_mode<synchronous>, transform_indices = @transform_9, window_bounds = array<i64: 128, 256>}, {pipeline_mode = #tpu.pipeline_mode<synchronous>, transform_indices = @transform_10, window_bounds = array<i64: 1, 256>}, {pipeline_mode = #tpu.pipeline_mode<synchronous>, transform_indices = @transform_11, window_bounds = array<i64: 128, 256>}, {pipeline_mode = #tpu.pipeline_mode<synchronous>, transform_indices = @transform_12, window_bounds = array<i64: 1, 256>}, {pipeline_mode = #tpu.pipeline_mode<synchronous>, transform_indices = @transform_13, window_bounds = array<i64: 128, 12>}, {pipeline_mode = #tpu.pipeline_mode<synchronous>, transform_indices = @transform_14, window_bounds = array<i64: 1, 12>}, {transform_indices = @transform_15, window_bounds = array<i64: 8, 12>}]} {
    %c0 = arith.constant 0 : index
    %c0_0 = arith.constant 0 : index
    %0 = vector.load %arg1[%c0, %c0_0] : memref<8x1024xf32, #tpu.memory_space<vmem>>, vector<8x1024xf32>
    %c0_1 = arith.constant 0 : index
    %c0_2 = arith.constant 0 : index
    %1 = vector.load %arg2[%c0_1, %c0_2] : memref<1024x2048xbf16, #tpu.memory_space<vmem>>, vector<1024x2048xbf16>
    %c0_3 = arith.constant 0 : index
    %c0_4 = arith.constant 0 : index
    %2 = vector.load %arg3[%c0_3, %c0_4] : memref<1x2048xf32, #tpu.memory_space<vmem>>, vector<1x2048xf32>
    %3 = arith.truncf %0 : vector<8x1024xf32> to vector<8x1024xbf16>
    %cst = arith.constant dense<0.000000e+00> : vector<8x2048xf32>
    %4 = tpu.matmul %3, %1, %cst {dimension_numbers = #tpu.dot_dimension_numbers<[1], [0], [0], [1], [0, 0, 1, 1], [], []>} : vector<8x1024xbf16>, vector<1024x2048xbf16>, vector<8x2048xf32> -> vector<8x2048xf32>
    %5 = vector.broadcast %2 : vector<1x2048xf32> to vector<8x2048xf32>
    %6 = arith.addf %4, %5 : vector<8x2048xf32>
    %7 = vector.extract_strided_slice %6 {offsets = [0, 0], sizes = [8, 1024], strides = [1, 1]} : vector<8x2048xf32> to vector<8x1024xf32>
    %cst_5 = arith.constant 0.000000e+00 : f32
    %8 = vector.broadcast %cst_5 : f32 to vector<8x1024xf32>
    %9 = arith.maximumf %7, %8 : vector<8x1024xf32>
    %10 = vector.extract_strided_slice %6 {offsets = [0, 1024], sizes = [8, 1024], strides = [1, 1]} : vector<8x2048xf32> to vector<8x1024xf32>
    %11 = arith.addf %9, %10 : vector<8x1024xf32>
    %c0_6 = arith.constant 0 : index
    %c0_7 = arith.constant 0 : index
    %12 = vector.load %arg4[%c0_6, %c0_7] : memref<1024x1024xbf16, #tpu.memory_space<vmem>>, vector<1024x1024xbf16>
    %c0_8 = arith.constant 0 : index
    %c0_9 = arith.constant 0 : index
    %13 = vector.load %arg5[%c0_8, %c0_9] : memref<1x1024xf32, #tpu.memory_space<vmem>>, vector<1x1024xf32>
    %14 = arith.truncf %11 : vector<8x1024xf32> to vector<8x1024xbf16>
    %cst_10 = arith.constant dense<0.000000e+00> : vector<8x1024xf32>
    %15 = tpu.matmul %14, %12, %cst_10 {dimension_numbers = #tpu.dot_dimension_numbers<[1], [0], [0], [1], [0, 0, 1, 1], [], []>} : vector<8x1024xbf16>, vector<1024x1024xbf16>, vector<8x1024xf32> -> vector<8x1024xf32>
    %16 = vector.broadcast %13 : vector<1x1024xf32> to vector<8x1024xf32>
    %17 = arith.addf %15, %16 : vector<8x1024xf32>
    %18 = vector.extract_strided_slice %17 {offsets = [0, 0], sizes = [8, 512], strides = [1, 1]} : vector<8x1024xf32> to vector<8x512xf32>
    %cst_11 = arith.constant 0.000000e+00 : f32
    %19 = vector.broadcast %cst_11 : f32 to vector<8x512xf32>
    %20 = arith.maximumf %18, %19 : vector<8x512xf32>
    %21 = vector.extract_strided_slice %17 {offsets = [0, 512], sizes = [8, 512], strides = [1, 1]} : vector<8x1024xf32> to vector<8x512xf32>
    %22 = arith.addf %20, %21 : vector<8x512xf32>
    %c0_12 = arith.constant 0 : index
    %c0_13 = arith.constant 0 : index
    %23 = vector.load %arg6[%c0_12, %c0_13] : memref<512x512xbf16, #tpu.memory_space<vmem>>, vector<512x512xbf16>
    %c0_14 = arith.constant 0 : index
    %c0_15 = arith.constant 0 : index
    %24 = vector.load %arg7[%c0_14, %c0_15] : memref<1x512xf32, #tpu.memory_space<vmem>>, vector<1x512xf32>
    %25 = arith.truncf %22 : vector<8x512xf32> to vector<8x512xbf16>
    %cst_16 = arith.constant dense<0.000000e+00> : vector<8x512xf32>
    %26 = tpu.matmul %25, %23, %cst_16 {dimension_numbers = #tpu.dot_dimension_numbers<[1], [0], [0], [1], [0, 0, 1, 1], [], []>} : vector<8x512xbf16>, vector<512x512xbf16>, vector<8x512xf32> -> vector<8x512xf32>
    %27 = vector.broadcast %24 : vector<1x512xf32> to vector<8x512xf32>
    %28 = arith.addf %26, %27 : vector<8x512xf32>
    %29 = vector.extract_strided_slice %28 {offsets = [0, 0], sizes = [8, 256], strides = [1, 1]} : vector<8x512xf32> to vector<8x256xf32>
    %cst_17 = arith.constant 0.000000e+00 : f32
    %30 = vector.broadcast %cst_17 : f32 to vector<8x256xf32>
    %31 = arith.maximumf %29, %30 : vector<8x256xf32>
    %32 = vector.extract_strided_slice %28 {offsets = [0, 256], sizes = [8, 256], strides = [1, 1]} : vector<8x512xf32> to vector<8x256xf32>
    %33 = arith.addf %31, %32 : vector<8x256xf32>
    %c0_18 = arith.constant 0 : index
    %c0_19 = arith.constant 0 : index
    %34 = vector.load %arg8[%c0_18, %c0_19] : memref<256x256xbf16, #tpu.memory_space<vmem>>, vector<256x256xbf16>
    %c0_20 = arith.constant 0 : index
    %c0_21 = arith.constant 0 : index
    %35 = vector.load %arg9[%c0_20, %c0_21] : memref<1x256xf32, #tpu.memory_space<vmem>>, vector<1x256xf32>
    %36 = arith.truncf %33 : vector<8x256xf32> to vector<8x256xbf16>
    %cst_22 = arith.constant dense<0.000000e+00> : vector<8x256xf32>
    %37 = tpu.matmul %36, %34, %cst_22 {dimension_numbers = #tpu.dot_dimension_numbers<[1], [0], [0], [1], [0, 0, 1, 1], [], []>} : vector<8x256xbf16>, vector<256x256xbf16>, vector<8x256xf32> -> vector<8x256xf32>
    %38 = vector.broadcast %35 : vector<1x256xf32> to vector<8x256xf32>
    %39 = arith.addf %37, %38 : vector<8x256xf32>
    %40 = vector.extract_strided_slice %39 {offsets = [0, 0], sizes = [8, 128], strides = [1, 1]} : vector<8x256xf32> to vector<8x128xf32>
    %cst_23 = arith.constant 0.000000e+00 : f32
    %41 = vector.broadcast %cst_23 : f32 to vector<8x128xf32>
    %42 = arith.maximumf %40, %41 : vector<8x128xf32>
    %43 = vector.extract_strided_slice %39 {offsets = [0, 128], sizes = [8, 128], strides = [1, 1]} : vector<8x256xf32> to vector<8x128xf32>
    %44 = arith.addf %42, %43 : vector<8x128xf32>
    %c0_24 = arith.constant 0 : index
    %c0_25 = arith.constant 0 : index
    %45 = vector.load %arg10[%c0_24, %c0_25] : memref<128x256xbf16, #tpu.memory_space<vmem>>, vector<128x256xbf16>
    %c0_26 = arith.constant 0 : index
    %c0_27 = arith.constant 0 : index
    %46 = vector.load %arg11[%c0_26, %c0_27] : memref<1x256xf32, #tpu.memory_space<vmem>>, vector<1x256xf32>
    %47 = arith.truncf %44 : vector<8x128xf32> to vector<8x128xbf16>
    %cst_28 = arith.constant dense<0.000000e+00> : vector<8x256xf32>
    %48 = tpu.matmul %47, %45, %cst_28 {dimension_numbers = #tpu.dot_dimension_numbers<[1], [0], [0], [1], [0, 0, 1, 1], [], []>} : vector<8x128xbf16>, vector<128x256xbf16>, vector<8x256xf32> -> vector<8x256xf32>
    %49 = vector.broadcast %46 : vector<1x256xf32> to vector<8x256xf32>
    %50 = arith.addf %48, %49 : vector<8x256xf32>
    %51 = vector.extract_strided_slice %50 {offsets = [0, 0], sizes = [8, 128], strides = [1, 1]} : vector<8x256xf32> to vector<8x128xf32>
    %cst_29 = arith.constant 0.000000e+00 : f32
    %52 = vector.broadcast %cst_29 : f32 to vector<8x128xf32>
    %53 = arith.maximumf %51, %52 : vector<8x128xf32>
    %54 = vector.extract_strided_slice %50 {offsets = [0, 128], sizes = [8, 128], strides = [1, 1]} : vector<8x256xf32> to vector<8x128xf32>
    %55 = arith.addf %53, %54 : vector<8x128xf32>
    %c0_30 = arith.constant 0 : index
    %c0_31 = arith.constant 0 : index
    %56 = vector.load %arg12[%c0_30, %c0_31] : memref<128x256xbf16, #tpu.memory_space<vmem>>, vector<128x256xbf16>
    %c0_32 = arith.constant 0 : index
    %c0_33 = arith.constant 0 : index
    %57 = vector.load %arg13[%c0_32, %c0_33] : memref<1x256xf32, #tpu.memory_space<vmem>>, vector<1x256xf32>
    %58 = arith.truncf %55 : vector<8x128xf32> to vector<8x128xbf16>
    %cst_34 = arith.constant dense<0.000000e+00> : vector<8x256xf32>
    %59 = tpu.matmul %58, %56, %cst_34 {dimension_numbers = #tpu.dot_dimension_numbers<[1], [0], [0], [1], [0, 0, 1, 1], [], []>} : vector<8x128xbf16>, vector<128x256xbf16>, vector<8x256xf32> -> vector<8x256xf32>
    %60 = vector.broadcast %57 : vector<1x256xf32> to vector<8x256xf32>
    %61 = arith.addf %59, %60 : vector<8x256xf32>
    %62 = vector.extract_strided_slice %61 {offsets = [0, 0], sizes = [8, 128], strides = [1, 1]} : vector<8x256xf32> to vector<8x128xf32>
    %cst_35 = arith.constant 0.000000e+00 : f32
    %63 = vector.broadcast %cst_35 : f32 to vector<8x128xf32>
    %64 = arith.maximumf %62, %63 : vector<8x128xf32>
    %65 = vector.extract_strided_slice %61 {offsets = [0, 128], sizes = [8, 128], strides = [1, 1]} : vector<8x256xf32> to vector<8x128xf32>
    %66 = arith.addf %64, %65 : vector<8x128xf32>
    %c0_36 = arith.constant 0 : index
    %c0_37 = arith.constant 0 : index
    %67 = vector.load %arg14[%c0_36, %c0_37] : memref<128x12xbf16, #tpu.memory_space<vmem>>, vector<128x12xbf16>
    %c0_38 = arith.constant 0 : index
    %c0_39 = arith.constant 0 : index
    %68 = vector.load %arg15[%c0_38, %c0_39] : memref<1x12xf32, #tpu.memory_space<vmem>>, vector<1x12xf32>
    %69 = arith.truncf %66 : vector<8x128xf32> to vector<8x128xbf16>
    %cst_40 = arith.constant dense<0.000000e+00> : vector<8x12xf32>
    %70 = tpu.matmul %69, %67, %cst_40 {dimension_numbers = #tpu.dot_dimension_numbers<[1], [0], [0], [1], [0, 0, 1, 1], [], []>} : vector<8x128xbf16>, vector<128x12xbf16>, vector<8x12xf32> -> vector<8x12xf32>
    %71 = vector.broadcast %68 : vector<1x12xf32> to vector<8x12xf32>
    %72 = arith.addf %70, %71 : vector<8x12xf32>
    %c0_41 = arith.constant 0 : index
    %c0_42 = arith.constant 0 : index
    %73 = vector.load %arg16[%c0_41, %c0_42] : memref<8x12xf32, #tpu.memory_space<vmem>>, vector<8x12xf32>
    tpu.vector_store %arg16[%c0_41, %c0_42], %72 {strides = array<i32>} : memref<8x12xf32, #tpu.memory_space<vmem>>, vector<8x12xf32>,
    return
  }
  func.func @transform_0(%arg0: i32) -> (i32, i32) {
    %c0_i32 = arith.constant 0 : i32
    %c0_i32_0 = arith.constant 0 : i32
    return %arg0, %c0_i32 : i32, i32
  }
  func.func @transform_1(%arg0: i32) -> (i32, i32) {
    %c0_i32 = arith.constant 0 : i32
    %c0_i32_0 = arith.constant 0 : i32
    %c0_i32_1 = arith.constant 0 : i32
    return %c0_i32, %c0_i32_0 : i32, i32
  }
  func.func @transform_2(%arg0: i32) -> (i32, i32) {
    %c0_i32 = arith.constant 0 : i32
    %c0_i32_0 = arith.constant 0 : i32
    %c0_i32_1 = arith.constant 0 : i32
    return %c0_i32, %c0_i32_0 : i32, i32
  }
  func.func @transform_3(%arg0: i32) -> (i32, i32) {
    %c0_i32 = arith.constant 0 : i32
    %c0_i32_0 = arith.constant 0 : i32
    %c0_i32_1 = arith.constant 0 : i32
    return %c0_i32, %c0_i32_0 : i32, i32
  }
  func.func @transform_4(%arg0: i32) -> (i32, i32) {
    %c0_i32 = arith.constant 0 : i32
    %c0_i32_0 = arith.constant 0 : i32
    %c0_i32_1 = arith.constant 0 : i32
    return %c0_i32, %c0_i32_0 : i32, i32
  }
  func.func @transform_5(%arg0: i32) -> (i32, i32) {
    %c0_i32 = arith.constant 0 : i32
    %c0_i32_0 = arith.constant 0 : i32
    %c0_i32_1 = arith.constant 0 : i32
    return %c0_i32, %c0_i32_0 : i32, i32
  }
  func.func @transform_6(%arg0: i32) -> (i32, i32) {
    %c0_i32 = arith.constant 0 : i32
    %c0_i32_0 = arith.constant 0 : i32
    %c0_i32_1 = arith.constant 0 : i32
    return %c0_i32, %c0_i32_0 : i32, i32
  }
  func.func @transform_7(%arg0: i32) -> (i32, i32) {
    %c0_i32 = arith.constant 0 : i32
    %c0_i32_0 = arith.constant 0 : i32
    %c0_i32_1 = arith.constant 0 : i32
    return %c0_i32, %c0_i32_0 : i32, i32
  }
  func.func @transform_8(%arg0: i32) -> (i32, i32) {
    %c0_i32 = arith.constant 0 : i32
    %c0_i32_0 = arith.constant 0 : i32
    %c0_i32_1 = arith.constant 0 : i32
    return %c0_i32, %c0_i32_0 : i32, i32
  }
  func.func @transform_9(%arg0: i32) -> (i32, i32) {
    %c0_i32 = arith.constant 0 : i32
    %c0_i32_0 = arith.constant 0 : i32
    %c0_i32_1 = arith.constant 0 : i32
    return %c0_i32, %c0_i32_0 : i32, i32
  }
  func.func @transform_10(%arg0: i32) -> (i32, i32) {
    %c0_i32 = arith.constant 0 : i32
    %c0_i32_0 = arith.constant 0 : i32
    %c0_i32_1 = arith.constant 0 : i32
    return %c0_i32, %c0_i32_0 : i32, i32
  }
  func.func @transform_11(%arg0: i32) -> (i32, i32) {
    %c0_i32 = arith.constant 0 : i32
    %c0_i32_0 = arith.constant 0 : i32
    %c0_i32_1 = arith.constant 0 : i32
    return %c0_i32, %c0_i32_0 : i32, i32
  }
  func.func @transform_12(%arg0: i32) -> (i32, i32) {
    %c0_i32 = arith.constant 0 : i32
    %c0_i32_0 = arith.constant 0 : i32
    %c0_i32_1 = arith.constant 0 : i32
    return %c0_i32, %c0_i32_0 : i32, i32
  }
  func.func @transform_13(%arg0: i32) -> (i32, i32) {
    %c0_i32 = arith.constant 0 : i32
    %c0_i32_0 = arith.constant 0 : i32
    %c0_i32_1 = arith.constant 0 : i32
    return %c0_i32, %c0_i32_0 : i32, i32
  }
  func.func @transform_14(%arg0: i32) -> (i32, i32) {
    %c0_i32 = arith.constant 0 : i32
    %c0_i32_0 = arith.constant 0 : i32
    %c0_i32_1 = arith.constant 0 : i32
    return %c0_i32, %c0_i32_0 : i32, i32
  }
  func.func @transform_15(%arg0: i32) -> (i32, i32) {
    %c0_i32 = arith.constant 0 : i32
    %c0_i32_0 = arith.constant 0 : i32
    return %arg0, %c0_i32 : i32, i32
  }
}

</mosaic_0001>

<bundles_post_ra>
// kernel: deep_fc_forward.1
= control target key start
LH: loop header
LB: loop body
LE: loop exit
PB: predicated region body
PF: predicated region fallthrough
CT: control target
= control target key end

     0   :  { %20 = vsyncpa [#allocation3], 0  ;;  %s17815_s0 = inlined_call_operand.vmem [shape: f32[8,1024], index: 0, kind: input, shape index: {}]   ;;  %s17816_s1 = inlined_call_operand.hbm [shape: bf16[1024,2048], index: 1, kind: input, shape index: {}]   ;;  %s17817_s2 = inlined_call_operand.hbm [shape: f32[1,2048], index: 2, kind: input, shape index: {}]   ;;  %s17818_s3 = inlined_call_operand.vmem [shape: bf16[1024,1024], index: 3, kind: input, shape index: {}]   ;;  %s17819_s4 = inlined_call_operand.hbm [shape: f32[1,1024], index: 4, kind: input, shape index: {}]   ;;  %s17820_s5 = inlined_call_operand.hbm [shape: bf16[512,512], index: 5, kind: input, shape index: {}]   ;;  %s17821_s6 = inlined_call_operand.hbm [shape: f32[1,512], index: 6, kind: input, shape index: {}]   ;;  %s17822_s7 = inlined_call_operand.hbm [shape: bf16[256,256], index: 7, kind: input, shape index: {}]   ;;  %s17823_s8 = inlined_call_operand.hbm [shape: f32[1,256], index: 8, kind: input, shape index: {}]   ;;  %s17824_s9 = inlined_call_operand.hbm [shape: bf16[128,256], index: 9, kind: input, shape index: {}]   ;;  %s17825_s10 = inlined_call_operand.hbm [shape: f32[1,256], index: 10, kind: input, shape index: {}]   ;;  %s17826_s11 = inlined_call_operand.hbm [shape: bf16[128,256], index: 11, kind: input, shape index: {}]   ;;  %s17827_s12 = inlined_call_operand.hbm [shape: f32[1,256], index: 12, kind: input, shape index: {}]   ;;  %s17828_s13 = inlined_call_operand.vmem [shape: bf16[128,12], index: 13, kind: input, shape index: {}]   ;;  %s17829_s14 = inlined_call_operand.hbm [shape: f32[1,12], index: 14, kind: input, shape index: {}]   ;;  %s17830_s15 = inlined_call_operand.vmem [shape: f32[8,12], index: 15, kind: output, shape index: {}]  }
   0x1   :  { %21 = vsyncpa [#allocation5], 0 }
   0x2   :  { %22 = vsyncpa [#allocation8], 0 }
   0x3   :  { %23 = vsyncpa [#allocation11], 0 }
   0x4   :  { %24 = vsyncpa [#allocation14], 0 }
   0x5   :  { %25 = vsyncpa [#allocation17], 0 }
   0x6   :  { %26 = vsyncpa [#allocation20], 0  ;;  %s15651_s18 = smov [#allocation4]   ;;  %s15652_s20 = smov [#allocation7]  }
   0x7   :  { %s47_s19 = sshll.u32 %s15651_s18, 4  ;;  %s68_s21 = sshll.u32 %s15652_s20, 4  ;;  %s48_s19 = int_to_ptr.vmem [resolvable:$true] %s47_s19  ;;  %s15752_s21 = int_to_ptr.vmem [resolvable:$true] %s68_s21 }
   0x8   :  { %s15373_s24 = scalar_lea.hbm %s17817_s2, 256 }
   0x9   :  { %p15374_p0 = scmp.ne.s32.totalorder %s17817_s2, %s15373_s24  ;;  %p15377_p1 = scmp.lt.u32.totalorder %s15373_s24, %s17817_s2 }
   0xb   :  { %p15379_p2 = pnand %p15377_p1, %p15374_p0 }
   0xd   :  { %15382 = shalt.err (!%p15379_p2)
}
   0xe   :  { %s15383_s29 = scalar_lea.vmem %s48_s19, 256  ;;  %p15388_p4 = scmp.lt.s32.totalorder %s48_s19, %s48_s19 }
   0xf   :  { %p15384_p3 = scmp.ne.s32.totalorder %s48_s19, %s15383_s29  ;;  %p15389_p5 = scmp.lt.s32.totalorder %s15383_s29, %s15383_s29 }
  0x11   :  { %p15390_p6 = por %p15389_p5, %p15388_p4 }
  0x13   :  { %p15391_p7 = pnand %p15390_p6, %p15384_p3 }
  0x15   :  { %15394 = shalt.err (!%p15391_p7)
}
  0x16   :  { %50 = dma.hbm_to_vmem [thread:$0]  %s17817_s2, 256, %s48_s19, [#allocation5]  }
  0x17   :  { %s15395_s20 = scalar_lea.hbm %s17820_s5, 16384 }
  0x18   :  { %p15396_p8 = scmp.ne.s32.totalorder %s17820_s5, %s15395_s20  ;;  %p15399_p9 = scmp.lt.u32.totalorder %s15395_s20, %s17820_s5 }
  0x1a   :  { %p15401_p10 = pnand %p15399_p9, %p15396_p8 }
  0x1c   :  { %15404 = shalt.err (!%p15401_p10)
}
  0x1d   :  { %s15405_s26 = scalar_lea.vmem %s15752_s21, 16384  ;;  %p15410_p12 = scmp.lt.s32.totalorder %s15752_s21, %s15752_s21 }
  0x1e   :  { %p15406_p11 = scmp.ne.s32.totalorder %s15752_s21, %s15405_s26  ;;  %p15411_p13 = scmp.lt.s32.totalorder %s15405_s26, %s15405_s26 }
  0x20   :  { %p15412_p0 = por %p15411_p13, %p15410_p12 }
  0x22   :  { %p15413_p1 = pnand %p15412_p0, %p15406_p11 }
  0x24   :  { %15416 = shalt.err (!%p15413_p1)
}
  0x25   :  { %s15653_s2 = smov 256   ;;  %s15654_s19 = smov 16  }
  0x26   :  { %74 = dma.hbm_to_vmem [thread:$0]  %s17820_s5, 16384, %s15752_s21, [#allocation8], %s15653_s2, %s15653_s2, %s15654_s19  }
  0x27   :  { %s15655_s29 = smov [#allocation10]   ;;  %s15417_s18 = scalar_lea.hbm %s17822_s7, 4096 }
  0x28   :  { %s90_s30 = sshll.u32 %s15655_s29, 4  ;;  %p15418_p2 = scmp.ne.s32.totalorder %s17822_s7, %s15417_s18  ;;  %s91_s30 = int_to_ptr.vmem [resolvable:$true] %s90_s30 }
  0x29   :  { %p15421_p3 = scmp.lt.u32.totalorder %s15417_s18, %s17822_s7 }
  0x2b   :  { %p15423_p4 = pnand %p15421_p3, %p15418_p2 }
  0x2d   :  { %15426 = shalt.err (!%p15423_p4)
}
  0x2e   :  { %s15427_s25 = scalar_lea.vmem %s91_s30, 4096  ;;  %p15432_p6 = scmp.lt.s32.totalorder %s91_s30, %s91_s30 }
  0x2f   :  { %p15428_p5 = scmp.ne.s32.totalorder %s91_s30, %s15427_s25  ;;  %p15433_p7 = scmp.lt.s32.totalorder %s15427_s25, %s15427_s25 }
  0x31   :  { %p15434_p8 = por %p15433_p7, %p15432_p6 }
  0x33   :  { %p15435_p9 = pnand %p15434_p8, %p15428_p5 }
  0x35   :  { %15438 = shalt.err (!%p15435_p9)
}
  0x36   :  { %s15656_s5 = smov 128   ;;  %s15657_s21 = smov 8  }
  0x37   :  { %96 = dma.hbm_to_vmem [thread:$0]  %s17822_s7, 4096, %s91_s30, [#allocation11], %s15656_s5, %s15656_s5, %s15657_s21  }
  0x38   :  { %s15658_s19 = smov [#allocation13]   ;;  %s15659_s28 = smov [#allocation16]  }
  0x39   :  { %s112_s27 = sshll.u32 %s15658_s19, 4  ;;  %s134_s29 = sshll.u32 %s15659_s28, 4  ;;  %s113_s27 = int_to_ptr.vmem [resolvable:$true] %s112_s27  ;;  %s135_s29 = int_to_ptr.vmem [resolvable:$true] %s134_s29 }
  0x3a   :  { %s15439_s18 = scalar_lea.hbm %s17824_s9, 2048 }
  0x3b   :  { %p15440_p10 = scmp.ne.s32.totalorder %s17824_s9, %s15439_s18  ;;  %p15443_p11 = scmp.lt.u32.totalorder %s15439_s18, %s17824_s9 }
  0x3d   :  { %p15445_p12 = pnand %p15443_p11, %p15440_p10 }
  0x3f   :  { %15448 = shalt.err (!%p15445_p12)
}
  0x40   :  { %s15449_s7 = scalar_lea.vmem %s113_s27, 2048  ;;  %p15454_p0 = scmp.lt.s32.totalorder %s113_s27, %s113_s27 }
  0x41   :  { %p15450_p13 = scmp.ne.s32.totalorder %s113_s27, %s15449_s7  ;;  %p15455_p1 = scmp.lt.s32.totalorder %s15449_s7, %s15449_s7 }
  0x43   :  { %p15456_p2 = por %p15455_p1, %p15454_p0 }
  0x45   :  { %p15457_p3 = pnand %p15456_p2, %p15450_p13 }
  0x47   :  { %15460 = shalt.err (!%p15457_p3)
}
  0x48   :  { %118 = dma.hbm_to_vmem [thread:$0]  %s17824_s9, 2048, %s113_s27, [#allocation14], %s15656_s5, %s15656_s5, %s15657_s21  }
  0x49   :  { %s15461_s19 = scalar_lea.hbm %s17826_s11, 2048 }
  0x4a   :  { %p15462_p4 = scmp.ne.s32.totalorder %s17826_s11, %s15461_s19  ;;  %p15465_p5 = scmp.lt.u32.totalorder %s15461_s19, %s17826_s11 }
  0x4c   :  { %p15467_p6 = pnand %p15465_p5, %p15462_p4 }
  0x4e   :  { %15470 = shalt.err (!%p15467_p6)
}
  0x4f   :  { %s15471_s20 = scalar_lea.vmem %s135_s29, 2048  ;;  %p15476_p8 = scmp.lt.s32.totalorder %s135_s29, %s135_s29 }
  0x50   :  { %p15472_p7 = scmp.ne.s32.totalorder %s135_s29, %s15471_s20  ;;  %p15477_p9 = scmp.lt.s32.totalorder %s15471_s20, %s15471_s20 }
  0x52   :  { %p15478_p10 = por %p15477_p9, %p15476_p8 }
  0x54   :  { %p15479_p11 = pnand %p15478_p10, %p15472_p7 }
  0x56   :  { %15482 = shalt.err (!%p15479_p11)
}
  0x57   :  { %140 = dma.hbm_to_vmem [thread:$0]  %s17826_s11, 2048, %s135_s29, [#allocation17], %s15656_s5, %s15656_s5, %s15657_s21  }
  0x58   :  { %s15660_s22 = smov [#allocation2]   ;;  %s15483_s30 = scalar_lea.hbm %s17816_s1, 131072 }
  0x59   :  { %s34_s23 = sshll.u32 %s15660_s22, 4  ;;  %p15484_p12 = scmp.ne.s32.totalorder %s17816_s1, %s15483_s30  ;;  %s35_s23 = int_to_ptr.vmem [resolvable:$true] %s34_s23 }
  0x5a   :  { %p15487_p13 = scmp.lt.u32.totalorder %s15483_s30, %s17816_s1 }
  0x5c   :  { %p15489_p0 = pnand %p15487_p13, %p15484_p12 }
  0x5e   :  { %15492 = shalt.err (!%p15489_p0)
}
  0x5f   :  { %s15493_s28 = scalar_lea.vmem %s35_s23, 131072  ;;  %p15498_p2 = scmp.lt.s32.totalorder %s35_s23, %s35_s23 }
  0x60   :  { %p15494_p1 = scmp.ne.s32.totalorder %s35_s23, %s15493_s28  ;;  %p15499_p3 = scmp.lt.s32.totalorder %s15493_s28, %s15493_s28 }
  0x62   :  { %p15500_p4 = por %p15499_p3, %p15498_p2 }
  0x64   :  { %p15501_p5 = pnand %p15500_p4, %p15494_p1 }
  0x66   :  { %15504 = shalt.err (!%p15501_p5)
}
  0x67   :  { %s15661_s11 = smov 1024   ;;  %s15662_s5 = smov 64  }
  0x68   :  { %40 = dma.hbm_to_vmem [thread:$0]  %s17816_s1, 131072, %s35_s23, [#allocation3], %s15661_s11, %s15661_s11, %s15662_s5  }
  0x69   :  { %s15663_s16 = smov [#allocation6]   ;;  %s15664_s18 = smov [#allocation9]  }
  0x6a   :  { %s59_s17 = sshll.u32 %s15663_s16, 4  ;;  %s81_s20 = sshll.u32 %s15664_s18, 4  ;;  %s60_s17 = int_to_ptr.vmem [resolvable:$true] %s59_s17  ;;  %s82_s20 = int_to_ptr.vmem [resolvable:$true] %s81_s20 }
  0x6b   :  { %s15505_s22 = scalar_lea.hbm %s17819_s4, 128 }
  0x6c   :  { %p15506_p6 = scmp.ne.s32.totalorder %s17819_s4, %s15505_s22  ;;  %p15509_p7 = scmp.lt.u32.totalorder %s15505_s22, %s17819_s4 }
  0x6e   :  { %p15511_p8 = pnand %p15509_p7, %p15506_p6 }
  0x70   :  { %15514 = shalt.err (!%p15511_p8)
}
  0x71   :  { %s15515_s1 = scalar_lea.vmem %s60_s17, 128  ;;  %p15520_p10 = scmp.lt.s32.totalorder %s60_s17, %s60_s17 }
  0x72   :  { %p15516_p9 = scmp.ne.s32.totalorder %s60_s17, %s15515_s1  ;;  %p15521_p11 = scmp.lt.s32.totalorder %s15515_s1, %s15515_s1 }
  0x74   :  { %p15522_p12 = por %p15521_p11, %p15520_p10 }
  0x76   :  { %p15523_p13 = pnand %p15522_p12, %p15516_p9 }
  0x78   :  { %15526 = shalt.err (!%p15523_p13)
}
  0x79   :  { %62 = dma.hbm_to_vmem [thread:$0]  %s17819_s4, 128, %s60_s17, [#allocation5]  }
  0x7a   :  { %s15527_s28 = scalar_lea.hbm %s17821_s6, 64 }
  0x7b   :  { %p15528_p0 = scmp.ne.s32.totalorder %s17821_s6, %s15527_s28  ;;  %p15531_p1 = scmp.lt.u32.totalorder %s15527_s28, %s17821_s6 }
  0x7d   :  { %p15533_p2 = pnand %p15531_p1, %p15528_p0 }
  0x7f   :  { %15536 = shalt.err (!%p15533_p2)
}
  0x80   :  { %s15537_s16 = scalar_lea.vmem %s82_s20, 64  ;;  %p15542_p4 = scmp.lt.s32.totalorder %s82_s20, %s82_s20 }
  0x81   :  { %p15538_p3 = scmp.ne.s32.totalorder %s82_s20, %s15537_s16  ;;  %p15543_p5 = scmp.lt.s32.totalorder %s15537_s16, %s15537_s16 }
  0x83   :  { %p15544_p6 = por %p15543_p5, %p15542_p4 }
  0x85   :  { %p15545_p7 = pnand %p15544_p6, %p15538_p3 }
  0x87   :  { %15548 = shalt.err (!%p15545_p7)
}
  0x88   :  { %84 = dma.hbm_to_vmem [thread:$0]  %s17821_s6, 64, %s82_s20, [#allocation8]  }
  0x89   :  { %s15665_s18 = smov [#allocation12]   ;;  %s15666_s27 = smov [#allocation15]  }
  0x8a   :  { %s103_s9 = sshll.u32 %s15665_s18, 4  ;;  %s125_s22 = sshll.u32 %s15666_s27, 4  ;;  %s104_s9 = int_to_ptr.vmem [resolvable:$true] %s103_s9  ;;  %s126_s22 = int_to_ptr.vmem [resolvable:$true] %s125_s22 }
  0x8b   :  { %s15549_s30 = scalar_lea.hbm %s17823_s8, 32 }
  0x8c   :  { %p15550_p8 = scmp.ne.s32.totalorder %s17823_s8, %s15549_s30  ;;  %p15553_p9 = scmp.lt.u32.totalorder %s15549_s30, %s17823_s8 }
  0x8e   :  { %p15555_p10 = pnand %p15553_p9, %p15550_p8 }
  0x90   :  { %15558 = shalt.err (!%p15555_p10)
}
  0x91   :  { %s15559_s6 = scalar_lea.vmem %s104_s9, 32  ;;  %p15564_p12 = scmp.lt.s32.totalorder %s104_s9, %s104_s9 }
  0x92   :  { %p15560_p11 = scmp.ne.s32.totalorder %s104_s9, %s15559_s6  ;;  %p15565_p13 = scmp.lt.s32.totalorder %s15559_s6, %s15559_s6 }
  0x94   :  { %p15566_p0 = por %p15565_p13, %p15564_p12 }
  0x96   :  { %p15567_p1 = pnand %p15566_p0, %p15560_p11 }
  0x98   :  { %15570 = shalt.err (!%p15567_p1)
}
  0x99   :  { %106 = dma.hbm_to_vmem [thread:$0]  %s17823_s8, 32, %s104_s9, [#allocation11]  }
  0x9a   :  { %s15571_s11 = scalar_lea.hbm %s17825_s10, 32 }
  0x9b   :  { %p15572_p2 = scmp.ne.s32.totalorder %s17825_s10, %s15571_s11  ;;  %p15575_p3 = scmp.lt.u32.totalorder %s15571_s11, %s17825_s10 }
  0x9d   :  { %p15577_p4 = pnand %p15575_p3, %p15572_p2 }
  0x9f   :  { %15580 = shalt.err (!%p15577_p4)
}
  0xa0   :  { %s15581_s4 = scalar_lea.vmem %s126_s22, 32  ;;  %p15586_p6 = scmp.lt.s32.totalorder %s126_s22, %s126_s22 }
  0xa1   :  { %p15582_p5 = scmp.ne.s32.totalorder %s126_s22, %s15581_s4  ;;  %p15587_p7 = scmp.lt.s32.totalorder %s15581_s4, %s15581_s4 }
  0xa3   :  { %p15588_p8 = por %p15587_p7, %p15586_p6 }
  0xa5   :  { %p15589_p9 = pnand %p15588_p8, %p15582_p5 }
  0xa7   :  { %15592 = shalt.err (!%p15589_p9)
}
  0xa8   :  { %128 = dma.hbm_to_vmem [thread:$0]  %s17825_s10, 32, %s126_s22, [#allocation14]  }
  0xa9   :  { %s15667_s18 = smov [#allocation18]   ;;  %s15668_s27 = smov [#allocation19]  }
  0xaa   :  { %s147_s9 = sshll.u32 %s15667_s18, 4  ;;  %s159_s24 = sshll.u32 %s15668_s27, 4  ;;  %s148_s9 = int_to_ptr.vmem [resolvable:$true] %s147_s9  ;;  %s160_s24 = int_to_ptr.vmem [resolvable:$true] %s159_s24 }
  0xab   :  { %s15593_s25 = scalar_lea.hbm %s17827_s12, 32 }
  0xac   :  { %p15594_p10 = scmp.ne.s32.totalorder %s17827_s12, %s15593_s25  ;;  %p15597_p11 = scmp.lt.u32.totalorder %s15593_s25, %s17827_s12 }
  0xae   :  { %p15599_p12 = pnand %p15597_p11, %p15594_p10 }
  0xb0   :  { %15602 = shalt.err (!%p15599_p12)
}
  0xb1   :  { %s15603_s10 = scalar_lea.vmem %s148_s9, 32  ;;  %p15608_p0 = scmp.lt.s32.totalorder %s148_s9, %s148_s9 }
  0xb2   :  { %p15604_p13 = scmp.ne.s32.totalorder %s148_s9, %s15603_s10  ;;  %p15609_p1 = scmp.lt.s32.totalorder %s15603_s10, %s15603_s10 }
  0xb4   :  { %p15610_p2 = por %p15609_p1, %p15608_p0 }
  0xb6   :  { %p15611_p3 = pnand %p15610_p2, %p15604_p13 }
  0xb8   :  { %15614 = shalt.err (!%p15611_p3)
}
  0xb9   :  { %150 = dma.hbm_to_vmem [thread:$0]  %s17827_s12, 32, %s148_s9, [#allocation17]  }
  0xba   :  { %s15615_s28 = scalar_lea.hbm %s17829_s14, 16 }
  0xbb   :  { %p15616_p4 = scmp.ne.s32.totalorder %s17829_s14, %s15615_s28  ;;  %p15619_p5 = scmp.lt.u32.totalorder %s15615_s28, %s17829_s14 }
  0xbd   :  { %p15621_p6 = pnand %p15619_p5, %p15616_p4 }
  0xbf   :  { %15624 = shalt.err (!%p15621_p6)
}
  0xc0   :  { %s15625_s16 = scalar_lea.vmem %s160_s24, 16  ;;  %s15629_s4 = scalar_lea.vmem %s160_s24, 32 }
  0xc1   :  { %p15626_p7 = scmp.ne.s32.totalorder %s160_s24, %s15625_s16  ;;  %p15630_p8 = scmp.lt.s32.totalorder %s160_s24, %s160_s24 }
  0xc2   :  { %p15631_p9 = scmp.lt.s32.totalorder %s15629_s4, %s15625_s16 }
  0xc4   :  { %p15632_p10 = por %p15631_p9, %p15630_p8 }
  0xc6   :  { %p15633_p11 = pnand %p15632_p10, %p15626_p7 }
  0xc8   :  { %15636 = shalt.err (!%p15633_p11)
}
  0xc9   :  { %162 = dma.hbm_to_vmem [thread:$0]  %s17829_s14, 16, %s160_s24, [#allocation20]  }
  0xca   :  { %15637 = dma.done.wait [#allocation3], 131072  }
  0xcb   :  { %15638 = vsyncadd [#allocation3], 4294836224 }
  0xcc   :  { %15639 = dma.done.wait [#allocation5], 384  }
  0xcd   :  { %15640 = vsyncadd [#allocation5], 4294966912 }
  0xce   :  { %15641 = dma.done.wait [#allocation8], 16448  }
  0xcf   :  { %15642 = vsyncadd [#allocation8], 4294950848 }
  0xd0   :  { %15643 = dma.done.wait [#allocation11], 4128  }
  0xd1   :  { %15644 = vsyncadd [#allocation11], 4294963168 }
  0xd2   :  { %15645 = dma.done.wait [#allocation14], 2080  }
  0xd3   :  { %15646 = vsyncadd [#allocation14], 4294965216 }
  0xd4   :  { %15647 = dma.done.wait [#allocation17], 2080  }
  0xd5   :  { %15648 = vsyncadd [#allocation17], 4294965216 }
  0xd6   :  { %15649 = dma.done.wait [#allocation20], 16  }
  0xd7   :  { %15650 = vsyncadd [#allocation20], 4294967280  ;;  %v208_v0 = vld [vmem:[#allocation2] sm:$0xff]  ;;  %v209_v2 = vld [vmem:[#allocation2 + $0x8] sm:$0xff]  ;;  %vm15671_vm0 = vmmov 0   ;;  %vm13185_vm1 = vcmask 97280  }
  0xd8   :  { %v216_v1 = vld [vmem:[#allocation2 + $0x40] sm:$0xff]  ;;  %v217_v4 = vld [vmem:[#allocation2 + $0x48] sm:$0xff] }
  0xd9   :  { %v13199_v3 = vcombine.high %v208_v0, %v216_v1  ;;  %v13198_v5 = vcombine.low %v208_v0, %v216_v1  ;;  %v224_v6 = vld [vmem:[#allocation2 + $0x80] sm:$0xff]  ;;  %v13201_v8 = vcombine.high %v209_v2, %v217_v4  ;;  %v13200_v9 = vcombine.low %v209_v2, %v217_v4  ;;  %v225_v11 = vld [vmem:[#allocation2 + $0x88] sm:$0xff] }
  0xda   :  { %v232_v7 = vld [vmem:[#allocation2 + $0xc0] sm:$0xff]  ;;  %v233_v12 = vld [vmem:[#allocation2 + $0xc8] sm:$0xff] }
  0xdb   :  { %v13215_v10 = vcombine.high %v224_v6, %v232_v7  ;;  %v240_v13 = vld [vmem:[#allocation2 + $0x100] sm:$0xff]  ;;  %6444 = vmatprep.subr.bf16.mxu0 %v13199_v3  ;;  %v13217_v14 = vcombine.high %v225_v11, %v233_v12  ;;  %v241_v16 = vld [vmem:[#allocation2 + $0x108] sm:$0xff]  ;;  %6608 = vmatprep.subr.bf16.mxu1 %v13201_v8  ;;  %v13214_v18 = vcombine.low %v224_v6, %v232_v7 }
  0xdc   :  { %v248_v15 = vld [vmem:[#allocation2 + $0x140] sm:$0xff]  ;;  %v249_v17 = vld [vmem:[#allocation2 + $0x148] sm:$0xff]  ;;  %6445 = vmatpush1.bf16.msra.mxu0 %v13198_v5  ;;  %6609 = vmatpush1.bf16.msra.mxu1 %v13200_v9  ;;  %v13216_v19 = vcombine.low %v225_v11, %v233_v12 }
  0xdd   :  { %6446 = vmatprep.subr.bf16.mxu0 %v13215_v10  ;;  %v13231_v20 = vcombine.high %v240_v13, %v248_v15  ;;  %6610 = vmatprep.subr.bf16.mxu1 %v13217_v14  ;;  %v13233_v21 = vcombine.high %v241_v16, %v249_v17  ;;  %v256_v22 = vld [vmem:[#allocation2 + $0x180] sm:$0xff]  ;;  %v257_v24 = vld [vmem:[#allocation2 + $0x188] sm:$0xff]  ;;  %v13230_v26 = vcombine.low %v240_v13, %v248_v15 }
  0xde   :  { %v264_v23 = vld [vmem:[#allocation2 + $0x1c0] sm:$0xff]  ;;  %v265_v25 = vld [vmem:[#allocation2 + $0x1c8] sm:$0xff]  ;;  %v13232_v27 = vcombine.low %v241_v16, %v249_v17 }
  0xdf   :  { %v13247_v28 = vcombine.high %v256_v22, %v264_v23  ;;  %v13249_v29 = vcombine.high %v257_v24, %v265_v25  ;;  %v272_v30 = vld [vmem:[#allocation2 + $0x200] sm:$0xff]  ;;  %v273_v32 = vld [vmem:[#allocation2 + $0x208] sm:$0xff]  ;;  %v13246_v34 = vcombine.low %v256_v22, %v264_v23  ;;  %v13248_v35 = vcombine.low %v257_v24, %v265_v25 }
  0xe0   :  { %6447 = vmatpush1.bf16.msra.mxu0 %v13214_v18  ;;  %6611 = vmatpush1.bf16.msra.mxu1 %v13216_v19  ;;  %v280_v31 = vld [vmem:[#allocation2 + $0x240] sm:$0xff]  ;;  %v281_v33 = vld [vmem:[#allocation2 + $0x248] sm:$0xff] }
  0xe1   :  { %6448 = vmatprep.subr.bf16.mxu0 %v13231_v20  ;;  %6612 = vmatprep.subr.bf16.mxu1 %v13233_v21  ;;  %v13263_v36 = vcombine.high %v272_v30, %v280_v31  ;;  %v13265_v37 = vcombine.high %v273_v32, %v281_v33  ;;  %v288_v38 = vld [vmem:[#allocation2 + $0x280] sm:$0xff]  ;;  %v289_v40 = vld [vmem:[#allocation2 + $0x288] sm:$0xff]  ;;  %v13262_v42 = vcombine.low %v272_v30, %v280_v31 }
  0xe2   :  { %v296_v39 = vld [vmem:[#allocation2 + $0x2c0] sm:$0xff]  ;;  %v297_v41 = vld [vmem:[#allocation2 + $0x2c8] sm:$0xff]  ;;  %v13264_v43 = vcombine.low %v273_v32, %v281_v33 }
  0xe3   :  { %v13279_v44 = vcombine.high %v288_v38, %v296_v39  ;;  %v13281_v45 = vcombine.high %v289_v40, %v297_v41  ;;  %v304_v46 = vld [vmem:[#allocation2 + $0x300] sm:$0xff]  ;;  %v305_v48 = vld [vmem:[#allocation2 + $0x308] sm:$0xff]  ;;  %v13278_v50 = vcombine.low %v288_v38, %v296_v39  ;;  %v13280_v51 = vcombine.low %v289_v40, %v297_v41 }
  0xe4   :  { %6449 = vmatpush1.bf16.msra.mxu0 %v13230_v26  ;;  %6613 = vmatpush1.bf16.msra.mxu1 %v13232_v27  ;;  %v312_v47 = vld [vmem:[#allocation2 + $0x340] sm:$0xff]  ;;  %v313_v49 = vld [vmem:[#allocation2 + $0x348] sm:$0xff] }
  0xe5   :  { %6450 = vmatprep.subr.bf16.mxu0 %v13247_v28  ;;  %6614 = vmatprep.subr.bf16.mxu1 %v13249_v29  ;;  %v13295_v52 = vcombine.high %v304_v46, %v312_v47  ;;  %v201_v53 = vld [vmem:[%s17815_s0 + $0x8] sm:$0xff]  ;;  %v13297_v54 = vcombine.high %v305_v48, %v313_v49  ;;  %v320_v55 = vld [vmem:[#allocation2 + $0x380] sm:$0xff]  ;;  %v13294_v60 = vcombine.low %v304_v46, %v312_v47 }
  0xe6   :  { %v328_v56 = vld [vmem:[#allocation2 + $0x3c0] sm:$0xff]  ;;  %v15915_v57 = vpack.c.bf16 %v201_v53, %v201_v53  ;;  %v321_v58 = vld [vmem:[#allocation2 + $0x388] sm:$0xff]  ;;  %v13296_v61 = vcombine.low %v305_v48, %v313_v49 }
  0xe7   :  { %v329_v59 = vld [vmem:[#allocation2 + $0x3c8] sm:$0xff]  ;;  %v13311_v62 = vcombine.high %v320_v55, %v328_v56  ;;  %v336_v0 = vld [vmem:[#allocation2 + $0x400] sm:$0xff]  ;;  %v13310_v4 = vcombine.low %v320_v55, %v328_v56 }
  0xe8   :  { %6451 = vmatpush1.bf16.msra.mxu0 %v13246_v34  ;;  %6615 = vmatpush1.bf16.msra.mxu1 %v13248_v35  ;;  %v13313_v63 = vcombine.high %v321_v58, %v329_v59  ;;  %v344_v1 = vld [vmem:[#allocation2 + $0x440] sm:$0xff]  ;;  %v337_v2 = vld [vmem:[#allocation2 + $0x408] sm:$0xff]  ;;  %v13312_v5 = vcombine.low %v321_v58, %v329_v59 }
  0xe9   :  { %6452 = vmatprep.subr.bf16.mxu0 %v13263_v36  ;;  %6616 = vmatprep.subr.bf16.mxu1 %v13265_v37  ;;  %v345_v3 = vld [vmem:[#allocation2 + $0x448] sm:$0xff]  ;;  %v13327_v6 = vcombine.high %v336_v0, %v344_v1  ;;  %v352_v8 = vld [vmem:[#allocation2 + $0x480] sm:$0xff]  ;;  %v13326_v12 = vcombine.low %v336_v0, %v344_v1 }
  0xea   :  { %6476 = vmatprep.mubr.bf16.mxu0 %v15915_v57  ;;  %6640 = vmatprep.mubr.bf16.mxu1 %v15915_v57  ;;  %v13329_v7 = vcombine.high %v337_v2, %v345_v3  ;;  %v360_v9 = vld [vmem:[#allocation2 + $0x4c0] sm:$0xff]  ;;  %v353_v10 = vld [vmem:[#allocation2 + $0x488] sm:$0xff]  ;;  %v13328_v13 = vcombine.low %v337_v2, %v345_v3 }
  0xeb   :  { %v361_v11 = vld [vmem:[#allocation2 + $0x4c8] sm:$0xff]  ;;  %v13343_v14 = vcombine.high %v352_v8, %v360_v9  ;;  %v368_v16 = vld [vmem:[#allocation2 + $0x500] sm:$0xff]  ;;  %v13342_v20 = vcombine.low %v352_v8, %v360_v9 }
  0xec   :  { %6453 = vmatpush1.bf16.msra.mxu0 %v13262_v42  ;;  %6617 = vmatpush1.bf16.msra.mxu1 %v13264_v43  ;;  %v13345_v15 = vcombine.high %v353_v10, %v361_v11  ;;  %v376_v17 = vld [vmem:[#allocation2 + $0x540] sm:$0xff]  ;;  %v369_v18 = vld [vmem:[#allocation2 + $0x508] sm:$0xff]  ;;  %v13344_v21 = vcombine.low %v353_v10, %v361_v11 }
  0xed   :  { %6454 = vmatprep.subr.bf16.mxu0 %v13279_v44  ;;  %6618 = vmatprep.subr.bf16.mxu1 %v13281_v45  ;;  %v377_v19 = vld [vmem:[#allocation2 + $0x548] sm:$0xff]  ;;  %v13359_v22 = vcombine.high %v368_v16, %v376_v17  ;;  %v384_v24 = vld [vmem:[#allocation2 + $0x580] sm:$0xff]  ;;  %v13358_v28 = vcombine.low %v368_v16, %v376_v17 }
  0xee   :  { %v13361_v23 = vcombine.high %v369_v18, %v377_v19  ;;  %v392_v25 = vld [vmem:[#allocation2 + $0x5c0] sm:$0xff]  ;;  %v385_v26 = vld [vmem:[#allocation2 + $0x588] sm:$0xff]  ;;  %v13360_v29 = vcombine.low %v369_v18, %v377_v19 }
  0xef   :  { %v393_v27 = vld [vmem:[#allocation2 + $0x5c8] sm:$0xff]  ;;  %v13375_v30 = vcombine.high %v384_v24, %v392_v25  ;;  %v400_v32 = vld [vmem:[#allocation2 + $0x600] sm:$0xff]  ;;  %v13374_v36 = vcombine.low %v384_v24, %v392_v25 }
  0xf0   :  { %6455 = vmatpush1.bf16.msra.mxu0 %v13278_v50  ;;  %6619 = vmatpush1.bf16.msra.mxu1 %v13280_v51  ;;  %v13377_v31 = vcombine.high %v385_v26, %v393_v27  ;;  %v408_v33 = vld [vmem:[#allocation2 + $0x640] sm:$0xff]  ;;  %v401_v34 = vld [vmem:[#allocation2 + $0x608] sm:$0xff]  ;;  %v13376_v37 = vcombine.low %v385_v26, %v393_v27 }
  0xf1   :  { %6456 = vmatprep.subr.bf16.mxu0 %v13295_v52  ;;  %6620 = vmatprep.subr.bf16.mxu1 %v13297_v54  ;;  %v409_v35 = vld [vmem:[#allocation2 + $0x648] sm:$0xff]  ;;  %v13391_v38 = vcombine.high %v400_v32, %v408_v33  ;;  %v416_v40 = vld [vmem:[#allocation2 + $0x680] sm:$0xff]  ;;  %v13390_v44 = vcombine.low %v400_v32, %v408_v33 }
  0xf2   :  { %v13393_v39 = vcombine.high %v401_v34, %v409_v35  ;;  %v424_v41 = vld [vmem:[#allocation2 + $0x6c0] sm:$0xff]  ;;  %v417_v42 = vld [vmem:[#allocation2 + $0x688] sm:$0xff]  ;;  %v13392_v45 = vcombine.low %v401_v34, %v409_v35 }
  0xf3   :  { %v425_v43 = vld [vmem:[#allocation2 + $0x6c8] sm:$0xff]  ;;  %v13407_v46 = vcombine.high %v416_v40, %v424_v41  ;;  %v432_v48 = vld [vmem:[#allocation2 + $0x700] sm:$0xff]  ;;  %v13406_v52 = vcombine.low %v416_v40, %v424_v41 }
  0xf4   :  { %6457 = vmatpush1.bf16.msra.mxu0 %v13294_v60  ;;  %6621 = vmatpush1.bf16.msra.mxu1 %v13296_v61  ;;  %v13409_v47 = vcombine.high %v417_v42, %v425_v43  ;;  %v440_v49 = vld [vmem:[#allocation2 + $0x740] sm:$0xff]  ;;  %v433_v50 = vld [vmem:[#allocation2 + $0x708] sm:$0xff]  ;;  %v13408_v53 = vcombine.low %v417_v42, %v425_v43 }
  0xf5   :  { %6458 = vmatprep.subr.bf16.mxu0 %v13311_v62  ;;  %6622 = vmatprep.subr.bf16.mxu1 %v13313_v63  ;;  %v441_v51 = vld [vmem:[#allocation2 + $0x748] sm:$0xff]  ;;  %v13423_v54 = vcombine.high %v432_v48, %v440_v49  ;;  %v448_v56 = vld [vmem:[#allocation2 + $0x780] sm:$0xff]  ;;  %v13422_v61 = vcombine.low %v432_v48, %v440_v49 }
  0xf6   :  { %v13425_v55 = vcombine.high %v433_v50, %v441_v51  ;;  %v456_v58 = vld [vmem:[#allocation2 + $0x7c0] sm:$0xff]  ;;  %v449_v59 = vld [vmem:[#allocation2 + $0x788] sm:$0xff]  ;;  %v13424_v62 = vcombine.low %v433_v50, %v441_v51 }
  0xf7   :  { %v457_v60 = vld [vmem:[#allocation2 + $0x7c8] sm:$0xff]  ;;  %v13439_v63 = vcombine.high %v448_v56, %v456_v58  ;;  %v464_v1 = vld [vmem:[#allocation2 + $0x800] sm:$0xff] }
  0xf8   :  { %6459 = vmatpush1.bf16.msra.mxu0 %v13310_v4  ;;  %6623 = vmatpush1.bf16.msra.mxu1 %v13312_v5  ;;  %v13441_v0 = vcombine.high %v449_v59, %v457_v60  ;;  %v472_v2 = vld [vmem:[#allocation2 + $0x840] sm:$0xff]  ;;  %v465_v3 = vld [vmem:[#allocation2 + $0x808] sm:$0xff]  ;;  %v13438_v5 = vcombine.low %v448_v56, %v456_v58 }
  0xf9   :  { %6460 = vmatprep.subr.bf16.mxu0 %v13327_v6  ;;  %6624 = vmatprep.subr.bf16.mxu1 %v13329_v7  ;;  %v473_v4 = vld [vmem:[#allocation2 + $0x848] sm:$0xff]  ;;  %v200_v6 = vld [vmem:[%s17815_s0] sm:$0xff]  ;;  %v13440_v7 = vcombine.low %v449_v59, %v457_v60  ;;  %v13455_v8 = vcombine.high %v464_v1, %v472_v2  ;;  %v13454_v16 = vcombine.low %v464_v1, %v472_v2 }
  0xfa   :  { %v13457_v9 = vcombine.high %v465_v3, %v473_v4  ;;  %v480_v10 = vld [vmem:[#allocation2 + $0x880] sm:$0xff]  ;;  %v13456_v17 = vcombine.low %v465_v3, %v473_v4  ;;  %v505_v24 = vld [vmem:[#allocation2 + $0x948] sm:$0xff] }
  0xfb   :  { %v488_v11 = vld [vmem:[#allocation2 + $0x8c0] sm:$0xff]  ;;  %v521_v32 = vld [vmem:[#allocation2 + $0x9c8] sm:$0xff] }
  0xfc   :  { %6461 = vmatpush1.bf16.msra.mxu0 %v13326_v12  ;;  %6625 = vmatpush1.bf16.msra.mxu1 %v13328_v13  ;;  %v15922_v12 = vpack.c.bf16 %v200_v6, %v200_v6  ;;  %v481_v13 = vld [vmem:[#allocation2 + $0x888] sm:$0xff]  ;;  %v13471_v18 = vcombine.high %v480_v10, %v488_v11  ;;  %v13470_v25 = vcombine.low %v480_v10, %v488_v11  ;;  %v600_v6 = vld [vmem:[#allocation2 + $0xc40] sm:$0xff] }
  0xfd   :  { %6462 = vmatprep.subr.bf16.mxu0 %v13343_v14  ;;  %6626 = vmatprep.subr.bf16.mxu1 %v13345_v15  ;;  %v489_v14 = vld [vmem:[#allocation2 + $0x8c8] sm:$0xff]  ;;  %v203_v15 = vld [vmem:[%s17815_s0 + $0x18] sm:$0xff] }
  0xfe   :  { %v13473_v19 = vcombine.high %v481_v13, %v489_v14  ;;  %v13472_v26 = vcombine.low %v481_v13, %v489_v14  ;;  %v537_v40 = vld [vmem:[#allocation2 + $0xa48] sm:$0xff]  ;;  %v608_v14 = vld [vmem:[#allocation2 + $0xc80] sm:$0xff] }
  0xff   :  { %v553_v48 = vld [vmem:[#allocation2 + $0xac8] sm:$0xff] }
 0x100   :  { %6463 = vmatpush1.bf16.msra.mxu0 %v13342_v20  ;;  %6627 = vmatpush1.bf16.msra.mxu1 %v13344_v21  ;;  %v496_v20 = vld [vmem:[#allocation2 + $0x900] sm:$0xff]  ;;  %v569_v56 = vld [vmem:[#allocation2 + $0xb48] sm:$0xff] }
 0x101   :  { %6464 = vmatprep.subr.bf16.mxu0 %v13359_v22  ;;  %6628 = vmatprep.subr.bf16.mxu1 %v13361_v23  ;;  %v504_v21 = vld [vmem:[#allocation2 + $0x940] sm:$0xff]  ;;  %v497_v22 = vld [vmem:[#allocation2 + $0x908] sm:$0xff]  ;;  %v15927_v23 = vpack.c.bf16 %v203_v15, %v203_v15 }
 0x102   :  { %v13487_v27 = vcombine.high %v496_v20, %v504_v21  ;;  %v13486_v33 = vcombine.low %v496_v20, %v504_v21  ;;  %v13488_v34 = vcombine.low %v497_v22, %v505_v24  ;;  %v585_v1 = vld [vmem:[#allocation2 + $0xbc8] sm:$0xff]  ;;  %v616_v15 = vld [vmem:[#allocation2 + $0xcc0] sm:$0xff] }
 0x103   :  { %v13599_v21 = vcombine.high %v608_v14, %v616_v15 }
 0x104   :  { %6465 = vmatpush1.bf16.msra.mxu0 %v13358_v28  ;;  %6629 = vmatpush1.bf16.msra.mxu1 %v13360_v29  ;;  %v512_v28 = vld [vmem:[#allocation2 + $0x980] sm:$0xff] }
 0x105   :  { %6466 = vmatprep.subr.bf16.mxu0 %v13375_v30  ;;  %6630 = vmatprep.subr.bf16.mxu1 %v13377_v31  ;;  %v520_v29 = vld [vmem:[#allocation2 + $0x9c0] sm:$0xff]  ;;  %v513_v30 = vld [vmem:[#allocation2 + $0x988] sm:$0xff]  ;;  %v13489_v31 = vcombine.high %v497_v22, %v505_v24 }
 0x106   :  { %v13503_v35 = vcombine.high %v512_v28, %v520_v29  ;;  %v13502_v41 = vcombine.low %v512_v28, %v520_v29  ;;  %v13504_v42 = vcombine.low %v513_v30, %v521_v32  ;;  %v624_v22 = vld [vmem:[#allocation2 + $0xd00] sm:$0xff]  ;;  %v13598_v28 = vcombine.low %v608_v14, %v616_v15  ;;  %v202_v14 = vld [vmem:[%s17815_s0 + $0x10] sm:$0xff] }
 0x107   :  { %v632_v24 = vld [vmem:[#allocation2 + $0xd40] sm:$0xff] }
 0x108   :  { %6467 = vmatpush1.bf16.msra.mxu0 %v13374_v36  ;;  %6631 = vmatpush1.bf16.msra.mxu1 %v13376_v37  ;;  %v528_v36 = vld [vmem:[#allocation2 + $0xa00] sm:$0xff] }
 0x109   :  { %6468 = vmatprep.subr.bf16.mxu0 %v13391_v38  ;;  %6632 = vmatprep.subr.bf16.mxu1 %v13393_v39  ;;  %v536_v37 = vld [vmem:[#allocation2 + $0xa40] sm:$0xff]  ;;  %v529_v38 = vld [vmem:[#allocation2 + $0xa08] sm:$0xff]  ;;  %v13505_v39 = vcombine.high %v513_v30, %v521_v32  ;;  %v13615_v30 = vcombine.high %v624_v22, %v632_v24 }
 0x10a   :  { %v13519_v43 = vcombine.high %v528_v36, %v536_v37  ;;  %v13518_v49 = vcombine.low %v528_v36, %v536_v37  ;;  %v13520_v50 = vcombine.low %v529_v38, %v537_v40  ;;  %v648_v32 = vld [vmem:[#allocation2 + $0xdc0] sm:$0xff]  ;;  %v13614_v36 = vcombine.low %v624_v22, %v632_v24  ;;  %v205_v24 = vld [vmem:[%s17815_s0 + $0x28] sm:$0xff] }
 0x10c   :  { %6469 = vmatpush1.bf16.msra.mxu0 %v13390_v44  ;;  %6633 = vmatpush1.bf16.msra.mxu1 %v13392_v45  ;;  %v544_v44 = vld [vmem:[#allocation2 + $0xa80] sm:$0xff] }
 0x10d   :  { %6470 = vmatprep.subr.bf16.mxu0 %v13407_v46  ;;  %6634 = vmatprep.subr.bf16.mxu1 %v13409_v47  ;;  %v552_v45 = vld [vmem:[#allocation2 + $0xac0] sm:$0xff]  ;;  %v545_v46 = vld [vmem:[#allocation2 + $0xa88] sm:$0xff]  ;;  %v13521_v47 = vcombine.high %v529_v38, %v537_v40 }
 0x10e   :  { %v13535_v51 = vcombine.high %v544_v44, %v552_v45  ;;  %v13534_v58 = vcombine.low %v544_v44, %v552_v45  ;;  %v13536_v59 = vcombine.low %v545_v46, %v553_v48  ;;  %v664_v40 = vld [vmem:[#allocation2 + $0xe40] sm:$0xff] }
 0x110   :  { %6471 = vmatpush1.bf16.msra.mxu0 %v13406_v52  ;;  %6635 = vmatpush1.bf16.msra.mxu1 %v13408_v53  ;;  %v560_v52 = vld [vmem:[#allocation2 + $0xb00] sm:$0xff] }
 0x111   :  { %6472 = vmatprep.subr.bf16.mxu0 %v13423_v54  ;;  %6636 = vmatprep.subr.bf16.mxu1 %v13425_v55  ;;  %v568_v53 = vld [vmem:[#allocation2 + $0xb40] sm:$0xff]  ;;  %v561_v54 = vld [vmem:[#allocation2 + $0xb08] sm:$0xff]  ;;  %v13537_v55 = vcombine.high %v545_v46, %v553_v48 }
 0x112   :  { %v13551_v60 = vcombine.high %v560_v52, %v568_v53  ;;  %v13550_v2 = vcombine.low %v560_v52, %v568_v53  ;;  %v13552_v3 = vcombine.low %v561_v54, %v569_v56  ;;  %v680_v48 = vld [vmem:[#allocation2 + $0xec0] sm:$0xff] }
 0x114   :  { %6473 = vmatpush1.bf16.msra.mxu0 %v13422_v61  ;;  %6637 = vmatpush1.bf16.msra.mxu1 %v13424_v62  ;;  %v576_v61 = vld [vmem:[#allocation2 + $0xb80] sm:$0xff] }
 0x115   :  { %6474 = vmatprep.subr.bf16.mxu0 %v13439_v63  ;;  %6638 = vmatprep.subr.bf16.mxu1 %v13441_v0  ;;  %v584_v62 = vld [vmem:[#allocation2 + $0xbc0] sm:$0xff]  ;;  %v577_v63 = vld [vmem:[#allocation2 + $0xb88] sm:$0xff]  ;;  %v13553_v0 = vcombine.high %v561_v54, %v569_v56 }
 0x116   :  { %v13567_v4 = vcombine.high %v576_v61, %v584_v62  ;;  %v13566_v10 = vcombine.low %v576_v61, %v584_v62  ;;  %v13568_v11 = vcombine.low %v577_v63, %v585_v1  ;;  %v696_v56 = vld [vmem:[#allocation2 + $0xf40] sm:$0xff] }
 0x118   :  { %6475 = vmatpush1.bf16.msra.mxu0 %v13438_v5  ;;  %6639 = vmatpush1.bf16.msra.mxu1 %v13440_v7  ;;  %v592_v5 = vld [vmem:[#allocation2 + $0xc00] sm:$0xff]  ;;  %v593_v7 = vld [vmem:[#allocation2 + $0xc08] sm:$0xff] }
 0x119   :  { %6485 = vmatprep.subr.bf16.mxu0 %v13455_v8  ;;  %6649 = vmatprep.subr.bf16.mxu1 %v13457_v9  ;;  %v13569_v8 = vcombine.high %v577_v63, %v585_v1  ;;  %v601_v9 = vld [vmem:[#allocation2 + $0xc48] sm:$0xff]  ;;  %v13583_v13 = vcombine.high %v592_v5, %v600_v6  ;;  %v712_v1 = vld [vmem:[#allocation2 + $0xfc0] sm:$0xff] }
 0x11a   :  { %v13584_v20 = vcombine.low %v593_v7, %v601_v9 }
 0x11b   :  { %6477 = vmatmul.mubr.bf16.vlgmr.msra.gmra.mrb[0].mxu0 %v15922_v12  ;;  %6641 = vmatmul.mubr.bf16.vlgmr.msra.gmra.mrb[0].mxu1 %v15922_v12 }
 0x11c   :  { %6486 = vmatpush1.bf16.msra.mxu0 %v13454_v16  ;;  %6650 = vmatpush1.bf16.msra.mxu1 %v13456_v17  ;;  %v609_v16 = vld [vmem:[#allocation2 + $0xc88] sm:$0xff]  ;;  %v13585_v17 = vcombine.high %v593_v7, %v601_v9  ;;  %v728_v9 = vld [vmem:[#allocation2 + $0x1040] sm:$0xff] }
 0x11d   :  { %6487 = vmatprep.subr.bf16.mxu0 %v13471_v18  ;;  %6651 = vmatprep.subr.bf16.mxu1 %v13473_v19  ;;  %v617_v18 = vld [vmem:[#allocation2 + $0xcc8] sm:$0xff]  ;;  %v13582_v19 = vcombine.low %v592_v5, %v600_v6  ;;  %v720_v6 = vld [vmem:[#allocation2 + $0x1000] sm:$0xff] }
 0x11e   :  { %6517 = vmatprep.mubr.bf16.mxu0 %v15927_v23  ;;  %6681 = vmatprep.mubr.bf16.mxu1 %v15927_v23  ;;  %v13600_v29 = vcombine.low %v609_v16, %v617_v18 }
 0x120   :  { %6488 = vmatpush1.bf16.msra.mxu0 %v13470_v25  ;;  %6652 = vmatpush1.bf16.msra.mxu1 %v13472_v26  ;;  %v625_v25 = vld [vmem:[#allocation2 + $0xd08] sm:$0xff]  ;;  %v13601_v26 = vcombine.high %v609_v16, %v617_v18  ;;  %v736_v16 = vld [vmem:[#allocation2 + $0x1080] sm:$0xff]  ;;  %v13711_v18 = vcombine.high %v720_v6, %v728_v9 }
 0x121   :  { %6489 = vmatprep.subr.bf16.mxu0 %v13487_v27  ;;  %6653 = vmatprep.subr.bf16.mxu1 %v13489_v31  ;;  %v633_v27 = vld [vmem:[#allocation2 + $0xd48] sm:$0xff]  ;;  %v640_v31 = vld [vmem:[#allocation2 + $0xd80] sm:$0xff] }
 0x122   :  { %v13616_v37 = vcombine.low %v625_v25, %v633_v27  ;;  %v13631_v38 = vcombine.high %v640_v31, %v648_v32  ;;  %v13630_v44 = vcombine.low %v640_v31, %v648_v32  ;;  %v753_v32 = vld [vmem:[#allocation2 + $0x1108] sm:$0xff] }
 0x124   :  { %6490 = vmatpush1.bf16.msra.mxu0 %v13486_v33  ;;  %6654 = vmatpush1.bf16.msra.mxu1 %v13488_v34  ;;  %v641_v33 = vld [vmem:[#allocation2 + $0xd88] sm:$0xff]  ;;  %v13617_v34 = vcombine.high %v625_v25, %v633_v27  ;;  %v15939_v25 = vpack.c.bf16 %v202_v14, %v202_v14 }
 0x125   :  { %6491 = vmatprep.subr.bf16.mxu0 %v13503_v35  ;;  %6655 = vmatprep.subr.bf16.mxu1 %v13505_v39  ;;  %v649_v35 = vld [vmem:[#allocation2 + $0xdc8] sm:$0xff]  ;;  %v656_v39 = vld [vmem:[#allocation2 + $0xe00] sm:$0xff] }
 0x126   :  { %v13632_v45 = vcombine.low %v641_v33, %v649_v35  ;;  %v13647_v46 = vcombine.high %v656_v39, %v664_v40  ;;  %v13646_v52 = vcombine.low %v656_v39, %v664_v40  ;;  %v776_v39 = vld [vmem:[#allocation2 + $0x11c0] sm:$0xff]  ;;  %v769_v40 = vld [vmem:[#allocation2 + $0x1188] sm:$0xff] }
 0x128   :  { %6492 = vmatpush1.bf16.msra.mxu0 %v13502_v41  ;;  %6656 = vmatpush1.bf16.msra.mxu1 %v13504_v42  ;;  %v657_v41 = vld [vmem:[#allocation2 + $0xe08] sm:$0xff]  ;;  %v13633_v42 = vcombine.high %v641_v33, %v649_v35 }
 0x129   :  { %6493 = vmatprep.subr.bf16.mxu0 %v13519_v43  ;;  %6657 = vmatprep.subr.bf16.mxu1 %v13521_v47  ;;  %v665_v43 = vld [vmem:[#allocation2 + $0xe48] sm:$0xff]  ;;  %v672_v47 = vld [vmem:[#allocation2 + $0xe80] sm:$0xff] }
 0x12a   :  { %v13648_v53 = vcombine.low %v657_v41, %v665_v43  ;;  %v13663_v54 = vcombine.high %v672_v47, %v680_v48  ;;  %v13662_v61 = vcombine.low %v672_v47, %v680_v48  ;;  %v761_v33 = vld [vmem:[#allocation2 + $0x1148] sm:$0xff]  ;;  %v792_v47 = vld [vmem:[#allocation2 + $0x1240] sm:$0xff] }
 0x12b   :  { %v785_v48 = vld [vmem:[#allocation2 + $0x1208] sm:$0xff] }
 0x12c   :  { %6494 = vmatpush1.bf16.msra.mxu0 %v13518_v49  ;;  %6658 = vmatpush1.bf16.msra.mxu1 %v13520_v50  ;;  %v673_v49 = vld [vmem:[#allocation2 + $0xe88] sm:$0xff]  ;;  %v13649_v50 = vcombine.high %v657_v41, %v665_v43  ;;  %v13745_v41 = vcombine.high %v753_v32, %v761_v33 }
 0x12d   :  { %6495 = vmatprep.subr.bf16.mxu0 %v13535_v51  ;;  %6659 = vmatprep.subr.bf16.mxu1 %v13537_v55  ;;  %v681_v51 = vld [vmem:[#allocation2 + $0xec8] sm:$0xff]  ;;  %v688_v55 = vld [vmem:[#allocation2 + $0xf00] sm:$0xff] }
 0x12e   :  { %v13664_v62 = vcombine.low %v673_v49, %v681_v51  ;;  %v13679_v63 = vcombine.high %v688_v55, %v696_v56  ;;  %v13678_v5 = vcombine.low %v688_v55, %v696_v56  ;;  %v808_v55 = vld [vmem:[#allocation2 + $0x12c0] sm:$0xff]  ;;  %v801_v56 = vld [vmem:[#allocation2 + $0x1288] sm:$0xff] }
 0x130   :  { %6496 = vmatpush1.bf16.msra.mxu0 %v13534_v58  ;;  %6660 = vmatpush1.bf16.msra.mxu1 %v13536_v59  ;;  %v689_v58 = vld [vmem:[#allocation2 + $0xf08] sm:$0xff]  ;;  %v13665_v59 = vcombine.high %v673_v49, %v681_v51 }
 0x131   :  { %6497 = vmatprep.subr.bf16.mxu0 %v13551_v60  ;;  %6661 = vmatprep.subr.bf16.mxu1 %v13553_v0  ;;  %v697_v60 = vld [vmem:[#allocation2 + $0xf48] sm:$0xff]  ;;  %v704_v0 = vld [vmem:[#allocation2 + $0xf80] sm:$0xff] }
 0x132   :  { %v13680_v7 = vcombine.low %v689_v58, %v697_v60  ;;  %v13694_v15 = vcombine.low %v704_v0, %v712_v1 }
 0x134   :  { %6498 = vmatpush1.bf16.msra.mxu0 %v13550_v2  ;;  %6662 = vmatpush1.bf16.msra.mxu1 %v13552_v3  ;;  %v705_v2 = vld [vmem:[#allocation2 + $0xf88] sm:$0xff]  ;;  %v13681_v3 = vcombine.high %v689_v58, %v697_v60 }
 0x135   :  { %6499 = vmatprep.subr.bf16.mxu0 %v13567_v4  ;;  %6663 = vmatprep.subr.bf16.mxu1 %v13569_v8  ;;  %v713_v4 = vld [vmem:[#allocation2 + $0xfc8] sm:$0xff]  ;;  %v13695_v8 = vcombine.high %v704_v0, %v712_v1  ;;  %v824_v0 = vld [vmem:[#allocation2 + $0x1340] sm:$0xff] }
 0x136   :  { %v817_v1 = vld [vmem:[#allocation2 + $0x1308] sm:$0xff] }
 0x138   :  { %6500 = vmatpush1.bf16.msra.mxu0 %v13566_v10  ;;  %6664 = vmatpush1.bf16.msra.mxu1 %v13568_v11  ;;  %v721_v10 = vld [vmem:[#allocation2 + $0x1008] sm:$0xff] }
 0x139   :  { %6501 = vmatprep.subr.bf16.mxu0 %v13583_v13  ;;  %6665 = vmatprep.subr.bf16.mxu1 %v13585_v17  ;;  %v729_v11 = vld [vmem:[#allocation2 + $0x1048] sm:$0xff]  ;;  %v13697_v13 = vcombine.high %v705_v2, %v713_v4  ;;  %v13696_v17 = vcombine.low %v705_v2, %v713_v4 }
 0x13a   :  { %v13713_v22 = vcombine.high %v721_v10, %v729_v11  ;;  %v13712_v27 = vcombine.low %v721_v10, %v729_v11  ;;  %v841_v11 = vld [vmem:[#allocation2 + $0x13c8] sm:$0xff] }
 0x13c   :  { %6502 = vmatpush1.bf16.msra.mxu0 %v13582_v19  ;;  %6666 = vmatpush1.bf16.msra.mxu1 %v13584_v20  ;;  %v744_v19 = vld [vmem:[#allocation2 + $0x10c0] sm:$0xff]  ;;  %v737_v20 = vld [vmem:[#allocation2 + $0x1088] sm:$0xff] }
 0x13d   :  { %6503 = vmatprep.subr.bf16.mxu0 %v13599_v21  ;;  %6667 = vmatprep.subr.bf16.mxu1 %v13601_v26  ;;  %v745_v21 = vld [vmem:[#allocation2 + $0x10c8] sm:$0xff]  ;;  %v13710_v26 = vcombine.low %v720_v6, %v728_v9  ;;  %v13726_v35 = vcombine.low %v736_v16, %v744_v19 }
 0x13e   :  { %v13729_v31 = vcombine.high %v737_v20, %v745_v21  ;;  %v833_v9 = vld [vmem:[#allocation2 + $0x1388] sm:$0xff] }
 0x140   :  { %6504 = vmatpush1.bf16.msra.mxu0 %v13598_v28  ;;  %6668 = vmatpush1.bf16.msra.mxu1 %v13600_v29  ;;  %v13727_v28 = vcombine.high %v736_v16, %v744_v19  ;;  %v752_v29 = vld [vmem:[#allocation2 + $0x1100] sm:$0xff]  ;;  %v13825_v19 = vcombine.high %v833_v9, %v841_v11 }
 0x141   :  { %6505 = vmatprep.subr.bf16.mxu0 %v13615_v30  ;;  %6669 = vmatprep.subr.bf16.mxu1 %v13617_v34  ;;  %v760_v30 = vld [vmem:[#allocation2 + $0x1140] sm:$0xff]  ;;  %v15941_v34 = vpack.c.bf16 %v205_v24, %v205_v24 }
 0x142   :  { %v13742_v43 = vcombine.low %v752_v29, %v760_v30  ;;  %v848_v16 = vld [vmem:[#allocation2 + $0x1400] sm:$0xff] }
 0x144   :  { %6506 = vmatpush1.bf16.msra.mxu0 %v13614_v36  ;;  %6670 = vmatpush1.bf16.msra.mxu1 %v13616_v37  ;;  %v13728_v36 = vcombine.low %v737_v20, %v745_v21  ;;  %v13743_v37 = vcombine.high %v752_v29, %v760_v30  ;;  %v857_v20 = vld [vmem:[#allocation2 + $0x1448] sm:$0xff] }
 0x145   :  { %6507 = vmatprep.subr.bf16.mxu0 %v13631_v38  ;;  %6671 = vmatprep.subr.bf16.mxu1 %v13633_v42  ;;  %v768_v38 = vld [vmem:[#allocation2 + $0x1180] sm:$0xff]  ;;  %v777_v42 = vld [vmem:[#allocation2 + $0x11c8] sm:$0xff] }
 0x146   :  { %v13761_v49 = vcombine.high %v769_v40, %v777_v42  ;;  %v13758_v51 = vcombine.low %v768_v38, %v776_v39  ;;  %v873_v30 = vld [vmem:[#allocation2 + $0x14c8] sm:$0xff] }
 0x148   :  { %6508 = vmatpush1.bf16.msra.mxu0 %v13630_v44  ;;  %6672 = vmatpush1.bf16.msra.mxu1 %v13632_v45  ;;  %v13744_v44 = vcombine.low %v753_v32, %v761_v33  ;;  %v13759_v45 = vcombine.high %v768_v38, %v776_v39  ;;  %v889_v39 = vld [vmem:[#allocation2 + $0x1548] sm:$0xff] }
 0x149   :  { %6509 = vmatprep.subr.bf16.mxu0 %v13647_v46  ;;  %6673 = vmatprep.subr.bf16.mxu1 %v13649_v50  ;;  %v784_v46 = vld [vmem:[#allocation2 + $0x1200] sm:$0xff]  ;;  %v793_v50 = vld [vmem:[#allocation2 + $0x1248] sm:$0xff] }
 0x14a   :  { %v13777_v58 = vcombine.high %v785_v48, %v793_v50  ;;  %v13774_v60 = vcombine.low %v784_v46, %v792_v47 }
 0x14c   :  { %6510 = vmatpush1.bf16.msra.mxu0 %v13646_v52  ;;  %6674 = vmatpush1.bf16.msra.mxu1 %v13648_v53  ;;  %v13760_v52 = vcombine.low %v769_v40, %v777_v42  ;;  %v13775_v53 = vcombine.high %v784_v46, %v792_v47  ;;  %v905_v47 = vld [vmem:[#allocation2 + $0x15c8] sm:$0xff] }
 0x14d   :  { %6511 = vmatprep.subr.bf16.mxu0 %v13663_v54  ;;  %6675 = vmatprep.subr.bf16.mxu1 %v13665_v59  ;;  %v800_v54 = vld [vmem:[#allocation2 + $0x1280] sm:$0xff]  ;;  %v809_v59 = vld [vmem:[#allocation2 + $0x12c8] sm:$0xff] }
 0x14e   :  { %v13793_v2 = vcombine.high %v801_v56, %v809_v59  ;;  %v13790_v4 = vcombine.low %v800_v54, %v808_v55 }
 0x150   :  { %6512 = vmatpush1.bf16.msra.mxu0 %v13662_v61  ;;  %6676 = vmatpush1.bf16.msra.mxu1 %v13664_v62  ;;  %v13776_v61 = vcombine.low %v785_v48, %v793_v50  ;;  %v13791_v62 = vcombine.high %v800_v54, %v808_v55  ;;  %v921_v55 = vld [vmem:[#allocation2 + $0x1648] sm:$0xff] }
 0x151   :  { %6513 = vmatprep.subr.bf16.mxu0 %v13679_v63  ;;  %6677 = vmatprep.subr.bf16.mxu1 %v13681_v3  ;;  %v816_v63 = vld [vmem:[#allocation2 + $0x1300] sm:$0xff]  ;;  %v825_v3 = vld [vmem:[#allocation2 + $0x1348] sm:$0xff] }
 0x152   :  { %v13807_v6 = vcombine.high %v816_v63, %v824_v0  ;;  %v13809_v10 = vcombine.high %v817_v1, %v825_v3  ;;  %v13808_v14 = vcombine.low %v817_v1, %v825_v3 }
 0x154   :  { %6514 = vmatpush1.bf16.msra.mxu0 %v13678_v5  ;;  %6678 = vmatpush1.bf16.msra.mxu1 %v13680_v7  ;;  %v13792_v5 = vcombine.low %v801_v56, %v809_v59  ;;  %v832_v7 = vld [vmem:[#allocation2 + $0x1380] sm:$0xff] }
 0x155   :  { %6515 = vmatprep.subr.bf16.mxu0 %v13695_v8  ;;  %6679 = vmatprep.subr.bf16.mxu1 %v13697_v13  ;;  %v840_v8 = vld [vmem:[#allocation2 + $0x13c0] sm:$0xff]  ;;  %v13806_v13 = vcombine.low %v816_v63, %v824_v0  ;;  %v929_v63 = vld [vmem:[#allocation2 + $0x1688] sm:$0xff] }
 0x156   :  { %v13822_v21 = vcombine.low %v832_v7, %v840_v8  ;;  %v937_v0 = vld [vmem:[#allocation2 + $0x16c8] sm:$0xff] }
 0x158   :  { %6516 = vmatpush1.bf16.msra.mxu0 %v13694_v15  ;;  %6680 = vmatpush1.bf16.msra.mxu1 %v13696_v17  ;;  %v13823_v15 = vcombine.high %v832_v7, %v840_v8  ;;  %v856_v17 = vld [vmem:[#allocation2 + $0x1440] sm:$0xff]  ;;  %v945_v7 = vld [vmem:[#allocation2 + $0x1708] sm:$0xff] }
 0x159   :  { %6526 = vmatprep.subr.bf16.mxu0 %v13711_v18  ;;  %6690 = vmatprep.subr.bf16.mxu1 %v13713_v22  ;;  %v849_v18 = vld [vmem:[#allocation2 + $0x1408] sm:$0xff]  ;;  %v13824_v22 = vcombine.low %v833_v9, %v841_v11  ;;  %v13839_v24 = vcombine.high %v848_v16, %v856_v17 }
 0x15a   :  { %v13841_v29 = vcombine.high %v849_v18, %v857_v20  ;;  %v13840_v32 = vcombine.low %v849_v18, %v857_v20  ;;  %v953_v8 = vld [vmem:[#allocation2 + $0x1748] sm:$0xff] }
 0x15b   :  { %6518 = vmatmul.mubr.bf16.vlgmr.msra.gmra.mrb[0].mxu0 %v15939_v25  ;;  %6682 = vmatmul.mubr.bf16.vlgmr.msra.gmra.mrb[0].mxu1 %v15939_v25 }
 0x15c   :  { %6527 = vmatpush1.bf16.msra.mxu0 %v13710_v26  ;;  %6691 = vmatpush1.bf16.msra.mxu1 %v13712_v27  ;;  %v864_v26 = vld [vmem:[#allocation2 + $0x1480] sm:$0xff] }
 0x15d   :  { %6528 = vmatprep.subr.bf16.mxu0 %v13727_v28  ;;  %6692 = vmatprep.subr.bf16.mxu1 %v13729_v31  ;;  %v872_v27 = vld [vmem:[#allocation2 + $0x14c0] sm:$0xff]  ;;  %v865_v28 = vld [vmem:[#allocation2 + $0x1488] sm:$0xff]  ;;  %v13838_v31 = vcombine.low %v848_v16, %v856_v17 }
 0x15e   :  { %6558 = vmatprep.mubr.bf16.mxu0 %v15941_v34  ;;  %6722 = vmatprep.mubr.bf16.mxu1 %v15941_v34  ;;  %v13855_v33 = vcombine.high %v864_v26, %v872_v27  ;;  %v13857_v38 = vcombine.high %v865_v28, %v873_v30  ;;  %v13854_v40 = vcombine.low %v864_v26, %v872_v27  ;;  %v961_v16 = vld [vmem:[#allocation2 + $0x1788] sm:$0xff] }
 0x15f   :  { %v969_v17 = vld [vmem:[#allocation2 + $0x17c8] sm:$0xff] }
 0x160   :  { %6529 = vmatpush1.bf16.msra.mxu0 %v13726_v35  ;;  %6693 = vmatpush1.bf16.msra.mxu1 %v13728_v36  ;;  %v880_v35 = vld [vmem:[#allocation2 + $0x1500] sm:$0xff]  ;;  %v977_v26 = vld [vmem:[#allocation2 + $0x1808] sm:$0xff] }
 0x161   :  { %6530 = vmatprep.subr.bf16.mxu0 %v13743_v37  ;;  %6694 = vmatprep.subr.bf16.mxu1 %v13745_v41  ;;  %v888_v36 = vld [vmem:[#allocation2 + $0x1540] sm:$0xff]  ;;  %v881_v37 = vld [vmem:[#allocation2 + $0x1508] sm:$0xff]  ;;  %v13856_v41 = vcombine.low %v865_v28, %v873_v30  ;;  %v13952_v30 = vcombine.low %v961_v16, %v969_v17 }
 0x162   :  { %v13871_v42 = vcombine.high %v880_v35, %v888_v36  ;;  %v13873_v46 = vcombine.high %v881_v37, %v889_v39  ;;  %v13870_v48 = vcombine.low %v880_v35, %v888_v36  ;;  %v985_v27 = vld [vmem:[#allocation2 + $0x1848] sm:$0xff]  ;;  %v1000_v35 = vld [vmem:[#allocation2 + $0x18c0] sm:$0xff] }
 0x164   :  { %6531 = vmatpush1.bf16.msra.mxu0 %v13742_v43  ;;  %6695 = vmatpush1.bf16.msra.mxu1 %v13744_v44  ;;  %v896_v43 = vld [vmem:[#allocation2 + $0x1580] sm:$0xff] }
 0x165   :  { %6532 = vmatprep.subr.bf16.mxu0 %v13759_v45  ;;  %6696 = vmatprep.subr.bf16.mxu1 %v13761_v49  ;;  %v904_v44 = vld [vmem:[#allocation2 + $0x15c0] sm:$0xff]  ;;  %v897_v45 = vld [vmem:[#allocation2 + $0x1588] sm:$0xff]  ;;  %v13872_v49 = vcombine.low %v881_v37, %v889_v39  ;;  %v207_v39 = vld [vmem:[%s17815_s0 + $0x38] sm:$0xff] }
 0x166   :  { %v13887_v50 = vcombine.high %v896_v43, %v904_v44  ;;  %v13889_v54 = vcombine.high %v897_v45, %v905_v47  ;;  %v13886_v56 = vcombine.low %v896_v43, %v904_v44  ;;  %v993_v37 = vld [vmem:[#allocation2 + $0x1888] sm:$0xff]  ;;  %v1008_v44 = vld [vmem:[#allocation2 + $0x1900] sm:$0xff] }
 0x168   :  { %6533 = vmatpush1.bf16.msra.mxu0 %v13758_v51  ;;  %6697 = vmatpush1.bf16.msra.mxu1 %v13760_v52  ;;  %v912_v51 = vld [vmem:[#allocation2 + $0x1600] sm:$0xff] }
 0x169   :  { %6534 = vmatprep.subr.bf16.mxu0 %v13775_v53  ;;  %6698 = vmatprep.subr.bf16.mxu1 %v13777_v58  ;;  %v920_v52 = vld [vmem:[#allocation2 + $0x1640] sm:$0xff]  ;;  %v913_v53 = vld [vmem:[#allocation2 + $0x1608] sm:$0xff]  ;;  %v13888_v58 = vcombine.low %v897_v45, %v905_v47 }
 0x16a   :  { %v13903_v59 = vcombine.high %v912_v51, %v920_v52  ;;  %v13902_v1 = vcombine.low %v912_v51, %v920_v52  ;;  %v1016_v45 = vld [vmem:[#allocation2 + $0x1940] sm:$0xff]  ;;  %v1009_v47 = vld [vmem:[#allocation2 + $0x1908] sm:$0xff] }
 0x16b   :  { %v13999_v51 = vcombine.high %v1008_v44, %v1016_v45 }
 0x16c   :  { %6535 = vmatpush1.bf16.msra.mxu0 %v13774_v60  ;;  %6699 = vmatpush1.bf16.msra.mxu1 %v13776_v61  ;;  %v13905_v60 = vcombine.high %v913_v53, %v921_v55  ;;  %v928_v61 = vld [vmem:[#allocation2 + $0x1680] sm:$0xff] }
 0x16d   :  { %6536 = vmatprep.subr.bf16.mxu0 %v13791_v62  ;;  %6700 = vmatprep.subr.bf16.mxu1 %v13793_v2  ;;  %v936_v62 = vld [vmem:[#allocation2 + $0x16c0] sm:$0xff]  ;;  %v13904_v2 = vcombine.low %v913_v53, %v921_v55  ;;  %v1025_v55 = vld [vmem:[#allocation2 + $0x1988] sm:$0xff] }
 0x16e   :  { %v13919_v3 = vcombine.high %v928_v61, %v936_v62  ;;  %v13918_v9 = vcombine.low %v928_v61, %v936_v62  ;;  %v1024_v53 = vld [vmem:[#allocation2 + $0x1980] sm:$0xff] }
 0x16f   :  { %v1040_v62 = vld [vmem:[#allocation2 + $0x1a00] sm:$0xff] }
 0x170   :  { %6537 = vmatpush1.bf16.msra.mxu0 %v13790_v4  ;;  %6701 = vmatpush1.bf16.msra.mxu1 %v13792_v5  ;;  %v13921_v4 = vcombine.high %v929_v63, %v937_v0  ;;  %v944_v5 = vld [vmem:[#allocation2 + $0x1700] sm:$0xff] }
 0x171   :  { %6538 = vmatprep.subr.bf16.mxu0 %v13807_v6  ;;  %6702 = vmatprep.subr.bf16.mxu1 %v13809_v10  ;;  %v952_v6 = vld [vmem:[#allocation2 + $0x1740] sm:$0xff]  ;;  %v13920_v10 = vcombine.low %v929_v63, %v937_v0  ;;  %v1041_v0 = vld [vmem:[#allocation2 + $0x1a08] sm:$0xff] }
 0x172   :  { %v13935_v11 = vcombine.high %v944_v5, %v952_v6  ;;  %v13934_v18 = vcombine.low %v944_v5, %v952_v6  ;;  %v1048_v63 = vld [vmem:[#allocation2 + $0x1a40] sm:$0xff] }
 0x173   :  { %v1056_v6 = vld [vmem:[#allocation2 + $0x1a80] sm:$0xff] }
 0x174   :  { %6539 = vmatpush1.bf16.msra.mxu0 %v13806_v13  ;;  %6703 = vmatpush1.bf16.msra.mxu1 %v13808_v14  ;;  %v13937_v13 = vcombine.high %v945_v7, %v953_v8  ;;  %v960_v14 = vld [vmem:[#allocation2 + $0x1780] sm:$0xff] }
 0x175   :  { %6540 = vmatprep.subr.bf16.mxu0 %v13823_v15  ;;  %6704 = vmatprep.subr.bf16.mxu1 %v13825_v19  ;;  %v968_v15 = vld [vmem:[#allocation2 + $0x17c0] sm:$0xff]  ;;  %v13936_v19 = vcombine.low %v945_v7, %v953_v8  ;;  %v1057_v8 = vld [vmem:[#allocation2 + $0x1a88] sm:$0xff] }
 0x176   :  { %v13951_v20 = vcombine.high %v960_v14, %v968_v15  ;;  %v13950_v28 = vcombine.low %v960_v14, %v968_v15  ;;  %v1064_v7 = vld [vmem:[#allocation2 + $0x1ac0] sm:$0xff] }
 0x177   :  { %v1072_v15 = vld [vmem:[#allocation2 + $0x1b00] sm:$0xff] }
 0x178   :  { %6541 = vmatpush1.bf16.msra.mxu0 %v13822_v21  ;;  %6705 = vmatpush1.bf16.msra.mxu1 %v13824_v22  ;;  %v13953_v21 = vcombine.high %v961_v16, %v969_v17  ;;  %v976_v22 = vld [vmem:[#allocation2 + $0x1800] sm:$0xff]  ;;  %v1073_v17 = vld [vmem:[#allocation2 + $0x1b08] sm:$0xff] }
 0x179   :  { %6542 = vmatprep.subr.bf16.mxu0 %v13839_v24  ;;  %6706 = vmatprep.subr.bf16.mxu1 %v13841_v29  ;;  %v984_v24 = vld [vmem:[#allocation2 + $0x1840] sm:$0xff] }
 0x17a   :  { %v204_v29 = vld [vmem:[%s17815_s0 + $0x20] sm:$0xff] }
 0x17b   :  { %v15950_v36 = vpack.c.bf16 %v204_v29, %v204_v29  ;;  %v1080_v16 = vld [vmem:[#allocation2 + $0x1b40] sm:$0xff] }
 0x17c   :  { %6543 = vmatpush1.bf16.msra.mxu0 %v13838_v31  ;;  %6707 = vmatpush1.bf16.msra.mxu1 %v13840_v32  ;;  %v13967_v31 = vcombine.high %v976_v22, %v984_v24  ;;  %v13969_v32 = vcombine.high %v977_v26, %v985_v27  ;;  %v14062_v29 = vcombine.low %v1072_v15, %v1080_v16 }
 0x17d   :  { %6544 = vmatprep.subr.bf16.mxu0 %v13855_v33  ;;  %6708 = vmatprep.subr.bf16.mxu1 %v13857_v38  ;;  %v992_v33 = vld [vmem:[#allocation2 + $0x1880] sm:$0xff]  ;;  %v1001_v38 = vld [vmem:[#allocation2 + $0x18c8] sm:$0xff] }
 0x17e   :  { %v13985_v43 = vcombine.high %v993_v37, %v1001_v38 }
 0x180   :  { %6545 = vmatpush1.bf16.msra.mxu0 %v13854_v40  ;;  %6709 = vmatpush1.bf16.msra.mxu1 %v13856_v41  ;;  %v13966_v40 = vcombine.low %v976_v22, %v984_v24  ;;  %v13968_v41 = vcombine.low %v977_v26, %v985_v27  ;;  %v1088_v24 = vld [vmem:[#allocation2 + $0x1b80] sm:$0xff]  ;;  %v1089_v27 = vld [vmem:[#allocation2 + $0x1b88] sm:$0xff] }
 0x181   :  { %6546 = vmatprep.subr.bf16.mxu0 %v13871_v42  ;;  %6710 = vmatprep.subr.bf16.mxu1 %v13873_v46  ;;  %v13983_v42 = vcombine.high %v992_v33, %v1000_v35  ;;  %v15955_v46 = vpack.c.bf16 %v207_v39, %v207_v39  ;;  %v1096_v26 = vld [vmem:[#allocation2 + $0x1bc0] sm:$0xff] }
 0x182   :  { %v14078_v39 = vcombine.low %v1088_v24, %v1096_v26 }
 0x184   :  { %6547 = vmatpush1.bf16.msra.mxu0 %v13870_v48  ;;  %6711 = vmatpush1.bf16.msra.mxu1 %v13872_v49  ;;  %v1017_v48 = vld [vmem:[#allocation2 + $0x1948] sm:$0xff]  ;;  %v13982_v49 = vcombine.low %v992_v33, %v1000_v35  ;;  %v1104_v33 = vld [vmem:[#allocation2 + $0x1c00] sm:$0xff] }
 0x185   :  { %6548 = vmatprep.subr.bf16.mxu0 %v13887_v50  ;;  %6712 = vmatprep.subr.bf16.mxu1 %v13889_v54  ;;  %v13984_v50 = vcombine.low %v993_v37, %v1001_v38  ;;  %v14001_v52 = vcombine.high %v1009_v47, %v1017_v48  ;;  %v1032_v54 = vld [vmem:[#allocation2 + $0x19c0] sm:$0xff]  ;;  %v1105_v37 = vld [vmem:[#allocation2 + $0x1c08] sm:$0xff] }
 0x186   :  { %v1112_v35 = vld [vmem:[#allocation2 + $0x1c40] sm:$0xff]  ;;  %v1113_v38 = vld [vmem:[#allocation2 + $0x1c48] sm:$0xff] }
 0x188   :  { %6549 = vmatpush1.bf16.msra.mxu0 %v13886_v56  ;;  %6713 = vmatpush1.bf16.msra.mxu1 %v13888_v58  ;;  %v1033_v56 = vld [vmem:[#allocation2 + $0x19c8] sm:$0xff]  ;;  %v13998_v58 = vcombine.low %v1008_v44, %v1016_v45  ;;  %v1128_v44 = vld [vmem:[#allocation2 + $0x1cc0] sm:$0xff] }
 0x189   :  { %6550 = vmatprep.subr.bf16.mxu0 %v13903_v59  ;;  %6714 = vmatprep.subr.bf16.mxu1 %v13905_v60  ;;  %v14000_v59 = vcombine.low %v1009_v47, %v1017_v48  ;;  %v14015_v60 = vcombine.high %v1024_v53, %v1032_v54  ;;  %v14017_v61 = vcombine.high %v1025_v55, %v1033_v56  ;;  %v1121_v45 = vld [vmem:[#allocation2 + $0x1c88] sm:$0xff] }
 0x18a   :  { %v1129_v47 = vld [vmem:[#allocation2 + $0x1cc8] sm:$0xff]  ;;  %v14094_v48 = vcombine.low %v1104_v33, %v1112_v35 }
 0x18c   :  { %6551 = vmatpush1.bf16.msra.mxu0 %v13902_v1  ;;  %6715 = vmatpush1.bf16.msra.mxu1 %v13904_v2  ;;  %v1049_v1 = vld [vmem:[#allocation2 + $0x1a48] sm:$0xff]  ;;  %v14014_v2 = vcombine.low %v1024_v53, %v1032_v54  ;;  %v1144_v53 = vld [vmem:[#allocation2 + $0x1d40] sm:$0xff] }
 0x18d   :  { %6552 = vmatprep.subr.bf16.mxu0 %v13919_v3  ;;  %6716 = vmatprep.subr.bf16.mxu1 %v13921_v4  ;;  %v14016_v3 = vcombine.low %v1025_v55, %v1033_v56  ;;  %v14031_v4 = vcombine.high %v1040_v62, %v1048_v63  ;;  %v14033_v5 = vcombine.high %v1041_v0, %v1049_v1  ;;  %v1137_v54 = vld [vmem:[#allocation2 + $0x1d08] sm:$0xff] }
 0x18e   :  { %v1145_v55 = vld [vmem:[#allocation2 + $0x1d48] sm:$0xff] }
 0x190   :  { %6553 = vmatpush1.bf16.msra.mxu0 %v13918_v9  ;;  %6717 = vmatpush1.bf16.msra.mxu1 %v13920_v10  ;;  %v1065_v9 = vld [vmem:[#allocation2 + $0x1ac8] sm:$0xff]  ;;  %v14030_v10 = vcombine.low %v1040_v62, %v1048_v63  ;;  %v1160_v62 = vld [vmem:[#allocation2 + $0x1dc0] sm:$0xff] }
 0x191   :  { %6554 = vmatprep.subr.bf16.mxu0 %v13935_v11  ;;  %6718 = vmatprep.subr.bf16.mxu1 %v13937_v13  ;;  %v14032_v11 = vcombine.low %v1041_v0, %v1049_v1  ;;  %v14047_v13 = vcombine.high %v1056_v6, %v1064_v7  ;;  %v14049_v14 = vcombine.high %v1057_v8, %v1065_v9  ;;  %v1153_v63 = vld [vmem:[#allocation2 + $0x1d88] sm:$0xff] }
 0x192   :  { %v1161_v0 = vld [vmem:[#allocation2 + $0x1dc8] sm:$0xff] }
 0x194   :  { %6555 = vmatpush1.bf16.msra.mxu0 %v13934_v18  ;;  %6719 = vmatpush1.bf16.msra.mxu1 %v13936_v19  ;;  %v1081_v18 = vld [vmem:[#allocation2 + $0x1b48] sm:$0xff]  ;;  %v14046_v19 = vcombine.low %v1056_v6, %v1064_v7  ;;  %v1176_v6 = vld [vmem:[#allocation2 + $0x1e40] sm:$0xff] }
 0x195   :  { %6556 = vmatprep.subr.bf16.mxu0 %v13951_v20  ;;  %6720 = vmatprep.subr.bf16.mxu1 %v13953_v21  ;;  %v14048_v20 = vcombine.low %v1057_v8, %v1065_v9  ;;  %v14063_v21 = vcombine.high %v1072_v15, %v1080_v16  ;;  %v14065_v22 = vcombine.high %v1073_v17, %v1081_v18  ;;  %v1169_v7 = vld [vmem:[#allocation2 + $0x1e08] sm:$0xff]  ;;  %v1192_v15 = vld [vmem:[#allocation2 + $0x1ec0] sm:$0xff] }
 0x196   :  { %v1177_v8 = vld [vmem:[#allocation2 + $0x1e48] sm:$0xff] }
 0x197   :  { %v1185_v16 = vld [vmem:[#allocation2 + $0x1e88] sm:$0xff] }
 0x198   :  { %6557 = vmatpush1.bf16.msra.mxu0 %v13950_v28  ;;  %6721 = vmatpush1.bf16.msra.mxu1 %v13952_v30  ;;  %v1097_v28 = vld [vmem:[#allocation2 + $0x1bc8] sm:$0xff]  ;;  %v14064_v30 = vcombine.low %v1073_v17, %v1081_v18 }
 0x199   :  { %6567 = vmatprep.subr.bf16.mxu0 %v13967_v31  ;;  %6731 = vmatprep.subr.bf16.mxu1 %v13969_v32  ;;  %v14079_v31 = vcombine.high %v1088_v24, %v1096_v26  ;;  %v14081_v32 = vcombine.high %v1089_v27, %v1097_v28  ;;  %v1193_v17 = vld [vmem:[#allocation2 + $0x1ec8] sm:$0xff]  ;;  %v1208_v24 = vld [vmem:[#allocation2 + $0x1f40] sm:$0xff] }
 0x19a   :  { %v1201_v26 = vld [vmem:[#allocation2 + $0x1f08] sm:$0xff] }
 0x19b   :  { %6559 = vmatmul.mubr.bf16.vlgmr.msra.gmra.mrb[0].mxu0 %v15950_v36  ;;  %6723 = vmatmul.mubr.bf16.vlgmr.msra.gmra.mrb[0].mxu1 %v15950_v36 }
 0x19c   :  { %6568 = vmatpush1.bf16.msra.mxu0 %v13966_v40  ;;  %6732 = vmatpush1.bf16.msra.mxu1 %v13968_v41  ;;  %v14080_v40 = vcombine.low %v1089_v27, %v1097_v28  ;;  %v14095_v41 = vcombine.high %v1104_v33, %v1112_v35  ;;  %v1209_v27 = vld [vmem:[#allocation2 + $0x1f48] sm:$0xff]  ;;  %v1224_v33 = vld [vmem:[#allocation2 + $0x1fc0] sm:$0xff] }
 0x19d   :  { %6569 = vmatprep.subr.bf16.mxu0 %v13983_v42  ;;  %6733 = vmatprep.subr.bf16.mxu1 %v13985_v43  ;;  %v14097_v42 = vcombine.high %v1105_v37, %v1113_v38  ;;  %v1120_v43 = vld [vmem:[#allocation2 + $0x1c80] sm:$0xff]  ;;  %v1217_v35 = vld [vmem:[#allocation2 + $0x1f88] sm:$0xff] }
 0x19e   :  { %6599 = vmatprep.mubr.bf16.mxu0 %v15955_v46  ;;  %6763 = vmatprep.mubr.bf16.mxu1 %v15955_v46  ;;  %v14110_v56 = vcombine.low %v1120_v43, %v1128_v44 }
 0x1a0   :  { %6570 = vmatpush1.bf16.msra.mxu0 %v13982_v49  ;;  %6734 = vmatpush1.bf16.msra.mxu1 %v13984_v50  ;;  %v14096_v49 = vcombine.low %v1105_v37, %v1113_v38  ;;  %v14111_v50 = vcombine.high %v1120_v43, %v1128_v44  ;;  %v1225_v37 = vld [vmem:[#allocation2 + $0x1fc8] sm:$0xff]  ;;  %v218_v43 = vld [vmem:[#allocation2 + $0x50] sm:$0xff]  ;;  %v211_v44 = vld [vmem:[#allocation2 + $0x18] sm:$0xff] }
 0x1a1   :  { %6571 = vmatprep.subr.bf16.mxu0 %v13999_v51  ;;  %6735 = vmatprep.subr.bf16.mxu1 %v14001_v52  ;;  %v14113_v51 = vcombine.high %v1121_v45, %v1129_v47  ;;  %v1136_v52 = vld [vmem:[#allocation2 + $0x1d00] sm:$0xff] }
 0x1a2   :  { %v14126_v1 = vcombine.low %v1136_v52, %v1144_v53 }
 0x1a4   :  { %6572 = vmatpush1.bf16.msra.mxu0 %v13998_v58  ;;  %6736 = vmatpush1.bf16.msra.mxu1 %v14000_v59  ;;  %v14112_v58 = vcombine.low %v1121_v45, %v1129_v47  ;;  %v14127_v59 = vcombine.high %v1136_v52, %v1144_v53  ;;  %v219_v45 = vld [vmem:[#allocation2 + $0x58] sm:$0xff]  ;;  %v226_v52 = vld [vmem:[#allocation2 + $0x90] sm:$0xff] }
 0x1a5   :  { %6573 = vmatprep.subr.bf16.mxu0 %v14015_v60  ;;  %6737 = vmatprep.subr.bf16.mxu1 %v14017_v61  ;;  %v14129_v60 = vcombine.high %v1137_v54, %v1145_v55  ;;  %v1152_v61 = vld [vmem:[#allocation2 + $0x1d80] sm:$0xff]  ;;  %v234_v53 = vld [vmem:[#allocation2 + $0xd0] sm:$0xff] }
 0x1a6   :  { %v14142_v9 = vcombine.low %v1152_v61, %v1160_v62 }
 0x1a8   :  { %6574 = vmatpush1.bf16.msra.mxu0 %v14014_v2  ;;  %6738 = vmatpush1.bf16.msra.mxu1 %v14016_v3  ;;  %v14128_v2 = vcombine.low %v1137_v54, %v1145_v55  ;;  %v14143_v3 = vcombine.high %v1152_v61, %v1160_v62  ;;  %v227_v55 = vld [vmem:[#allocation2 + $0x98] sm:$0xff]  ;;  %v242_v62 = vld [vmem:[#allocation2 + $0x110] sm:$0xff] }
 0x1a9   :  { %6575 = vmatprep.subr.bf16.mxu0 %v14031_v4  ;;  %6739 = vmatprep.subr.bf16.mxu1 %v14033_v5  ;;  %v14145_v4 = vcombine.high %v1153_v63, %v1161_v0  ;;  %v1168_v5 = vld [vmem:[#allocation2 + $0x1e00] sm:$0xff] }
 0x1aa   :  { %v14158_v18 = vcombine.low %v1168_v5, %v1176_v6 }
 0x1ac   :  { %6576 = vmatpush1.bf16.msra.mxu0 %v14030_v10  ;;  %6740 = vmatpush1.bf16.msra.mxu1 %v14032_v11  ;;  %v14144_v10 = vcombine.low %v1153_v63, %v1161_v0  ;;  %v14159_v11 = vcombine.high %v1168_v5, %v1176_v6  ;;  %v250_v63 = vld [vmem:[#allocation2 + $0x150] sm:$0xff]  ;;  %v243_v0 = vld [vmem:[#allocation2 + $0x118] sm:$0xff] }
 0x1ad   :  { %6577 = vmatprep.subr.bf16.mxu0 %v14047_v13  ;;  %6741 = vmatprep.subr.bf16.mxu1 %v14049_v14  ;;  %v14161_v13 = vcombine.high %v1169_v7, %v1177_v8  ;;  %v1184_v14 = vld [vmem:[#allocation2 + $0x1e80] sm:$0xff]  ;;  %v258_v6 = vld [vmem:[#allocation2 + $0x190] sm:$0xff] }
 0x1ae   :  { %v14174_v28 = vcombine.low %v1184_v14, %v1192_v15 }
 0x1b0   :  { %6578 = vmatpush1.bf16.msra.mxu0 %v14046_v19  ;;  %6742 = vmatpush1.bf16.msra.mxu1 %v14048_v20  ;;  %v14160_v19 = vcombine.low %v1169_v7, %v1177_v8  ;;  %v14175_v20 = vcombine.high %v1184_v14, %v1192_v15  ;;  %v266_v7 = vld [vmem:[#allocation2 + $0x1d0] sm:$0xff]  ;;  %v259_v8 = vld [vmem:[#allocation2 + $0x198] sm:$0xff] }
 0x1b1   :  { %6579 = vmatprep.subr.bf16.mxu0 %v14063_v21  ;;  %6743 = vmatprep.subr.bf16.mxu1 %v14065_v22  ;;  %v14177_v21 = vcombine.high %v1185_v16, %v1193_v17  ;;  %v1200_v22 = vld [vmem:[#allocation2 + $0x1f00] sm:$0xff]  ;;  %v274_v15 = vld [vmem:[#allocation2 + $0x210] sm:$0xff] }
 0x1b2   :  { %v14190_v38 = vcombine.low %v1200_v22, %v1208_v24 }
 0x1b4   :  { %6580 = vmatpush1.bf16.msra.mxu0 %v14062_v29  ;;  %6744 = vmatpush1.bf16.msra.mxu1 %v14064_v30  ;;  %v14176_v29 = vcombine.low %v1185_v16, %v1193_v17  ;;  %v14191_v30 = vcombine.high %v1200_v22, %v1208_v24  ;;  %v282_v16 = vld [vmem:[#allocation2 + $0x250] sm:$0xff]  ;;  %v275_v17 = vld [vmem:[#allocation2 + $0x218] sm:$0xff] }
 0x1b5   :  { %6581 = vmatprep.subr.bf16.mxu0 %v14079_v31  ;;  %6745 = vmatprep.subr.bf16.mxu1 %v14081_v32  ;;  %v14193_v31 = vcombine.high %v1201_v26, %v1209_v27  ;;  %v1216_v32 = vld [vmem:[#allocation2 + $0x1f80] sm:$0xff]  ;;  %v290_v24 = vld [vmem:[#allocation2 + $0x290] sm:$0xff] }
 0x1b6   :  { %v14206_v47 = vcombine.low %v1216_v32, %v1224_v33 }
 0x1b8   :  { %6582 = vmatpush1.bf16.msra.mxu0 %v14078_v39  ;;  %6746 = vmatpush1.bf16.msra.mxu1 %v14080_v40  ;;  %v14192_v39 = vcombine.low %v1201_v26, %v1209_v27  ;;  %v14207_v40 = vcombine.high %v1216_v32, %v1224_v33  ;;  %v298_v26 = vld [vmem:[#allocation2 + $0x2d0] sm:$0xff]  ;;  %v291_v27 = vld [vmem:[#allocation2 + $0x298] sm:$0xff] }
 0x1b9   :  { %6583 = vmatprep.subr.bf16.mxu0 %v14095_v41  ;;  %6747 = vmatprep.subr.bf16.mxu1 %v14097_v42  ;;  %v14209_v41 = vcombine.high %v1217_v35, %v1225_v37  ;;  %v210_v42 = vld [vmem:[#allocation2 + $0x10] sm:$0xff] }
 0x1ba   :  { %v306_v33 = vld [vmem:[#allocation2 + $0x310] sm:$0xff] }
 0x1bc   :  { %6584 = vmatpush1.bf16.msra.mxu0 %v14094_v48  ;;  %6748 = vmatpush1.bf16.msra.mxu1 %v14096_v49  ;;  %v206_v48 = vld [vmem:[%s17815_s0 + $0x30] sm:$0xff]  ;;  %v14208_v49 = vcombine.low %v1217_v35, %v1225_v37  ;;  %v307_v37 = vld [vmem:[#allocation2 + $0x318] sm:$0xff] }
 0x1bd   :  { %6585 = vmatprep.subr.bf16.mxu0 %v14111_v50  ;;  %6749 = vmatprep.subr.bf16.mxu1 %v14113_v51  ;;  %v13203_v50 = vcombine.high %v210_v42, %v218_v43  ;;  %v13205_v51 = vcombine.high %v211_v44, %v219_v45  ;;  %v15964_v54 = vpack.c.bf16 %v206_v48, %v206_v48  ;;  %v314_v35 = vld [vmem:[#allocation2 + $0x350] sm:$0xff] }
 0x1be   :  { %v13298_v48 = vcombine.low %v306_v33, %v314_v35 }
 0x1c0   :  { %6586 = vmatpush1.bf16.msra.mxu0 %v14110_v56  ;;  %6750 = vmatpush1.bf16.msra.mxu1 %v14112_v58  ;;  %v235_v56 = vld [vmem:[#allocation2 + $0xd8] sm:$0xff]  ;;  %v13202_v58 = vcombine.low %v210_v42, %v218_v43  ;;  %v322_v43 = vld [vmem:[#allocation2 + $0x390] sm:$0xff] }
 0x1c1   :  { %6587 = vmatprep.subr.bf16.mxu0 %v14127_v59  ;;  %6751 = vmatprep.subr.bf16.mxu1 %v14129_v60  ;;  %v13204_v59 = vcombine.low %v211_v44, %v219_v45  ;;  %v13219_v60 = vcombine.high %v226_v52, %v234_v53  ;;  %v13221_v61 = vcombine.high %v227_v55, %v235_v56  ;;  %v330_v44 = vld [vmem:[#allocation2 + $0x3d0] sm:$0xff]  ;;  %v323_v45 = vld [vmem:[#allocation2 + $0x398] sm:$0xff] }
 0x1c4   :  { %6588 = vmatpush1.bf16.msra.mxu0 %v14126_v1  ;;  %6752 = vmatpush1.bf16.msra.mxu1 %v14128_v2  ;;  %v251_v1 = vld [vmem:[#allocation2 + $0x158] sm:$0xff]  ;;  %v13218_v2 = vcombine.low %v226_v52, %v234_v53  ;;  %v338_v52 = vld [vmem:[#allocation2 + $0x410] sm:$0xff] }
 0x1c5   :  { %6589 = vmatprep.subr.bf16.mxu0 %v14143_v3  ;;  %6753 = vmatprep.subr.bf16.mxu1 %v14145_v4  ;;  %v13220_v3 = vcombine.low %v227_v55, %v235_v56  ;;  %v13235_v4 = vcombine.high %v242_v62, %v250_v63  ;;  %v13237_v5 = vcombine.high %v243_v0, %v251_v1  ;;  %v346_v53 = vld [vmem:[#allocation2 + $0x450] sm:$0xff]  ;;  %v339_v55 = vld [vmem:[#allocation2 + $0x418] sm:$0xff] }
 0x1c6   :  { %v347_v56 = vld [vmem:[#allocation2 + $0x458] sm:$0xff] }
 0x1c8   :  { %6590 = vmatpush1.bf16.msra.mxu0 %v14142_v9  ;;  %6754 = vmatpush1.bf16.msra.mxu1 %v14144_v10  ;;  %v267_v9 = vld [vmem:[#allocation2 + $0x1d8] sm:$0xff]  ;;  %v13234_v10 = vcombine.low %v242_v62, %v250_v63  ;;  %v354_v62 = vld [vmem:[#allocation2 + $0x490] sm:$0xff] }
 0x1c9   :  { %6591 = vmatprep.subr.bf16.mxu0 %v14159_v11  ;;  %6755 = vmatprep.subr.bf16.mxu1 %v14161_v13  ;;  %v13236_v11 = vcombine.low %v243_v0, %v251_v1  ;;  %v13251_v13 = vcombine.high %v258_v6, %v266_v7  ;;  %v13253_v14 = vcombine.high %v259_v8, %v267_v9  ;;  %v362_v63 = vld [vmem:[#allocation2 + $0x4d0] sm:$0xff]  ;;  %v355_v0 = vld [vmem:[#allocation2 + $0x498] sm:$0xff] }
 0x1ca   :  { %v363_v1 = vld [vmem:[#allocation2 + $0x4d8] sm:$0xff] }
 0x1cc   :  { %6592 = vmatpush1.bf16.msra.mxu0 %v14158_v18  ;;  %6756 = vmatpush1.bf16.msra.mxu1 %v14160_v19  ;;  %v283_v18 = vld [vmem:[#allocation2 + $0x258] sm:$0xff]  ;;  %v13250_v19 = vcombine.low %v258_v6, %v266_v7  ;;  %v370_v6 = vld [vmem:[#allocation2 + $0x510] sm:$0xff] }
 0x1cd   :  { %6593 = vmatprep.subr.bf16.mxu0 %v14175_v20  ;;  %6757 = vmatprep.subr.bf16.mxu1 %v14177_v21  ;;  %v13252_v20 = vcombine.low %v259_v8, %v267_v9  ;;  %v13267_v21 = vcombine.high %v274_v15, %v282_v16  ;;  %v13269_v22 = vcombine.high %v275_v17, %v283_v18  ;;  %v378_v7 = vld [vmem:[#allocation2 + $0x550] sm:$0xff]  ;;  %v371_v8 = vld [vmem:[#allocation2 + $0x518] sm:$0xff] }
 0x1ce   :  { %v379_v9 = vld [vmem:[#allocation2 + $0x558] sm:$0xff] }
 0x1d0   :  { %6594 = vmatpush1.bf16.msra.mxu0 %v14174_v28  ;;  %6758 = vmatpush1.bf16.msra.mxu1 %v14176_v29  ;;  %v299_v28 = vld [vmem:[#allocation2 + $0x2d8] sm:$0xff]  ;;  %v13266_v29 = vcombine.low %v274_v15, %v282_v16  ;;  %v386_v15 = vld [vmem:[#allocation2 + $0x590] sm:$0xff] }
 0x1d1   :  { %6595 = vmatprep.subr.bf16.mxu0 %v14191_v30  ;;  %6759 = vmatprep.subr.bf16.mxu1 %v14193_v31  ;;  %v13268_v30 = vcombine.low %v275_v17, %v283_v18  ;;  %v13283_v31 = vcombine.high %v290_v24, %v298_v26  ;;  %v13285_v32 = vcombine.high %v291_v27, %v299_v28  ;;  %v394_v16 = vld [vmem:[#allocation2 + $0x5d0] sm:$0xff]  ;;  %v387_v17 = vld [vmem:[#allocation2 + $0x598] sm:$0xff] }
 0x1d2   :  { %v395_v18 = vld [vmem:[#allocation2 + $0x5d8] sm:$0xff] }
 0x1d4   :  { %6596 = vmatpush1.bf16.msra.mxu0 %v14190_v38  ;;  %6760 = vmatpush1.bf16.msra.mxu1 %v14192_v39  ;;  %v315_v38 = vld [vmem:[#allocation2 + $0x358] sm:$0xff]  ;;  %v13282_v39 = vcombine.low %v290_v24, %v298_v26  ;;  %v402_v24 = vld [vmem:[#allocation2 + $0x610] sm:$0xff] }
 0x1d5   :  { %6597 = vmatprep.subr.bf16.mxu0 %v14207_v40  ;;  %6761 = vmatprep.subr.bf16.mxu1 %v14209_v41  ;;  %v13284_v40 = vcombine.low %v291_v27, %v299_v28  ;;  %v13299_v41 = vcombine.high %v306_v33, %v314_v35  ;;  %v13301_v42 = vcombine.high %v307_v37, %v315_v38  ;;  %v410_v26 = vld [vmem:[#allocation2 + $0x650] sm:$0xff]  ;;  %v403_v27 = vld [vmem:[#allocation2 + $0x618] sm:$0xff] }
 0x1d6   :  { %v411_v28 = vld [vmem:[#allocation2 + $0x658] sm:$0xff]  ;;  %v418_v33 = vld [vmem:[#allocation2 + $0x690] sm:$0xff] }
 0x1d7   :  { %v426_v35 = vld [vmem:[#allocation2 + $0x6d0] sm:$0xff] }
 0x1d8   :  { %6598 = vmatpush1.bf16.msra.mxu0 %v14206_v47  ;;  %6762 = vmatpush1.bf16.msra.mxu1 %v14208_v49  ;;  %v331_v47 = vld [vmem:[#allocation2 + $0x3d8] sm:$0xff]  ;;  %v13300_v49 = vcombine.low %v307_v37, %v315_v38 }
 0x1d9   :  { %6772 = vmatprep.subr.bf16.mxu0 %v13203_v50  ;;  %6936 = vmatprep.subr.bf16.mxu1 %v13205_v51  ;;  %v13315_v50 = vcombine.high %v322_v43, %v330_v44  ;;  %v13317_v51 = vcombine.high %v323_v45, %v331_v47  ;;  %v419_v37 = vld [vmem:[#allocation2 + $0x698] sm:$0xff] }
 0x1da   :  { %v427_v38 = vld [vmem:[#allocation2 + $0x6d8] sm:$0xff] }
 0x1db   :  { %6600 = vmatmul.mubr.bf16.vlgmr.msra.gmra.mrb[0].mxu0 %v15964_v54  ;;  %6764 = vmatmul.mubr.bf16.vlgmr.msra.gmra.mrb[0].mxu1 %v15964_v54 }
 0x1dc   :  { %6773 = vmatpush1.bf16.msra.mxu0 %v13202_v58  ;;  %6937 = vmatpush1.bf16.msra.mxu1 %v13204_v59  ;;  %v13314_v58 = vcombine.low %v322_v43, %v330_v44  ;;  %v13316_v59 = vcombine.low %v323_v45, %v331_v47  ;;  %v434_v43 = vld [vmem:[#allocation2 + $0x710] sm:$0xff]  ;;  %v435_v45 = vld [vmem:[#allocation2 + $0x718] sm:$0xff] }
 0x1dd   :  { %6774 = vmatprep.subr.bf16.mxu0 %v13219_v60  ;;  %6938 = vmatprep.subr.bf16.mxu1 %v13221_v61  ;;  %v13331_v60 = vcombine.high %v338_v52, %v346_v53  ;;  %v13333_v61 = vcombine.high %v339_v55, %v347_v56  ;;  %v442_v44 = vld [vmem:[#allocation2 + $0x750] sm:$0xff]  ;;  %v443_v47 = vld [vmem:[#allocation2 + $0x758] sm:$0xff] }
 0x1de   :  { %6804 = vmatprep.mubr.bf16.mxu0 %v15915_v57  ;;  %6968 = vmatprep.mubr.bf16.mxu1 %v15915_v57 }
 0x1e0   :  { %6775 = vmatpush1.bf16.msra.mxu0 %v13218_v2  ;;  %6939 = vmatpush1.bf16.msra.mxu1 %v13220_v3  ;;  %v13330_v2 = vcombine.low %v338_v52, %v346_v53  ;;  %v13332_v3 = vcombine.low %v339_v55, %v347_v56  ;;  %v450_v52 = vld [vmem:[#allocation2 + $0x790] sm:$0xff]  ;;  %v451_v55 = vld [vmem:[#allocation2 + $0x798] sm:$0xff] }
 0x1e1   :  { %6776 = vmatprep.subr.bf16.mxu0 %v13235_v4  ;;  %6940 = vmatprep.subr.bf16.mxu1 %v13237_v5  ;;  %v13347_v4 = vcombine.high %v354_v62, %v362_v63  ;;  %v13349_v5 = vcombine.high %v355_v0, %v363_v1  ;;  %v458_v53 = vld [vmem:[#allocation2 + $0x7d0] sm:$0xff]  ;;  %v459_v56 = vld [vmem:[#allocation2 + $0x7d8] sm:$0xff] }
 0x1e4   :  { %6777 = vmatpush1.bf16.msra.mxu0 %v13234_v10  ;;  %6941 = vmatpush1.bf16.msra.mxu1 %v13236_v11  ;;  %v13346_v10 = vcombine.low %v354_v62, %v362_v63  ;;  %v13348_v11 = vcombine.low %v355_v0, %v363_v1  ;;  %v466_v62 = vld [vmem:[#allocation2 + $0x810] sm:$0xff]  ;;  %v467_v0 = vld [vmem:[#allocation2 + $0x818] sm:$0xff] }
 0x1e5   :  { %6778 = vmatprep.subr.bf16.mxu0 %v13251_v13  ;;  %6942 = vmatprep.subr.bf16.mxu1 %v13253_v14  ;;  %v13363_v13 = vcombine.high %v370_v6, %v378_v7  ;;  %v13365_v14 = vcombine.high %v371_v8, %v379_v9  ;;  %v474_v63 = vld [vmem:[#allocation2 + $0x850] sm:$0xff]  ;;  %v475_v1 = vld [vmem:[#allocation2 + $0x858] sm:$0xff] }
 0x1e8   :  { %6779 = vmatpush1.bf16.msra.mxu0 %v13250_v19  ;;  %6943 = vmatpush1.bf16.msra.mxu1 %v13252_v20  ;;  %v13362_v19 = vcombine.low %v370_v6, %v378_v7  ;;  %v13364_v20 = vcombine.low %v371_v8, %v379_v9  ;;  %v482_v6 = vld [vmem:[#allocation2 + $0x890] sm:$0xff]  ;;  %v483_v8 = vld [vmem:[#allocation2 + $0x898] sm:$0xff] }
 0x1e9   :  { %6780 = vmatprep.subr.bf16.mxu0 %v13267_v21  ;;  %6944 = vmatprep.subr.bf16.mxu1 %v13269_v22  ;;  %v13379_v21 = vcombine.high %v386_v15, %v394_v16  ;;  %v13381_v22 = vcombine.high %v387_v17, %v395_v18  ;;  %v490_v7 = vld [vmem:[#allocation2 + $0x8d0] sm:$0xff]  ;;  %v491_v9 = vld [vmem:[#allocation2 + $0x8d8] sm:$0xff] }
 0x1ec   :  { %6781 = vmatpush1.bf16.msra.mxu0 %v13266_v29  ;;  %6945 = vmatpush1.bf16.msra.mxu1 %v13268_v30  ;;  %v13378_v29 = vcombine.low %v386_v15, %v394_v16  ;;  %v13380_v30 = vcombine.low %v387_v17, %v395_v18  ;;  %v498_v15 = vld [vmem:[#allocation2 + $0x910] sm:$0xff]  ;;  %v499_v17 = vld [vmem:[#allocation2 + $0x918] sm:$0xff] }
 0x1ed   :  { %6782 = vmatprep.subr.bf16.mxu0 %v13283_v31  ;;  %6946 = vmatprep.subr.bf16.mxu1 %v13285_v32  ;;  %v13395_v31 = vcombine.high %v402_v24, %v410_v26  ;;  %v13397_v32 = vcombine.high %v403_v27, %v411_v28  ;;  %v506_v16 = vld [vmem:[#allocation2 + $0x950] sm:$0xff]  ;;  %v507_v18 = vld [vmem:[#allocation2 + $0x958] sm:$0xff] }
 0x1f0   :  { %6783 = vmatpush1.bf16.msra.mxu0 %v13282_v39  ;;  %6947 = vmatpush1.bf16.msra.mxu1 %v13284_v40  ;;  %v13394_v39 = vcombine.low %v402_v24, %v410_v26  ;;  %v13396_v40 = vcombine.low %v403_v27, %v411_v28  ;;  %v514_v24 = vld [vmem:[#allocation2 + $0x990] sm:$0xff]  ;;  %v515_v27 = vld [vmem:[#allocation2 + $0x998] sm:$0xff] }
 0x1f1   :  { %6784 = vmatprep.subr.bf16.mxu0 %v13299_v41  ;;  %6948 = vmatprep.subr.bf16.mxu1 %v13301_v42  ;;  %v13411_v41 = vcombine.high %v418_v33, %v426_v35  ;;  %v13413_v42 = vcombine.high %v419_v37, %v427_v38  ;;  %v522_v26 = vld [vmem:[#allocation2 + $0x9d0] sm:$0xff]  ;;  %v523_v28 = vld [vmem:[#allocation2 + $0x9d8] sm:$0xff] }
 0x1f4   :  { %6785 = vmatpush1.bf16.msra.mxu0 %v13298_v48  ;;  %6949 = vmatpush1.bf16.msra.mxu1 %v13300_v49  ;;  %v13410_v48 = vcombine.low %v418_v33, %v426_v35  ;;  %v13412_v49 = vcombine.low %v419_v37, %v427_v38  ;;  %v530_v33 = vld [vmem:[#allocation2 + $0xa10] sm:$0xff]  ;;  %v531_v37 = vld [vmem:[#allocation2 + $0xa18] sm:$0xff] }
 0x1f5   :  { %6786 = vmatprep.subr.bf16.mxu0 %v13315_v50  ;;  %6950 = vmatprep.subr.bf16.mxu1 %v13317_v51  ;;  %v13427_v50 = vcombine.high %v434_v43, %v442_v44  ;;  %v13429_v51 = vcombine.high %v435_v45, %v443_v47  ;;  %v538_v35 = vld [vmem:[#allocation2 + $0xa50] sm:$0xff]  ;;  %v539_v38 = vld [vmem:[#allocation2 + $0xa58] sm:$0xff] }
 0x1f8   :  { %6787 = vmatpush1.bf16.msra.mxu0 %v13314_v58  ;;  %6951 = vmatpush1.bf16.msra.mxu1 %v13316_v59  ;;  %v13426_v58 = vcombine.low %v434_v43, %v442_v44  ;;  %v13428_v59 = vcombine.low %v435_v45, %v443_v47  ;;  %v546_v43 = vld [vmem:[#allocation2 + $0xa90] sm:$0xff]  ;;  %v547_v45 = vld [vmem:[#allocation2 + $0xa98] sm:$0xff] }
 0x1f9   :  { %6788 = vmatprep.subr.bf16.mxu0 %v13331_v60  ;;  %6952 = vmatprep.subr.bf16.mxu1 %v13333_v61  ;;  %v13443_v60 = vcombine.high %v450_v52, %v458_v53  ;;  %v13445_v61 = vcombine.high %v451_v55, %v459_v56  ;;  %v554_v44 = vld [vmem:[#allocation2 + $0xad0] sm:$0xff]  ;;  %v555_v47 = vld [vmem:[#allocation2 + $0xad8] sm:$0xff] }
 0x1fc   :  { %6789 = vmatpush1.bf16.msra.mxu0 %v13330_v2  ;;  %6953 = vmatpush1.bf16.msra.mxu1 %v13332_v3  ;;  %v13442_v2 = vcombine.low %v450_v52, %v458_v53  ;;  %v13444_v3 = vcombine.low %v451_v55, %v459_v56  ;;  %v562_v52 = vld [vmem:[#allocation2 + $0xb10] sm:$0xff]  ;;  %v563_v55 = vld [vmem:[#allocation2 + $0xb18] sm:$0xff] }
 0x1fd   :  { %6790 = vmatprep.subr.bf16.mxu0 %v13347_v4  ;;  %6954 = vmatprep.subr.bf16.mxu1 %v13349_v5  ;;  %v13459_v4 = vcombine.high %v466_v62, %v474_v63  ;;  %v13461_v5 = vcombine.high %v467_v0, %v475_v1  ;;  %v570_v53 = vld [vmem:[#allocation2 + $0xb50] sm:$0xff]  ;;  %v571_v56 = vld [vmem:[#allocation2 + $0xb58] sm:$0xff] }
 0x200   :  { %6791 = vmatpush1.bf16.msra.mxu0 %v13346_v10  ;;  %6955 = vmatpush1.bf16.msra.mxu1 %v13348_v11  ;;  %v13458_v10 = vcombine.low %v466_v62, %v474_v63  ;;  %v13460_v11 = vcombine.low %v467_v0, %v475_v1  ;;  %v578_v62 = vld [vmem:[#allocation2 + $0xb90] sm:$0xff]  ;;  %v579_v0 = vld [vmem:[#allocation2 + $0xb98] sm:$0xff] }
 0x201   :  { %6792 = vmatprep.subr.bf16.mxu0 %v13363_v13  ;;  %6956 = vmatprep.subr.bf16.mxu1 %v13365_v14  ;;  %v13475_v13 = vcombine.high %v482_v6, %v490_v7  ;;  %v13477_v14 = vcombine.high %v483_v8, %v491_v9  ;;  %v586_v63 = vld [vmem:[#allocation2 + $0xbd0] sm:$0xff]  ;;  %v587_v1 = vld [vmem:[#allocation2 + $0xbd8] sm:$0xff] }
 0x204   :  { %6793 = vmatpush1.bf16.msra.mxu0 %v13362_v19  ;;  %6957 = vmatpush1.bf16.msra.mxu1 %v13364_v20  ;;  %v13474_v19 = vcombine.low %v482_v6, %v490_v7  ;;  %v13476_v20 = vcombine.low %v483_v8, %v491_v9  ;;  %v594_v6 = vld [vmem:[#allocation2 + $0xc10] sm:$0xff]  ;;  %v595_v8 = vld [vmem:[#allocation2 + $0xc18] sm:$0xff] }
 0x205   :  { %6794 = vmatprep.subr.bf16.mxu0 %v13379_v21  ;;  %6958 = vmatprep.subr.bf16.mxu1 %v13381_v22  ;;  %v13491_v21 = vcombine.high %v498_v15, %v506_v16  ;;  %v13493_v22 = vcombine.high %v499_v17, %v507_v18  ;;  %v602_v7 = vld [vmem:[#allocation2 + $0xc50] sm:$0xff]  ;;  %v603_v9 = vld [vmem:[#allocation2 + $0xc58] sm:$0xff] }
 0x208   :  { %6795 = vmatpush1.bf16.msra.mxu0 %v13378_v29  ;;  %6959 = vmatpush1.bf16.msra.mxu1 %v13380_v30  ;;  %v13490_v29 = vcombine.low %v498_v15, %v506_v16  ;;  %v13492_v30 = vcombine.low %v499_v17, %v507_v18  ;;  %v610_v15 = vld [vmem:[#allocation2 + $0xc90] sm:$0xff]  ;;  %v611_v17 = vld [vmem:[#allocation2 + $0xc98] sm:$0xff] }
 0x209   :  { %6796 = vmatprep.subr.bf16.mxu0 %v13395_v31  ;;  %6960 = vmatprep.subr.bf16.mxu1 %v13397_v32  ;;  %v13507_v31 = vcombine.high %v514_v24, %v522_v26  ;;  %v13509_v32 = vcombine.high %v515_v27, %v523_v28  ;;  %v618_v16 = vld [vmem:[#allocation2 + $0xcd0] sm:$0xff]  ;;  %v619_v18 = vld [vmem:[#allocation2 + $0xcd8] sm:$0xff] }
 0x20c   :  { %6797 = vmatpush1.bf16.msra.mxu0 %v13394_v39  ;;  %6961 = vmatpush1.bf16.msra.mxu1 %v13396_v40  ;;  %v13506_v39 = vcombine.low %v514_v24, %v522_v26  ;;  %v13508_v40 = vcombine.low %v515_v27, %v523_v28  ;;  %v626_v24 = vld [vmem:[#allocation2 + $0xd10] sm:$0xff]  ;;  %v627_v27 = vld [vmem:[#allocation2 + $0xd18] sm:$0xff] }
 0x20d   :  { %6798 = vmatprep.subr.bf16.mxu0 %v13411_v41  ;;  %6962 = vmatprep.subr.bf16.mxu1 %v13413_v42  ;;  %v13523_v41 = vcombine.high %v530_v33, %v538_v35  ;;  %v13525_v42 = vcombine.high %v531_v37, %v539_v38  ;;  %v634_v26 = vld [vmem:[#allocation2 + $0xd50] sm:$0xff]  ;;  %v635_v28 = vld [vmem:[#allocation2 + $0xd58] sm:$0xff] }
 0x210   :  { %6799 = vmatpush1.bf16.msra.mxu0 %v13410_v48  ;;  %6963 = vmatpush1.bf16.msra.mxu1 %v13412_v49  ;;  %v13522_v48 = vcombine.low %v530_v33, %v538_v35  ;;  %v13524_v49 = vcombine.low %v531_v37, %v539_v38  ;;  %v642_v33 = vld [vmem:[#allocation2 + $0xd90] sm:$0xff]  ;;  %v643_v37 = vld [vmem:[#allocation2 + $0xd98] sm:$0xff] }
 0x211   :  { %6800 = vmatprep.subr.bf16.mxu0 %v13427_v50  ;;  %6964 = vmatprep.subr.bf16.mxu1 %v13429_v51  ;;  %v13539_v50 = vcombine.high %v546_v43, %v554_v44  ;;  %v13541_v51 = vcombine.high %v547_v45, %v555_v47  ;;  %v650_v35 = vld [vmem:[#allocation2 + $0xdd0] sm:$0xff]  ;;  %v651_v38 = vld [vmem:[#allocation2 + $0xdd8] sm:$0xff] }
 0x214   :  { %6801 = vmatpush1.bf16.msra.mxu0 %v13426_v58  ;;  %6965 = vmatpush1.bf16.msra.mxu1 %v13428_v59  ;;  %v13538_v58 = vcombine.low %v546_v43, %v554_v44  ;;  %v13540_v59 = vcombine.low %v547_v45, %v555_v47  ;;  %v658_v43 = vld [vmem:[#allocation2 + $0xe10] sm:$0xff]  ;;  %v659_v45 = vld [vmem:[#allocation2 + $0xe18] sm:$0xff] }
 0x215   :  { %6802 = vmatprep.subr.bf16.mxu0 %v13443_v60  ;;  %6966 = vmatprep.subr.bf16.mxu1 %v13445_v61  ;;  %v13555_v60 = vcombine.high %v562_v52, %v570_v53  ;;  %v13557_v61 = vcombine.high %v563_v55, %v571_v56  ;;  %v666_v44 = vld [vmem:[#allocation2 + $0xe50] sm:$0xff]  ;;  %v667_v47 = vld [vmem:[#allocation2 + $0xe58] sm:$0xff] }
 0x218   :  { %6803 = vmatpush1.bf16.msra.mxu0 %v13442_v2  ;;  %6967 = vmatpush1.bf16.msra.mxu1 %v13444_v3  ;;  %v13554_v2 = vcombine.low %v562_v52, %v570_v53  ;;  %v13556_v3 = vcombine.low %v563_v55, %v571_v56  ;;  %v674_v52 = vld [vmem:[#allocation2 + $0xe90] sm:$0xff]  ;;  %v675_v55 = vld [vmem:[#allocation2 + $0xe98] sm:$0xff] }
 0x219   :  { %6813 = vmatprep.subr.bf16.mxu0 %v13459_v4  ;;  %6977 = vmatprep.subr.bf16.mxu1 %v13461_v5  ;;  %v13571_v4 = vcombine.high %v578_v62, %v586_v63  ;;  %v13573_v5 = vcombine.high %v579_v0, %v587_v1  ;;  %v682_v53 = vld [vmem:[#allocation2 + $0xed0] sm:$0xff]  ;;  %v683_v56 = vld [vmem:[#allocation2 + $0xed8] sm:$0xff] }
 0x21b   :  { %6805 = vmatmul.mubr.bf16.vlgmr.msra.gmra.mrb[4].mxu0 %v15922_v12  ;;  %6969 = vmatmul.mubr.bf16.vlgmr.msra.gmra.mrb[4].mxu1 %v15922_v12 }
 0x21c   :  { %6814 = vmatpush1.bf16.msra.mxu0 %v13458_v10  ;;  %6978 = vmatpush1.bf16.msra.mxu1 %v13460_v11  ;;  %v13570_v10 = vcombine.low %v578_v62, %v586_v63  ;;  %v13572_v11 = vcombine.low %v579_v0, %v587_v1  ;;  %v690_v62 = vld [vmem:[#allocation2 + $0xf10] sm:$0xff]  ;;  %v691_v0 = vld [vmem:[#allocation2 + $0xf18] sm:$0xff] }
 0x21d   :  { %6815 = vmatprep.subr.bf16.mxu0 %v13475_v13  ;;  %6979 = vmatprep.subr.bf16.mxu1 %v13477_v14  ;;  %v13587_v13 = vcombine.high %v594_v6, %v602_v7  ;;  %v13589_v14 = vcombine.high %v595_v8, %v603_v9  ;;  %v698_v63 = vld [vmem:[#allocation2 + $0xf50] sm:$0xff]  ;;  %v699_v1 = vld [vmem:[#allocation2 + $0xf58] sm:$0xff] }
 0x21e   :  { %6845 = vmatprep.mubr.bf16.mxu0 %v15927_v23  ;;  %7009 = vmatprep.mubr.bf16.mxu1 %v15927_v23 }
 0x220   :  { %6816 = vmatpush1.bf16.msra.mxu0 %v13474_v19  ;;  %6980 = vmatpush1.bf16.msra.mxu1 %v13476_v20  ;;  %v13586_v19 = vcombine.low %v594_v6, %v602_v7  ;;  %v13588_v20 = vcombine.low %v595_v8, %v603_v9  ;;  %v706_v6 = vld [vmem:[#allocation2 + $0xf90] sm:$0xff]  ;;  %v707_v8 = vld [vmem:[#allocation2 + $0xf98] sm:$0xff] }
 0x221   :  { %6817 = vmatprep.subr.bf16.mxu0 %v13491_v21  ;;  %6981 = vmatprep.subr.bf16.mxu1 %v13493_v22  ;;  %v13603_v21 = vcombine.high %v610_v15, %v618_v16  ;;  %v13605_v22 = vcombine.high %v611_v17, %v619_v18  ;;  %v714_v7 = vld [vmem:[#allocation2 + $0xfd0] sm:$0xff]  ;;  %v715_v9 = vld [vmem:[#allocation2 + $0xfd8] sm:$0xff] }
 0x224   :  { %6818 = vmatpush1.bf16.msra.mxu0 %v13490_v29  ;;  %6982 = vmatpush1.bf16.msra.mxu1 %v13492_v30  ;;  %v13602_v29 = vcombine.low %v610_v15, %v618_v16  ;;  %v13604_v30 = vcombine.low %v611_v17, %v619_v18  ;;  %v722_v15 = vld [vmem:[#allocation2 + $0x1010] sm:$0xff]  ;;  %v723_v17 = vld [vmem:[#allocation2 + $0x1018] sm:$0xff] }
 0x225   :  { %6819 = vmatprep.subr.bf16.mxu0 %v13507_v31  ;;  %6983 = vmatprep.subr.bf16.mxu1 %v13509_v32  ;;  %v13619_v31 = vcombine.high %v626_v24, %v634_v26  ;;  %v13621_v32 = vcombine.high %v627_v27, %v635_v28  ;;  %v730_v16 = vld [vmem:[#allocation2 + $0x1050] sm:$0xff]  ;;  %v731_v18 = vld [vmem:[#allocation2 + $0x1058] sm:$0xff] }
 0x228   :  { %6820 = vmatpush1.bf16.msra.mxu0 %v13506_v39  ;;  %6984 = vmatpush1.bf16.msra.mxu1 %v13508_v40  ;;  %v13618_v39 = vcombine.low %v626_v24, %v634_v26  ;;  %v13620_v40 = vcombine.low %v627_v27, %v635_v28  ;;  %v738_v24 = vld [vmem:[#allocation2 + $0x1090] sm:$0xff]  ;;  %v739_v27 = vld [vmem:[#allocation2 + $0x1098] sm:$0xff] }
 0x229   :  { %6821 = vmatprep.subr.bf16.mxu0 %v13523_v41  ;;  %6985 = vmatprep.subr.bf16.mxu1 %v13525_v42  ;;  %v13635_v41 = vcombine.high %v642_v33, %v650_v35  ;;  %v13637_v42 = vcombine.high %v643_v37, %v651_v38  ;;  %v746_v26 = vld [vmem:[#allocation2 + $0x10d0] sm:$0xff]  ;;  %v747_v28 = vld [vmem:[#allocation2 + $0x10d8] sm:$0xff] }
 0x22c   :  { %6822 = vmatpush1.bf16.msra.mxu0 %v13522_v48  ;;  %6986 = vmatpush1.bf16.msra.mxu1 %v13524_v49  ;;  %v13634_v48 = vcombine.low %v642_v33, %v650_v35  ;;  %v13636_v49 = vcombine.low %v643_v37, %v651_v38  ;;  %v754_v33 = vld [vmem:[#allocation2 + $0x1110] sm:$0xff]  ;;  %v755_v37 = vld [vmem:[#allocation2 + $0x1118] sm:$0xff] }
 0x22d   :  { %6823 = vmatprep.subr.bf16.mxu0 %v13539_v50  ;;  %6987 = vmatprep.subr.bf16.mxu1 %v13541_v51  ;;  %v13651_v50 = vcombine.high %v658_v43, %v666_v44  ;;  %v13653_v51 = vcombine.high %v659_v45, %v667_v47  ;;  %v762_v35 = vld [vmem:[#allocation2 + $0x1150] sm:$0xff]  ;;  %v763_v38 = vld [vmem:[#allocation2 + $0x1158] sm:$0xff] }
 0x230   :  { %6824 = vmatpush1.bf16.msra.mxu0 %v13538_v58  ;;  %6988 = vmatpush1.bf16.msra.mxu1 %v13540_v59  ;;  %v13650_v58 = vcombine.low %v658_v43, %v666_v44  ;;  %v13652_v59 = vcombine.low %v659_v45, %v667_v47  ;;  %v770_v43 = vld [vmem:[#allocation2 + $0x1190] sm:$0xff]  ;;  %v771_v45 = vld [vmem:[#allocation2 + $0x1198] sm:$0xff] }
 0x231   :  { %6825 = vmatprep.subr.bf16.mxu0 %v13555_v60  ;;  %6989 = vmatprep.subr.bf16.mxu1 %v13557_v61  ;;  %v13667_v60 = vcombine.high %v674_v52, %v682_v53  ;;  %v13669_v61 = vcombine.high %v675_v55, %v683_v56  ;;  %v778_v44 = vld [vmem:[#allocation2 + $0x11d0] sm:$0xff]  ;;  %v779_v47 = vld [vmem:[#allocation2 + $0x11d8] sm:$0xff] }
 0x234   :  { %6826 = vmatpush1.bf16.msra.mxu0 %v13554_v2  ;;  %6990 = vmatpush1.bf16.msra.mxu1 %v13556_v3  ;;  %v13666_v2 = vcombine.low %v674_v52, %v682_v53  ;;  %v13668_v3 = vcombine.low %v675_v55, %v683_v56  ;;  %v786_v52 = vld [vmem:[#allocation2 + $0x1210] sm:$0xff]  ;;  %v787_v55 = vld [vmem:[#allocation2 + $0x1218] sm:$0xff] }
 0x235   :  { %6827 = vmatprep.subr.bf16.mxu0 %v13571_v4  ;;  %6991 = vmatprep.subr.bf16.mxu1 %v13573_v5  ;;  %v13683_v4 = vcombine.high %v690_v62, %v698_v63  ;;  %v13685_v5 = vcombine.high %v691_v0, %v699_v1  ;;  %v794_v53 = vld [vmem:[#allocation2 + $0x1250] sm:$0xff]  ;;  %v795_v56 = vld [vmem:[#allocation2 + $0x1258] sm:$0xff] }
 0x238   :  { %6828 = vmatpush1.bf16.msra.mxu0 %v13570_v10  ;;  %6992 = vmatpush1.bf16.msra.mxu1 %v13572_v11  ;;  %v13682_v10 = vcombine.low %v690_v62, %v698_v63  ;;  %v13684_v11 = vcombine.low %v691_v0, %v699_v1  ;;  %v802_v62 = vld [vmem:[#allocation2 + $0x1290] sm:$0xff]  ;;  %v803_v0 = vld [vmem:[#allocation2 + $0x1298] sm:$0xff] }
 0x239   :  { %6829 = vmatprep.subr.bf16.mxu0 %v13587_v13  ;;  %6993 = vmatprep.subr.bf16.mxu1 %v13589_v14  ;;  %v13699_v13 = vcombine.high %v706_v6, %v714_v7  ;;  %v13701_v14 = vcombine.high %v707_v8, %v715_v9  ;;  %v810_v63 = vld [vmem:[#allocation2 + $0x12d0] sm:$0xff]  ;;  %v811_v1 = vld [vmem:[#allocation2 + $0x12d8] sm:$0xff] }
 0x23c   :  { %6830 = vmatpush1.bf16.msra.mxu0 %v13586_v19  ;;  %6994 = vmatpush1.bf16.msra.mxu1 %v13588_v20  ;;  %v13698_v19 = vcombine.low %v706_v6, %v714_v7  ;;  %v13700_v20 = vcombine.low %v707_v8, %v715_v9  ;;  %v818_v6 = vld [vmem:[#allocation2 + $0x1310] sm:$0xff]  ;;  %v819_v8 = vld [vmem:[#allocation2 + $0x1318] sm:$0xff] }
 0x23d   :  { %6831 = vmatprep.subr.bf16.mxu0 %v13603_v21  ;;  %6995 = vmatprep.subr.bf16.mxu1 %v13605_v22  ;;  %v13715_v21 = vcombine.high %v722_v15, %v730_v16  ;;  %v13717_v22 = vcombine.high %v723_v17, %v731_v18  ;;  %v826_v7 = vld [vmem:[#allocation2 + $0x1350] sm:$0xff]  ;;  %v827_v9 = vld [vmem:[#allocation2 + $0x1358] sm:$0xff] }
 0x240   :  { %6832 = vmatpush1.bf16.msra.mxu0 %v13602_v29  ;;  %6996 = vmatpush1.bf16.msra.mxu1 %v13604_v30  ;;  %v13714_v29 = vcombine.low %v722_v15, %v730_v16  ;;  %v13716_v30 = vcombine.low %v723_v17, %v731_v18  ;;  %v834_v15 = vld [vmem:[#allocation2 + $0x1390] sm:$0xff]  ;;  %v835_v17 = vld [vmem:[#allocation2 + $0x1398] sm:$0xff] }
 0x241   :  { %6833 = vmatprep.subr.bf16.mxu0 %v13619_v31  ;;  %6997 = vmatprep.subr.bf16.mxu1 %v13621_v32  ;;  %v13731_v31 = vcombine.high %v738_v24, %v746_v26  ;;  %v13733_v32 = vcombine.high %v739_v27, %v747_v28  ;;  %v842_v16 = vld [vmem:[#allocation2 + $0x13d0] sm:$0xff]  ;;  %v843_v18 = vld [vmem:[#allocation2 + $0x13d8] sm:$0xff] }
 0x244   :  { %6834 = vmatpush1.bf16.msra.mxu0 %v13618_v39  ;;  %6998 = vmatpush1.bf16.msra.mxu1 %v13620_v40  ;;  %v13730_v39 = vcombine.low %v738_v24, %v746_v26  ;;  %v13732_v40 = vcombine.low %v739_v27, %v747_v28  ;;  %v850_v24 = vld [vmem:[#allocation2 + $0x1410] sm:$0xff]  ;;  %v851_v27 = vld [vmem:[#allocation2 + $0x1418] sm:$0xff] }
 0x245   :  { %6835 = vmatprep.subr.bf16.mxu0 %v13635_v41  ;;  %6999 = vmatprep.subr.bf16.mxu1 %v13637_v42  ;;  %v13747_v41 = vcombine.high %v754_v33, %v762_v35  ;;  %v13749_v42 = vcombine.high %v755_v37, %v763_v38  ;;  %v858_v26 = vld [vmem:[#allocation2 + $0x1450] sm:$0xff]  ;;  %v859_v28 = vld [vmem:[#allocation2 + $0x1458] sm:$0xff] }
 0x248   :  { %6836 = vmatpush1.bf16.msra.mxu0 %v13634_v48  ;;  %7000 = vmatpush1.bf16.msra.mxu1 %v13636_v49  ;;  %v13746_v48 = vcombine.low %v754_v33, %v762_v35  ;;  %v13748_v49 = vcombine.low %v755_v37, %v763_v38  ;;  %v866_v33 = vld [vmem:[#allocation2 + $0x1490] sm:$0xff]  ;;  %v867_v37 = vld [vmem:[#allocation2 + $0x1498] sm:$0xff] }
 0x249   :  { %6837 = vmatprep.subr.bf16.mxu0 %v13651_v50  ;;  %7001 = vmatprep.subr.bf16.mxu1 %v13653_v51  ;;  %v13763_v50 = vcombine.high %v770_v43, %v778_v44  ;;  %v13765_v51 = vcombine.high %v771_v45, %v779_v47  ;;  %v874_v35 = vld [vmem:[#allocation2 + $0x14d0] sm:$0xff]  ;;  %v875_v38 = vld [vmem:[#allocation2 + $0x14d8] sm:$0xff] }
 0x24c   :  { %6838 = vmatpush1.bf16.msra.mxu0 %v13650_v58  ;;  %7002 = vmatpush1.bf16.msra.mxu1 %v13652_v59  ;;  %v13762_v58 = vcombine.low %v770_v43, %v778_v44  ;;  %v13764_v59 = vcombine.low %v771_v45, %v779_v47  ;;  %v882_v43 = vld [vmem:[#allocation2 + $0x1510] sm:$0xff]  ;;  %v883_v45 = vld [vmem:[#allocation2 + $0x1518] sm:$0xff] }
 0x24d   :  { %6839 = vmatprep.subr.bf16.mxu0 %v13667_v60  ;;  %7003 = vmatprep.subr.bf16.mxu1 %v13669_v61  ;;  %v13779_v60 = vcombine.high %v786_v52, %v794_v53  ;;  %v13781_v61 = vcombine.high %v787_v55, %v795_v56  ;;  %v890_v44 = vld [vmem:[#allocation2 + $0x1550] sm:$0xff]  ;;  %v891_v47 = vld [vmem:[#allocation2 + $0x1558] sm:$0xff] }
 0x250   :  { %6840 = vmatpush1.bf16.msra.mxu0 %v13666_v2  ;;  %7004 = vmatpush1.bf16.msra.mxu1 %v13668_v3  ;;  %v13778_v2 = vcombine.low %v786_v52, %v794_v53  ;;  %v13780_v3 = vcombine.low %v787_v55, %v795_v56  ;;  %v898_v52 = vld [vmem:[#allocation2 + $0x1590] sm:$0xff]  ;;  %v899_v55 = vld [vmem:[#allocation2 + $0x1598] sm:$0xff] }
 0x251   :  { %6841 = vmatprep.subr.bf16.mxu0 %v13683_v4  ;;  %7005 = vmatprep.subr.bf16.mxu1 %v13685_v5  ;;  %v13795_v4 = vcombine.high %v802_v62, %v810_v63  ;;  %v13797_v5 = vcombine.high %v803_v0, %v811_v1  ;;  %v906_v53 = vld [vmem:[#allocation2 + $0x15d0] sm:$0xff]  ;;  %v907_v56 = vld [vmem:[#allocation2 + $0x15d8] sm:$0xff] }
 0x254   :  { %6842 = vmatpush1.bf16.msra.mxu0 %v13682_v10  ;;  %7006 = vmatpush1.bf16.msra.mxu1 %v13684_v11  ;;  %v13794_v10 = vcombine.low %v802_v62, %v810_v63  ;;  %v13796_v11 = vcombine.low %v803_v0, %v811_v1  ;;  %v914_v62 = vld [vmem:[#allocation2 + $0x1610] sm:$0xff]  ;;  %v915_v0 = vld [vmem:[#allocation2 + $0x1618] sm:$0xff] }
 0x255   :  { %6843 = vmatprep.subr.bf16.mxu0 %v13699_v13  ;;  %7007 = vmatprep.subr.bf16.mxu1 %v13701_v14  ;;  %v13811_v13 = vcombine.high %v818_v6, %v826_v7  ;;  %v13813_v14 = vcombine.high %v819_v8, %v827_v9  ;;  %v922_v63 = vld [vmem:[#allocation2 + $0x1650] sm:$0xff]  ;;  %v923_v1 = vld [vmem:[#allocation2 + $0x1658] sm:$0xff] }
 0x258   :  { %6844 = vmatpush1.bf16.msra.mxu0 %v13698_v19  ;;  %7008 = vmatpush1.bf16.msra.mxu1 %v13700_v20  ;;  %v13810_v19 = vcombine.low %v818_v6, %v826_v7  ;;  %v13812_v20 = vcombine.low %v819_v8, %v827_v9  ;;  %v930_v6 = vld [vmem:[#allocation2 + $0x1690] sm:$0xff]  ;;  %v931_v8 = vld [vmem:[#allocation2 + $0x1698] sm:$0xff] }
 0x259   :  { %6854 = vmatprep.subr.bf16.mxu0 %v13715_v21  ;;  %7018 = vmatprep.subr.bf16.mxu1 %v13717_v22  ;;  %v13827_v21 = vcombine.high %v834_v15, %v842_v16  ;;  %v13829_v22 = vcombine.high %v835_v17, %v843_v18  ;;  %v938_v7 = vld [vmem:[#allocation2 + $0x16d0] sm:$0xff]  ;;  %v939_v9 = vld [vmem:[#allocation2 + $0x16d8] sm:$0xff] }
 0x25b   :  { %6846 = vmatmul.mubr.bf16.vlgmr.msra.gmra.mrb[4].mxu0 %v15939_v25  ;;  %7010 = vmatmul.mubr.bf16.vlgmr.msra.gmra.mrb[4].mxu1 %v15939_v25 }
 0x25c   :  { %6855 = vmatpush1.bf16.msra.mxu0 %v13714_v29  ;;  %7019 = vmatpush1.bf16.msra.mxu1 %v13716_v30  ;;  %v13826_v29 = vcombine.low %v834_v15, %v842_v16  ;;  %v13828_v30 = vcombine.low %v835_v17, %v843_v18  ;;  %v946_v15 = vld [vmem:[#allocation2 + $0x1710] sm:$0xff]  ;;  %v947_v17 = vld [vmem:[#allocation2 + $0x1718] sm:$0xff] }
 0x25d   :  { %6856 = vmatprep.subr.bf16.mxu0 %v13731_v31  ;;  %7020 = vmatprep.subr.bf16.mxu1 %v13733_v32  ;;  %v13843_v31 = vcombine.high %v850_v24, %v858_v26  ;;  %v13845_v32 = vcombine.high %v851_v27, %v859_v28  ;;  %v954_v16 = vld [vmem:[#allocation2 + $0x1750] sm:$0xff]  ;;  %v955_v18 = vld [vmem:[#allocation2 + $0x1758] sm:$0xff] }
 0x25e   :  { %6886 = vmatprep.mubr.bf16.mxu0 %v15941_v34  ;;  %7050 = vmatprep.mubr.bf16.mxu1 %v15941_v34 }
 0x260   :  { %6857 = vmatpush1.bf16.msra.mxu0 %v13730_v39  ;;  %7021 = vmatpush1.bf16.msra.mxu1 %v13732_v40  ;;  %v13842_v39 = vcombine.low %v850_v24, %v858_v26  ;;  %v13844_v40 = vcombine.low %v851_v27, %v859_v28  ;;  %v962_v24 = vld [vmem:[#allocation2 + $0x1790] sm:$0xff]  ;;  %v963_v27 = vld [vmem:[#allocation2 + $0x1798] sm:$0xff] }
 0x261   :  { %6858 = vmatprep.subr.bf16.mxu0 %v13747_v41  ;;  %7022 = vmatprep.subr.bf16.mxu1 %v13749_v42  ;;  %v13859_v41 = vcombine.high %v866_v33, %v874_v35  ;;  %v13861_v42 = vcombine.high %v867_v37, %v875_v38  ;;  %v970_v26 = vld [vmem:[#allocation2 + $0x17d0] sm:$0xff]  ;;  %v971_v28 = vld [vmem:[#allocation2 + $0x17d8] sm:$0xff] }
 0x264   :  { %6859 = vmatpush1.bf16.msra.mxu0 %v13746_v48  ;;  %7023 = vmatpush1.bf16.msra.mxu1 %v13748_v49  ;;  %v13858_v48 = vcombine.low %v866_v33, %v874_v35  ;;  %v13860_v49 = vcombine.low %v867_v37, %v875_v38  ;;  %v978_v33 = vld [vmem:[#allocation2 + $0x1810] sm:$0xff]  ;;  %v979_v37 = vld [vmem:[#allocation2 + $0x1818] sm:$0xff] }
 0x265   :  { %6860 = vmatprep.subr.bf16.mxu0 %v13763_v50  ;;  %7024 = vmatprep.subr.bf16.mxu1 %v13765_v51  ;;  %v13875_v50 = vcombine.high %v882_v43, %v890_v44  ;;  %v13877_v51 = vcombine.high %v883_v45, %v891_v47  ;;  %v986_v35 = vld [vmem:[#allocation2 + $0x1850] sm:$0xff]  ;;  %v987_v38 = vld [vmem:[#allocation2 + $0x1858] sm:$0xff] }
 0x268   :  { %6861 = vmatpush1.bf16.msra.mxu0 %v13762_v58  ;;  %7025 = vmatpush1.bf16.msra.mxu1 %v13764_v59  ;;  %v13874_v58 = vcombine.low %v882_v43, %v890_v44  ;;  %v13876_v59 = vcombine.low %v883_v45, %v891_v47  ;;  %v994_v43 = vld [vmem:[#allocation2 + $0x1890] sm:$0xff]  ;;  %v995_v45 = vld [vmem:[#allocation2 + $0x1898] sm:$0xff] }
 0x269   :  { %6862 = vmatprep.subr.bf16.mxu0 %v13779_v60  ;;  %7026 = vmatprep.subr.bf16.mxu1 %v13781_v61  ;;  %v13891_v60 = vcombine.high %v898_v52, %v906_v53  ;;  %v13893_v61 = vcombine.high %v899_v55, %v907_v56  ;;  %v1002_v44 = vld [vmem:[#allocation2 + $0x18d0] sm:$0xff]  ;;  %v1003_v47 = vld [vmem:[#allocation2 + $0x18d8] sm:$0xff] }
 0x26c   :  { %6863 = vmatpush1.bf16.msra.mxu0 %v13778_v2  ;;  %7027 = vmatpush1.bf16.msra.mxu1 %v13780_v3  ;;  %v13890_v2 = vcombine.low %v898_v52, %v906_v53  ;;  %v13892_v3 = vcombine.low %v899_v55, %v907_v56  ;;  %v1010_v52 = vld [vmem:[#allocation2 + $0x1910] sm:$0xff]  ;;  %v1011_v55 = vld [vmem:[#allocation2 + $0x1918] sm:$0xff] }
 0x26d   :  { %6864 = vmatprep.subr.bf16.mxu0 %v13795_v4  ;;  %7028 = vmatprep.subr.bf16.mxu1 %v13797_v5  ;;  %v13907_v4 = vcombine.high %v914_v62, %v922_v63  ;;  %v13909_v5 = vcombine.high %v915_v0, %v923_v1  ;;  %v1018_v53 = vld [vmem:[#allocation2 + $0x1950] sm:$0xff]  ;;  %v1019_v56 = vld [vmem:[#allocation2 + $0x1958] sm:$0xff] }
 0x270   :  { %6865 = vmatpush1.bf16.msra.mxu0 %v13794_v10  ;;  %7029 = vmatpush1.bf16.msra.mxu1 %v13796_v11  ;;  %v13906_v10 = vcombine.low %v914_v62, %v922_v63  ;;  %v13908_v11 = vcombine.low %v915_v0, %v923_v1  ;;  %v1026_v62 = vld [vmem:[#allocation2 + $0x1990] sm:$0xff]  ;;  %v1027_v0 = vld [vmem:[#allocation2 + $0x1998] sm:$0xff] }
 0x271   :  { %6866 = vmatprep.subr.bf16.mxu0 %v13811_v13  ;;  %7030 = vmatprep.subr.bf16.mxu1 %v13813_v14  ;;  %v13923_v13 = vcombine.high %v930_v6, %v938_v7  ;;  %v13925_v14 = vcombine.high %v931_v8, %v939_v9  ;;  %v1034_v63 = vld [vmem:[#allocation2 + $0x19d0] sm:$0xff]  ;;  %v1035_v1 = vld [vmem:[#allocation2 + $0x19d8] sm:$0xff] }
 0x274   :  { %6867 = vmatpush1.bf16.msra.mxu0 %v13810_v19  ;;  %7031 = vmatpush1.bf16.msra.mxu1 %v13812_v20  ;;  %v13922_v19 = vcombine.low %v930_v6, %v938_v7  ;;  %v13924_v20 = vcombine.low %v931_v8, %v939_v9  ;;  %v1042_v6 = vld [vmem:[#allocation2 + $0x1a10] sm:$0xff]  ;;  %v1043_v8 = vld [vmem:[#allocation2 + $0x1a18] sm:$0xff] }
 0x275   :  { %6868 = vmatprep.subr.bf16.mxu0 %v13827_v21  ;;  %7032 = vmatprep.subr.bf16.mxu1 %v13829_v22  ;;  %v13939_v21 = vcombine.high %v946_v15, %v954_v16  ;;  %v13941_v22 = vcombine.high %v947_v17, %v955_v18  ;;  %v1050_v7 = vld [vmem:[#allocation2 + $0x1a50] sm:$0xff]  ;;  %v1051_v9 = vld [vmem:[#allocation2 + $0x1a58] sm:$0xff] }
 0x278   :  { %6869 = vmatpush1.bf16.msra.mxu0 %v13826_v29  ;;  %7033 = vmatpush1.bf16.msra.mxu1 %v13828_v30  ;;  %v13938_v29 = vcombine.low %v946_v15, %v954_v16  ;;  %v13940_v30 = vcombine.low %v947_v17, %v955_v18  ;;  %v1058_v15 = vld [vmem:[#allocation2 + $0x1a90] sm:$0xff]  ;;  %v1059_v17 = vld [vmem:[#allocation2 + $0x1a98] sm:$0xff] }
 0x279   :  { %6870 = vmatprep.subr.bf16.mxu0 %v13843_v31  ;;  %7034 = vmatprep.subr.bf16.mxu1 %v13845_v32  ;;  %v13955_v31 = vcombine.high %v962_v24, %v970_v26  ;;  %v13957_v32 = vcombine.high %v963_v27, %v971_v28  ;;  %v1066_v16 = vld [vmem:[#allocation2 + $0x1ad0] sm:$0xff]  ;;  %v1067_v18 = vld [vmem:[#allocation2 + $0x1ad8] sm:$0xff] }
 0x27c   :  { %6871 = vmatpush1.bf16.msra.mxu0 %v13842_v39  ;;  %7035 = vmatpush1.bf16.msra.mxu1 %v13844_v40  ;;  %v13954_v39 = vcombine.low %v962_v24, %v970_v26  ;;  %v13956_v40 = vcombine.low %v963_v27, %v971_v28  ;;  %v1074_v24 = vld [vmem:[#allocation2 + $0x1b10] sm:$0xff]  ;;  %v1075_v27 = vld [vmem:[#allocation2 + $0x1b18] sm:$0xff] }
 0x27d   :  { %6872 = vmatprep.subr.bf16.mxu0 %v13859_v41  ;;  %7036 = vmatprep.subr.bf16.mxu1 %v13861_v42  ;;  %v13971_v41 = vcombine.high %v978_v33, %v986_v35  ;;  %v13973_v42 = vcombine.high %v979_v37, %v987_v38  ;;  %v1082_v26 = vld [vmem:[#allocation2 + $0x1b50] sm:$0xff]  ;;  %v1083_v28 = vld [vmem:[#allocation2 + $0x1b58] sm:$0xff] }
 0x280   :  { %6873 = vmatpush1.bf16.msra.mxu0 %v13858_v48  ;;  %7037 = vmatpush1.bf16.msra.mxu1 %v13860_v49  ;;  %v13970_v48 = vcombine.low %v978_v33, %v986_v35  ;;  %v13972_v49 = vcombine.low %v979_v37, %v987_v38  ;;  %v14069_v33 = vcombine.high %v1075_v27, %v1083_v28  ;;  %v1090_v35 = vld [vmem:[#allocation2 + $0x1b90] sm:$0xff] }
 0x281   :  { %6874 = vmatprep.subr.bf16.mxu0 %v13875_v50  ;;  %7038 = vmatprep.subr.bf16.mxu1 %v13877_v51  ;;  %v13987_v50 = vcombine.high %v994_v43, %v1002_v44  ;;  %v13989_v51 = vcombine.high %v995_v45, %v1003_v47  ;;  %v1098_v37 = vld [vmem:[#allocation2 + $0x1bd0] sm:$0xff] }
 0x284   :  { %6875 = vmatpush1.bf16.msra.mxu0 %v13874_v58  ;;  %7039 = vmatpush1.bf16.msra.mxu1 %v13876_v59  ;;  %v13986_v58 = vcombine.low %v994_v43, %v1002_v44  ;;  %v13988_v59 = vcombine.low %v995_v45, %v1003_v47  ;;  %v14066_v44 = vcombine.low %v1074_v24, %v1082_v26 }
 0x285   :  { %6876 = vmatprep.subr.bf16.mxu0 %v13891_v60  ;;  %7040 = vmatprep.subr.bf16.mxu1 %v13893_v61  ;;  %v14003_v60 = vcombine.high %v1010_v52, %v1018_v53  ;;  %v14005_v61 = vcombine.high %v1011_v55, %v1019_v56 }
 0x288   :  { %6877 = vmatpush1.bf16.msra.mxu0 %v13890_v2  ;;  %7041 = vmatpush1.bf16.msra.mxu1 %v13892_v3  ;;  %v14002_v2 = vcombine.low %v1010_v52, %v1018_v53  ;;  %v14004_v3 = vcombine.low %v1011_v55, %v1019_v56  ;;  %v1106_v52 = vld [vmem:[#allocation2 + $0x1c10] sm:$0xff]  ;;  %v1107_v55 = vld [vmem:[#allocation2 + $0x1c18] sm:$0xff] }
 0x289   :  { %6878 = vmatprep.subr.bf16.mxu0 %v13907_v4  ;;  %7042 = vmatprep.subr.bf16.mxu1 %v13909_v5  ;;  %v14019_v4 = vcombine.high %v1026_v62, %v1034_v63  ;;  %v14021_v5 = vcombine.high %v1027_v0, %v1035_v1  ;;  %v1114_v53 = vld [vmem:[#allocation2 + $0x1c50] sm:$0xff]  ;;  %v1115_v56 = vld [vmem:[#allocation2 + $0x1c58] sm:$0xff] }
 0x28c   :  { %6879 = vmatpush1.bf16.msra.mxu0 %v13906_v10  ;;  %7043 = vmatpush1.bf16.msra.mxu1 %v13908_v11  ;;  %v14018_v10 = vcombine.low %v1026_v62, %v1034_v63  ;;  %v14020_v11 = vcombine.low %v1027_v0, %v1035_v1  ;;  %v1122_v62 = vld [vmem:[#allocation2 + $0x1c90] sm:$0xff]  ;;  %v1123_v0 = vld [vmem:[#allocation2 + $0x1c98] sm:$0xff] }
 0x28d   :  { %6880 = vmatprep.subr.bf16.mxu0 %v13923_v13  ;;  %7044 = vmatprep.subr.bf16.mxu1 %v13925_v14  ;;  %v14035_v13 = vcombine.high %v1042_v6, %v1050_v7  ;;  %v14037_v14 = vcombine.high %v1043_v8, %v1051_v9  ;;  %v1130_v63 = vld [vmem:[#allocation2 + $0x1cd0] sm:$0xff]  ;;  %v1131_v1 = vld [vmem:[#allocation2 + $0x1cd8] sm:$0xff] }
 0x290   :  { %6881 = vmatpush1.bf16.msra.mxu0 %v13922_v19  ;;  %7045 = vmatpush1.bf16.msra.mxu1 %v13924_v20  ;;  %v14034_v19 = vcombine.low %v1042_v6, %v1050_v7  ;;  %v14036_v20 = vcombine.low %v1043_v8, %v1051_v9  ;;  %v1138_v6 = vld [vmem:[#allocation2 + $0x1d10] sm:$0xff]  ;;  %v1139_v8 = vld [vmem:[#allocation2 + $0x1d18] sm:$0xff] }
 0x291   :  { %6882 = vmatprep.subr.bf16.mxu0 %v13939_v21  ;;  %7046 = vmatprep.subr.bf16.mxu1 %v13941_v22  ;;  %v14051_v21 = vcombine.high %v1058_v15, %v1066_v16  ;;  %v14053_v22 = vcombine.high %v1059_v17, %v1067_v18  ;;  %v1146_v7 = vld [vmem:[#allocation2 + $0x1d50] sm:$0xff]  ;;  %v1147_v9 = vld [vmem:[#allocation2 + $0x1d58] sm:$0xff] }
 0x294   :  { %6883 = vmatpush1.bf16.msra.mxu0 %v13938_v29  ;;  %7047 = vmatpush1.bf16.msra.mxu1 %v13940_v30  ;;  %v14050_v29 = vcombine.low %v1058_v15, %v1066_v16  ;;  %v14052_v30 = vcombine.low %v1059_v17, %v1067_v18  ;;  %v1154_v15 = vld [vmem:[#allocation2 + $0x1d90] sm:$0xff]  ;;  %v1155_v17 = vld [vmem:[#allocation2 + $0x1d98] sm:$0xff] }
 0x295   :  { %6884 = vmatprep.subr.bf16.mxu0 %v13955_v31  ;;  %7048 = vmatprep.subr.bf16.mxu1 %v13957_v32  ;;  %v14067_v31 = vcombine.high %v1074_v24, %v1082_v26  ;;  %v1162_v16 = vld [vmem:[#allocation2 + $0x1dd0] sm:$0xff]  ;;  %v1163_v18 = vld [vmem:[#allocation2 + $0x1dd8] sm:$0xff] }
 0x296   :  { %v1170_v24 = vld [vmem:[#allocation2 + $0x1e10] sm:$0xff] }
 0x297   :  { %v1178_v26 = vld [vmem:[#allocation2 + $0x1e50] sm:$0xff] }
 0x298   :  { %6885 = vmatpush1.bf16.msra.mxu0 %v13954_v39  ;;  %7049 = vmatpush1.bf16.msra.mxu1 %v13956_v40  ;;  %v1091_v40 = vld [vmem:[#allocation2 + $0x1b98] sm:$0xff] }
 0x299   :  { %6895 = vmatprep.subr.bf16.mxu0 %v13971_v41  ;;  %7059 = vmatprep.subr.bf16.mxu1 %v13973_v42  ;;  %v1099_v41 = vld [vmem:[#allocation2 + $0x1bd8] sm:$0xff] }
 0x29b   :  { %6887 = vmatmul.mubr.bf16.vlgmr.msra.gmra.mrb[4].mxu0 %v15950_v36  ;;  %7051 = vmatmul.mubr.bf16.vlgmr.msra.gmra.mrb[4].mxu1 %v15950_v36 }
 0x29c   :  { %6896 = vmatpush1.bf16.msra.mxu0 %v13970_v48  ;;  %7060 = vmatpush1.bf16.msra.mxu1 %v13972_v49  ;;  %v14068_v48 = vcombine.low %v1075_v27, %v1083_v28  ;;  %v14083_v49 = vcombine.high %v1090_v35, %v1098_v37  ;;  %v1171_v27 = vld [vmem:[#allocation2 + $0x1e18] sm:$0xff] }
 0x29d   :  { %6897 = vmatprep.subr.bf16.mxu0 %v13987_v50  ;;  %7061 = vmatprep.subr.bf16.mxu1 %v13989_v51  ;;  %v14085_v51 = vcombine.high %v1091_v40, %v1099_v41  ;;  %v1179_v28 = vld [vmem:[#allocation2 + $0x1e58] sm:$0xff] }
 0x29e   :  { %6927 = vmatprep.mubr.bf16.mxu0 %v15955_v46  ;;  %7091 = vmatprep.mubr.bf16.mxu1 %v15955_v46 }
 0x2a0   :  { %6898 = vmatpush1.bf16.msra.mxu0 %v13986_v58  ;;  %7062 = vmatpush1.bf16.msra.mxu1 %v13988_v59  ;;  %v14082_v58 = vcombine.low %v1090_v35, %v1098_v37  ;;  %v14084_v59 = vcombine.low %v1091_v40, %v1099_v41  ;;  %v1186_v35 = vld [vmem:[#allocation2 + $0x1e90] sm:$0xff]  ;;  %v1187_v40 = vld [vmem:[#allocation2 + $0x1e98] sm:$0xff] }
 0x2a1   :  { %6899 = vmatprep.subr.bf16.mxu0 %v14003_v60  ;;  %7063 = vmatprep.subr.bf16.mxu1 %v14005_v61  ;;  %v14099_v60 = vcombine.high %v1106_v52, %v1114_v53  ;;  %v14101_v61 = vcombine.high %v1107_v55, %v1115_v56  ;;  %v1194_v37 = vld [vmem:[#allocation2 + $0x1ed0] sm:$0xff]  ;;  %v1195_v41 = vld [vmem:[#allocation2 + $0x1ed8] sm:$0xff] }
 0x2a4   :  { %6900 = vmatpush1.bf16.msra.mxu0 %v14002_v2  ;;  %7064 = vmatpush1.bf16.msra.mxu1 %v14004_v3  ;;  %v14098_v2 = vcombine.low %v1106_v52, %v1114_v53  ;;  %v14100_v3 = vcombine.low %v1107_v55, %v1115_v56  ;;  %v14178_v52 = vcombine.low %v1186_v35, %v1194_v37 }
 0x2a5   :  { %6901 = vmatprep.subr.bf16.mxu0 %v14019_v4  ;;  %7065 = vmatprep.subr.bf16.mxu1 %v14021_v5  ;;  %v14115_v4 = vcombine.high %v1122_v62, %v1130_v63  ;;  %v14117_v5 = vcombine.high %v1123_v0, %v1131_v1  ;;  %v14180_v53 = vcombine.low %v1187_v40, %v1195_v41 }
 0x2a8   :  { %6902 = vmatpush1.bf16.msra.mxu0 %v14018_v10  ;;  %7066 = vmatpush1.bf16.msra.mxu1 %v14020_v11  ;;  %v14114_v10 = vcombine.low %v1122_v62, %v1130_v63  ;;  %v14116_v11 = vcombine.low %v1123_v0, %v1131_v1 }
 0x2a9   :  { %6903 = vmatprep.subr.bf16.mxu0 %v14035_v13  ;;  %7067 = vmatprep.subr.bf16.mxu1 %v14037_v14  ;;  %v14131_v13 = vcombine.high %v1138_v6, %v1146_v7  ;;  %v14133_v14 = vcombine.high %v1139_v8, %v1147_v9 }
 0x2ac   :  { %6904 = vmatpush1.bf16.msra.mxu0 %v14034_v19  ;;  %7068 = vmatpush1.bf16.msra.mxu1 %v14036_v20  ;;  %v14130_v19 = vcombine.low %v1138_v6, %v1146_v7  ;;  %v14132_v20 = vcombine.low %v1139_v8, %v1147_v9 }
 0x2ad   :  { %6905 = vmatprep.subr.bf16.mxu0 %v14051_v21  ;;  %7069 = vmatprep.subr.bf16.mxu1 %v14053_v22  ;;  %v14147_v21 = vcombine.high %v1154_v15, %v1162_v16  ;;  %v14149_v22 = vcombine.high %v1155_v17, %v1163_v18 }
 0x2ae   :  { %v15982_v32 = vpop.f32.mrb[0].mxu0  ;;  %v15984_v38 = vpop.f32.mrb[0].mxu1 }
 0x2af   :  { %v15986_v39 = vpop.f32.mrb[1].mxu0  ;;  %v15988_v42 = vpop.f32.mrb[1].mxu1 }
 0x2b0   :  { %v6605_v43 = vpop.f32.mrb[2].mxu0  ;;  %6906 = vmatpush1.bf16.msra.mxu0 %v14050_v29  ;;  %v6769_v45 = vpop.f32.mrb[2].mxu1  ;;  %7070 = vmatpush1.bf16.msra.mxu1 %v14052_v30  ;;  %v14146_v29 = vcombine.low %v1154_v15, %v1162_v16  ;;  %v14148_v30 = vcombine.low %v1155_v17, %v1163_v18 }
 0x2b1   :  { %v6606_v47 = vpop.f32.mrb[3].mxu0  ;;  %6907 = vmatprep.subr.bf16.mxu0 %v14067_v31  ;;  %v6770_v50 = vpop.f32.mrb[3].mxu1  ;;  %7071 = vmatprep.subr.bf16.mxu1 %v14069_v33  ;;  %v14163_v31 = vcombine.high %v1170_v24, %v1178_v26  ;;  %v14165_v33 = vcombine.high %v1171_v27, %v1179_v28  ;;  %v14162_v43 = vcombine.low %v1170_v24, %v1178_v26 }
 0x2b2   :  { %v14179_v45 = vcombine.high %v1186_v35, %v1194_v37  ;;  %v14181_v47 = vcombine.high %v1187_v40, %v1195_v41  ;;  %v1203_v50 = vld [vmem:[#allocation2 + $0x1f18] sm:$0xff] }
 0x2b4   :  { %6908 = vmatpush1.bf16.msra.mxu0 %v14066_v44  ;;  %7072 = vmatpush1.bf16.msra.mxu1 %v14068_v48  ;;  %v14164_v44 = vcombine.low %v1171_v27, %v1179_v28  ;;  %v1202_v48 = vld [vmem:[#allocation2 + $0x1f10] sm:$0xff] }
 0x2b5   :  { %6909 = vmatprep.subr.bf16.mxu0 %v14083_v49  ;;  %7073 = vmatprep.subr.bf16.mxu1 %v14085_v51  ;;  %v1210_v49 = vld [vmem:[#allocation2 + $0x1f50] sm:$0xff]  ;;  %v1211_v51 = vld [vmem:[#allocation2 + $0x1f58] sm:$0xff] }
 0x2b6   :  { %v14195_v55 = vcombine.high %v1202_v48, %v1210_v49  ;;  %v14197_v56 = vcombine.high %v1203_v50, %v1211_v51  ;;  %v14194_v62 = vcombine.low %v1202_v48, %v1210_v49  ;;  %v14196_v63 = vcombine.low %v1203_v50, %v1211_v51 }
 0x2b8   :  { %6910 = vmatpush1.bf16.msra.mxu0 %v14082_v58  ;;  %7074 = vmatpush1.bf16.msra.mxu1 %v14084_v59  ;;  %v1218_v58 = vld [vmem:[#allocation2 + $0x1f90] sm:$0xff] }
 0x2b9   :  { %6911 = vmatprep.subr.bf16.mxu0 %v14099_v60  ;;  %7075 = vmatprep.subr.bf16.mxu1 %v14101_v61  ;;  %v1226_v59 = vld [vmem:[#allocation2 + $0x1fd0] sm:$0xff]  ;;  %v1219_v60 = vld [vmem:[#allocation2 + $0x1f98] sm:$0xff] }
 0x2ba   :  { %v1227_v61 = vld [vmem:[#allocation2 + $0x1fd8] sm:$0xff]  ;;  %v14211_v0 = vcombine.high %v1218_v58, %v1226_v59  ;;  %v14210_v6 = vcombine.low %v1218_v58, %v1226_v59 }
 0x2bb   :  { %v14213_v1 = vcombine.high %v1219_v60, %v1227_v61  ;;  %v14212_v7 = vcombine.low %v1219_v60, %v1227_v61 }
 0x2bc   :  { %6912 = vmatpush1.bf16.msra.mxu0 %v14098_v2  ;;  %7076 = vmatpush1.bf16.msra.mxu1 %v14100_v3  ;;  %v212_v2 = vld [vmem:[#allocation2 + $0x20] sm:$0xff] }
 0x2bd   :  { %6913 = vmatprep.subr.bf16.mxu0 %v14115_v4  ;;  %7077 = vmatprep.subr.bf16.mxu1 %v14117_v5  ;;  %v220_v3 = vld [vmem:[#allocation2 + $0x60] sm:$0xff] }
 0x2be   :  { %v468_v4 = vld [vmem:[#allocation2 + $0x820] sm:$0xff]  ;;  %v13207_v8 = vcombine.high %v212_v2, %v220_v3  ;;  %v13206_v15 = vcombine.low %v212_v2, %v220_v3 }
 0x2bf   :  { %v476_v5 = vld [vmem:[#allocation2 + $0x860] sm:$0xff] }
 0x2c0   :  { %6914 = vmatpush1.bf16.msra.mxu0 %v14114_v10  ;;  %7078 = vmatpush1.bf16.msra.mxu1 %v14116_v11  ;;  %v13463_v9 = vcombine.high %v468_v4, %v476_v5  ;;  %v228_v10 = vld [vmem:[#allocation2 + $0xa0] sm:$0xff]  ;;  %v13462_v16 = vcombine.low %v468_v4, %v476_v5 }
 0x2c1   :  { %6915 = vmatprep.subr.bf16.mxu0 %v14131_v13  ;;  %7079 = vmatprep.subr.bf16.mxu1 %v14133_v14  ;;  %v236_v11 = vld [vmem:[#allocation2 + $0xe0] sm:$0xff] }
 0x2c2   :  { %v484_v13 = vld [vmem:[#allocation2 + $0x8a0] sm:$0xff]  ;;  %v13223_v17 = vcombine.high %v228_v10, %v236_v11  ;;  %v13222_v24 = vcombine.low %v228_v10, %v236_v11 }
 0x2c3   :  { %v492_v14 = vld [vmem:[#allocation2 + $0x8e0] sm:$0xff] }
 0x2c4   :  { %6916 = vmatpush1.bf16.msra.mxu0 %v14130_v19  ;;  %7080 = vmatpush1.bf16.msra.mxu1 %v14132_v20  ;;  %v13479_v18 = vcombine.high %v484_v13, %v492_v14  ;;  %v244_v19 = vld [vmem:[#allocation2 + $0x120] sm:$0xff]  ;;  %v13478_v26 = vcombine.low %v484_v13, %v492_v14 }
 0x2c5   :  { %6917 = vmatprep.subr.bf16.mxu0 %v14147_v21  ;;  %7081 = vmatprep.subr.bf16.mxu1 %v14149_v22  ;;  %v252_v20 = vld [vmem:[#allocation2 + $0x160] sm:$0xff] }
 0x2c6   :  { %v500_v21 = vld [vmem:[#allocation2 + $0x920] sm:$0xff]  ;;  %v13239_v27 = vcombine.high %v244_v19, %v252_v20  ;;  %v13238_v35 = vcombine.low %v244_v19, %v252_v20 }
 0x2c7   :  { %v508_v22 = vld [vmem:[#allocation2 + $0x960] sm:$0xff] }
 0x2c8   :  { %6918 = vmatpush1.bf16.msra.mxu0 %v14146_v29  ;;  %7082 = vmatpush1.bf16.msra.mxu1 %v14148_v30  ;;  %v13495_v28 = vcombine.high %v500_v21, %v508_v22  ;;  %v260_v29 = vld [vmem:[#allocation2 + $0x1a0] sm:$0xff]  ;;  %v13494_v37 = vcombine.low %v500_v21, %v508_v22 }
 0x2c9   :  { %6919 = vmatprep.subr.bf16.mxu0 %v14163_v31  ;;  %7083 = vmatprep.subr.bf16.mxu1 %v14165_v33  ;;  %v268_v30 = vld [vmem:[#allocation2 + $0x1e0] sm:$0xff] }
 0x2ca   :  { %v516_v31 = vld [vmem:[#allocation2 + $0x9a0] sm:$0xff]  ;;  %v13255_v40 = vcombine.high %v260_v29, %v268_v30  ;;  %v13254_v48 = vcombine.low %v260_v29, %v268_v30 }
 0x2cb   :  { %v524_v33 = vld [vmem:[#allocation2 + $0x9e0] sm:$0xff] }
 0x2cc   :  { %6920 = vmatpush1.bf16.msra.mxu0 %v14162_v43  ;;  %7084 = vmatpush1.bf16.msra.mxu1 %v14164_v44  ;;  %v13511_v41 = vcombine.high %v516_v31, %v524_v33  ;;  %v276_v43 = vld [vmem:[#allocation2 + $0x220] sm:$0xff]  ;;  %v13510_v49 = vcombine.low %v516_v31, %v524_v33 }
 0x2cd   :  { %6921 = vmatprep.subr.bf16.mxu0 %v14179_v45  ;;  %7085 = vmatprep.subr.bf16.mxu1 %v14181_v47  ;;  %v284_v44 = vld [vmem:[#allocation2 + $0x260] sm:$0xff] }
 0x2ce   :  { %v532_v45 = vld [vmem:[#allocation2 + $0xa20] sm:$0xff]  ;;  %v13271_v50 = vcombine.high %v276_v43, %v284_v44  ;;  %v13270_v58 = vcombine.low %v276_v43, %v284_v44 }
 0x2cf   :  { %v540_v47 = vld [vmem:[#allocation2 + $0xa60] sm:$0xff] }
 0x2d0   :  { %6922 = vmatpush1.bf16.msra.mxu0 %v14178_v52  ;;  %7086 = vmatpush1.bf16.msra.mxu1 %v14180_v53  ;;  %v13527_v51 = vcombine.high %v532_v45, %v540_v47  ;;  %v292_v52 = vld [vmem:[#allocation2 + $0x2a0] sm:$0xff]  ;;  %v13526_v59 = vcombine.low %v532_v45, %v540_v47 }
 0x2d1   :  { %6923 = vmatprep.subr.bf16.mxu0 %v14195_v55  ;;  %7087 = vmatprep.subr.bf16.mxu1 %v14197_v56  ;;  %v300_v53 = vld [vmem:[#allocation2 + $0x2e0] sm:$0xff] }
 0x2d2   :  { %v548_v55 = vld [vmem:[#allocation2 + $0xaa0] sm:$0xff]  ;;  %v13287_v60 = vcombine.high %v292_v52, %v300_v53  ;;  %v13286_v2 = vcombine.low %v292_v52, %v300_v53 }
 0x2d3   :  { %v556_v56 = vld [vmem:[#allocation2 + $0xae0] sm:$0xff] }
 0x2d4   :  { %6924 = vmatpush1.bf16.msra.mxu0 %v14194_v62  ;;  %7088 = vmatpush1.bf16.msra.mxu1 %v14196_v63  ;;  %v13543_v61 = vcombine.high %v548_v55, %v556_v56  ;;  %v308_v62 = vld [vmem:[#allocation2 + $0x320] sm:$0xff]  ;;  %v13542_v3 = vcombine.low %v548_v55, %v556_v56 }
 0x2d5   :  { %6925 = vmatprep.subr.bf16.mxu0 %v14211_v0  ;;  %7089 = vmatprep.subr.bf16.mxu1 %v14213_v1  ;;  %v316_v63 = vld [vmem:[#allocation2 + $0x360] sm:$0xff] }
 0x2d6   :  { %v564_v0 = vld [vmem:[#allocation2 + $0xb20] sm:$0xff]  ;;  %v13303_v4 = vcombine.high %v308_v62, %v316_v63  ;;  %v13302_v10 = vcombine.low %v308_v62, %v316_v63 }
 0x2d7   :  { %v572_v1 = vld [vmem:[#allocation2 + $0xb60] sm:$0xff] }
 0x2d8   :  { %6926 = vmatpush1.bf16.msra.mxu0 %v14210_v6  ;;  %7090 = vmatpush1.bf16.msra.mxu1 %v14212_v7  ;;  %v13559_v5 = vcombine.high %v564_v0, %v572_v1  ;;  %v324_v6 = vld [vmem:[#allocation2 + $0x3a0] sm:$0xff]  ;;  %v13558_v11 = vcombine.low %v564_v0, %v572_v1 }
 0x2d9   :  { %7100 = vmatprep.subr.bf16.mxu0 %v13207_v8  ;;  %7141 = vmatprep.subr.bf16.mxu1 %v13463_v9  ;;  %v332_v7 = vld [vmem:[#allocation2 + $0x3e0] sm:$0xff] }
 0x2da   :  { %v580_v8 = vld [vmem:[#allocation2 + $0xba0] sm:$0xff]  ;;  %v13319_v13 = vcombine.high %v324_v6, %v332_v7  ;;  %v13318_v19 = vcombine.low %v324_v6, %v332_v7 }
 0x2db   :  { %6928 = vmatmul.mubr.bf16.vlgmr.msra.gmra.mrb[4].mxu0 %v15964_v54  ;;  %7092 = vmatmul.mubr.bf16.vlgmr.msra.gmra.mrb[4].mxu1 %v15964_v54  ;;  %v588_v9 = vld [vmem:[#allocation2 + $0xbe0] sm:$0xff] }
 0x2dc   :  { %7101 = vmatpush1.bf16.msra.mxu0 %v13206_v15  ;;  %7142 = vmatpush1.bf16.msra.mxu1 %v13462_v16  ;;  %v13575_v14 = vcombine.high %v580_v8, %v588_v9  ;;  %v340_v15 = vld [vmem:[#allocation2 + $0x420] sm:$0xff]  ;;  %v13574_v20 = vcombine.low %v580_v8, %v588_v9 }
 0x2dd   :  { %7102 = vmatprep.subr.bf16.mxu0 %v13223_v17  ;;  %7143 = vmatprep.subr.bf16.mxu1 %v13479_v18  ;;  %v348_v16 = vld [vmem:[#allocation2 + $0x460] sm:$0xff] }
 0x2de   :  { %7132 = vmatprep.mubr.bf16.mxu0 %v15915_v57  ;;  %7173 = vmatprep.mubr.bf16.mxu1 %v15927_v23  ;;  %v596_v17 = vld [vmem:[#allocation2 + $0xc20] sm:$0xff]  ;;  %v13335_v21 = vcombine.high %v340_v15, %v348_v16  ;;  %v13334_v29 = vcombine.low %v340_v15, %v348_v16 }
 0x2df   :  { %v604_v18 = vld [vmem:[#allocation2 + $0xc60] sm:$0xff] }
 0x2e0   :  { %7103 = vmatpush1.bf16.msra.mxu0 %v13222_v24  ;;  %7144 = vmatpush1.bf16.msra.mxu1 %v13478_v26  ;;  %v13591_v22 = vcombine.high %v596_v17, %v604_v18  ;;  %v356_v24 = vld [vmem:[#allocation2 + $0x4a0] sm:$0xff]  ;;  %v13590_v30 = vcombine.low %v596_v17, %v604_v18 }
 0x2e1   :  { %7104 = vmatprep.subr.bf16.mxu0 %v13239_v27  ;;  %7145 = vmatprep.subr.bf16.mxu1 %v13495_v28  ;;  %v364_v26 = vld [vmem:[#allocation2 + $0x4e0] sm:$0xff] }
 0x2e2   :  { %v612_v27 = vld [vmem:[#allocation2 + $0xca0] sm:$0xff]  ;;  %v13351_v31 = vcombine.high %v356_v24, %v364_v26  ;;  %v13350_v43 = vcombine.low %v356_v24, %v364_v26 }
 0x2e3   :  { %v620_v28 = vld [vmem:[#allocation2 + $0xce0] sm:$0xff] }
 0x2e4   :  { %7105 = vmatpush1.bf16.msra.mxu0 %v13238_v35  ;;  %7146 = vmatpush1.bf16.msra.mxu1 %v13494_v37  ;;  %v13607_v33 = vcombine.high %v612_v27, %v620_v28  ;;  %v372_v35 = vld [vmem:[#allocation2 + $0x520] sm:$0xff]  ;;  %v13606_v44 = vcombine.low %v612_v27, %v620_v28 }
 0x2e5   :  { %7106 = vmatprep.subr.bf16.mxu0 %v13255_v40  ;;  %7147 = vmatprep.subr.bf16.mxu1 %v13511_v41  ;;  %v380_v37 = vld [vmem:[#allocation2 + $0x560] sm:$0xff] }
 0x2e6   :  { %v628_v40 = vld [vmem:[#allocation2 + $0xd20] sm:$0xff]  ;;  %v13367_v45 = vcombine.high %v372_v35, %v380_v37  ;;  %v13366_v52 = vcombine.low %v372_v35, %v380_v37 }
 0x2e7   :  { %v636_v41 = vld [vmem:[#allocation2 + $0xd60] sm:$0xff] }
 0x2e8   :  { %7107 = vmatpush1.bf16.msra.mxu0 %v13254_v48  ;;  %7148 = vmatpush1.bf16.msra.mxu1 %v13510_v49  ;;  %v13623_v47 = vcombine.high %v628_v40, %v636_v41  ;;  %v388_v48 = vld [vmem:[#allocation2 + $0x5a0] sm:$0xff]  ;;  %v13622_v53 = vcombine.low %v628_v40, %v636_v41 }
 0x2e9   :  { %7108 = vmatprep.subr.bf16.mxu0 %v13271_v50  ;;  %7149 = vmatprep.subr.bf16.mxu1 %v13527_v51  ;;  %v396_v49 = vld [vmem:[#allocation2 + $0x5e0] sm:$0xff] }
 0x2ea   :  { %v644_v50 = vld [vmem:[#allocation2 + $0xda0] sm:$0xff]  ;;  %v13383_v55 = vcombine.high %v388_v48, %v396_v49  ;;  %v13382_v62 = vcombine.low %v388_v48, %v396_v49 }
 0x2eb   :  { %v652_v51 = vld [vmem:[#allocation2 + $0xde0] sm:$0xff] }
 0x2ec   :  { %7109 = vmatpush1.bf16.msra.mxu0 %v13270_v58  ;;  %7150 = vmatpush1.bf16.msra.mxu1 %v13526_v59  ;;  %v13639_v56 = vcombine.high %v644_v50, %v652_v51  ;;  %v404_v58 = vld [vmem:[#allocation2 + $0x620] sm:$0xff]  ;;  %v13638_v63 = vcombine.low %v644_v50, %v652_v51 }
 0x2ed   :  { %7110 = vmatprep.subr.bf16.mxu0 %v13287_v60  ;;  %7151 = vmatprep.subr.bf16.mxu1 %v13543_v61  ;;  %v412_v59 = vld [vmem:[#allocation2 + $0x660] sm:$0xff] }
 0x2ee   :  { %v660_v60 = vld [vmem:[#allocation2 + $0xe20] sm:$0xff]  ;;  %v13399_v0 = vcombine.high %v404_v58, %v412_v59  ;;  %v13398_v6 = vcombine.low %v404_v58, %v412_v59 }
 0x2ef   :  { %v668_v61 = vld [vmem:[#allocation2 + $0xe60] sm:$0xff] }
 0x2f0   :  { %7111 = vmatpush1.bf16.msra.mxu0 %v13286_v2  ;;  %7152 = vmatpush1.bf16.msra.mxu1 %v13542_v3  ;;  %v13655_v1 = vcombine.high %v660_v60, %v668_v61  ;;  %v420_v2 = vld [vmem:[#allocation2 + $0x6a0] sm:$0xff]  ;;  %v13654_v7 = vcombine.low %v660_v60, %v668_v61 }
 0x2f1   :  { %7112 = vmatprep.subr.bf16.mxu0 %v13303_v4  ;;  %7153 = vmatprep.subr.bf16.mxu1 %v13559_v5  ;;  %v428_v3 = vld [vmem:[#allocation2 + $0x6e0] sm:$0xff] }
 0x2f2   :  { %v676_v4 = vld [vmem:[#allocation2 + $0xea0] sm:$0xff]  ;;  %v13415_v8 = vcombine.high %v420_v2, %v428_v3  ;;  %v13414_v15 = vcombine.low %v420_v2, %v428_v3 }
 0x2f3   :  { %v684_v5 = vld [vmem:[#allocation2 + $0xee0] sm:$0xff] }
 0x2f4   :  { %7113 = vmatpush1.bf16.msra.mxu0 %v13302_v10  ;;  %7154 = vmatpush1.bf16.msra.mxu1 %v13558_v11  ;;  %v13671_v9 = vcombine.high %v676_v4, %v684_v5  ;;  %v436_v10 = vld [vmem:[#allocation2 + $0x720] sm:$0xff]  ;;  %v13670_v16 = vcombine.low %v676_v4, %v684_v5 }
 0x2f5   :  { %7114 = vmatprep.subr.bf16.mxu0 %v13319_v13  ;;  %7155 = vmatprep.subr.bf16.mxu1 %v13575_v14  ;;  %v444_v11 = vld [vmem:[#allocation2 + $0x760] sm:$0xff] }
 0x2f6   :  { %v692_v13 = vld [vmem:[#allocation2 + $0xf20] sm:$0xff]  ;;  %v13431_v17 = vcombine.high %v436_v10, %v444_v11  ;;  %v13430_v24 = vcombine.low %v436_v10, %v444_v11 }
 0x2f7   :  { %v700_v14 = vld [vmem:[#allocation2 + $0xf60] sm:$0xff] }
 0x2f8   :  { %7115 = vmatpush1.bf16.msra.mxu0 %v13318_v19  ;;  %7156 = vmatpush1.bf16.msra.mxu1 %v13574_v20  ;;  %v13687_v18 = vcombine.high %v692_v13, %v700_v14  ;;  %v452_v19 = vld [vmem:[#allocation2 + $0x7a0] sm:$0xff]  ;;  %v13686_v26 = vcombine.low %v692_v13, %v700_v14 }
 0x2f9   :  { %7116 = vmatprep.subr.bf16.mxu0 %v13335_v21  ;;  %7157 = vmatprep.subr.bf16.mxu1 %v13591_v22  ;;  %v460_v20 = vld [vmem:[#allocation2 + $0x7e0] sm:$0xff] }
 0x2fa   :  { %v708_v21 = vld [vmem:[#allocation2 + $0xfa0] sm:$0xff]  ;;  %v13447_v27 = vcombine.high %v452_v19, %v460_v20  ;;  %v13446_v35 = vcombine.low %v452_v19, %v460_v20 }
 0x2fb   :  { %v716_v22 = vld [vmem:[#allocation2 + $0xfe0] sm:$0xff] }
 0x2fc   :  { %7117 = vmatpush1.bf16.msra.mxu0 %v13334_v29  ;;  %7158 = vmatpush1.bf16.msra.mxu1 %v13590_v30  ;;  %v13703_v28 = vcombine.high %v708_v21, %v716_v22  ;;  %v724_v29 = vld [vmem:[#allocation2 + $0x1020] sm:$0xff]  ;;  %v13702_v37 = vcombine.low %v708_v21, %v716_v22 }
 0x2fd   :  { %7118 = vmatprep.subr.bf16.mxu0 %v13351_v31  ;;  %7159 = vmatprep.subr.bf16.mxu1 %v13607_v33  ;;  %v732_v30 = vld [vmem:[#allocation2 + $0x1060] sm:$0xff] }
 0x2fe   :  { %v980_v31 = vld [vmem:[#allocation2 + $0x1820] sm:$0xff]  ;;  %v13719_v40 = vcombine.high %v724_v29, %v732_v30  ;;  %v13718_v48 = vcombine.low %v724_v29, %v732_v30 }
 0x2ff   :  { %v988_v33 = vld [vmem:[#allocation2 + $0x1860] sm:$0xff] }
 0x300   :  { %7119 = vmatpush1.bf16.msra.mxu0 %v13350_v43  ;;  %7160 = vmatpush1.bf16.msra.mxu1 %v13606_v44  ;;  %v13975_v41 = vcombine.high %v980_v31, %v988_v33  ;;  %v740_v43 = vld [vmem:[#allocation2 + $0x10a0] sm:$0xff]  ;;  %v13974_v49 = vcombine.low %v980_v31, %v988_v33 }
 0x301   :  { %7120 = vmatprep.subr.bf16.mxu0 %v13367_v45  ;;  %7161 = vmatprep.subr.bf16.mxu1 %v13623_v47  ;;  %v748_v44 = vld [vmem:[#allocation2 + $0x10e0] sm:$0xff] }
 0x302   :  { %v996_v45 = vld [vmem:[#allocation2 + $0x18a0] sm:$0xff]  ;;  %v13735_v50 = vcombine.high %v740_v43, %v748_v44  ;;  %v13734_v58 = vcombine.low %v740_v43, %v748_v44 }
 0x303   :  { %v1004_v47 = vld [vmem:[#allocation2 + $0x18e0] sm:$0xff] }
 0x304   :  { %7121 = vmatpush1.bf16.msra.mxu0 %v13366_v52  ;;  %7162 = vmatpush1.bf16.msra.mxu1 %v13622_v53  ;;  %v13991_v51 = vcombine.high %v996_v45, %v1004_v47  ;;  %v756_v52 = vld [vmem:[#allocation2 + $0x1120] sm:$0xff]  ;;  %v13990_v59 = vcombine.low %v996_v45, %v1004_v47 }
 0x305   :  { %7122 = vmatprep.subr.bf16.mxu0 %v13383_v55  ;;  %7163 = vmatprep.subr.bf16.mxu1 %v13639_v56  ;;  %v764_v53 = vld [vmem:[#allocation2 + $0x1160] sm:$0xff] }
 0x306   :  { %v1012_v55 = vld [vmem:[#allocation2 + $0x1920] sm:$0xff]  ;;  %v13751_v60 = vcombine.high %v756_v52, %v764_v53  ;;  %v13750_v2 = vcombine.low %v756_v52, %v764_v53 }
 0x307   :  { %v1020_v56 = vld [vmem:[#allocation2 + $0x1960] sm:$0xff] }
 0x308   :  { %7123 = vmatpush1.bf16.msra.mxu0 %v13382_v62  ;;  %7164 = vmatpush1.bf16.msra.mxu1 %v13638_v63  ;;  %v14007_v61 = vcombine.high %v1012_v55, %v1020_v56  ;;  %v772_v62 = vld [vmem:[#allocation2 + $0x11a0] sm:$0xff]  ;;  %v14006_v3 = vcombine.low %v1012_v55, %v1020_v56 }
 0x309   :  { %7124 = vmatprep.subr.bf16.mxu0 %v13399_v0  ;;  %7165 = vmatprep.subr.bf16.mxu1 %v13655_v1  ;;  %v780_v63 = vld [vmem:[#allocation2 + $0x11e0] sm:$0xff] }
 0x30a   :  { %v1028_v0 = vld [vmem:[#allocation2 + $0x19a0] sm:$0xff]  ;;  %v13767_v4 = vcombine.high %v772_v62, %v780_v63  ;;  %v13766_v10 = vcombine.low %v772_v62, %v780_v63 }
 0x30b   :  { %v1036_v1 = vld [vmem:[#allocation2 + $0x19e0] sm:$0xff] }
 0x30c   :  { %7125 = vmatpush1.bf16.msra.mxu0 %v13398_v6  ;;  %7166 = vmatpush1.bf16.msra.mxu1 %v13654_v7  ;;  %v14023_v5 = vcombine.high %v1028_v0, %v1036_v1  ;;  %v788_v6 = vld [vmem:[#allocation2 + $0x1220] sm:$0xff]  ;;  %v14022_v11 = vcombine.low %v1028_v0, %v1036_v1 }
 0x30d   :  { %7126 = vmatprep.subr.bf16.mxu0 %v13415_v8  ;;  %7167 = vmatprep.subr.bf16.mxu1 %v13671_v9  ;;  %v796_v7 = vld [vmem:[#allocation2 + $0x1260] sm:$0xff] }
 0x30e   :  { %v1044_v8 = vld [vmem:[#allocation2 + $0x1a20] sm:$0xff]  ;;  %v13783_v13 = vcombine.high %v788_v6, %v796_v7  ;;  %v13782_v19 = vcombine.low %v788_v6, %v796_v7 }
 0x30f   :  { %v1052_v9 = vld [vmem:[#allocation2 + $0x1a60] sm:$0xff] }
 0x310   :  { %7127 = vmatpush1.bf16.msra.mxu0 %v13414_v15  ;;  %7168 = vmatpush1.bf16.msra.mxu1 %v13670_v16  ;;  %v14039_v14 = vcombine.high %v1044_v8, %v1052_v9  ;;  %v804_v15 = vld [vmem:[#allocation2 + $0x12a0] sm:$0xff]  ;;  %v14038_v20 = vcombine.low %v1044_v8, %v1052_v9 }
 0x311   :  { %7128 = vmatprep.subr.bf16.mxu0 %v13431_v17  ;;  %7169 = vmatprep.subr.bf16.mxu1 %v13687_v18  ;;  %v812_v16 = vld [vmem:[#allocation2 + $0x12e0] sm:$0xff] }
 0x312   :  { %v1060_v17 = vld [vmem:[#allocation2 + $0x1aa0] sm:$0xff]  ;;  %v13799_v21 = vcombine.high %v804_v15, %v812_v16  ;;  %v13798_v29 = vcombine.low %v804_v15, %v812_v16 }
 0x313   :  { %v1068_v18 = vld [vmem:[#allocation2 + $0x1ae0] sm:$0xff] }
 0x314   :  { %7129 = vmatpush1.bf16.msra.mxu0 %v13430_v24  ;;  %7170 = vmatpush1.bf16.msra.mxu1 %v13686_v26  ;;  %v14055_v22 = vcombine.high %v1060_v17, %v1068_v18  ;;  %v820_v24 = vld [vmem:[#allocation2 + $0x1320] sm:$0xff]  ;;  %v14054_v30 = vcombine.low %v1060_v17, %v1068_v18 }
 0x315   :  { %7130 = vmatprep.subr.bf16.mxu0 %v13447_v27  ;;  %7171 = vmatprep.subr.bf16.mxu1 %v13703_v28  ;;  %v828_v26 = vld [vmem:[#allocation2 + $0x1360] sm:$0xff] }
 0x316   :  { %v1076_v27 = vld [vmem:[#allocation2 + $0x1b20] sm:$0xff]  ;;  %v13815_v31 = vcombine.high %v820_v24, %v828_v26  ;;  %v13814_v43 = vcombine.low %v820_v24, %v828_v26 }
 0x317   :  { %v1084_v28 = vld [vmem:[#allocation2 + $0x1b60] sm:$0xff] }
 0x318   :  { %7131 = vmatpush1.bf16.msra.mxu0 %v13446_v35  ;;  %7172 = vmatpush1.bf16.msra.mxu1 %v13702_v37  ;;  %v14071_v33 = vcombine.high %v1076_v27, %v1084_v28  ;;  %v836_v35 = vld [vmem:[#allocation2 + $0x13a0] sm:$0xff]  ;;  %v14070_v44 = vcombine.low %v1076_v27, %v1084_v28 }
 0x319   :  { %7182 = vmatprep.subr.bf16.mxu0 %v13719_v40  ;;  %7223 = vmatprep.subr.bf16.mxu1 %v13975_v41  ;;  %v844_v37 = vld [vmem:[#allocation2 + $0x13e0] sm:$0xff] }
 0x31a   :  { %v1092_v40 = vld [vmem:[#allocation2 + $0x1ba0] sm:$0xff]  ;;  %v13831_v45 = vcombine.high %v836_v35, %v844_v37  ;;  %v13830_v52 = vcombine.low %v836_v35, %v844_v37 }
 0x31b   :  { %7133 = vmatmul.mubr.bf16.vlgmr.msra.gmra.mrb[8].mxu0 %v15922_v12  ;;  %7174 = vmatmul.mubr.bf16.vlgmr.msra.gmra.mrb[8].mxu1 %v15939_v25  ;;  %v1100_v41 = vld [vmem:[#allocation2 + $0x1be0] sm:$0xff] }
 0x31c   :  { %7183 = vmatpush1.bf16.msra.mxu0 %v13718_v48  ;;  %7224 = vmatpush1.bf16.msra.mxu1 %v13974_v49  ;;  %v14087_v47 = vcombine.high %v1092_v40, %v1100_v41  ;;  %v852_v48 = vld [vmem:[#allocation2 + $0x1420] sm:$0xff]  ;;  %v14086_v53 = vcombine.low %v1092_v40, %v1100_v41 }
 0x31d   :  { %7184 = vmatprep.subr.bf16.mxu0 %v13735_v50  ;;  %7225 = vmatprep.subr.bf16.mxu1 %v13991_v51  ;;  %v860_v49 = vld [vmem:[#allocation2 + $0x1460] sm:$0xff] }
 0x31e   :  { %7214 = vmatprep.mubr.bf16.mxu0 %v15941_v34  ;;  %7255 = vmatprep.mubr.bf16.mxu1 %v15955_v46  ;;  %v1108_v50 = vld [vmem:[#allocation2 + $0x1c20] sm:$0xff]  ;;  %v13847_v55 = vcombine.high %v852_v48, %v860_v49  ;;  %v13846_v62 = vcombine.low %v852_v48, %v860_v49 }
 0x31f   :  { %v1116_v51 = vld [vmem:[#allocation2 + $0x1c60] sm:$0xff] }
 0x320   :  { %7185 = vmatpush1.bf16.msra.mxu0 %v13734_v58  ;;  %7226 = vmatpush1.bf16.msra.mxu1 %v13990_v59  ;;  %v14103_v56 = vcombine.high %v1108_v50, %v1116_v51  ;;  %v868_v58 = vld [vmem:[#allocation2 + $0x14a0] sm:$0xff]  ;;  %v14102_v63 = vcombine.low %v1108_v50, %v1116_v51 }
 0x321   :  { %7186 = vmatprep.subr.bf16.mxu0 %v13751_v60  ;;  %7227 = vmatprep.subr.bf16.mxu1 %v14007_v61  ;;  %v876_v59 = vld [vmem:[#allocation2 + $0x14e0] sm:$0xff] }
 0x322   :  { %v1124_v60 = vld [vmem:[#allocation2 + $0x1ca0] sm:$0xff]  ;;  %v13863_v0 = vcombine.high %v868_v58, %v876_v59  ;;  %v13862_v6 = vcombine.low %v868_v58, %v876_v59 }
 0x323   :  { %v1132_v61 = vld [vmem:[#allocation2 + $0x1ce0] sm:$0xff] }
 0x324   :  { %7187 = vmatpush1.bf16.msra.mxu0 %v13750_v2  ;;  %7228 = vmatpush1.bf16.msra.mxu1 %v14006_v3  ;;  %v14119_v1 = vcombine.high %v1124_v60, %v1132_v61  ;;  %v884_v2 = vld [vmem:[#allocation2 + $0x1520] sm:$0xff]  ;;  %v14118_v7 = vcombine.low %v1124_v60, %v1132_v61 }
 0x325   :  { %7188 = vmatprep.subr.bf16.mxu0 %v13767_v4  ;;  %7229 = vmatprep.subr.bf16.mxu1 %v14023_v5  ;;  %v892_v3 = vld [vmem:[#allocation2 + $0x1560] sm:$0xff] }
 0x326   :  { %v1140_v4 = vld [vmem:[#allocation2 + $0x1d20] sm:$0xff]  ;;  %v13879_v8 = vcombine.high %v884_v2, %v892_v3  ;;  %v13878_v15 = vcombine.low %v884_v2, %v892_v3 }
 0x327   :  { %v1148_v5 = vld [vmem:[#allocation2 + $0x1d60] sm:$0xff] }
 0x328   :  { %7189 = vmatpush1.bf16.msra.mxu0 %v13766_v10  ;;  %7230 = vmatpush1.bf16.msra.mxu1 %v14022_v11  ;;  %v14135_v9 = vcombine.high %v1140_v4, %v1148_v5  ;;  %v900_v10 = vld [vmem:[#allocation2 + $0x15a0] sm:$0xff]  ;;  %v14134_v16 = vcombine.low %v1140_v4, %v1148_v5 }
 0x329   :  { %7190 = vmatprep.subr.bf16.mxu0 %v13783_v13  ;;  %7231 = vmatprep.subr.bf16.mxu1 %v14039_v14  ;;  %v908_v11 = vld [vmem:[#allocation2 + $0x15e0] sm:$0xff] }
 0x32a   :  { %v1156_v13 = vld [vmem:[#allocation2 + $0x1da0] sm:$0xff]  ;;  %v13895_v17 = vcombine.high %v900_v10, %v908_v11  ;;  %v13894_v24 = vcombine.low %v900_v10, %v908_v11 }
 0x32b   :  { %v1164_v14 = vld [vmem:[#allocation2 + $0x1de0] sm:$0xff] }
 0x32c   :  { %7191 = vmatpush1.bf16.msra.mxu0 %v13782_v19  ;;  %7232 = vmatpush1.bf16.msra.mxu1 %v14038_v20  ;;  %v14151_v18 = vcombine.high %v1156_v13, %v1164_v14  ;;  %v916_v19 = vld [vmem:[#allocation2 + $0x1620] sm:$0xff]  ;;  %v14150_v26 = vcombine.low %v1156_v13, %v1164_v14 }
 0x32d   :  { %7192 = vmatprep.subr.bf16.mxu0 %v13799_v21  ;;  %7233 = vmatprep.subr.bf16.mxu1 %v14055_v22  ;;  %v924_v20 = vld [vmem:[#allocation2 + $0x1660] sm:$0xff] }
 0x32e   :  { %v1172_v21 = vld [vmem:[#allocation2 + $0x1e20] sm:$0xff]  ;;  %v13911_v27 = vcombine.high %v916_v19, %v924_v20  ;;  %v13910_v35 = vcombine.low %v916_v19, %v924_v20 }
 0x32f   :  { %v1180_v22 = vld [vmem:[#allocation2 + $0x1e60] sm:$0xff] }
 0x330   :  { %7193 = vmatpush1.bf16.msra.mxu0 %v13798_v29  ;;  %7234 = vmatpush1.bf16.msra.mxu1 %v14054_v30  ;;  %v14167_v28 = vcombine.high %v1172_v21, %v1180_v22  ;;  %v932_v29 = vld [vmem:[#allocation2 + $0x16a0] sm:$0xff]  ;;  %v14166_v37 = vcombine.low %v1172_v21, %v1180_v22 }
 0x331   :  { %7194 = vmatprep.subr.bf16.mxu0 %v13815_v31  ;;  %7235 = vmatprep.subr.bf16.mxu1 %v14071_v33  ;;  %v940_v30 = vld [vmem:[#allocation2 + $0x16e0] sm:$0xff] }
 0x332   :  { %v1188_v31 = vld [vmem:[#allocation2 + $0x1ea0] sm:$0xff]  ;;  %v13927_v40 = vcombine.high %v932_v29, %v940_v30  ;;  %v13926_v48 = vcombine.low %v932_v29, %v940_v30 }
 0x333   :  { %v1196_v33 = vld [vmem:[#allocation2 + $0x1ee0] sm:$0xff] }
 0x334   :  { %7195 = vmatpush1.bf16.msra.mxu0 %v13814_v43  ;;  %7236 = vmatpush1.bf16.msra.mxu1 %v14070_v44  ;;  %v14183_v41 = vcombine.high %v1188_v31, %v1196_v33  ;;  %v948_v43 = vld [vmem:[#allocation2 + $0x1720] sm:$0xff]  ;;  %v14182_v49 = vcombine.low %v1188_v31, %v1196_v33 }
 0x335   :  { %7196 = vmatprep.subr.bf16.mxu0 %v13831_v45  ;;  %7237 = vmatprep.subr.bf16.mxu1 %v14087_v47  ;;  %v956_v44 = vld [vmem:[#allocation2 + $0x1760] sm:$0xff] }
 0x336   :  { %v1204_v45 = vld [vmem:[#allocation2 + $0x1f20] sm:$0xff]  ;;  %v13943_v50 = vcombine.high %v948_v43, %v956_v44  ;;  %v13942_v58 = vcombine.low %v948_v43, %v956_v44 }
 0x337   :  { %v1212_v47 = vld [vmem:[#allocation2 + $0x1f60] sm:$0xff] }
 0x338   :  { %7197 = vmatpush1.bf16.msra.mxu0 %v13830_v52  ;;  %7238 = vmatpush1.bf16.msra.mxu1 %v14086_v53  ;;  %v14199_v51 = vcombine.high %v1204_v45, %v1212_v47  ;;  %v964_v52 = vld [vmem:[#allocation2 + $0x17a0] sm:$0xff]  ;;  %v14198_v59 = vcombine.low %v1204_v45, %v1212_v47 }
 0x339   :  { %7198 = vmatprep.subr.bf16.mxu0 %v13847_v55  ;;  %7239 = vmatprep.subr.bf16.mxu1 %v14103_v56  ;;  %v972_v53 = vld [vmem:[#allocation2 + $0x17e0] sm:$0xff] }
 0x33a   :  { %v1220_v55 = vld [vmem:[#allocation2 + $0x1fa0] sm:$0xff]  ;;  %v13959_v60 = vcombine.high %v964_v52, %v972_v53  ;;  %v13958_v2 = vcombine.low %v964_v52, %v972_v53 }
 0x33b   :  { %v1228_v56 = vld [vmem:[#allocation2 + $0x1fe0] sm:$0xff] }
 0x33c   :  { %7199 = vmatpush1.bf16.msra.mxu0 %v13846_v62  ;;  %7240 = vmatpush1.bf16.msra.mxu1 %v14102_v63  ;;  %v14215_v61 = vcombine.high %v1220_v55, %v1228_v56  ;;  %v213_v62 = vld [vmem:[#allocation2 + $0x28] sm:$0xff]  ;;  %v14214_v3 = vcombine.low %v1220_v55, %v1228_v56 }
 0x33d   :  { %7200 = vmatprep.subr.bf16.mxu0 %v13863_v0  ;;  %7241 = vmatprep.subr.bf16.mxu1 %v14119_v1  ;;  %v221_v63 = vld [vmem:[#allocation2 + $0x68] sm:$0xff] }
 0x33e   :  { %v469_v0 = vld [vmem:[#allocation2 + $0x828] sm:$0xff]  ;;  %v13209_v4 = vcombine.high %v213_v62, %v221_v63  ;;  %v13208_v10 = vcombine.low %v213_v62, %v221_v63 }
 0x33f   :  { %v477_v1 = vld [vmem:[#allocation2 + $0x868] sm:$0xff] }
 0x340   :  { %7201 = vmatpush1.bf16.msra.mxu0 %v13862_v6  ;;  %7242 = vmatpush1.bf16.msra.mxu1 %v14118_v7  ;;  %v13465_v5 = vcombine.high %v469_v0, %v477_v1  ;;  %v229_v6 = vld [vmem:[#allocation2 + $0xa8] sm:$0xff]  ;;  %v13464_v11 = vcombine.low %v469_v0, %v477_v1 }
 0x341   :  { %7202 = vmatprep.subr.bf16.mxu0 %v13879_v8  ;;  %7243 = vmatprep.subr.bf16.mxu1 %v14135_v9  ;;  %v237_v7 = vld [vmem:[#allocation2 + $0xe8] sm:$0xff] }
 0x342   :  { %v485_v8 = vld [vmem:[#allocation2 + $0x8a8] sm:$0xff]  ;;  %v13225_v13 = vcombine.high %v229_v6, %v237_v7  ;;  %v13224_v19 = vcombine.low %v229_v6, %v237_v7 }
 0x343   :  { %v493_v9 = vld [vmem:[#allocation2 + $0x8e8] sm:$0xff] }
 0x344   :  { %7203 = vmatpush1.bf16.msra.mxu0 %v13878_v15  ;;  %7244 = vmatpush1.bf16.msra.mxu1 %v14134_v16  ;;  %v13481_v14 = vcombine.high %v485_v8, %v493_v9  ;;  %v245_v15 = vld [vmem:[#allocation2 + $0x128] sm:$0xff]  ;;  %v13480_v20 = vcombine.low %v485_v8, %v493_v9 }
 0x345   :  { %7204 = vmatprep.subr.bf16.mxu0 %v13895_v17  ;;  %7245 = vmatprep.subr.bf16.mxu1 %v14151_v18  ;;  %v253_v16 = vld [vmem:[#allocation2 + $0x168] sm:$0xff] }
 0x346   :  { %v501_v17 = vld [vmem:[#allocation2 + $0x928] sm:$0xff]  ;;  %v13241_v21 = vcombine.high %v245_v15, %v253_v16  ;;  %v13240_v29 = vcombine.low %v245_v15, %v253_v16 }
 0x347   :  { %v509_v18 = vld [vmem:[#allocation2 + $0x968] sm:$0xff] }
 0x348   :  { %7205 = vmatpush1.bf16.msra.mxu0 %v13894_v24  ;;  %7246 = vmatpush1.bf16.msra.mxu1 %v14150_v26  ;;  %v13497_v22 = vcombine.high %v501_v17, %v509_v18  ;;  %v261_v24 = vld [vmem:[#allocation2 + $0x1a8] sm:$0xff]  ;;  %v13496_v30 = vcombine.low %v501_v17, %v509_v18 }
 0x349   :  { %7206 = vmatprep.subr.bf16.mxu0 %v13911_v27  ;;  %7247 = vmatprep.subr.bf16.mxu1 %v14167_v28  ;;  %v269_v26 = vld [vmem:[#allocation2 + $0x1e8] sm:$0xff] }
 0x34a   :  { %v517_v27 = vld [vmem:[#allocation2 + $0x9a8] sm:$0xff]  ;;  %v13257_v31 = vcombine.high %v261_v24, %v269_v26  ;;  %v13256_v43 = vcombine.low %v261_v24, %v269_v26 }
 0x34b   :  { %v525_v28 = vld [vmem:[#allocation2 + $0x9e8] sm:$0xff] }
 0x34c   :  { %7207 = vmatpush1.bf16.msra.mxu0 %v13910_v35  ;;  %7248 = vmatpush1.bf16.msra.mxu1 %v14166_v37  ;;  %v13513_v33 = vcombine.high %v517_v27, %v525_v28  ;;  %v277_v35 = vld [vmem:[#allocation2 + $0x228] sm:$0xff]  ;;  %v13512_v44 = vcombine.low %v517_v27, %v525_v28 }
 0x34d   :  { %7208 = vmatprep.subr.bf16.mxu0 %v13927_v40  ;;  %7249 = vmatprep.subr.bf16.mxu1 %v14183_v41  ;;  %v285_v37 = vld [vmem:[#allocation2 + $0x268] sm:$0xff] }
 0x34e   :  { %v533_v40 = vld [vmem:[#allocation2 + $0xa28] sm:$0xff]  ;;  %v13273_v45 = vcombine.high %v277_v35, %v285_v37  ;;  %v13272_v52 = vcombine.low %v277_v35, %v285_v37 }
 0x34f   :  { %v541_v41 = vld [vmem:[#allocation2 + $0xa68] sm:$0xff] }
 0x350   :  { %7209 = vmatpush1.bf16.msra.mxu0 %v13926_v48  ;;  %7250 = vmatpush1.bf16.msra.mxu1 %v14182_v49  ;;  %v13529_v47 = vcombine.high %v533_v40, %v541_v41  ;;  %v293_v48 = vld [vmem:[#allocation2 + $0x2a8] sm:$0xff]  ;;  %v13528_v53 = vcombine.low %v533_v40, %v541_v41 }
 0x351   :  { %7210 = vmatprep.subr.bf16.mxu0 %v13943_v50  ;;  %7251 = vmatprep.subr.bf16.mxu1 %v14199_v51  ;;  %v301_v49 = vld [vmem:[#allocation2 + $0x2e8] sm:$0xff] }
 0x352   :  { %v549_v50 = vld [vmem:[#allocation2 + $0xaa8] sm:$0xff]  ;;  %v13289_v55 = vcombine.high %v293_v48, %v301_v49  ;;  %v13288_v62 = vcombine.low %v293_v48, %v301_v49 }
 0x353   :  { %v557_v51 = vld [vmem:[#allocation2 + $0xae8] sm:$0xff] }
 0x354   :  { %7211 = vmatpush1.bf16.msra.mxu0 %v13942_v58  ;;  %7252 = vmatpush1.bf16.msra.mxu1 %v14198_v59  ;;  %v13545_v56 = vcombine.high %v549_v50, %v557_v51  ;;  %v309_v58 = vld [vmem:[#allocation2 + $0x328] sm:$0xff]  ;;  %v13544_v63 = vcombine.low %v549_v50, %v557_v51 }
 0x355   :  { %7212 = vmatprep.subr.bf16.mxu0 %v13959_v60  ;;  %7253 = vmatprep.subr.bf16.mxu1 %v14215_v61  ;;  %v317_v59 = vld [vmem:[#allocation2 + $0x368] sm:$0xff] }
 0x356   :  { %v565_v60 = vld [vmem:[#allocation2 + $0xb28] sm:$0xff]  ;;  %v13305_v0 = vcombine.high %v309_v58, %v317_v59  ;;  %v13304_v6 = vcombine.low %v309_v58, %v317_v59 }
 0x357   :  { %v573_v61 = vld [vmem:[#allocation2 + $0xb68] sm:$0xff] }
 0x358   :  { %7213 = vmatpush1.bf16.msra.mxu0 %v13958_v2  ;;  %7254 = vmatpush1.bf16.msra.mxu1 %v14214_v3  ;;  %v13561_v1 = vcombine.high %v565_v60, %v573_v61  ;;  %v325_v2 = vld [vmem:[#allocation2 + $0x3a8] sm:$0xff]  ;;  %v13560_v7 = vcombine.low %v565_v60, %v573_v61 }
 0x359   :  { %7264 = vmatprep.subr.bf16.mxu0 %v13209_v4  ;;  %7305 = vmatprep.subr.bf16.mxu1 %v13465_v5  ;;  %v333_v3 = vld [vmem:[#allocation2 + $0x3e8] sm:$0xff] }
 0x35a   :  { %v581_v4 = vld [vmem:[#allocation2 + $0xba8] sm:$0xff]  ;;  %v13321_v8 = vcombine.high %v325_v2, %v333_v3  ;;  %v13320_v15 = vcombine.low %v325_v2, %v333_v3 }
 0x35b   :  { %7215 = vmatmul.mubr.bf16.vlgmr.msra.gmra.mrb[12].mxu0 %v15950_v36  ;;  %7256 = vmatmul.mubr.bf16.vlgmr.msra.gmra.mrb[12].mxu1 %v15964_v54  ;;  %v589_v5 = vld [vmem:[#allocation2 + $0xbe8] sm:$0xff] }
 0x35c   :  { %7265 = vmatpush1.bf16.msra.mxu0 %v13208_v10  ;;  %7306 = vmatpush1.bf16.msra.mxu1 %v13464_v11  ;;  %v13577_v9 = vcombine.high %v581_v4, %v589_v5  ;;  %v341_v10 = vld [vmem:[#allocation2 + $0x428] sm:$0xff]  ;;  %v13576_v16 = vcombine.low %v581_v4, %v589_v5 }
 0x35d   :  { %7266 = vmatprep.subr.bf16.mxu0 %v13225_v13  ;;  %7307 = vmatprep.subr.bf16.mxu1 %v13481_v14  ;;  %v349_v11 = vld [vmem:[#allocation2 + $0x468] sm:$0xff] }
 0x35e   :  { %7296 = vmatprep.mubr.bf16.mxu0 %v15915_v57  ;;  %7337 = vmatprep.mubr.bf16.mxu1 %v15927_v23  ;;  %v597_v13 = vld [vmem:[#allocation2 + $0xc28] sm:$0xff]  ;;  %v13337_v17 = vcombine.high %v341_v10, %v349_v11  ;;  %v13336_v24 = vcombine.low %v341_v10, %v349_v11 }
 0x35f   :  { %v605_v14 = vld [vmem:[#allocation2 + $0xc68] sm:$0xff] }
 0x360   :  { %7267 = vmatpush1.bf16.msra.mxu0 %v13224_v19  ;;  %7308 = vmatpush1.bf16.msra.mxu1 %v13480_v20  ;;  %v13593_v18 = vcombine.high %v597_v13, %v605_v14  ;;  %v357_v19 = vld [vmem:[#allocation2 + $0x4a8] sm:$0xff]  ;;  %v13592_v26 = vcombine.low %v597_v13, %v605_v14 }
 0x361   :  { %7268 = vmatprep.subr.bf16.mxu0 %v13241_v21  ;;  %7309 = vmatprep.subr.bf16.mxu1 %v13497_v22  ;;  %v365_v20 = vld [vmem:[#allocation2 + $0x4e8] sm:$0xff] }
 0x362   :  { %v613_v21 = vld [vmem:[#allocation2 + $0xca8] sm:$0xff]  ;;  %v13353_v27 = vcombine.high %v357_v19, %v365_v20  ;;  %v13352_v35 = vcombine.low %v357_v19, %v365_v20 }
 0x363   :  { %v621_v22 = vld [vmem:[#allocation2 + $0xce8] sm:$0xff] }
 0x364   :  { %7269 = vmatpush1.bf16.msra.mxu0 %v13240_v29  ;;  %7310 = vmatpush1.bf16.msra.mxu1 %v13496_v30  ;;  %v13609_v28 = vcombine.high %v613_v21, %v621_v22  ;;  %v373_v29 = vld [vmem:[#allocation2 + $0x528] sm:$0xff]  ;;  %v13608_v37 = vcombine.low %v613_v21, %v621_v22 }
 0x365   :  { %7270 = vmatprep.subr.bf16.mxu0 %v13257_v31  ;;  %7311 = vmatprep.subr.bf16.mxu1 %v13513_v33  ;;  %v381_v30 = vld [vmem:[#allocation2 + $0x568] sm:$0xff] }
 0x366   :  { %v629_v31 = vld [vmem:[#allocation2 + $0xd28] sm:$0xff]  ;;  %v13369_v40 = vcombine.high %v373_v29, %v381_v30  ;;  %v13368_v48 = vcombine.low %v373_v29, %v381_v30 }
 0x367   :  { %v637_v33 = vld [vmem:[#allocation2 + $0xd68] sm:$0xff] }
 0x368   :  { %7271 = vmatpush1.bf16.msra.mxu0 %v13256_v43  ;;  %7312 = vmatpush1.bf16.msra.mxu1 %v13512_v44  ;;  %v13625_v41 = vcombine.high %v629_v31, %v637_v33  ;;  %v389_v43 = vld [vmem:[#allocation2 + $0x5a8] sm:$0xff]  ;;  %v13624_v49 = vcombine.low %v629_v31, %v637_v33 }
 0x369   :  { %7272 = vmatprep.subr.bf16.mxu0 %v13273_v45  ;;  %7313 = vmatprep.subr.bf16.mxu1 %v13529_v47  ;;  %v397_v44 = vld [vmem:[#allocation2 + $0x5e8] sm:$0xff] }
 0x36a   :  { %v645_v45 = vld [vmem:[#allocation2 + $0xda8] sm:$0xff]  ;;  %v13385_v50 = vcombine.high %v389_v43, %v397_v44  ;;  %v13384_v58 = vcombine.low %v389_v43, %v397_v44 }
 0x36b   :  { %v653_v47 = vld [vmem:[#allocation2 + $0xde8] sm:$0xff] }
 0x36c   :  { %7273 = vmatpush1.bf16.msra.mxu0 %v13272_v52  ;;  %7314 = vmatpush1.bf16.msra.mxu1 %v13528_v53  ;;  %v13641_v51 = vcombine.high %v645_v45, %v653_v47  ;;  %v405_v52 = vld [vmem:[#allocation2 + $0x628] sm:$0xff]  ;;  %v13640_v59 = vcombine.low %v645_v45, %v653_v47 }
 0x36d   :  { %7274 = vmatprep.subr.bf16.mxu0 %v13289_v55  ;;  %7315 = vmatprep.subr.bf16.mxu1 %v13545_v56  ;;  %v413_v53 = vld [vmem:[#allocation2 + $0x668] sm:$0xff] }
 0x36e   :  { %v661_v55 = vld [vmem:[#allocation2 + $0xe28] sm:$0xff]  ;;  %v13401_v60 = vcombine.high %v405_v52, %v413_v53  ;;  %v13400_v2 = vcombine.low %v405_v52, %v413_v53 }
 0x36f   :  { %v669_v56 = vld [vmem:[#allocation2 + $0xe68] sm:$0xff] }
 0x370   :  { %7275 = vmatpush1.bf16.msra.mxu0 %v13288_v62  ;;  %7316 = vmatpush1.bf16.msra.mxu1 %v13544_v63  ;;  %v13657_v61 = vcombine.high %v661_v55, %v669_v56  ;;  %v421_v62 = vld [vmem:[#allocation2 + $0x6a8] sm:$0xff]  ;;  %v13656_v3 = vcombine.low %v661_v55, %v669_v56 }
 0x371   :  { %7276 = vmatprep.subr.bf16.mxu0 %v13305_v0  ;;  %7317 = vmatprep.subr.bf16.mxu1 %v13561_v1  ;;  %v429_v63 = vld [vmem:[#allocation2 + $0x6e8] sm:$0xff] }
 0x372   :  { %v677_v0 = vld [vmem:[#allocation2 + $0xea8] sm:$0xff]  ;;  %v13417_v4 = vcombine.high %v421_v62, %v429_v63  ;;  %v13416_v10 = vcombine.low %v421_v62, %v429_v63 }
 0x373   :  { %v685_v1 = vld [vmem:[#allocation2 + $0xee8] sm:$0xff] }
 0x374   :  { %7277 = vmatpush1.bf16.msra.mxu0 %v13304_v6  ;;  %7318 = vmatpush1.bf16.msra.mxu1 %v13560_v7  ;;  %v13673_v5 = vcombine.high %v677_v0, %v685_v1  ;;  %v437_v6 = vld [vmem:[#allocation2 + $0x728] sm:$0xff]  ;;  %v13672_v11 = vcombine.low %v677_v0, %v685_v1 }
 0x375   :  { %7278 = vmatprep.subr.bf16.mxu0 %v13321_v8  ;;  %7319 = vmatprep.subr.bf16.mxu1 %v13577_v9  ;;  %v445_v7 = vld [vmem:[#allocation2 + $0x768] sm:$0xff] }
 0x376   :  { %v693_v8 = vld [vmem:[#allocation2 + $0xf28] sm:$0xff]  ;;  %v13433_v13 = vcombine.high %v437_v6, %v445_v7  ;;  %v13432_v19 = vcombine.low %v437_v6, %v445_v7 }
 0x377   :  { %v701_v9 = vld [vmem:[#allocation2 + $0xf68] sm:$0xff] }
 0x378   :  { %7279 = vmatpush1.bf16.msra.mxu0 %v13320_v15  ;;  %7320 = vmatpush1.bf16.msra.mxu1 %v13576_v16  ;;  %v13689_v14 = vcombine.high %v693_v8, %v701_v9  ;;  %v453_v15 = vld [vmem:[#allocation2 + $0x7a8] sm:$0xff]  ;;  %v13688_v20 = vcombine.low %v693_v8, %v701_v9 }
 0x379   :  { %7280 = vmatprep.subr.bf16.mxu0 %v13337_v17  ;;  %7321 = vmatprep.subr.bf16.mxu1 %v13593_v18  ;;  %v461_v16 = vld [vmem:[#allocation2 + $0x7e8] sm:$0xff] }
 0x37a   :  { %v709_v17 = vld [vmem:[#allocation2 + $0xfa8] sm:$0xff]  ;;  %v13449_v21 = vcombine.high %v453_v15, %v461_v16  ;;  %v13448_v29 = vcombine.low %v453_v15, %v461_v16 }
 0x37b   :  { %v717_v18 = vld [vmem:[#allocation2 + $0xfe8] sm:$0xff] }
 0x37c   :  { %7281 = vmatpush1.bf16.msra.mxu0 %v13336_v24  ;;  %7322 = vmatpush1.bf16.msra.mxu1 %v13592_v26  ;;  %v13705_v22 = vcombine.high %v709_v17, %v717_v18  ;;  %v725_v24 = vld [vmem:[#allocation2 + $0x1028] sm:$0xff]  ;;  %v13704_v30 = vcombine.low %v709_v17, %v717_v18 }
 0x37d   :  { %7282 = vmatprep.subr.bf16.mxu0 %v13353_v27  ;;  %7323 = vmatprep.subr.bf16.mxu1 %v13609_v28  ;;  %v733_v26 = vld [vmem:[#allocation2 + $0x1068] sm:$0xff] }
 0x37e   :  { %v981_v27 = vld [vmem:[#allocation2 + $0x1828] sm:$0xff]  ;;  %v13721_v31 = vcombine.high %v725_v24, %v733_v26  ;;  %v13720_v43 = vcombine.low %v725_v24, %v733_v26 }
 0x37f   :  { %v989_v28 = vld [vmem:[#allocation2 + $0x1868] sm:$0xff] }
 0x380   :  { %7283 = vmatpush1.bf16.msra.mxu0 %v13352_v35  ;;  %7324 = vmatpush1.bf16.msra.mxu1 %v13608_v37  ;;  %v13977_v33 = vcombine.high %v981_v27, %v989_v28  ;;  %v741_v35 = vld [vmem:[#allocation2 + $0x10a8] sm:$0xff]  ;;  %v13976_v44 = vcombine.low %v981_v27, %v989_v28 }
 0x381   :  { %7284 = vmatprep.subr.bf16.mxu0 %v13369_v40  ;;  %7325 = vmatprep.subr.bf16.mxu1 %v13625_v41  ;;  %v749_v37 = vld [vmem:[#allocation2 + $0x10e8] sm:$0xff] }
 0x382   :  { %v997_v40 = vld [vmem:[#allocation2 + $0x18a8] sm:$0xff]  ;;  %v13737_v45 = vcombine.high %v741_v35, %v749_v37  ;;  %v13736_v52 = vcombine.low %v741_v35, %v749_v37 }
 0x383   :  { %v1005_v41 = vld [vmem:[#allocation2 + $0x18e8] sm:$0xff] }
 0x384   :  { %7285 = vmatpush1.bf16.msra.mxu0 %v13368_v48  ;;  %7326 = vmatpush1.bf16.msra.mxu1 %v13624_v49  ;;  %v13993_v47 = vcombine.high %v997_v40, %v1005_v41  ;;  %v757_v48 = vld [vmem:[#allocation2 + $0x1128] sm:$0xff]  ;;  %v13992_v53 = vcombine.low %v997_v40, %v1005_v41 }
 0x385   :  { %7286 = vmatprep.subr.bf16.mxu0 %v13385_v50  ;;  %7327 = vmatprep.subr.bf16.mxu1 %v13641_v51  ;;  %v765_v49 = vld [vmem:[#allocation2 + $0x1168] sm:$0xff] }
 0x386   :  { %v1013_v50 = vld [vmem:[#allocation2 + $0x1928] sm:$0xff]  ;;  %v13753_v55 = vcombine.high %v757_v48, %v765_v49  ;;  %v13752_v62 = vcombine.low %v757_v48, %v765_v49 }
 0x387   :  { %v1021_v51 = vld [vmem:[#allocation2 + $0x1968] sm:$0xff] }
 0x388   :  { %7287 = vmatpush1.bf16.msra.mxu0 %v13384_v58  ;;  %7328 = vmatpush1.bf16.msra.mxu1 %v13640_v59  ;;  %v14009_v56 = vcombine.high %v1013_v50, %v1021_v51  ;;  %v773_v58 = vld [vmem:[#allocation2 + $0x11a8] sm:$0xff]  ;;  %v14008_v63 = vcombine.low %v1013_v50, %v1021_v51 }
 0x389   :  { %7288 = vmatprep.subr.bf16.mxu0 %v13401_v60  ;;  %7329 = vmatprep.subr.bf16.mxu1 %v13657_v61  ;;  %v781_v59 = vld [vmem:[#allocation2 + $0x11e8] sm:$0xff] }
 0x38a   :  { %v1029_v60 = vld [vmem:[#allocation2 + $0x19a8] sm:$0xff]  ;;  %v13769_v0 = vcombine.high %v773_v58, %v781_v59  ;;  %v13768_v6 = vcombine.low %v773_v58, %v781_v59 }
 0x38b   :  { %v1037_v61 = vld [vmem:[#allocation2 + $0x19e8] sm:$0xff] }
 0x38c   :  { %7289 = vmatpush1.bf16.msra.mxu0 %v13400_v2  ;;  %7330 = vmatpush1.bf16.msra.mxu1 %v13656_v3  ;;  %v14025_v1 = vcombine.high %v1029_v60, %v1037_v61  ;;  %v789_v2 = vld [vmem:[#allocation2 + $0x1228] sm:$0xff]  ;;  %v14024_v7 = vcombine.low %v1029_v60, %v1037_v61 }
 0x38d   :  { %7290 = vmatprep.subr.bf16.mxu0 %v13417_v4  ;;  %7331 = vmatprep.subr.bf16.mxu1 %v13673_v5  ;;  %v797_v3 = vld [vmem:[#allocation2 + $0x1268] sm:$0xff] }
 0x38e   :  { %v1045_v4 = vld [vmem:[#allocation2 + $0x1a28] sm:$0xff]  ;;  %v13785_v8 = vcombine.high %v789_v2, %v797_v3  ;;  %v13784_v15 = vcombine.low %v789_v2, %v797_v3 }
 0x38f   :  { %v1053_v5 = vld [vmem:[#allocation2 + $0x1a68] sm:$0xff] }
 0x390   :  { %7291 = vmatpush1.bf16.msra.mxu0 %v13416_v10  ;;  %7332 = vmatpush1.bf16.msra.mxu1 %v13672_v11  ;;  %v14041_v9 = vcombine.high %v1045_v4, %v1053_v5  ;;  %v805_v10 = vld [vmem:[#allocation2 + $0x12a8] sm:$0xff]  ;;  %v14040_v16 = vcombine.low %v1045_v4, %v1053_v5 }
 0x391   :  { %7292 = vmatprep.subr.bf16.mxu0 %v13433_v13  ;;  %7333 = vmatprep.subr.bf16.mxu1 %v13689_v14  ;;  %v813_v11 = vld [vmem:[#allocation2 + $0x12e8] sm:$0xff] }
 0x392   :  { %v1061_v13 = vld [vmem:[#allocation2 + $0x1aa8] sm:$0xff]  ;;  %v13801_v17 = vcombine.high %v805_v10, %v813_v11  ;;  %v13800_v24 = vcombine.low %v805_v10, %v813_v11 }
 0x393   :  { %v1069_v14 = vld [vmem:[#allocation2 + $0x1ae8] sm:$0xff] }
 0x394   :  { %7293 = vmatpush1.bf16.msra.mxu0 %v13432_v19  ;;  %7334 = vmatpush1.bf16.msra.mxu1 %v13688_v20  ;;  %v14057_v18 = vcombine.high %v1061_v13, %v1069_v14  ;;  %v821_v19 = vld [vmem:[#allocation2 + $0x1328] sm:$0xff]  ;;  %v14056_v26 = vcombine.low %v1061_v13, %v1069_v14 }
 0x395   :  { %7294 = vmatprep.subr.bf16.mxu0 %v13449_v21  ;;  %7335 = vmatprep.subr.bf16.mxu1 %v13705_v22  ;;  %v829_v20 = vld [vmem:[#allocation2 + $0x1368] sm:$0xff] }
 0x396   :  { %v1077_v21 = vld [vmem:[#allocation2 + $0x1b28] sm:$0xff]  ;;  %v13817_v27 = vcombine.high %v821_v19, %v829_v20 }
 0x397   :  { %v1085_v22 = vld [vmem:[#allocation2 + $0x1b68] sm:$0xff] }
 0x398   :  { %7295 = vmatpush1.bf16.msra.mxu0 %v13448_v29  ;;  %7336 = vmatpush1.bf16.msra.mxu1 %v13704_v30  ;;  %v14073_v29 = vcombine.high %v1077_v21, %v1085_v22  ;;  %v837_v30 = vld [vmem:[#allocation2 + $0x13a8] sm:$0xff]  ;;  %v14072_v48 = vcombine.low %v1077_v21, %v1085_v22 }
 0x399   :  { %7346 = vmatprep.subr.bf16.mxu0 %v13721_v31  ;;  %7387 = vmatprep.subr.bf16.mxu1 %v13977_v33  ;;  %v845_v31 = vld [vmem:[#allocation2 + $0x13e8] sm:$0xff] }
 0x39a   :  { %v1093_v37 = vld [vmem:[#allocation2 + $0x1ba8] sm:$0xff]  ;;  %v13833_v49 = vcombine.high %v837_v30, %v845_v31  ;;  %v13832_v58 = vcombine.low %v837_v30, %v845_v31 }
 0x39b   :  { %7297 = vmatmul.mubr.bf16.vlgmr.msra.gmra.mrb[16].mxu0 %v15922_v12  ;;  %7338 = vmatmul.mubr.bf16.vlgmr.msra.gmra.mrb[16].mxu1 %v15939_v25  ;;  %v1101_v40 = vld [vmem:[#allocation2 + $0x1be8] sm:$0xff] }
 0x39c   :  { %7347 = vmatpush1.bf16.msra.mxu0 %v13720_v43  ;;  %7388 = vmatpush1.bf16.msra.mxu1 %v13976_v44  ;;  %v13816_v44 = vcombine.low %v821_v19, %v829_v20  ;;  %v14089_v51 = vcombine.high %v1093_v37, %v1101_v40  ;;  %v14088_v59 = vcombine.low %v1093_v37, %v1101_v40 }
 0x39d   :  { %7348 = vmatprep.subr.bf16.mxu0 %v13737_v45  ;;  %7389 = vmatprep.subr.bf16.mxu1 %v13993_v47 }
 0x39e   :  { %7378 = vmatprep.mubr.bf16.mxu0 %v15941_v34  ;;  %7419 = vmatprep.mubr.bf16.mxu1 %v15955_v46 }
 0x3a0   :  { %7349 = vmatpush1.bf16.msra.mxu0 %v13736_v52  ;;  %7390 = vmatpush1.bf16.msra.mxu1 %v13992_v53  ;;  %v853_v52 = vld [vmem:[#allocation2 + $0x1428] sm:$0xff] }
 0x3a1   :  { %7350 = vmatprep.subr.bf16.mxu0 %v13753_v55  ;;  %7391 = vmatprep.subr.bf16.mxu1 %v14009_v56  ;;  %v861_v53 = vld [vmem:[#allocation2 + $0x1468] sm:$0xff] }
 0x3a2   :  { %v1109_v55 = vld [vmem:[#allocation2 + $0x1c28] sm:$0xff]  ;;  %v13849_v60 = vcombine.high %v853_v52, %v861_v53  ;;  %v13848_v2 = vcombine.low %v853_v52, %v861_v53 }
 0x3a3   :  { %v1117_v56 = vld [vmem:[#allocation2 + $0x1c68] sm:$0xff] }
 0x3a4   :  { %7351 = vmatpush1.bf16.msra.mxu0 %v13752_v62  ;;  %7392 = vmatpush1.bf16.msra.mxu1 %v14008_v63  ;;  %v14105_v61 = vcombine.high %v1109_v55, %v1117_v56  ;;  %v869_v62 = vld [vmem:[#allocation2 + $0x14a8] sm:$0xff]  ;;  %v14104_v3 = vcombine.low %v1109_v55, %v1117_v56 }
 0x3a5   :  { %7352 = vmatprep.subr.bf16.mxu0 %v13769_v0  ;;  %7393 = vmatprep.subr.bf16.mxu1 %v14025_v1  ;;  %v877_v63 = vld [vmem:[#allocation2 + $0x14e8] sm:$0xff] }
 0x3a6   :  { %v1125_v0 = vld [vmem:[#allocation2 + $0x1ca8] sm:$0xff]  ;;  %v13865_v4 = vcombine.high %v869_v62, %v877_v63  ;;  %v13864_v10 = vcombine.low %v869_v62, %v877_v63 }
 0x3a7   :  { %v1133_v1 = vld [vmem:[#allocation2 + $0x1ce8] sm:$0xff] }
 0x3a8   :  { %7353 = vmatpush1.bf16.msra.mxu0 %v13768_v6  ;;  %7394 = vmatpush1.bf16.msra.mxu1 %v14024_v7  ;;  %v14121_v5 = vcombine.high %v1125_v0, %v1133_v1  ;;  %v885_v6 = vld [vmem:[#allocation2 + $0x1528] sm:$0xff]  ;;  %v14120_v11 = vcombine.low %v1125_v0, %v1133_v1 }
 0x3a9   :  { %7354 = vmatprep.subr.bf16.mxu0 %v13785_v8  ;;  %7395 = vmatprep.subr.bf16.mxu1 %v14041_v9  ;;  %v893_v7 = vld [vmem:[#allocation2 + $0x1568] sm:$0xff] }
 0x3aa   :  { %v1141_v8 = vld [vmem:[#allocation2 + $0x1d28] sm:$0xff]  ;;  %v13881_v13 = vcombine.high %v885_v6, %v893_v7  ;;  %v13880_v19 = vcombine.low %v885_v6, %v893_v7  ;;  %v214_v6 = vld [vmem:[#allocation2 + $0x30] sm:$0xff] }
 0x3ab   :  { %v1149_v9 = vld [vmem:[#allocation2 + $0x1d68] sm:$0xff]  ;;  %v222_v7 = vld [vmem:[#allocation2 + $0x70] sm:$0xff] }
 0x3ac   :  { %7355 = vmatpush1.bf16.msra.mxu0 %v13784_v15  ;;  %7396 = vmatpush1.bf16.msra.mxu1 %v14040_v16  ;;  %v14137_v14 = vcombine.high %v1141_v8, %v1149_v9  ;;  %v901_v15 = vld [vmem:[#allocation2 + $0x15a8] sm:$0xff]  ;;  %v14136_v20 = vcombine.low %v1141_v8, %v1149_v9  ;;  %v470_v8 = vld [vmem:[#allocation2 + $0x830] sm:$0xff] }
 0x3ad   :  { %7356 = vmatprep.subr.bf16.mxu0 %v13801_v17  ;;  %7397 = vmatprep.subr.bf16.mxu1 %v14057_v18  ;;  %v909_v16 = vld [vmem:[#allocation2 + $0x15e8] sm:$0xff]  ;;  %v478_v9 = vld [vmem:[#allocation2 + $0x870] sm:$0xff] }
 0x3ae   :  { %v16006_v28 = vpop.f32.mrb[4].mxu0  ;;  %v16008_v33 = vpop.f32.mrb[4].mxu1  ;;  %v1157_v17 = vld [vmem:[#allocation2 + $0x1da8] sm:$0xff]  ;;  %v13897_v21 = vcombine.high %v901_v15, %v909_v16  ;;  %v13896_v30 = vcombine.low %v901_v15, %v909_v16  ;;  %v230_v15 = vld [vmem:[#allocation2 + $0xb0] sm:$0xff] }
 0x3af   :  { %v16010_v35 = vpop.f32.mrb[5].mxu0  ;;  %v16012_v41 = vpop.f32.mrb[5].mxu1  ;;  %v1165_v18 = vld [vmem:[#allocation2 + $0x1de8] sm:$0xff]  ;;  %v238_v16 = vld [vmem:[#allocation2 + $0xf0] sm:$0xff] }
 0x3b0   :  { %v6933_v43 = vpop.f32.mrb[6].mxu0  ;;  %7357 = vmatpush1.bf16.msra.mxu0 %v13800_v24  ;;  %v7097_v45 = vpop.f32.mrb[6].mxu1  ;;  %7398 = vmatpush1.bf16.msra.mxu1 %v14056_v26  ;;  %v14153_v22 = vcombine.high %v1157_v17, %v1165_v18  ;;  %v917_v24 = vld [vmem:[#allocation2 + $0x1628] sm:$0xff]  ;;  %v14152_v31 = vcombine.low %v1157_v17, %v1165_v18  ;;  %v486_v17 = vld [vmem:[#allocation2 + $0x8b0] sm:$0xff] }
 0x3b1   :  { %v6934_v47 = vpop.f32.mrb[7].mxu0  ;;  %7358 = vmatprep.subr.bf16.mxu0 %v13817_v27  ;;  %v7098_v50 = vpop.f32.mrb[7].mxu1  ;;  %7399 = vmatprep.subr.bf16.mxu1 %v14073_v29  ;;  %v925_v26 = vld [vmem:[#allocation2 + $0x1668] sm:$0xff]  ;;  %v494_v18 = vld [vmem:[#allocation2 + $0x8f0] sm:$0xff] }
 0x3b2   :  { %v1173_v27 = vld [vmem:[#allocation2 + $0x1e28] sm:$0xff]  ;;  %v13913_v37 = vcombine.high %v917_v24, %v925_v26 }
 0x3b3   :  { %v1181_v29 = vld [vmem:[#allocation2 + $0x1e68] sm:$0xff] }
 0x3b4   :  { %7359 = vmatpush1.bf16.msra.mxu0 %v13816_v44  ;;  %7400 = vmatpush1.bf16.msra.mxu1 %v14072_v48  ;;  %v14169_v40 = vcombine.high %v1173_v27, %v1181_v29  ;;  %v933_v43 = vld [vmem:[#allocation2 + $0x16a8] sm:$0xff]  ;;  %v13912_v48 = vcombine.low %v917_v24, %v925_v26  ;;  %v246_v24 = vld [vmem:[#allocation2 + $0x130] sm:$0xff] }
 0x3b5   :  { %7360 = vmatprep.subr.bf16.mxu0 %v13833_v49  ;;  %7401 = vmatprep.subr.bf16.mxu1 %v14089_v51  ;;  %v941_v44 = vld [vmem:[#allocation2 + $0x16e8] sm:$0xff]  ;;  %v14168_v49 = vcombine.low %v1173_v27, %v1181_v29  ;;  %v254_v26 = vld [vmem:[#allocation2 + $0x170] sm:$0xff] }
 0x3b6   :  { %v1189_v45 = vld [vmem:[#allocation2 + $0x1ea8] sm:$0xff]  ;;  %v13929_v50 = vcombine.high %v933_v43, %v941_v44  ;;  %v502_v27 = vld [vmem:[#allocation2 + $0x930] sm:$0xff] }
 0x3b7   :  { %v1197_v47 = vld [vmem:[#allocation2 + $0x1ee8] sm:$0xff]  ;;  %v510_v29 = vld [vmem:[#allocation2 + $0x970] sm:$0xff] }
 0x3b8   :  { %7361 = vmatpush1.bf16.msra.mxu0 %v13832_v58  ;;  %7402 = vmatpush1.bf16.msra.mxu1 %v14088_v59  ;;  %v14185_v51 = vcombine.high %v1189_v45, %v1197_v47  ;;  %v949_v52 = vld [vmem:[#allocation2 + $0x1728] sm:$0xff]  ;;  %v13928_v58 = vcombine.low %v933_v43, %v941_v44  ;;  %v14184_v59 = vcombine.low %v1189_v45, %v1197_v47  ;;  %v262_v43 = vld [vmem:[#allocation2 + $0x1b0] sm:$0xff] }
 0x3b9   :  { %7362 = vmatprep.subr.bf16.mxu0 %v13849_v60  ;;  %7403 = vmatprep.subr.bf16.mxu1 %v14105_v61  ;;  %v957_v53 = vld [vmem:[#allocation2 + $0x1768] sm:$0xff]  ;;  %v270_v44 = vld [vmem:[#allocation2 + $0x1f0] sm:$0xff] }
 0x3ba   :  { %v1205_v55 = vld [vmem:[#allocation2 + $0x1f28] sm:$0xff]  ;;  %v13945_v60 = vcombine.high %v949_v52, %v957_v53  ;;  %v518_v45 = vld [vmem:[#allocation2 + $0x9b0] sm:$0xff] }
 0x3bb   :  { %v1213_v56 = vld [vmem:[#allocation2 + $0x1f68] sm:$0xff]  ;;  %v526_v47 = vld [vmem:[#allocation2 + $0x9f0] sm:$0xff] }
 0x3bc   :  { %7363 = vmatpush1.bf16.msra.mxu0 %v13848_v2  ;;  %7404 = vmatpush1.bf16.msra.mxu1 %v14104_v3  ;;  %v14201_v61 = vcombine.high %v1205_v55, %v1213_v56  ;;  %v965_v62 = vld [vmem:[#allocation2 + $0x17a8] sm:$0xff]  ;;  %v13944_v2 = vcombine.low %v949_v52, %v957_v53  ;;  %v14200_v3 = vcombine.low %v1205_v55, %v1213_v56  ;;  %v278_v53 = vld [vmem:[#allocation2 + $0x230] sm:$0xff] }
 0x3bd   :  { %7364 = vmatprep.subr.bf16.mxu0 %v13865_v4  ;;  %7405 = vmatprep.subr.bf16.mxu1 %v14121_v5  ;;  %v973_v63 = vld [vmem:[#allocation2 + $0x17e8] sm:$0xff]  ;;  %v13515_v52 = vcombine.high %v518_v45, %v526_v47  ;;  %v286_v55 = vld [vmem:[#allocation2 + $0x270] sm:$0xff] }
 0x3be   :  { %v1221_v0 = vld [vmem:[#allocation2 + $0x1fa8] sm:$0xff]  ;;  %v13961_v4 = vcombine.high %v965_v62, %v973_v63  ;;  %v534_v56 = vld [vmem:[#allocation2 + $0xa30] sm:$0xff] }
 0x3bf   :  { %v1229_v1 = vld [vmem:[#allocation2 + $0x1fe8] sm:$0xff] }
 0x3c0   :  { %7365 = vmatpush1.bf16.msra.mxu0 %v13864_v10  ;;  %7406 = vmatpush1.bf16.msra.mxu1 %v14120_v11  ;;  %v14217_v5 = vcombine.high %v1221_v0, %v1229_v1  ;;  %v13960_v10 = vcombine.low %v965_v62, %v973_v63  ;;  %v14216_v11 = vcombine.low %v1221_v0, %v1229_v1  ;;  %v294_v0 = vld [vmem:[#allocation2 + $0x2b0] sm:$0xff] }
 0x3c1   :  { %7366 = vmatprep.subr.bf16.mxu0 %v13881_v13  ;;  %7407 = vmatprep.subr.bf16.mxu1 %v14137_v14  ;;  %v13211_v13 = vcombine.high %v214_v6, %v222_v7  ;;  %v13467_v14 = vcombine.high %v470_v8, %v478_v9  ;;  %v13275_v62 = vcombine.high %v278_v53, %v286_v55  ;;  %v302_v1 = vld [vmem:[#allocation2 + $0x2f0] sm:$0xff] }
 0x3c4   :  { %7367 = vmatpush1.bf16.msra.mxu0 %v13880_v19  ;;  %7408 = vmatpush1.bf16.msra.mxu1 %v14136_v20  ;;  %v13210_v19 = vcombine.low %v214_v6, %v222_v7  ;;  %v13466_v20 = vcombine.low %v470_v8, %v478_v9  ;;  %v13291_v8 = vcombine.high %v294_v0, %v302_v1 }
 0x3c5   :  { %7368 = vmatprep.subr.bf16.mxu0 %v13897_v21  ;;  %7409 = vmatprep.subr.bf16.mxu1 %v14153_v22  ;;  %v13227_v21 = vcombine.high %v230_v15, %v238_v16  ;;  %v13483_v22 = vcombine.high %v486_v17, %v494_v18 }
 0x3c8   :  { %7369 = vmatpush1.bf16.msra.mxu0 %v13896_v30  ;;  %7410 = vmatpush1.bf16.msra.mxu1 %v14152_v31  ;;  %v13226_v30 = vcombine.low %v230_v15, %v238_v16  ;;  %v13482_v31 = vcombine.low %v486_v17, %v494_v18  ;;  %v566_v15 = vld [vmem:[#allocation2 + $0xb30] sm:$0xff]  ;;  %v13290_v18 = vcombine.low %v294_v0, %v302_v1 }
 0x3c9   :  { %7370 = vmatprep.subr.bf16.mxu0 %v13913_v37  ;;  %7411 = vmatprep.subr.bf16.mxu1 %v14169_v40  ;;  %v13243_v37 = vcombine.high %v246_v24, %v254_v26  ;;  %v13499_v40 = vcombine.high %v502_v27, %v510_v29  ;;  %v574_v16 = vld [vmem:[#allocation2 + $0xb70] sm:$0xff] }
 0x3cc   :  { %7371 = vmatpush1.bf16.msra.mxu0 %v13912_v48  ;;  %7412 = vmatpush1.bf16.msra.mxu1 %v14168_v49  ;;  %v13242_v48 = vcombine.low %v246_v24, %v254_v26  ;;  %v1244_v49 = vlaneseq  ;;  %v326_v24 = vld [vmem:[#allocation2 + $0x3b0] sm:$0xff] }
 0x3cd   :  { %7372 = vmatprep.subr.bf16.mxu0 %v13929_v50  ;;  %7413 = vmatprep.subr.bf16.mxu1 %v14185_v51  ;;  %v13498_v50 = vcombine.low %v502_v27, %v510_v29  ;;  %v13259_v51 = vcombine.high %v262_v43, %v270_v44  ;;  %v334_v26 = vld [vmem:[#allocation2 + $0x3f0] sm:$0xff] }
 0x3d0   :  { %7373 = vmatpush1.bf16.msra.mxu0 %v13928_v58  ;;  %7414 = vmatpush1.bf16.msra.mxu1 %v14184_v59  ;;  %v542_v58 = vld [vmem:[#allocation2 + $0xa70] sm:$0xff]  ;;  %v13258_v59 = vcombine.low %v262_v43, %v270_v44 }
 0x3d1   :  { %7374 = vmatprep.subr.bf16.mxu0 %v13945_v60  ;;  %7415 = vmatprep.subr.bf16.mxu1 %v14201_v61  ;;  %v16018_v60 = vshrl.u32 %v1244_v49, 7  ;;  %v13514_v61 = vcombine.low %v518_v45, %v526_v47  ;;  %v13531_v63 = vcombine.high %v534_v56, %v542_v58  ;;  %v13530_v7 = vcombine.low %v534_v56, %v542_v58  ;;  %v342_v56 = vld [vmem:[#allocation2 + $0x430] sm:$0xff] }
 0x3d2   :  { %v350_v58 = vld [vmem:[#allocation2 + $0x470] sm:$0xff] }
 0x3d3   :  { %v16023_v6 = vsub.s32 0, %v16018_v60  ;;  %v16026_v9 = vsub.s32 1, %v16018_v60  ;;  %v13339_v0 = vcombine.high %v342_v56, %v350_v58 }
 0x3d4   :  { %7375 = vmatpush1.bf16.msra.mxu0 %v13944_v2  ;;  %7416 = vmatpush1.bf16.msra.mxu1 %v14200_v3  ;;  %v550_v2 = vld [vmem:[#allocation2 + $0xab0] sm:$0xff] }
 0x3d5   :  { %7376 = vmatprep.subr.bf16.mxu0 %v13961_v4  ;;  %7417 = vmatprep.subr.bf16.mxu1 %v14217_v5  ;;  %v558_v3 = vld [vmem:[#allocation2 + $0xaf0] sm:$0xff]  ;;  %v13274_v4 = vcombine.low %v278_v53, %v286_v55  ;;  %v16020_v5 = vld [vmem:[#allocation4 + $0x8] sm:$0xff] }
 0x3d6   :  { %v1283_v17 = vrot.slane %v16020_v5, %v16026_v9 }
 0x3d8   :  { %7377 = vmatpush1.bf16.msra.mxu0 %v13960_v10  ;;  %7418 = vmatpush1.bf16.msra.mxu1 %v14216_v11  ;;  %v13547_v10 = vcombine.high %v550_v2, %v558_v3  ;;  %v310_v11 = vld [vmem:[#allocation2 + $0x330] sm:$0xff] }
 0x3d9   :  { %7428 = vmatprep.subr.bf16.mxu0 %v13211_v13  ;;  %7469 = vmatprep.subr.bf16.mxu1 %v13467_v14  ;;  %v318_v13 = vld [vmem:[#allocation2 + $0x370] sm:$0xff]  ;;  %v1279_v14 = vrot.slane %v16020_v5, %v16023_v6 }
 0x3da   :  { %v13306_v45 = vcombine.low %v310_v11, %v318_v13 }
 0x3db   :  { %7379 = vmatmul.mubr.bf16.vlgmr.msra.gmra.mrb[20].mxu0 %v15950_v36  ;;  %7420 = vmatmul.mubr.bf16.vlgmr.msra.gmra.mrb[20].mxu1 %v15964_v54 }
 0x3dc   :  { %7429 = vmatpush1.bf16.msra.mxu0 %v13210_v19  ;;  %7470 = vmatpush1.bf16.msra.mxu1 %v13466_v20  ;;  %v13546_v19 = vcombine.low %v550_v2, %v558_v3  ;;  %v13307_v20 = vcombine.high %v310_v11, %v318_v13  ;;  %v358_v2 = vld [vmem:[#allocation2 + $0x4b0] sm:$0xff] }
 0x3dd   :  { %7430 = vmatprep.subr.bf16.mxu0 %v13227_v21  ;;  %7471 = vmatprep.subr.bf16.mxu1 %v13483_v22  ;;  %v13563_v22 = vcombine.high %v566_v15, %v574_v16  ;;  %v366_v3 = vld [vmem:[#allocation2 + $0x4f0] sm:$0xff] }
 0x3de   :  { %7460 = vmatprep.mubr.bf16.mxu0 %v15915_v57  ;;  %7501 = vmatprep.mubr.bf16.mxu1 %v15927_v23  ;;  %v13355_v11 = vcombine.high %v358_v2, %v366_v3 }
 0x3e0   :  { %7431 = vmatpush1.bf16.msra.mxu0 %v13226_v30  ;;  %7472 = vmatpush1.bf16.msra.mxu1 %v13482_v31  ;;  %v582_v31 = vld [vmem:[#allocation2 + $0xbb0] sm:$0xff] }
 0x3e1   :  { %7432 = vmatprep.subr.bf16.mxu0 %v13243_v37  ;;  %7473 = vmatprep.subr.bf16.mxu1 %v13499_v40  ;;  %v590_v37 = vld [vmem:[#allocation2 + $0xbf0] sm:$0xff] }
 0x3e2   :  { %v13579_v55 = vcombine.high %v582_v31, %v590_v37 }
 0x3e4   :  { %7433 = vmatpush1.bf16.msra.mxu0 %v13242_v48  ;;  %7474 = vmatpush1.bf16.msra.mxu1 %v13498_v50  ;;  %v13562_v50 = vcombine.low %v566_v15, %v574_v16  ;;  %v382_v15 = vld [vmem:[#allocation2 + $0x570] sm:$0xff] }
 0x3e5   :  { %7434 = vmatprep.subr.bf16.mxu0 %v13259_v51  ;;  %7475 = vmatprep.subr.bf16.mxu1 %v13515_v52  ;;  %v13323_v51 = vcombine.high %v326_v24, %v334_v26  ;;  %v630_v16 = vld [vmem:[#allocation2 + $0xd30] sm:$0xff] }
 0x3e8   :  { %7435 = vmatpush1.bf16.msra.mxu0 %v13258_v59  ;;  %7476 = vmatpush1.bf16.msra.mxu1 %v13514_v61  ;;  %v598_v59 = vld [vmem:[#allocation2 + $0xc30] sm:$0xff] }
 0x3e9   :  { %7436 = vmatprep.subr.bf16.mxu0 %v13275_v62  ;;  %7477 = vmatprep.subr.bf16.mxu1 %v13531_v63  ;;  %v606_v61 = vld [vmem:[#allocation2 + $0xc70] sm:$0xff]  ;;  %v13322_v62 = vcombine.low %v326_v24, %v334_v26  ;;  %v13578_v63 = vcombine.low %v582_v31, %v590_v37 }
 0x3ea   :  { %v13595_v1 = vcombine.high %v598_v59, %v606_v61  ;;  %v398_v24 = vld [vmem:[#allocation2 + $0x5f0] sm:$0xff] }
 0x3eb   :  { %v646_v26 = vld [vmem:[#allocation2 + $0xdb0] sm:$0xff] }
 0x3ec   :  { %7437 = vmatpush1.bf16.msra.mxu0 %v13274_v4  ;;  %7478 = vmatpush1.bf16.msra.mxu1 %v13530_v7  ;;  %v614_v4 = vld [vmem:[#allocation2 + $0xcb0] sm:$0xff] }
 0x3ed   :  { %7438 = vmatprep.subr.bf16.mxu0 %v13291_v8  ;;  %7479 = vmatprep.subr.bf16.mxu1 %v13547_v10  ;;  %v622_v7 = vld [vmem:[#allocation2 + $0xcf0] sm:$0xff]  ;;  %v13338_v8 = vcombine.low %v342_v56, %v350_v58  ;;  %v13594_v10 = vcombine.low %v598_v59, %v606_v61 }
 0x3ee   :  { %v7134_v21 = vpop.f32.mrb[8].mxu0  ;;  %v7175_v29 = vpop.f32.mrb[8].mxu1  ;;  %v13611_v13 = vcombine.high %v614_v4, %v622_v7  ;;  %v678_v56 = vld [vmem:[#allocation2 + $0xeb0] sm:$0xff] }
 0x3ef   :  { %v7135_v27 = vadd.f32 %v7134_v21, %v1279_v14  ;;  %v7136_v30 = vpop.f32.mrb[9].mxu0  ;;  %v7177_v43 = vpop.f32.mrb[9].mxu1  ;;  %v374_v14 = vld [vmem:[#allocation2 + $0x530] sm:$0xff] }
 0x3f0   :  { %v7137_v40 = vadd.f32 %v7136_v30, %v1283_v17  ;;  %v7138_v44 = vpop.f32.mrb[10].mxu0  ;;  %7439 = vmatpush1.bf16.msra.mxu0 %v13290_v18  ;;  %v7179_v48 = vpop.f32.mrb[10].mxu1  ;;  %7480 = vmatpush1.bf16.msra.mxu1 %v13546_v19  ;;  %v638_v17 = vld [vmem:[#allocation2 + $0xd70] sm:$0xff]  ;;  %v13354_v18 = vcombine.low %v358_v2, %v366_v3  ;;  %v13610_v19 = vcombine.low %v614_v4, %v622_v7 }
 0x3f1   :  { %v16032_v47 = vadd.f32 %v7175_v29, %v7135_v27  ;;  %v7139_v49 = vpop.f32.mrb[11].mxu0  ;;  %7440 = vmatprep.subr.bf16.mxu0 %v13307_v20  ;;  %v7180_v53 = vpop.f32.mrb[11].mxu1  ;;  %7481 = vmatprep.subr.bf16.mxu1 %v13563_v22  ;;  %v13371_v20 = vcombine.high %v374_v14, %v382_v15  ;;  %v13627_v21 = vcombine.high %v630_v16, %v638_v17  ;;  %v390_v22 = vld [vmem:[#allocation2 + $0x5b0] sm:$0xff] }
 0x3f2   :  { %v16034_v52 = vadd.f32 %v7177_v43, %v7137_v40  ;;  %v654_v27 = vld [vmem:[#allocation2 + $0xdf0] sm:$0xff]  ;;  %v13370_v29 = vcombine.low %v374_v14, %v382_v15  ;;  %v13626_v30 = vcombine.low %v630_v16, %v638_v17  ;;  %v13387_v31 = vcombine.high %v390_v22, %v398_v24 }
 0x3f3   :  { %v13643_v37 = vcombine.high %v646_v26, %v654_v27  ;;  %v406_v40 = vld [vmem:[#allocation2 + $0x630] sm:$0xff]  ;;  %v13386_v48 = vcombine.low %v390_v22, %v398_v24  ;;  %v13642_v49 = vcombine.low %v646_v26, %v654_v27 }
 0x3f4   :  { %7441 = vmatpush1.bf16.msra.mxu0 %v13306_v45  ;;  %7482 = vmatpush1.bf16.msra.mxu1 %v13562_v50  ;;  %v414_v43 = vld [vmem:[#allocation2 + $0x670] sm:$0xff] }
 0x3f5   :  { %7442 = vmatprep.subr.bf16.mxu0 %v13323_v51  ;;  %7483 = vmatprep.subr.bf16.mxu1 %v13579_v55  ;;  %v662_v44 = vld [vmem:[#allocation2 + $0xe30] sm:$0xff]  ;;  %v13403_v50 = vcombine.high %v406_v40, %v414_v43  ;;  %v13402_v59 = vcombine.low %v406_v40, %v414_v43 }
 0x3f6   :  { %v670_v45 = vld [vmem:[#allocation2 + $0xe70] sm:$0xff] }
 0x3f7   :  { %v13659_v51 = vcombine.high %v662_v44, %v670_v45  ;;  %v422_v53 = vld [vmem:[#allocation2 + $0x6b0] sm:$0xff]  ;;  %v13658_v61 = vcombine.low %v662_v44, %v670_v45 }
 0x3f8   :  { %7443 = vmatpush1.bf16.msra.mxu0 %v13322_v62  ;;  %7484 = vmatpush1.bf16.msra.mxu1 %v13578_v63  ;;  %v430_v55 = vld [vmem:[#allocation2 + $0x6f0] sm:$0xff] }
 0x3f9   :  { %7444 = vmatprep.subr.bf16.mxu0 %v13339_v0  ;;  %7485 = vmatprep.subr.bf16.mxu1 %v13595_v1  ;;  %v686_v58 = vld [vmem:[#allocation2 + $0xef0] sm:$0xff]  ;;  %v13419_v62 = vcombine.high %v422_v53, %v430_v55  ;;  %v13418_v4 = vcombine.low %v422_v53, %v430_v55 }
 0x3fa   :  { %v13675_v63 = vcombine.high %v678_v56, %v686_v58  ;;  %v438_v0 = vld [vmem:[#allocation2 + $0x730] sm:$0xff]  ;;  %v13674_v7 = vcombine.low %v678_v56, %v686_v58 }
 0x3fb   :  { %v446_v1 = vld [vmem:[#allocation2 + $0x770] sm:$0xff] }
 0x3fc   :  { %7445 = vmatpush1.bf16.msra.mxu0 %v13338_v8  ;;  %7486 = vmatpush1.bf16.msra.mxu1 %v13594_v10  ;;  %v694_v2 = vld [vmem:[#allocation2 + $0xf30] sm:$0xff]  ;;  %v13435_v8 = vcombine.high %v438_v0, %v446_v1  ;;  %v13434_v16 = vcombine.low %v438_v0, %v446_v1 }
 0x3fd   :  { %7446 = vmatprep.subr.bf16.mxu0 %v13355_v11  ;;  %7487 = vmatprep.subr.bf16.mxu1 %v13611_v13  ;;  %v702_v3 = vld [vmem:[#allocation2 + $0xf70] sm:$0xff] }
 0x3fe   :  { %v13691_v10 = vcombine.high %v694_v2, %v702_v3  ;;  %v454_v11 = vld [vmem:[#allocation2 + $0x7b0] sm:$0xff]  ;;  %v13690_v17 = vcombine.low %v694_v2, %v702_v3 }
 0x3ff   :  { %v462_v13 = vld [vmem:[#allocation2 + $0x7f0] sm:$0xff] }
 0x400   :  { %7447 = vmatpush1.bf16.msra.mxu0 %v13354_v18  ;;  %7488 = vmatpush1.bf16.msra.mxu1 %v13610_v19  ;;  %v710_v14 = vld [vmem:[#allocation2 + $0xfb0] sm:$0xff]  ;;  %v13451_v18 = vcombine.high %v454_v11, %v462_v13  ;;  %v13450_v26 = vcombine.low %v454_v11, %v462_v13 }
 0x401   :  { %7448 = vmatprep.subr.bf16.mxu0 %v13371_v20  ;;  %7489 = vmatprep.subr.bf16.mxu1 %v13627_v21  ;;  %v718_v15 = vld [vmem:[#allocation2 + $0xff0] sm:$0xff] }
 0x402   :  { %v13707_v19 = vcombine.high %v710_v14, %v718_v15  ;;  %v726_v20 = vld [vmem:[#allocation2 + $0x1030] sm:$0xff]  ;;  %v13706_v27 = vcombine.low %v710_v14, %v718_v15 }
 0x403   :  { %v734_v21 = vld [vmem:[#allocation2 + $0x1070] sm:$0xff] }
 0x404   :  { %7449 = vmatpush1.bf16.msra.mxu0 %v13370_v29  ;;  %7490 = vmatpush1.bf16.msra.mxu1 %v13626_v30  ;;  %v982_v22 = vld [vmem:[#allocation2 + $0x1830] sm:$0xff]  ;;  %v13723_v29 = vcombine.high %v726_v20, %v734_v21  ;;  %v13722_v44 = vcombine.low %v726_v20, %v734_v21 }
 0x405   :  { %7450 = vmatprep.subr.bf16.mxu0 %v13387_v31  ;;  %7491 = vmatprep.subr.bf16.mxu1 %v13643_v37  ;;  %v990_v24 = vld [vmem:[#allocation2 + $0x1870] sm:$0xff] }
 0x406   :  { %v13979_v30 = vcombine.high %v982_v22, %v990_v24  ;;  %v742_v31 = vld [vmem:[#allocation2 + $0x10b0] sm:$0xff]  ;;  %v13978_v45 = vcombine.low %v982_v22, %v990_v24 }
 0x407   :  { %v750_v37 = vld [vmem:[#allocation2 + $0x10f0] sm:$0xff] }
 0x408   :  { %7451 = vmatpush1.bf16.msra.mxu0 %v13386_v48  ;;  %7492 = vmatpush1.bf16.msra.mxu1 %v13642_v49  ;;  %v998_v40 = vld [vmem:[#allocation2 + $0x18b0] sm:$0xff]  ;;  %v13739_v48 = vcombine.high %v742_v31, %v750_v37  ;;  %v13738_v56 = vcombine.low %v742_v31, %v750_v37 }
 0x409   :  { %7452 = vmatprep.subr.bf16.mxu0 %v13403_v50  ;;  %7493 = vmatprep.subr.bf16.mxu1 %v13659_v51  ;;  %v1006_v43 = vld [vmem:[#allocation2 + $0x18f0] sm:$0xff] }
 0x40a   :  { %v13995_v49 = vcombine.high %v998_v40, %v1006_v43  ;;  %v758_v50 = vld [vmem:[#allocation2 + $0x1130] sm:$0xff]  ;;  %v13994_v58 = vcombine.low %v998_v40, %v1006_v43 }
 0x40b   :  { %v766_v51 = vld [vmem:[#allocation2 + $0x1170] sm:$0xff] }
 0x40c   :  { %7453 = vmatpush1.bf16.msra.mxu0 %v13402_v59  ;;  %7494 = vmatpush1.bf16.msra.mxu1 %v13658_v61  ;;  %v1014_v53 = vld [vmem:[#allocation2 + $0x1930] sm:$0xff]  ;;  %v13755_v59 = vcombine.high %v758_v50, %v766_v51  ;;  %v13754_v2 = vcombine.low %v758_v50, %v766_v51 }
 0x40d   :  { %7454 = vmatprep.subr.bf16.mxu0 %v13419_v62  ;;  %7495 = vmatprep.subr.bf16.mxu1 %v13675_v63  ;;  %v1022_v55 = vld [vmem:[#allocation2 + $0x1970] sm:$0xff] }
 0x40e   :  { %v14011_v61 = vcombine.high %v1014_v53, %v1022_v55  ;;  %v774_v62 = vld [vmem:[#allocation2 + $0x11b0] sm:$0xff]  ;;  %v14010_v3 = vcombine.low %v1014_v53, %v1022_v55 }
 0x40f   :  { %v782_v63 = vld [vmem:[#allocation2 + $0x11f0] sm:$0xff] }
 0x410   :  { %7455 = vmatpush1.bf16.msra.mxu0 %v13418_v4  ;;  %7496 = vmatpush1.bf16.msra.mxu1 %v13674_v7  ;;  %v1030_v0 = vld [vmem:[#allocation2 + $0x19b0] sm:$0xff]  ;;  %v13771_v4 = vcombine.high %v774_v62, %v782_v63  ;;  %v13770_v14 = vcombine.low %v774_v62, %v782_v63 }
 0x411   :  { %7456 = vmatprep.subr.bf16.mxu0 %v13435_v8  ;;  %7497 = vmatprep.subr.bf16.mxu1 %v13691_v10  ;;  %v1038_v1 = vld [vmem:[#allocation2 + $0x19f0] sm:$0xff] }
 0x412   :  { %v14027_v7 = vcombine.high %v1030_v0, %v1038_v1  ;;  %v790_v8 = vld [vmem:[#allocation2 + $0x1230] sm:$0xff]  ;;  %v14026_v15 = vcombine.low %v1030_v0, %v1038_v1 }
 0x413   :  { %v798_v10 = vld [vmem:[#allocation2 + $0x1270] sm:$0xff] }
 0x414   :  { %7457 = vmatpush1.bf16.msra.mxu0 %v13434_v16  ;;  %7498 = vmatpush1.bf16.msra.mxu1 %v13690_v17  ;;  %v1046_v11 = vld [vmem:[#allocation2 + $0x1a30] sm:$0xff]  ;;  %v13787_v16 = vcombine.high %v790_v8, %v798_v10  ;;  %v16040_v17 = vld [vmem:[#allocation4] sm:$0xff]  ;;  %v13786_v24 = vcombine.low %v790_v8, %v798_v10 }
 0x415   :  { %7458 = vmatprep.subr.bf16.mxu0 %v13451_v18  ;;  %7499 = vmatprep.subr.bf16.mxu1 %v13707_v19  ;;  %v1054_v13 = vld [vmem:[#allocation2 + $0x1a70] sm:$0xff] }
 0x416   :  { %v14043_v18 = vcombine.high %v1046_v11, %v1054_v13  ;;  %v806_v19 = vld [vmem:[#allocation2 + $0x12b0] sm:$0xff] }
 0x417   :  { %v814_v20 = vld [vmem:[#allocation2 + $0x12f0] sm:$0xff] }
 0x418   :  { %7459 = vmatpush1.bf16.msra.mxu0 %v13450_v26  ;;  %7500 = vmatpush1.bf16.msra.mxu1 %v13706_v27  ;;  %v1062_v21 = vld [vmem:[#allocation2 + $0x1ab0] sm:$0xff]  ;;  %v1247_v26 = vrot.slane %v16040_v17, %v16023_v6  ;;  %v14042_v27 = vcombine.low %v1046_v11, %v1054_v13 }
 0x419   :  { %7510 = vmatprep.subr.bf16.mxu0 %v13723_v29  ;;  %7551 = vmatprep.subr.bf16.mxu1 %v13979_v30  ;;  %v1070_v22 = vld [vmem:[#allocation2 + $0x1af0] sm:$0xff]  ;;  %v13803_v29 = vcombine.high %v806_v19, %v814_v20  ;;  %v1251_v30 = vrot.slane %v16040_v17, %v16026_v9 }
 0x41a   :  { %v14059_v31 = vcombine.high %v1062_v21, %v1070_v22  ;;  %v822_v37 = vld [vmem:[#allocation2 + $0x1330] sm:$0xff] }
 0x41b   :  { %7461 = vmatmul.mubr.bf16.vlgmr.msra.gmra.mrb[24].mxu0 %v15922_v12  ;;  %7502 = vmatmul.mubr.bf16.vlgmr.msra.gmra.mrb[24].mxu1 %v15939_v25  ;;  %v830_v40 = vld [vmem:[#allocation2 + $0x1370] sm:$0xff]  ;;  %v14965_v51 = vadd.f32 %v15986_v39, %v1251_v30 }
 0x41c   :  { %7511 = vmatpush1.bf16.msra.mxu0 %v13722_v44  ;;  %7552 = vmatpush1.bf16.msra.mxu1 %v13978_v45  ;;  %v1078_v43 = vld [vmem:[#allocation2 + $0x1b30] sm:$0xff]  ;;  %v13802_v45 = vcombine.low %v806_v19, %v814_v20  ;;  %v13819_v50 = vcombine.high %v822_v37, %v830_v40 }
 0x41d   :  { %7512 = vmatprep.subr.bf16.mxu0 %v13739_v48  ;;  %7553 = vmatprep.subr.bf16.mxu1 %v13995_v49  ;;  %v1086_v44 = vld [vmem:[#allocation2 + $0x1b70] sm:$0xff]  ;;  %v14964_v48 = vadd.f32 %v15982_v32, %v1247_v26  ;;  %v14058_v49 = vcombine.low %v1062_v21, %v1070_v22  ;;  %v7757_v13 = vmax.f32 %v14965_v51, 0.0 }
 0x41e   :  { %7542 = vmatprep.mubr.bf16.mxu0 %v15941_v34  ;;  %7583 = vmatprep.mubr.bf16.mxu1 %v15955_v46  ;;  %v14075_v55 = vcombine.high %v1078_v43, %v1086_v44  ;;  %v1094_v63 = vld [vmem:[#allocation2 + $0x1bb0] sm:$0xff]  ;;  %v14074_v10 = vcombine.low %v1078_v43, %v1086_v44 }
 0x41f   :  { %v1102_v0 = vld [vmem:[#allocation2 + $0x1bf0] sm:$0xff] }
 0x420   :  { %7513 = vmatpush1.bf16.msra.mxu0 %v13738_v56  ;;  %7554 = vmatpush1.bf16.msra.mxu1 %v13994_v58  ;;  %v838_v56 = vld [vmem:[#allocation2 + $0x13b0] sm:$0xff] }
 0x421   :  { %7514 = vmatprep.subr.bf16.mxu0 %v13755_v59  ;;  %7555 = vmatprep.subr.bf16.mxu1 %v14011_v61  ;;  %v846_v58 = vld [vmem:[#allocation2 + $0x13f0] sm:$0xff] }
 0x422   :  { %v13835_v11 = vcombine.high %v838_v56, %v846_v58  ;;  %v1110_v19 = vld [vmem:[#allocation2 + $0x1c30] sm:$0xff]  ;;  %v13834_v22 = vcombine.low %v838_v56, %v846_v58 }
 0x423   :  { %v1118_v20 = vld [vmem:[#allocation2 + $0x1c70] sm:$0xff] }
 0x424   :  { %7515 = vmatpush1.bf16.msra.mxu0 %v13754_v2  ;;  %7556 = vmatpush1.bf16.msra.mxu1 %v14010_v3  ;;  %v13818_v3 = vcombine.low %v822_v37, %v830_v40  ;;  %v878_v30 = vld [vmem:[#allocation2 + $0x14f0] sm:$0xff]  ;;  %v14106_v43 = vcombine.low %v1110_v19, %v1118_v20 }
 0x425   :  { %7516 = vmatprep.subr.bf16.mxu0 %v13771_v4  ;;  %7557 = vmatprep.subr.bf16.mxu1 %v14027_v7  ;;  %v7756_v4 = vmax.f32 %v14964_v48, 0.0  ;;  %v1134_v37 = vld [vmem:[#allocation2 + $0x1cf0] sm:$0xff] }
 0x426   :  { %v886_v48 = vld [vmem:[#allocation2 + $0x1530] sm:$0xff] }
 0x427   :  { %v1150_v51 = vld [vmem:[#allocation2 + $0x1d70] sm:$0xff] }
 0x428   :  { %7517 = vmatpush1.bf16.msra.mxu0 %v13770_v14  ;;  %7558 = vmatpush1.bf16.msra.mxu1 %v14026_v15  ;;  %v14091_v15 = vcombine.high %v1094_v63, %v1102_v0 }
 0x429   :  { %7518 = vmatprep.subr.bf16.mxu0 %v13787_v16  ;;  %7559 = vmatprep.subr.bf16.mxu1 %v14043_v18  ;;  %v854_v16 = vld [vmem:[#allocation2 + $0x1430] sm:$0xff] }
 0x42a   :  { %v862_v18 = vld [vmem:[#allocation2 + $0x1470] sm:$0xff] }
 0x42b   :  { %v13851_v26 = vcombine.high %v854_v16, %v862_v18  ;;  %v13850_v40 = vcombine.low %v854_v16, %v862_v18  ;;  %v1198_v16 = vld [vmem:[#allocation2 + $0x1ef0] sm:$0xff] }
 0x42c   :  { %7519 = vmatpush1.bf16.msra.mxu0 %v13786_v24  ;;  %7560 = vmatpush1.bf16.msra.mxu1 %v14042_v27  ;;  %v14090_v24 = vcombine.low %v1094_v63, %v1102_v0  ;;  %v14107_v27 = vcombine.high %v1110_v19, %v1118_v20  ;;  %v1166_v63 = vld [vmem:[#allocation2 + $0x1df0] sm:$0xff] }
 0x42d   :  { %7520 = vmatprep.subr.bf16.mxu0 %v13803_v29  ;;  %7561 = vmatprep.subr.bf16.mxu1 %v14059_v31  ;;  %v870_v29 = vld [vmem:[#allocation2 + $0x14b0] sm:$0xff] }
 0x42e   :  { %v7216_v53 = vpop.f32.mrb[12].mxu0  ;;  %v7257_v61 = vpop.f32.mrb[12].mxu1  ;;  %v1126_v31 = vld [vmem:[#allocation2 + $0x1cb0] sm:$0xff]  ;;  %v13867_v44 = vcombine.high %v870_v29, %v878_v30 }
 0x42f   :  { %v7217_v59 = vadd.f32 %v7216_v53, %v16032_v47  ;;  %v7218_v62 = vpop.f32.mrb[13].mxu0  ;;  %v7259_v32 = vpop.f32.mrb[13].mxu1  ;;  %v13866_v53 = vcombine.low %v870_v29, %v878_v30  ;;  %v1214_v29 = vld [vmem:[#allocation2 + $0x1f70] sm:$0xff] }
 0x430   :  { %v7219_v1 = vadd.f32 %v7218_v62, %v16034_v52  ;;  %v7220_v2 = vpop.f32.mrb[14].mxu0  ;;  %7521 = vmatpush1.bf16.msra.mxu0 %v13802_v45  ;;  %v7261_v39 = vpop.f32.mrb[14].mxu1  ;;  %7562 = vmatpush1.bf16.msra.mxu1 %v14058_v49  ;;  %v14123_v45 = vcombine.high %v1126_v31, %v1134_v37  ;;  %v894_v49 = vld [vmem:[#allocation2 + $0x1570] sm:$0xff] }
 0x431   :  { %v7258_v7 = vadd.f32 %v7257_v61, %v7217_v59  ;;  %v7221_v8 = vpop.f32.mrb[15].mxu0  ;;  %7522 = vmatprep.subr.bf16.mxu0 %v13819_v50  ;;  %v7262_v14 = vpop.f32.mrb[15].mxu1  ;;  %7563 = vmatprep.subr.bf16.mxu1 %v14075_v55  ;;  %v1142_v50 = vld [vmem:[#allocation2 + $0x1d30] sm:$0xff]  ;;  %v14122_v55 = vcombine.low %v1126_v31, %v1134_v37  ;;  %v13883_v56 = vcombine.high %v886_v48, %v894_v49 }
 0x432   :  { %v7260_v47 = vadd.f32 %v7259_v32, %v7219_v1  ;;  %v14139_v58 = vcombine.high %v1142_v50, %v1150_v51  ;;  %v902_v59 = vld [vmem:[#allocation2 + $0x15b0] sm:$0xff]  ;;  %v13882_v0 = vcombine.low %v886_v48, %v894_v49  ;;  %v14138_v1 = vcombine.low %v1142_v50, %v1150_v51 }
 0x433   :  { %v16050_v52 = vadd.f32 %v7756_v4, %v7258_v7  ;;  %v910_v61 = vld [vmem:[#allocation2 + $0x15f0] sm:$0xff] }
 0x434   :  { %v16052_v21 = vadd.f32 %v7757_v13, %v7260_v47  ;;  %7523 = vmatpush1.bf16.msra.mxu0 %v13818_v3  ;;  %7564 = vmatpush1.bf16.msra.mxu1 %v14074_v10  ;;  %v1158_v62 = vld [vmem:[#allocation2 + $0x1db0] sm:$0xff]  ;;  %v13899_v32 = vcombine.high %v902_v59, %v910_v61  ;;  %v13898_v8 = vcombine.low %v902_v59, %v910_v61  ;;  %v479_v59 = vld [vmem:[#allocation2 + $0x878] sm:$0xff] }
 0x435   :  { %7524 = vmatprep.subr.bf16.mxu0 %v13835_v11  ;;  %7565 = vmatprep.subr.bf16.mxu1 %v14091_v15  ;;  %v14155_v2 = vcombine.high %v1158_v62, %v1166_v63  ;;  %v918_v3 = vld [vmem:[#allocation2 + $0x1630] sm:$0xff]  ;;  %v14154_v10 = vcombine.low %v1158_v62, %v1166_v63 }
 0x436   :  { %v926_v4 = vld [vmem:[#allocation2 + $0x1670] sm:$0xff] }
 0x437   :  { %v1174_v7 = vld [vmem:[#allocation2 + $0x1e30] sm:$0xff]  ;;  %v13915_v11 = vcombine.high %v918_v3, %v926_v4  ;;  %v13914_v18 = vcombine.low %v918_v3, %v926_v4  ;;  %v495_v3 = vld [vmem:[#allocation2 + $0x8f8] sm:$0xff] }
 0x438   :  { %7525 = vmatpush1.bf16.msra.mxu0 %v13834_v22  ;;  %7566 = vmatpush1.bf16.msra.mxu1 %v14090_v24  ;;  %v1182_v39 = vld [vmem:[#allocation2 + $0x1e70] sm:$0xff] }
 0x439   :  { %7526 = vmatprep.subr.bf16.mxu0 %v13851_v26  ;;  %7567 = vmatprep.subr.bf16.mxu1 %v14107_v27  ;;  %v14171_v13 = vcombine.high %v1174_v7, %v1182_v39  ;;  %v934_v47 = vld [vmem:[#allocation2 + $0x16b0] sm:$0xff]  ;;  %v14170_v19 = vcombine.low %v1174_v7, %v1182_v39 }
 0x43a   :  { %v942_v14 = vld [vmem:[#allocation2 + $0x16f0] sm:$0xff] }
 0x43b   :  { %v1190_v15 = vld [vmem:[#allocation2 + $0x1eb0] sm:$0xff]  ;;  %v13931_v20 = vcombine.high %v934_v47, %v942_v14  ;;  %v13930_v30 = vcombine.low %v934_v47, %v942_v14  ;;  %v511_v47 = vld [vmem:[#allocation2 + $0x978] sm:$0xff] }
 0x43c   :  { %7527 = vmatpush1.bf16.msra.mxu0 %v13850_v40  ;;  %7568 = vmatpush1.bf16.msra.mxu1 %v14106_v43  ;;  %v14187_v22 = vcombine.high %v1190_v15, %v1198_v16  ;;  %v950_v24 = vld [vmem:[#allocation2 + $0x1730] sm:$0xff]  ;;  %v14186_v31 = vcombine.low %v1190_v15, %v1198_v16 }
 0x43d   :  { %7528 = vmatprep.subr.bf16.mxu0 %v13867_v44  ;;  %7569 = vmatprep.subr.bf16.mxu1 %v14123_v45  ;;  %v958_v26 = vld [vmem:[#allocation2 + $0x1770] sm:$0xff] }
 0x43e   :  { %v1206_v27 = vld [vmem:[#allocation2 + $0x1f30] sm:$0xff]  ;;  %v13947_v37 = vcombine.high %v950_v24, %v958_v26  ;;  %v13946_v49 = vcombine.low %v950_v24, %v958_v26  ;;  %v527_v24 = vld [vmem:[#allocation2 + $0x9f8] sm:$0xff] }
 0x43f   :  { %v14203_v40 = vcombine.high %v1206_v27, %v1214_v29  ;;  %v966_v43 = vld [vmem:[#allocation2 + $0x17b0] sm:$0xff]  ;;  %v14202_v50 = vcombine.low %v1206_v27, %v1214_v29 }
 0x440   :  { %7529 = vmatpush1.bf16.msra.mxu0 %v13866_v53  ;;  %7570 = vmatpush1.bf16.msra.mxu1 %v14122_v55  ;;  %v974_v44 = vld [vmem:[#allocation2 + $0x17f0] sm:$0xff]  ;;  %v215_v55 = vld [vmem:[#allocation2 + $0x38] sm:$0xff] }
 0x441   :  { %7530 = vmatprep.subr.bf16.mxu0 %v13883_v56  ;;  %7571 = vmatprep.subr.bf16.mxu1 %v14139_v58  ;;  %v1222_v45 = vld [vmem:[#allocation2 + $0x1fb0] sm:$0xff]  ;;  %v13963_v51 = vcombine.high %v966_v43, %v974_v44  ;;  %v223_v56 = vld [vmem:[#allocation2 + $0x78] sm:$0xff]  ;;  %v13962_v61 = vcombine.low %v966_v43, %v974_v44 }
 0x442   :  { %v1230_v48 = vld [vmem:[#allocation2 + $0x1ff0] sm:$0xff]  ;;  %v471_v58 = vld [vmem:[#allocation2 + $0x838] sm:$0xff]  ;;  %v13213_v63 = vcombine.high %v215_v55, %v223_v56  ;;  %v13212_v4 = vcombine.low %v215_v55, %v223_v56  ;;  %v16059_v55 = vsub.s32 2, %v16018_v60 }
 0x443   :  { %v14219_v53 = vcombine.high %v1222_v45, %v1230_v48  ;;  %v14218_v62 = vcombine.low %v1222_v45, %v1230_v48  ;;  %v13468_v7 = vcombine.low %v471_v58, %v479_v59  ;;  %v543_v43 = vld [vmem:[#allocation2 + $0xa78] sm:$0xff] }
 0x444   :  { %7531 = vmatpush1.bf16.msra.mxu0 %v13882_v0  ;;  %7572 = vmatpush1.bf16.msra.mxu1 %v14138_v1  ;;  %v13469_v0 = vcombine.high %v471_v58, %v479_v59  ;;  %v231_v1 = vld [vmem:[#allocation2 + $0xb8] sm:$0xff]  ;;  %v16062_v59 = vsub.s32 3, %v16018_v60 }
 0x445   :  { %7532 = vmatprep.subr.bf16.mxu0 %v13899_v32  ;;  %7573 = vmatprep.subr.bf16.mxu1 %v14155_v2  ;;  %v239_v32 = vld [vmem:[#allocation2 + $0xf8] sm:$0xff] }
 0x446   :  { %v487_v2 = vld [vmem:[#allocation2 + $0x8b8] sm:$0xff]  ;;  %v13229_v39 = vcombine.high %v231_v1, %v239_v32  ;;  %v13228_v14 = vcombine.low %v231_v1, %v239_v32 }
 0x447   :  { %v13484_v15 = vcombine.low %v487_v2, %v495_v3  ;;  %v295_v48 = vld [vmem:[#allocation2 + $0x2b8] sm:$0xff] }
 0x448   :  { %7533 = vmatpush1.bf16.msra.mxu0 %v13898_v8  ;;  %7574 = vmatpush1.bf16.msra.mxu1 %v14154_v10  ;;  %v13485_v8 = vcombine.high %v487_v2, %v495_v3  ;;  %v247_v10 = vld [vmem:[#allocation2 + $0x138] sm:$0xff]  ;;  %v1291_v2 = vrot.slane %v16020_v5, %v16062_v59 }
 0x449   :  { %7534 = vmatprep.subr.bf16.mxu0 %v13915_v11  ;;  %7575 = vmatprep.subr.bf16.mxu1 %v14171_v13  ;;  %v255_v11 = vld [vmem:[#allocation2 + $0x178] sm:$0xff] }
 0x44a   :  { %v503_v13 = vld [vmem:[#allocation2 + $0x938] sm:$0xff]  ;;  %v13245_v16 = vcombine.high %v247_v10, %v255_v11  ;;  %v13244_v26 = vcombine.low %v247_v10, %v255_v11 }
 0x44b   :  { %v13500_v27 = vcombine.low %v503_v13, %v511_v47  ;;  %v567_v1 = vld [vmem:[#allocation2 + $0xb38] sm:$0xff] }
 0x44c   :  { %7535 = vmatpush1.bf16.msra.mxu0 %v13914_v18  ;;  %7576 = vmatpush1.bf16.msra.mxu1 %v14170_v19  ;;  %v13501_v18 = vcombine.high %v503_v13, %v511_v47  ;;  %v263_v19 = vld [vmem:[#allocation2 + $0x1b8] sm:$0xff] }
 0x44d   :  { %7536 = vmatprep.subr.bf16.mxu0 %v13931_v20  ;;  %7577 = vmatprep.subr.bf16.mxu1 %v14187_v22  ;;  %v271_v20 = vld [vmem:[#allocation2 + $0x1f8] sm:$0xff] }
 0x44e   :  { %v519_v22 = vld [vmem:[#allocation2 + $0x9b8] sm:$0xff]  ;;  %v13261_v29 = vcombine.high %v263_v19, %v271_v20  ;;  %v13260_v44 = vcombine.low %v263_v19, %v271_v20 }
 0x44f   :  { %v575_v32 = vld [vmem:[#allocation2 + $0xb78] sm:$0xff] }
 0x450   :  { %7537 = vmatpush1.bf16.msra.mxu0 %v13930_v30  ;;  %7578 = vmatpush1.bf16.msra.mxu1 %v14186_v31  ;;  %v13517_v30 = vcombine.high %v519_v22, %v527_v24  ;;  %v279_v31 = vld [vmem:[#allocation2 + $0x238] sm:$0xff] }
 0x451   :  { %7538 = vmatprep.subr.bf16.mxu0 %v13947_v37  ;;  %7579 = vmatprep.subr.bf16.mxu1 %v14203_v40  ;;  %v287_v37 = vld [vmem:[#allocation2 + $0x278] sm:$0xff] }
 0x452   :  { %v535_v40 = vld [vmem:[#allocation2 + $0xa38] sm:$0xff]  ;;  %v13277_v45 = vcombine.high %v279_v31, %v287_v37 }
 0x453   :  { %v13532_v56 = vcombine.low %v535_v40, %v543_v43  ;;  %v327_v10 = vld [vmem:[#allocation2 + $0x3b8] sm:$0xff] }
 0x454   :  { %7539 = vmatpush1.bf16.msra.mxu0 %v13946_v49  ;;  %7580 = vmatpush1.bf16.msra.mxu1 %v14202_v50  ;;  %v303_v49 = vld [vmem:[#allocation2 + $0x2f8] sm:$0xff] }
 0x455   :  { %7540 = vmatprep.subr.bf16.mxu0 %v13963_v51  ;;  %7581 = vmatprep.subr.bf16.mxu1 %v14219_v53  ;;  %v551_v50 = vld [vmem:[#allocation2 + $0xab8] sm:$0xff]  ;;  %v13276_v53 = vcombine.low %v279_v31, %v287_v37  ;;  %v13293_v58 = vcombine.high %v295_v48, %v303_v49  ;;  %v13292_v3 = vcombine.low %v295_v48, %v303_v49 }
 0x456   :  { %v559_v51 = vld [vmem:[#allocation2 + $0xaf8] sm:$0xff] }
 0x457   :  { %v335_v11 = vld [vmem:[#allocation2 + $0x3f8] sm:$0xff] }
 0x458   :  { %7541 = vmatpush1.bf16.msra.mxu0 %v13962_v61  ;;  %7582 = vmatpush1.bf16.msra.mxu1 %v14218_v62  ;;  %v13549_v61 = vcombine.high %v551_v50, %v559_v51  ;;  %v311_v62 = vld [vmem:[#allocation2 + $0x338] sm:$0xff] }
 0x459   :  { %7592 = vmatprep.subr.bf16.mxu0 %v13213_v63  ;;  %7633 = vmatprep.subr.bf16.mxu1 %v13469_v0  ;;  %v319_v63 = vld [vmem:[#allocation2 + $0x378] sm:$0xff]  ;;  %v1287_v0 = vrot.slane %v16020_v5, %v16059_v55 }
 0x45a   :  { %v13308_v5 = vcombine.low %v311_v62, %v319_v63 }
 0x45b   :  { %7543 = vmatmul.mubr.bf16.vlgmr.msra.gmra.mrb[28].mxu0 %v15950_v36  ;;  %7584 = vmatmul.mubr.bf16.vlgmr.msra.gmra.mrb[28].mxu1 %v15964_v54 }
 0x45c   :  { %7593 = vmatpush1.bf16.msra.mxu0 %v13212_v4  ;;  %7634 = vmatpush1.bf16.msra.mxu1 %v13468_v7  ;;  %v13548_v4 = vcombine.low %v551_v50, %v559_v51  ;;  %v13309_v7 = vcombine.high %v311_v62, %v319_v63  ;;  %v359_v50 = vld [vmem:[#allocation2 + $0x4b8] sm:$0xff] }
 0x45d   :  { %7594 = vmatprep.subr.bf16.mxu0 %v13229_v39  ;;  %7635 = vmatprep.subr.bf16.mxu1 %v13485_v8  ;;  %v13565_v8 = vcombine.high %v567_v1, %v575_v32  ;;  %v367_v51 = vld [vmem:[#allocation2 + $0x4f8] sm:$0xff] }
 0x45e   :  { %7624 = vmatprep.mubr.bf16.mxu0 %v15915_v57  ;;  %7665 = vmatprep.mubr.bf16.mxu1 %v15927_v23  ;;  %v13516_v57 = vcombine.low %v519_v22, %v527_v24  ;;  %v13533_v23 = vcombine.high %v535_v40, %v543_v43  ;;  %v343_v40 = vld [vmem:[#allocation2 + $0x438] sm:$0xff]  ;;  %v13357_v62 = vcombine.high %v359_v50, %v367_v51 }
 0x45f   :  { %v351_v43 = vld [vmem:[#allocation2 + $0x478] sm:$0xff] }
 0x460   :  { %7595 = vmatpush1.bf16.msra.mxu0 %v13228_v14  ;;  %7636 = vmatpush1.bf16.msra.mxu1 %v13484_v15  ;;  %v583_v15 = vld [vmem:[#allocation2 + $0xbb8] sm:$0xff]  ;;  %v13341_v48 = vcombine.high %v343_v40, %v351_v43 }
 0x461   :  { %7596 = vmatprep.subr.bf16.mxu0 %v13245_v16  ;;  %7637 = vmatprep.subr.bf16.mxu1 %v13501_v18  ;;  %v591_v16 = vld [vmem:[#allocation2 + $0xbf8] sm:$0xff] }
 0x462   :  { %v13581_v37 = vcombine.high %v583_v15, %v591_v16 }
 0x464   :  { %7597 = vmatpush1.bf16.msra.mxu0 %v13244_v26  ;;  %7638 = vmatpush1.bf16.msra.mxu1 %v13500_v27  ;;  %v13564_v27 = vcombine.low %v567_v1, %v575_v32  ;;  %v383_v1 = vld [vmem:[#allocation2 + $0x578] sm:$0xff] }
 0x465   :  { %7598 = vmatprep.subr.bf16.mxu0 %v13261_v29  ;;  %7639 = vmatprep.subr.bf16.mxu1 %v13517_v30  ;;  %v13325_v29 = vcombine.high %v327_v10, %v335_v11  ;;  %v631_v32 = vld [vmem:[#allocation2 + $0xd38] sm:$0xff] }
 0x468   :  { %7599 = vmatpush1.bf16.msra.mxu0 %v13260_v44  ;;  %7640 = vmatpush1.bf16.msra.mxu1 %v13516_v57  ;;  %v599_v44 = vld [vmem:[#allocation2 + $0xc38] sm:$0xff] }
 0x469   :  { %7600 = vmatprep.subr.bf16.mxu0 %v13277_v45  ;;  %7641 = vmatprep.subr.bf16.mxu1 %v13533_v23  ;;  %v607_v57 = vld [vmem:[#allocation2 + $0xc78] sm:$0xff]  ;;  %v13324_v45 = vcombine.low %v327_v10, %v335_v11  ;;  %v13580_v23 = vcombine.low %v583_v15, %v591_v16 }
 0x46a   :  { %v13597_v49 = vcombine.high %v599_v44, %v607_v57  ;;  %v399_v10 = vld [vmem:[#allocation2 + $0x5f8] sm:$0xff] }
 0x46b   :  { %v647_v11 = vld [vmem:[#allocation2 + $0xdb8] sm:$0xff] }
 0x46c   :  { %7601 = vmatpush1.bf16.msra.mxu0 %v13276_v53  ;;  %7642 = vmatpush1.bf16.msra.mxu1 %v13532_v56  ;;  %v615_v53 = vld [vmem:[#allocation2 + $0xcb8] sm:$0xff] }
 0x46d   :  { %7602 = vmatprep.subr.bf16.mxu0 %v13293_v58  ;;  %7643 = vmatprep.subr.bf16.mxu1 %v13549_v61  ;;  %v623_v56 = vld [vmem:[#allocation2 + $0xcf8] sm:$0xff]  ;;  %v13340_v58 = vcombine.low %v343_v40, %v351_v43  ;;  %v13596_v61 = vcombine.low %v599_v44, %v607_v57 }
 0x46e   :  { %v7298_v39 = vpop.f32.mrb[16].mxu0  ;;  %v7339_v47 = vpop.f32.mrb[16].mxu1  ;;  %v13613_v63 = vcombine.high %v615_v53, %v623_v56  ;;  %v679_v40 = vld [vmem:[#allocation2 + $0xeb8] sm:$0xff] }
 0x46f   :  { %v7299_v13 = vadd.f32 %v7298_v39, %v1287_v0  ;;  %v7300_v14 = vpop.f32.mrb[17].mxu0  ;;  %v7341_v19 = vpop.f32.mrb[17].mxu1  ;;  %v375_v0 = vld [vmem:[#allocation2 + $0x538] sm:$0xff] }
 0x470   :  { %v7301_v18 = vadd.f32 %v7300_v14, %v1291_v2  ;;  %v7302_v20 = vpop.f32.mrb[18].mxu0  ;;  %7603 = vmatpush1.bf16.msra.mxu0 %v13292_v3  ;;  %v7343_v24 = vpop.f32.mrb[18].mxu1  ;;  %7644 = vmatpush1.bf16.msra.mxu1 %v13548_v4  ;;  %v639_v2 = vld [vmem:[#allocation2 + $0xd78] sm:$0xff]  ;;  %v13356_v3 = vcombine.low %v359_v50, %v367_v51  ;;  %v13612_v4 = vcombine.low %v615_v53, %v623_v56 }
 0x471   :  { %v16068_v22 = vadd.f32 %v7339_v47, %v7299_v13  ;;  %v7303_v26 = vpop.f32.mrb[19].mxu0  ;;  %7604 = vmatprep.subr.bf16.mxu0 %v13309_v7  ;;  %v7344_v31 = vpop.f32.mrb[19].mxu1  ;;  %7645 = vmatprep.subr.bf16.mxu1 %v13565_v8  ;;  %v13373_v7 = vcombine.high %v375_v0, %v383_v1  ;;  %v13629_v39 = vcombine.high %v631_v32, %v639_v2  ;;  %v391_v8 = vld [vmem:[#allocation2 + $0x5b8] sm:$0xff] }
 0x472   :  { %v16070_v30 = vadd.f32 %v7341_v19, %v7301_v18  ;;  %v655_v13 = vld [vmem:[#allocation2 + $0xdf8] sm:$0xff]  ;;  %v13372_v47 = vcombine.low %v375_v0, %v383_v1  ;;  %v13628_v14 = vcombine.low %v631_v32, %v639_v2  ;;  %v13389_v15 = vcombine.high %v391_v8, %v399_v10 }
 0x473   :  { %v13645_v16 = vcombine.high %v647_v11, %v655_v13  ;;  %v407_v18 = vld [vmem:[#allocation2 + $0x638] sm:$0xff]  ;;  %v13388_v24 = vcombine.low %v391_v8, %v399_v10  ;;  %v13644_v26 = vcombine.low %v647_v11, %v655_v13 }
 0x474   :  { %7605 = vmatpush1.bf16.msra.mxu0 %v13308_v5  ;;  %7646 = vmatpush1.bf16.msra.mxu1 %v13564_v27  ;;  %v415_v19 = vld [vmem:[#allocation2 + $0x678] sm:$0xff] }
 0x475   :  { %7606 = vmatprep.subr.bf16.mxu0 %v13325_v29  ;;  %7647 = vmatprep.subr.bf16.mxu1 %v13581_v37  ;;  %v663_v20 = vld [vmem:[#allocation2 + $0xe38] sm:$0xff]  ;;  %v13405_v27 = vcombine.high %v407_v18, %v415_v19  ;;  %v13404_v44 = vcombine.low %v407_v18, %v415_v19 }
 0x476   :  { %v671_v5 = vld [vmem:[#allocation2 + $0xe78] sm:$0xff] }
 0x477   :  { %v13661_v29 = vcombine.high %v663_v20, %v671_v5  ;;  %v423_v31 = vld [vmem:[#allocation2 + $0x6b8] sm:$0xff]  ;;  %v13660_v57 = vcombine.low %v663_v20, %v671_v5 }
 0x478   :  { %7607 = vmatpush1.bf16.msra.mxu0 %v13324_v45  ;;  %7648 = vmatpush1.bf16.msra.mxu1 %v13580_v23  ;;  %v431_v37 = vld [vmem:[#allocation2 + $0x6f8] sm:$0xff] }
 0x479   :  { %7608 = vmatprep.subr.bf16.mxu0 %v13341_v48  ;;  %7649 = vmatprep.subr.bf16.mxu1 %v13597_v49  ;;  %v687_v43 = vld [vmem:[#allocation2 + $0xef8] sm:$0xff]  ;;  %v13421_v45 = vcombine.high %v423_v31, %v431_v37  ;;  %v13420_v53 = vcombine.low %v423_v31, %v431_v37 }
 0x47a   :  { %v13677_v23 = vcombine.high %v679_v40, %v687_v43  ;;  %v439_v48 = vld [vmem:[#allocation2 + $0x738] sm:$0xff]  ;;  %v13676_v56 = vcombine.low %v679_v40, %v687_v43 }
 0x47b   :  { %v447_v49 = vld [vmem:[#allocation2 + $0x778] sm:$0xff] }
 0x47c   :  { %7609 = vmatpush1.bf16.msra.mxu0 %v13340_v58  ;;  %7650 = vmatpush1.bf16.msra.mxu1 %v13596_v61  ;;  %v695_v50 = vld [vmem:[#allocation2 + $0xf38] sm:$0xff]  ;;  %v13437_v58 = vcombine.high %v439_v48, %v447_v49  ;;  %v13436_v32 = vcombine.low %v439_v48, %v447_v49 }
 0x47d   :  { %7610 = vmatprep.subr.bf16.mxu0 %v13357_v62  ;;  %7651 = vmatprep.subr.bf16.mxu1 %v13613_v63  ;;  %v703_v51 = vld [vmem:[#allocation2 + $0xf78] sm:$0xff] }
 0x47e   :  { %v13693_v61 = vcombine.high %v695_v50, %v703_v51  ;;  %v455_v62 = vld [vmem:[#allocation2 + $0x7b8] sm:$0xff]  ;;  %v13692_v2 = vcombine.low %v695_v50, %v703_v51 }
 0x47f   :  { %v463_v63 = vld [vmem:[#allocation2 + $0x7f8] sm:$0xff] }
 0x480   :  { %7611 = vmatpush1.bf16.msra.mxu0 %v13356_v3  ;;  %7652 = vmatpush1.bf16.msra.mxu1 %v13612_v4  ;;  %v711_v0 = vld [vmem:[#allocation2 + $0xfb8] sm:$0xff]  ;;  %v13453_v3 = vcombine.high %v455_v62, %v463_v63  ;;  %v13452_v11 = vcombine.low %v455_v62, %v463_v63 }
 0x481   :  { %7612 = vmatprep.subr.bf16.mxu0 %v13373_v7  ;;  %7653 = vmatprep.subr.bf16.mxu1 %v13629_v39  ;;  %v719_v1 = vld [vmem:[#allocation2 + $0xff8] sm:$0xff] }
 0x482   :  { %v13709_v4 = vcombine.high %v711_v0, %v719_v1  ;;  %v727_v7 = vld [vmem:[#allocation2 + $0x1038] sm:$0xff]  ;;  %v13708_v13 = vcombine.low %v711_v0, %v719_v1 }
 0x483   :  { %v735_v39 = vld [vmem:[#allocation2 + $0x1078] sm:$0xff] }
 0x484   :  { %7613 = vmatpush1.bf16.msra.mxu0 %v13372_v47  ;;  %7654 = vmatpush1.bf16.msra.mxu1 %v13628_v14  ;;  %v983_v8 = vld [vmem:[#allocation2 + $0x1838] sm:$0xff]  ;;  %v13725_v47 = vcombine.high %v727_v7, %v735_v39  ;;  %v13724_v20 = vcombine.low %v727_v7, %v735_v39 }
 0x485   :  { %7614 = vmatprep.subr.bf16.mxu0 %v13389_v15  ;;  %7655 = vmatprep.subr.bf16.mxu1 %v13645_v16  ;;  %v991_v10 = vld [vmem:[#allocation2 + $0x1878] sm:$0xff] }
 0x486   :  { %v13981_v14 = vcombine.high %v983_v8, %v991_v10  ;;  %v743_v15 = vld [vmem:[#allocation2 + $0x10b8] sm:$0xff]  ;;  %v13980_v5 = vcombine.low %v983_v8, %v991_v10  ;;  %v1259_v8 = vrot.slane %v16040_v17, %v16062_v59 }
 0x487   :  { %v751_v16 = vld [vmem:[#allocation2 + $0x10f8] sm:$0xff] }
 0x488   :  { %7615 = vmatpush1.bf16.msra.mxu0 %v13388_v24  ;;  %7656 = vmatpush1.bf16.msra.mxu1 %v13644_v26  ;;  %v999_v18 = vld [vmem:[#allocation2 + $0x18b8] sm:$0xff]  ;;  %v13741_v24 = vcombine.high %v743_v15, %v751_v16  ;;  %v13740_v40 = vcombine.low %v743_v15, %v751_v16 }
 0x489   :  { %7616 = vmatprep.subr.bf16.mxu0 %v13405_v27  ;;  %7657 = vmatprep.subr.bf16.mxu1 %v13661_v29  ;;  %v1007_v19 = vld [vmem:[#allocation2 + $0x18f8] sm:$0xff] }
 0x48a   :  { %v13997_v26 = vcombine.high %v999_v18, %v1007_v19  ;;  %v759_v27 = vld [vmem:[#allocation2 + $0x1138] sm:$0xff]  ;;  %v13996_v43 = vcombine.low %v999_v18, %v1007_v19 }
 0x48b   :  { %v767_v29 = vld [vmem:[#allocation2 + $0x1178] sm:$0xff] }
 0x48c   :  { %7617 = vmatpush1.bf16.msra.mxu0 %v13404_v44  ;;  %7658 = vmatpush1.bf16.msra.mxu1 %v13660_v57  ;;  %v1015_v31 = vld [vmem:[#allocation2 + $0x1938] sm:$0xff]  ;;  %v13757_v44 = vcombine.high %v759_v27, %v767_v29 }
 0x48d   :  { %7618 = vmatprep.subr.bf16.mxu0 %v13421_v45  ;;  %7659 = vmatprep.subr.bf16.mxu1 %v13677_v23  ;;  %v1023_v37 = vld [vmem:[#allocation2 + $0x1978] sm:$0xff] }
 0x48e   :  { %v14013_v57 = vcombine.high %v1015_v31, %v1023_v37  ;;  %v775_v45 = vld [vmem:[#allocation2 + $0x11b8] sm:$0xff] }
 0x48f   :  { %v783_v23 = vld [vmem:[#allocation2 + $0x11f8] sm:$0xff] }
 0x490   :  { %7619 = vmatpush1.bf16.msra.mxu0 %v13420_v53  ;;  %7660 = vmatpush1.bf16.msra.mxu1 %v13676_v56  ;;  %v1031_v48 = vld [vmem:[#allocation2 + $0x19b8] sm:$0xff]  ;;  %v13773_v50 = vcombine.high %v775_v45, %v783_v23  ;;  %v13772_v62 = vcombine.low %v775_v45, %v783_v23 }
 0x491   :  { %7620 = vmatprep.subr.bf16.mxu0 %v13437_v58  ;;  %7661 = vmatprep.subr.bf16.mxu1 %v13693_v61  ;;  %v1039_v49 = vld [vmem:[#allocation2 + $0x19f8] sm:$0xff] }
 0x492   :  { %v14029_v51 = vcombine.high %v1031_v48, %v1039_v49  ;;  %v791_v53 = vld [vmem:[#allocation2 + $0x1238] sm:$0xff] }
 0x493   :  { %v799_v56 = vld [vmem:[#allocation2 + $0x1278] sm:$0xff] }
 0x494   :  { %7621 = vmatpush1.bf16.msra.mxu0 %v13436_v32  ;;  %7662 = vmatpush1.bf16.msra.mxu1 %v13692_v2  ;;  %v1047_v58 = vld [vmem:[#allocation2 + $0x1a38] sm:$0xff]  ;;  %v13789_v63 = vcombine.high %v791_v53, %v799_v56 }
 0x495   :  { %7622 = vmatprep.subr.bf16.mxu0 %v13453_v3  ;;  %7663 = vmatprep.subr.bf16.mxu1 %v13709_v4  ;;  %v1055_v61 = vld [vmem:[#allocation2 + $0x1a78] sm:$0xff]  ;;  %v13788_v3 = vcombine.low %v791_v53, %v799_v56  ;;  %v1255_v4 = vrot.slane %v16040_v17, %v16059_v55 }
 0x496   :  { %v807_v0 = vld [vmem:[#allocation2 + $0x12b8] sm:$0xff]  ;;  %v14044_v7 = vcombine.low %v1047_v58, %v1055_v61 }
 0x497   :  { %v815_v1 = vld [vmem:[#allocation2 + $0x12f8] sm:$0xff]  ;;  %v14966_v16 = vadd.f32 %v15984_v38, %v1255_v4 }
 0x498   :  { %7623 = vmatpush1.bf16.msra.mxu0 %v13452_v11  ;;  %7664 = vmatpush1.bf16.msra.mxu1 %v13708_v13  ;;  %v1063_v32 = vld [vmem:[#allocation2 + $0x1ab8] sm:$0xff]  ;;  %v13805_v39 = vcombine.high %v807_v0, %v815_v1  ;;  %v13804_v15 = vcombine.low %v807_v0, %v815_v1 }
 0x499   :  { %7674 = vmatprep.subr.bf16.mxu0 %v13725_v47  ;;  %7715 = vmatprep.subr.bf16.mxu1 %v13981_v14  ;;  %v1071_v2 = vld [vmem:[#allocation2 + $0x1af8] sm:$0xff]  ;;  %v7758_v45 = vmax.f32 %v14966_v16, 0.0 }
 0x49a   :  { %v14061_v10 = vcombine.high %v1063_v32, %v1071_v2  ;;  %v823_v11 = vld [vmem:[#allocation2 + $0x1338] sm:$0xff]  ;;  %v14060_v18 = vcombine.low %v1063_v32, %v1071_v2 }
 0x49b   :  { %7625 = vmatmul.mubr.bf16.vlgmr.msra.gmra.mrb[32].mxu0 %v15922_v12  ;;  %7666 = vmatmul.mubr.bf16.vlgmr.msra.gmra.mrb[32].mxu1 %v15939_v25  ;;  %v13756_v12 = vcombine.low %v759_v27, %v767_v29  ;;  %v14012_v25 = vcombine.low %v1015_v31, %v1023_v37  ;;  %v831_v13 = vld [vmem:[#allocation2 + $0x1378] sm:$0xff] }
 0x49c   :  { %7675 = vmatpush1.bf16.msra.mxu0 %v13724_v20  ;;  %7716 = vmatpush1.bf16.msra.mxu1 %v13980_v5  ;;  %v1079_v47 = vld [vmem:[#allocation2 + $0x1b38] sm:$0xff]  ;;  %v13821_v19 = vcombine.high %v823_v11, %v831_v13  ;;  %v14967_v20 = vadd.f32 %v15988_v42, %v1259_v8 }
 0x49d   :  { %7676 = vmatprep.subr.bf16.mxu0 %v13741_v24  ;;  %7717 = vmatprep.subr.bf16.mxu1 %v13997_v26  ;;  %v1087_v14 = vld [vmem:[#allocation2 + $0x1b78] sm:$0xff] }
 0x49e   :  { %7706 = vmatprep.mubr.bf16.mxu0 %v15941_v34  ;;  %7747 = vmatprep.mubr.bf16.mxu1 %v15955_v46  ;;  %v14028_v34 = vcombine.low %v1031_v48, %v1039_v49  ;;  %v14045_v46 = vcombine.high %v1047_v58, %v1055_v61  ;;  %v14077_v24 = vcombine.high %v1079_v47, %v1087_v14  ;;  %v839_v17 = vld [vmem:[#allocation2 + $0x13b8] sm:$0xff] }
 0x49f   :  { %v847_v26 = vld [vmem:[#allocation2 + $0x13f8] sm:$0xff]  ;;  %v14076_v49 = vcombine.low %v1079_v47, %v1087_v14 }
 0x4a0   :  { %7677 = vmatpush1.bf16.msra.mxu0 %v13740_v40  ;;  %7718 = vmatpush1.bf16.msra.mxu1 %v13996_v43  ;;  %v1095_v37 = vld [vmem:[#allocation2 + $0x1bb8] sm:$0xff] }
 0x4a1   :  { %7678 = vmatprep.subr.bf16.mxu0 %v13757_v44  ;;  %7719 = vmatprep.subr.bf16.mxu1 %v14013_v57  ;;  %v1103_v40 = vld [vmem:[#allocation2 + $0x1bf8] sm:$0xff]  ;;  %v13820_v57 = vcombine.low %v823_v11, %v831_v13 }
 0x4a2   :  { %v855_v53 = vld [vmem:[#allocation2 + $0x1438] sm:$0xff] }
 0x4a3   :  { %v863_v56 = vld [vmem:[#allocation2 + $0x1478] sm:$0xff] }
 0x4a4   :  { %7679 = vmatpush1.bf16.msra.mxu0 %v13756_v12  ;;  %7720 = vmatpush1.bf16.msra.mxu1 %v14012_v25  ;;  %v13837_v12 = vcombine.high %v839_v17, %v847_v26  ;;  %v7759_v25 = vmax.f32 %v14967_v20, 0.0  ;;  %v1111_v58 = vld [vmem:[#allocation2 + $0x1c38] sm:$0xff]  ;;  %v13852_v4 = vcombine.low %v855_v53, %v863_v56 }
 0x4a5   :  { %7680 = vmatprep.subr.bf16.mxu0 %v13773_v50  ;;  %7721 = vmatprep.subr.bf16.mxu1 %v14029_v51  ;;  %v14093_v51 = vcombine.high %v1095_v37, %v1103_v40  ;;  %v1119_v61 = vld [vmem:[#allocation2 + $0x1c78] sm:$0xff] }
 0x4a6   :  { %v14109_v0 = vcombine.high %v1111_v58, %v1119_v61  ;;  %v871_v1 = vld [vmem:[#allocation2 + $0x14b8] sm:$0xff] }
 0x4a7   :  { %v879_v32 = vld [vmem:[#allocation2 + $0x14f8] sm:$0xff] }
 0x4a8   :  { %7681 = vmatpush1.bf16.msra.mxu0 %v13772_v62  ;;  %7722 = vmatpush1.bf16.msra.mxu1 %v14028_v34  ;;  %v13836_v34 = vcombine.low %v839_v17, %v847_v26  ;;  %v1127_v2 = vld [vmem:[#allocation2 + $0x1cb8] sm:$0xff]  ;;  %v13868_v14 = vcombine.low %v871_v1, %v879_v32 }
 0x4a9   :  { %7682 = vmatprep.subr.bf16.mxu0 %v13789_v63  ;;  %7723 = vmatprep.subr.bf16.mxu1 %v14045_v46  ;;  %v14092_v63 = vcombine.low %v1095_v37, %v1103_v40  ;;  %v13853_v46 = vcombine.high %v855_v53, %v863_v56  ;;  %v895_v11 = vld [vmem:[#allocation2 + $0x1578] sm:$0xff] }
 0x4aa   :  { %v1143_v13 = vld [vmem:[#allocation2 + $0x1d38] sm:$0xff] }
 0x4ab   :  { %v1151_v47 = vld [vmem:[#allocation2 + $0x1d78] sm:$0xff] }
 0x4ac   :  { %7683 = vmatpush1.bf16.msra.mxu0 %v13788_v3  ;;  %7724 = vmatpush1.bf16.msra.mxu1 %v14044_v7  ;;  %v1135_v3 = vld [vmem:[#allocation2 + $0x1cf8] sm:$0xff]  ;;  %v14108_v7 = vcombine.low %v1111_v58, %v1119_v61  ;;  %v14140_v26 = vcombine.low %v1143_v13, %v1151_v47 }
 0x4ad   :  { %7684 = vmatprep.subr.bf16.mxu0 %v13805_v39  ;;  %7725 = vmatprep.subr.bf16.mxu1 %v14061_v10  ;;  %v13869_v39 = vcombine.high %v871_v1, %v879_v32  ;;  %v14125_v8 = vcombine.high %v1127_v2, %v1135_v3  ;;  %v887_v10 = vld [vmem:[#allocation2 + $0x1538] sm:$0xff] }
 0x4ae   :  { %v7380_v5 = vpop.f32.mrb[20].mxu0  ;;  %v7421_v29 = vpop.f32.mrb[20].mxu1  ;;  %v13885_v16 = vcombine.high %v887_v10, %v895_v11  ;;  %v911_v20 = vld [vmem:[#allocation2 + $0x15f8] sm:$0xff]  ;;  %v13884_v17 = vcombine.low %v887_v10, %v895_v11  ;;  %v7776_v10 = vld [vmem:[%s17818_s3 + $0x20] sm:$0xff]  ;;  %v7773_v11 = vld [vmem:[%s17818_s3 + $0x8] sm:$0xff] }
 0x4af   :  { %v7381_v27 = vadd.f32 %v7380_v5, %v16068_v22  ;;  %v7382_v31 = vpop.f32.mrb[21].mxu0  ;;  %v7423_v38 = vpop.f32.mrb[21].mxu1  ;;  %v1159_v5 = vld [vmem:[#allocation2 + $0x1db8] sm:$0xff] }
 0x4b0   :  { %v7383_v43 = vadd.f32 %v7382_v31, %v16070_v30  ;;  %v7384_v44 = vpop.f32.mrb[22].mxu0  ;;  %7685 = vmatpush1.bf16.msra.mxu0 %v13804_v15  ;;  %v7425_v42 = vpop.f32.mrb[22].mxu1  ;;  %7726 = vmatpush1.bf16.msra.mxu1 %v14060_v18  ;;  %v14124_v15 = vcombine.low %v1127_v2, %v1135_v3  ;;  %v14141_v18 = vcombine.high %v1143_v13, %v1151_v47  ;;  %v919_v31 = vld [vmem:[#allocation2 + $0x1638] sm:$0xff]  ;;  %v7777_v13 = vld [vmem:[%s17818_s3 + $0x28] sm:$0xff] }
 0x4b1   :  { %v7422_v23 = vadd.f32 %v7421_v29, %v7381_v27  ;;  %v7385_v48 = vpop.f32.mrb[23].mxu0  ;;  %7686 = vmatprep.subr.bf16.mxu0 %v13821_v19  ;;  %v7426_v50 = vpop.f32.mrb[23].mxu1  ;;  %7727 = vmatprep.subr.bf16.mxu1 %v14077_v24  ;;  %v903_v19 = vld [vmem:[#allocation2 + $0x15b8] sm:$0xff] }
 0x4b2   :  { %v7424_v22 = vadd.f32 %v7423_v38, %v7383_v43  ;;  %v1167_v24 = vld [vmem:[#allocation2 + $0x1df8] sm:$0xff]  ;;  %v13901_v27 = vcombine.high %v903_v19, %v911_v20  ;;  %v13900_v38 = vcombine.low %v903_v19, %v911_v20  ;;  %v7784_v19 = vld [vmem:[%s17818_s3 + $0x60] sm:$0xff] }
 0x4b3   :  { %v16084_v30 = vadd.f32 %v7758_v45, %v7422_v23  ;;  %v14157_v29 = vcombine.high %v1159_v5, %v1167_v24  ;;  %v927_v37 = vld [vmem:[#allocation2 + $0x1678] sm:$0xff]  ;;  %v14156_v44 = vcombine.low %v1159_v5, %v1167_v24  ;;  %v7781_v5 = vld [vmem:[%s17818_s3 + $0x48] sm:$0xff] }
 0x4b4   :  { %v16086_v62 = vadd.f32 %v7759_v25, %v7424_v22  ;;  %7687 = vmatpush1.bf16.msra.mxu0 %v13820_v57  ;;  %7728 = vmatpush1.bf16.msra.mxu1 %v14076_v49  ;;  %v1175_v40 = vld [vmem:[#allocation2 + $0x1e38] sm:$0xff]  ;;  %v13917_v57 = vcombine.high %v919_v31, %v927_v37  ;;  %v7785_v24 = vld [vmem:[%s17818_s3 + $0x68] sm:$0xff] }
 0x4b5   :  { %7688 = vmatprep.subr.bf16.mxu0 %v13837_v12  ;;  %7729 = vmatprep.subr.bf16.mxu1 %v14093_v51  ;;  %v1183_v43 = vld [vmem:[#allocation2 + $0x1e78] sm:$0xff]  ;;  %v13916_v12 = vcombine.low %v919_v31, %v927_v37  ;;  %v16120_v31 = vpack.c.bf16 %v16052_v21, %v16052_v21  ;;  %v14233_v37 = vcombine.high %v7781_v5, %v7785_v24 }
 0x4b6   :  { %v14173_v45 = vcombine.high %v1175_v40, %v1183_v43  ;;  %v935_v23 = vld [vmem:[#allocation2 + $0x16b8] sm:$0xff]  ;;  %v14172_v25 = vcombine.low %v1175_v40, %v1183_v43  ;;  %v7789_v40 = vld [vmem:[%s17818_s3 + $0x88] sm:$0xff]  ;;  %v14232_v21 = vcombine.low %v7781_v5, %v7785_v24  ;;  %v7828_v5 = vld [vmem:[%s17818_s3 + $0x1c0] sm:$0xff] }
 0x4b7   :  { %v943_v42 = vld [vmem:[#allocation2 + $0x16f8] sm:$0xff]  ;;  %v7793_v43 = vld [vmem:[%s17818_s3 + $0xa8] sm:$0xff]  ;;  %v7832_v24 = vld [vmem:[%s17818_s3 + $0x1e0] sm:$0xff] }
 0x4b8   :  { %7689 = vmatpush1.bf16.msra.mxu0 %v13836_v34  ;;  %7730 = vmatpush1.bf16.msra.mxu1 %v14092_v63  ;;  %v1191_v48 = vld [vmem:[#allocation2 + $0x1eb8] sm:$0xff]  ;;  %v13933_v22 = vcombine.high %v935_v23, %v943_v42  ;;  %v13932_v61 = vcombine.low %v935_v23, %v943_v42  ;;  %v7801_v23 = vld [vmem:[%s17818_s3 + $0xe8] sm:$0xff] }
 0x4b9   :  { %7690 = vmatprep.subr.bf16.mxu0 %v13853_v46  ;;  %7731 = vmatprep.subr.bf16.mxu1 %v14109_v0  ;;  %v1199_v49 = vld [vmem:[#allocation2 + $0x1ef8] sm:$0xff] }
 0x4ba   :  { %v14189_v50 = vcombine.high %v1191_v48, %v1199_v49  ;;  %v951_v51 = vld [vmem:[#allocation2 + $0x1738] sm:$0xff]  ;;  %v14188_v34 = vcombine.low %v1191_v48, %v1199_v49  ;;  %v14240_v48 = vcombine.low %v7789_v40, %v7793_v43 }
 0x4bb   :  { %v959_v53 = vld [vmem:[#allocation2 + $0x1778] sm:$0xff] }
 0x4bc   :  { %7691 = vmatpush1.bf16.msra.mxu0 %v13852_v4  ;;  %7732 = vmatpush1.bf16.msra.mxu1 %v14108_v7  ;;  %v1207_v56 = vld [vmem:[#allocation2 + $0x1f38] sm:$0xff]  ;;  %v13949_v63 = vcombine.high %v951_v51, %v959_v53  ;;  %v13948_v3 = vcombine.low %v951_v51, %v959_v53  ;;  %v7809_v51 = vld [vmem:[%s17818_s3 + $0x128] sm:$0xff] }
 0x4bd   :  { %7692 = vmatprep.subr.bf16.mxu0 %v13869_v39  ;;  %7733 = vmatprep.subr.bf16.mxu1 %v14125_v8  ;;  %v1215_v58 = vld [vmem:[#allocation2 + $0x1f78] sm:$0xff]  ;;  %v7772_v8 = vld [vmem:[%s17818_s3] sm:$0xff] }
 0x4be   :  { %v14205_v46 = vcombine.high %v1207_v56, %v1215_v58  ;;  %v967_v0 = vld [vmem:[#allocation2 + $0x17b8] sm:$0xff]  ;;  %v14204_v4 = vcombine.low %v1207_v56, %v1215_v58  ;;  %v14222_v20 = vcombine.low %v7772_v8, %v7776_v10 }
 0x4bf   :  { %v975_v1 = vld [vmem:[#allocation2 + $0x17f8] sm:$0xff] }
 0x4c0   :  { %7693 = vmatpush1.bf16.msra.mxu0 %v13868_v14  ;;  %7734 = vmatpush1.bf16.msra.mxu1 %v14124_v15  ;;  %v1223_v32 = vld [vmem:[#allocation2 + $0x1fb8] sm:$0xff]  ;;  %v13965_v7 = vcombine.high %v967_v0, %v975_v1  ;;  %v13964_v47 = vcombine.low %v967_v0, %v975_v1  ;;  %v14223_v15 = vcombine.high %v7772_v8, %v7776_v10  ;;  %v7817_v0 = vld [vmem:[%s17818_s3 + $0x168] sm:$0xff]  ;;  %v7824_v8 = vld [vmem:[%s17818_s3 + $0x1a0] sm:$0xff] }
 0x4c1   :  { %7694 = vmatprep.subr.bf16.mxu0 %v13885_v16  ;;  %7735 = vmatprep.subr.bf16.mxu1 %v14141_v18  ;;  %v1231_v2 = vld [vmem:[#allocation2 + $0x1ff8] sm:$0xff]  ;;  %v14225_v16 = vcombine.high %v7773_v11, %v7777_v13  ;;  %v7780_v18 = vld [vmem:[%s17818_s3 + $0x40] sm:$0xff]  ;;  %v16180_v10 = vld [vmem:[#allocation4 + $0x8] sm:$0xff] }
 0x4c2   :  { %v14221_v39 = vcombine.high %v1223_v32, %v1231_v2  ;;  %v14220_v14 = vcombine.low %v1223_v32, %v1231_v2  ;;  %v16169_v32 = vsub.s32 4, %v16018_v60 }
 0x4c4   :  { %7695 = vmatpush1.bf16.msra.mxu0 %v13884_v17  ;;  %7736 = vmatpush1.bf16.msra.mxu1 %v14140_v26  ;;  %v14224_v17 = vcombine.low %v7773_v11, %v7777_v13  ;;  %v14231_v26 = vcombine.high %v7780_v18, %v7784_v19  ;;  %v1295_v11 = vrot.slane %v16180_v10, %v16169_v32  ;;  %v7821_v13 = vld [vmem:[%s17818_s3 + $0x188] sm:$0xff] }
 0x4c5   :  { %7696 = vmatprep.subr.bf16.mxu0 %v13901_v27  ;;  %7737 = vmatprep.subr.bf16.mxu1 %v14157_v29  ;;  %v7788_v27 = vld [vmem:[%s17818_s3 + $0x80] sm:$0xff] }
 0x4c6   :  { %v7792_v29 = vld [vmem:[%s17818_s3 + $0xa0] sm:$0xff] }
 0x4c7   :  { %v14238_v42 = vcombine.low %v7788_v27, %v7792_v29 }
 0x4c8   :  { %7697 = vmatpush1.bf16.msra.mxu0 %v13900_v38  ;;  %7738 = vmatpush1.bf16.msra.mxu1 %v14156_v44  ;;  %v14230_v38 = vcombine.low %v7780_v18, %v7784_v19  ;;  %v14239_v44 = vcombine.high %v7788_v27, %v7792_v29  ;;  %v7829_v29 = vld [vmem:[%s17818_s3 + $0x1c8] sm:$0xff] }
 0x4c9   :  { %7698 = vmatprep.subr.bf16.mxu0 %v13917_v57  ;;  %7739 = vmatprep.subr.bf16.mxu1 %v14173_v45  ;;  %v7796_v57 = vld [vmem:[%s17818_s3 + $0xc0] sm:$0xff] }
 0x4ca   :  { %v7800_v45 = vld [vmem:[%s17818_s3 + $0xe0] sm:$0xff] }
 0x4cb   :  { %v14247_v49 = vcombine.high %v7796_v57, %v7800_v45  ;;  %v14246_v53 = vcombine.low %v7796_v57, %v7800_v45 }
 0x4cc   :  { %7699 = vmatpush1.bf16.msra.mxu0 %v13916_v12  ;;  %7740 = vmatpush1.bf16.msra.mxu1 %v14172_v25  ;;  %v7804_v25 = vld [vmem:[%s17818_s3 + $0x100] sm:$0xff] }
 0x4cd   :  { %7700 = vmatprep.subr.bf16.mxu0 %v13933_v22  ;;  %7741 = vmatprep.subr.bf16.mxu1 %v14189_v50  ;;  %v7808_v22 = vld [vmem:[%s17818_s3 + $0x120] sm:$0xff]  ;;  %v7805_v50 = vld [vmem:[%s17818_s3 + $0x108] sm:$0xff] }
 0x4ce   :  { %v14255_v58 = vcombine.high %v7804_v25, %v7808_v22  ;;  %v14254_v1 = vcombine.low %v7804_v25, %v7808_v22  ;;  %v14256_v2 = vcombine.low %v7805_v50, %v7809_v51  ;;  %v7837_v25 = vld [vmem:[%s17818_s3 + $0x208] sm:$0xff] }
 0x4cf   :  { %v7841_v22 = vld [vmem:[%s17818_s3 + $0x228] sm:$0xff] }
 0x4d0   :  { %7701 = vmatpush1.bf16.msra.mxu0 %v13932_v61  ;;  %7742 = vmatpush1.bf16.msra.mxu1 %v14188_v34  ;;  %v14257_v61 = vcombine.high %v7805_v50, %v7809_v51  ;;  %v7812_v34 = vld [vmem:[%s17818_s3 + $0x140] sm:$0xff]  ;;  %v14278_v50 = vcombine.low %v7828_v5, %v7832_v24 }
 0x4d1   :  { %7702 = vmatprep.subr.bf16.mxu0 %v13949_v63  ;;  %7743 = vmatprep.subr.bf16.mxu1 %v14205_v46  ;;  %v7816_v63 = vld [vmem:[%s17818_s3 + $0x160] sm:$0xff]  ;;  %v7813_v46 = vld [vmem:[%s17818_s3 + $0x148] sm:$0xff] }
 0x4d4   :  { %7703 = vmatpush1.bf16.msra.mxu0 %v13948_v3  ;;  %7744 = vmatpush1.bf16.msra.mxu1 %v14204_v4  ;;  %v14263_v3 = vcombine.high %v7812_v34, %v7816_v63  ;;  %v16172_v4 = vsub.s32 5, %v16018_v60 }
 0x4d5   :  { %7704 = vmatprep.subr.bf16.mxu0 %v13965_v7  ;;  %7745 = vmatprep.subr.bf16.mxu1 %v14221_v39  ;;  %v14265_v7 = vcombine.high %v7813_v46, %v7817_v0  ;;  %v7820_v39 = vld [vmem:[%s17818_s3 + $0x180] sm:$0xff] }
 0x4d6   :  { %v14271_v18 = vcombine.high %v7820_v39, %v7824_v8 }
 0x4d8   :  { %7705 = vmatpush1.bf16.msra.mxu0 %v13964_v47  ;;  %7746 = vmatpush1.bf16.msra.mxu1 %v14220_v14  ;;  %v7825_v47 = vld [vmem:[%s17818_s3 + $0x1a8] sm:$0xff]  ;;  %v1299_v14 = vrot.slane %v16180_v10, %v16172_v4 }
 0x4d9   :  { %10894 = vmatprep.subr.bf16.mxu0 %v14223_v15  ;;  %11058 = vmatprep.subr.bf16.mxu1 %v14225_v16  ;;  %v14262_v15 = vcombine.low %v7812_v34, %v7816_v63  ;;  %v14264_v16 = vcombine.low %v7813_v46, %v7817_v0  ;;  %v14272_v45 = vcombine.low %v7821_v13, %v7825_v47  ;;  %v7845_v34 = vld [vmem:[%s17818_s3 + $0x248] sm:$0xff] }
 0x4da   :  { %v7849_v63 = vld [vmem:[%s17818_s3 + $0x268] sm:$0xff]  ;;  %v14288_v0 = vcombine.low %v7837_v25, %v7841_v22 }
 0x4db   :  { %7707 = vmatmul.mubr.bf16.vlgmr.msra.gmra.mrb[36].mxu0 %v15950_v36  ;;  %7748 = vmatmul.mubr.bf16.vlgmr.msra.gmra.mrb[36].mxu1 %v15964_v54  ;;  %v14241_v36 = vcombine.high %v7789_v40, %v7793_v43  ;;  %v7797_v54 = vld [vmem:[%s17818_s3 + $0xc8] sm:$0xff] }
 0x4dc   :  { %10895 = vmatpush1.bf16.msra.mxu0 %v14222_v20  ;;  %10926 = vmatprep.mubr.bf16.mxu0 %v16120_v31  ;;  %v14249_v12 = vcombine.high %v7797_v54, %v7801_v23  ;;  %v14248_v56 = vcombine.low %v7797_v54, %v7801_v23  ;;  %v14273_v20 = vcombine.high %v7821_v13, %v7825_v47 }
 0x4dd   :  { %11059 = vmatpush1.bf16.msra.mxu1 %v14224_v17  ;;  %11090 = vmatprep.mubr.bf16.mxu1 %v16120_v31  ;;  %v14279_v54 = vcombine.high %v7828_v5, %v7832_v24  ;;  %v14296_v13 = vcombine.low %v7845_v34, %v7849_v63 }
 0x4de   :  { %10896 = vmatprep.subr.bf16.mxu0 %v14231_v26  ;;  %11060 = vmatprep.subr.bf16.mxu1 %v14233_v37  ;;  %v7833_v37 = vld [vmem:[%s17818_s3 + $0x1e8] sm:$0xff] }
 0x4df   :  { %v14280_v51 = vcombine.low %v7829_v29, %v7833_v37 }
 0x4e0   :  { %10897 = vmatpush1.bf16.msra.mxu0 %v14230_v38 }
 0x4e1   :  { %11061 = vmatpush1.bf16.msra.mxu1 %v14232_v21  ;;  %10898 = vmatprep.subr.bf16.mxu0 %v14239_v44  ;;  %v14270_v21 = vcombine.low %v7820_v39, %v7824_v8  ;;  %v7853_v39 = vld [vmem:[%s17818_s3 + $0x288] sm:$0xff] }
 0x4e2   :  { %11062 = vmatprep.subr.bf16.mxu1 %v14241_v36  ;;  %v7857_v8 = vld [vmem:[%s17818_s3 + $0x2a8] sm:$0xff] }
 0x4e3   :  { %v14304_v5 = vcombine.low %v7853_v39, %v7857_v8 }
 0x4e4   :  { %10899 = vmatpush1.bf16.msra.mxu0 %v14238_v42 }
 0x4e5   :  { %11063 = vmatpush1.bf16.msra.mxu1 %v14240_v48  ;;  %10900 = vmatprep.subr.bf16.mxu0 %v14247_v49  ;;  %v14281_v48 = vcombine.high %v7829_v29, %v7833_v37  ;;  %v7836_v49 = vld [vmem:[%s17818_s3 + $0x200] sm:$0xff]  ;;  %v7869_v29 = vld [vmem:[%s17818_s3 + $0x308] sm:$0xff] }
 0x4e6   :  { %11064 = vmatprep.subr.bf16.mxu1 %v14249_v12  ;;  %v7840_v12 = vld [vmem:[%s17818_s3 + $0x220] sm:$0xff]  ;;  %v7873_v37 = vld [vmem:[%s17818_s3 + $0x328] sm:$0xff] }
 0x4e7   :  { %v14286_v46 = vcombine.low %v7836_v49, %v7840_v12 }
 0x4e8   :  { %10901 = vmatpush1.bf16.msra.mxu0 %v14246_v53  ;;  %v14287_v53 = vcombine.high %v7836_v49, %v7840_v12 }
 0x4e9   :  { %11065 = vmatpush1.bf16.msra.mxu1 %v14248_v56  ;;  %10902 = vmatprep.subr.bf16.mxu0 %v14255_v58  ;;  %v14289_v56 = vcombine.high %v7837_v25, %v7841_v22  ;;  %v7844_v58 = vld [vmem:[%s17818_s3 + $0x240] sm:$0xff] }
 0x4ea   :  { %11066 = vmatprep.subr.bf16.mxu1 %v14257_v61  ;;  %v7848_v61 = vld [vmem:[%s17818_s3 + $0x260] sm:$0xff] }
 0x4eb   :  { %v7884_v25 = vld [vmem:[%s17818_s3 + $0x380] sm:$0xff] }
 0x4ec   :  { %10903 = vmatpush1.bf16.msra.mxu0 %v14254_v1  ;;  %v14295_v1 = vcombine.high %v7844_v58, %v7848_v61  ;;  %v7888_v22 = vld [vmem:[%s17818_s3 + $0x3a0] sm:$0xff] }
 0x4ed   :  { %11067 = vmatpush1.bf16.msra.mxu1 %v14256_v2  ;;  %10904 = vmatprep.subr.bf16.mxu0 %v14263_v3  ;;  %v14297_v2 = vcombine.high %v7845_v34, %v7849_v63  ;;  %v7852_v3 = vld [vmem:[%s17818_s3 + $0x280] sm:$0xff] }
 0x4ee   :  { %v7462_v19 = vpop.f32.mrb[24].mxu0  ;;  %11068 = vmatprep.subr.bf16.mxu1 %v14265_v7  ;;  %v7503_v26 = vpop.f32.mrb[24].mxu1  ;;  %v7856_v7 = vld [vmem:[%s17818_s3 + $0x2a0] sm:$0xff] }
 0x4ef   :  { %v7463_v17 = vadd.f32 %v7462_v19, %v1295_v11  ;;  %v7464_v27 = vpop.f32.mrb[25].mxu0  ;;  %v7505_v43 = vpop.f32.mrb[25].mxu1  ;;  %v14294_v11 = vcombine.low %v7844_v58, %v7848_v61  ;;  %v14303_v47 = vcombine.high %v7852_v3, %v7856_v7  ;;  %v7865_v19 = vld [vmem:[%s17818_s3 + $0x2e8] sm:$0xff]  ;;  %v14335_v58 = vcombine.high %v7884_v25, %v7888_v22  ;;  %v7892_v34 = vld [vmem:[%s17818_s3 + $0x3c0] sm:$0xff] }
 0x4f0   :  { %v7465_v40 = vadd.f32 %v7464_v27, %v1299_v14  ;;  %v7466_v38 = vpop.f32.mrb[26].mxu0  ;;  %10905 = vmatpush1.bf16.msra.mxu0 %v14262_v15  ;;  %v7507_v36 = vpop.f32.mrb[26].mxu1  ;;  %v14305_v14 = vcombine.high %v7853_v39, %v7857_v8  ;;  %v7860_v15 = vld [vmem:[%s17818_s3 + $0x2c0] sm:$0xff] }
 0x4f1   :  { %v16204_v44 = vadd.f32 %v7503_v26, %v7463_v17  ;;  %11069 = vmatpush1.bf16.msra.mxu1 %v14264_v16  ;;  %v7467_v57 = vpop.f32.mrb[27].mxu0  ;;  %10906 = vmatprep.subr.bf16.mxu0 %v14271_v18  ;;  %v7508_v42 = vpop.f32.mrb[27].mxu1  ;;  %v7864_v16 = vld [vmem:[%s17818_s3 + $0x2e0] sm:$0xff]  ;;  %v7861_v18 = vld [vmem:[%s17818_s3 + $0x2c8] sm:$0xff] }
 0x4f2   :  { %v16206_v23 = vadd.f32 %v7505_v43, %v7465_v40  ;;  %11070 = vmatprep.subr.bf16.mxu1 %v14273_v20  ;;  %v14302_v20 = vcombine.low %v7852_v3, %v7856_v7  ;;  %v14311_v24 = vcombine.high %v7860_v15, %v7864_v16  ;;  %v14313_v17 = vcombine.high %v7861_v18, %v7865_v19  ;;  %v7868_v26 = vld [vmem:[%s17818_s3 + $0x300] sm:$0xff] }
 0x4f3   :  { %v7872_v27 = vld [vmem:[%s17818_s3 + $0x320] sm:$0xff]  ;;  %v14310_v40 = vcombine.low %v7860_v15, %v7864_v16  ;;  %v14312_v43 = vcombine.low %v7861_v18, %v7865_v19 }
 0x4f4   :  { %10907 = vmatpush1.bf16.msra.mxu0 %v14270_v21  ;;  %v14319_v38 = vcombine.high %v7868_v26, %v7872_v27  ;;  %v14321_v21 = vcombine.high %v7869_v29, %v7873_v37  ;;  %v7876_v36 = vld [vmem:[%s17818_s3 + $0x340] sm:$0xff]  ;;  %v14318_v42 = vcombine.low %v7868_v26, %v7872_v27 }
 0x4f5   :  { %11071 = vmatpush1.bf16.msra.mxu1 %v14272_v45  ;;  %10908 = vmatprep.subr.bf16.mxu0 %v14279_v54  ;;  %v7880_v57 = vld [vmem:[%s17818_s3 + $0x360] sm:$0xff]  ;;  %v7877_v45 = vld [vmem:[%s17818_s3 + $0x348] sm:$0xff] }
 0x4f6   :  { %11072 = vmatprep.subr.bf16.mxu1 %v14281_v48  ;;  %v7881_v54 = vld [vmem:[%s17818_s3 + $0x368] sm:$0xff]  ;;  %v14320_v48 = vcombine.low %v7869_v29, %v7873_v37  ;;  %v14327_v49 = vcombine.high %v7876_v36, %v7880_v57  ;;  %v7896_v63 = vld [vmem:[%s17818_s3 + $0x3e0] sm:$0xff] }
 0x4f7   :  { %v14329_v12 = vcombine.high %v7877_v45, %v7881_v54  ;;  %v14343_v3 = vcombine.high %v7892_v34, %v7896_v63  ;;  %v7900_v39 = vld [vmem:[%s17818_s3 + $0x400] sm:$0xff] }
 0x4f8   :  { %10909 = vmatpush1.bf16.msra.mxu0 %v14278_v50  ;;  %v7885_v50 = vld [vmem:[%s17818_s3 + $0x388] sm:$0xff]  ;;  %v7904_v8 = vld [vmem:[%s17818_s3 + $0x420] sm:$0xff] }
 0x4f9   :  { %11073 = vmatpush1.bf16.msra.mxu1 %v14280_v51  ;;  %10910 = vmatprep.subr.bf16.mxu0 %v14287_v53  ;;  %v7889_v51 = vld [vmem:[%s17818_s3 + $0x3a8] sm:$0xff]  ;;  %v14326_v53 = vcombine.low %v7876_v36, %v7880_v57  ;;  %v14351_v15 = vcombine.high %v7900_v39, %v7904_v8  ;;  %v7908_v18 = vld [vmem:[%s17818_s3 + $0x440] sm:$0xff] }
 0x4fa   :  { %11074 = vmatprep.subr.bf16.mxu1 %v14289_v56  ;;  %v14328_v56 = vcombine.low %v7877_v45, %v7881_v54  ;;  %v14337_v61 = vcombine.high %v7885_v50, %v7889_v51  ;;  %v7912_v19 = vld [vmem:[%s17818_s3 + $0x460] sm:$0xff] }
 0x4fb   :  { %v14359_v27 = vcombine.high %v7908_v18, %v7912_v19  ;;  %v7916_v29 = vld [vmem:[%s17818_s3 + $0x480] sm:$0xff] }
 0x4fc   :  { %10911 = vmatpush1.bf16.msra.mxu0 %v14286_v46  ;;  %v7893_v46 = vld [vmem:[%s17818_s3 + $0x3c8] sm:$0xff]  ;;  %v7920_v37 = vld [vmem:[%s17818_s3 + $0x4a0] sm:$0xff] }
 0x4fd   :  { %11075 = vmatpush1.bf16.msra.mxu1 %v14288_v0  ;;  %10912 = vmatprep.subr.bf16.mxu0 %v14295_v1  ;;  %v7897_v0 = vld [vmem:[%s17818_s3 + $0x3e8] sm:$0xff]  ;;  %v14334_v1 = vcombine.low %v7884_v25, %v7888_v22  ;;  %v14367_v36 = vcombine.high %v7916_v29, %v7920_v37  ;;  %v7924_v45 = vld [vmem:[%s17818_s3 + $0x4c0] sm:$0xff] }
 0x4fe   :  { %11076 = vmatprep.subr.bf16.mxu1 %v14297_v2  ;;  %v14336_v2 = vcombine.low %v7885_v50, %v7889_v51  ;;  %v14345_v7 = vcombine.high %v7893_v46, %v7897_v0  ;;  %v7928_v54 = vld [vmem:[%s17818_s3 + $0x4e0] sm:$0xff] }
 0x4ff   :  { %v14375_v25 = vcombine.high %v7924_v45, %v7928_v54  ;;  %v7932_v50 = vld [vmem:[%s17818_s3 + $0x500] sm:$0xff] }
 0x500   :  { %10913 = vmatpush1.bf16.msra.mxu0 %v14294_v11  ;;  %v7901_v11 = vld [vmem:[%s17818_s3 + $0x408] sm:$0xff]  ;;  %v7936_v51 = vld [vmem:[%s17818_s3 + $0x520] sm:$0xff] }
 0x501   :  { %11077 = vmatpush1.bf16.msra.mxu1 %v14296_v13  ;;  %10914 = vmatprep.subr.bf16.mxu0 %v14303_v47  ;;  %v7905_v13 = vld [vmem:[%s17818_s3 + $0x428] sm:$0xff]  ;;  %v14342_v47 = vcombine.low %v7892_v34, %v7896_v63  ;;  %v14383_v34 = vcombine.high %v7932_v50, %v7936_v51 }
 0x502   :  { %11078 = vmatprep.subr.bf16.mxu1 %v14305_v14  ;;  %v14344_v14 = vcombine.low %v7893_v46, %v7897_v0  ;;  %v14353_v16 = vcombine.high %v7901_v11, %v7905_v13  ;;  %v14352_v26 = vcombine.low %v7901_v11, %v7905_v13  ;;  %v7940_v46 = vld [vmem:[%s17818_s3 + $0x540] sm:$0xff] }
 0x503   :  { %v7944_v0 = vld [vmem:[%s17818_s3 + $0x560] sm:$0xff] }
 0x504   :  { %10915 = vmatpush1.bf16.msra.mxu0 %v14302_v20  ;;  %v14350_v20 = vcombine.low %v7900_v39, %v7904_v8  ;;  %v14391_v11 = vcombine.high %v7940_v46, %v7944_v0 }
 0x505   :  { %11079 = vmatpush1.bf16.msra.mxu1 %v14304_v5  ;;  %10916 = vmatprep.subr.bf16.mxu0 %v14311_v24  ;;  %v7909_v5 = vld [vmem:[%s17818_s3 + $0x448] sm:$0xff] }
 0x506   :  { %11080 = vmatprep.subr.bf16.mxu1 %v14313_v17  ;;  %v7913_v24 = vld [vmem:[%s17818_s3 + $0x468] sm:$0xff]  ;;  %v16330_v17 = vpack.c.bf16 %v16050_v52, %v16050_v52 }
 0x507   :  { %v14361_v52 = vcombine.high %v7909_v5, %v7913_v24 }
 0x508   :  { %10917 = vmatpush1.bf16.msra.mxu0 %v14310_v40  ;;  %v16340_v40 = vpack.c.bf16 %v16086_v62, %v16086_v62  ;;  %v14360_v62 = vcombine.low %v7909_v5, %v7913_v24 }
 0x509   :  { %11081 = vmatpush1.bf16.msra.mxu1 %v14312_v43  ;;  %10918 = vmatprep.subr.bf16.mxu0 %v14319_v38  ;;  %v7917_v43 = vld [vmem:[%s17818_s3 + $0x488] sm:$0xff] }
 0x50a   :  { %11082 = vmatprep.subr.bf16.mxu1 %v14321_v21  ;;  %v7921_v38 = vld [vmem:[%s17818_s3 + $0x4a8] sm:$0xff]  ;;  %v14358_v21 = vcombine.low %v7908_v18, %v7912_v19  ;;  %v14390_v19 = vcombine.low %v7940_v46, %v7944_v0 }
 0x50b   :  { %v14369_v57 = vcombine.high %v7917_v43, %v7921_v38  ;;  %v7953_v18 = vld [vmem:[%s17818_s3 + $0x5a8] sm:$0xff] }
 0x50c   :  { %10919 = vmatpush1.bf16.msra.mxu0 %v14318_v42  ;;  %v7925_v42 = vld [vmem:[%s17818_s3 + $0x4c8] sm:$0xff] }
 0x50d   :  { %11083 = vmatpush1.bf16.msra.mxu1 %v14320_v48  ;;  %10920 = vmatprep.subr.bf16.mxu0 %v14327_v49  ;;  %v7929_v48 = vld [vmem:[%s17818_s3 + $0x4e8] sm:$0xff]  ;;  %v14366_v49 = vcombine.low %v7916_v29, %v7920_v37  ;;  %v7956_v37 = vld [vmem:[%s17818_s3 + $0x5c0] sm:$0xff] }
 0x50e   :  { %11084 = vmatprep.subr.bf16.mxu1 %v14329_v12  ;;  %v14368_v12 = vcombine.low %v7917_v43, %v7921_v38  ;;  %v14377_v22 = vcombine.high %v7925_v42, %v7929_v48 }
 0x510   :  { %10921 = vmatpush1.bf16.msra.mxu0 %v14326_v53  ;;  %v7933_v53 = vld [vmem:[%s17818_s3 + $0x508] sm:$0xff] }
 0x511   :  { %11085 = vmatpush1.bf16.msra.mxu1 %v14328_v56  ;;  %10922 = vmatprep.subr.bf16.mxu0 %v14335_v58  ;;  %v7937_v56 = vld [vmem:[%s17818_s3 + $0x528] sm:$0xff]  ;;  %v14374_v58 = vcombine.low %v7924_v45, %v7928_v54 }
 0x512   :  { %11086 = vmatprep.subr.bf16.mxu1 %v14337_v61  ;;  %v14376_v61 = vcombine.low %v7925_v42, %v7929_v48  ;;  %v14385_v63 = vcombine.high %v7933_v53, %v7937_v56  ;;  %v14384_v8 = vcombine.low %v7933_v53, %v7937_v56  ;;  %v7968_v53 = vld [vmem:[%s17818_s3 + $0x620] sm:$0xff] }
 0x514   :  { %10923 = vmatpush1.bf16.msra.mxu0 %v14334_v1  ;;  %v7941_v1 = vld [vmem:[%s17818_s3 + $0x548] sm:$0xff] }
 0x515   :  { %11087 = vmatpush1.bf16.msra.mxu1 %v14336_v2  ;;  %10924 = vmatprep.subr.bf16.mxu0 %v14343_v3  ;;  %v7945_v2 = vld [vmem:[%s17818_s3 + $0x568] sm:$0xff]  ;;  %v14382_v3 = vcombine.low %v7932_v50, %v7936_v51 }
 0x516   :  { %11088 = vmatprep.subr.bf16.mxu1 %v14345_v7  ;;  %v16388_v7 = vld [vmem:[#allocation4] sm:$0xff]  ;;  %v14392_v5 = vcombine.low %v7941_v1, %v7945_v2 }
 0x517   :  { %v1263_v39 = vrot.slane %v16388_v7, %v16169_v32  ;;  %v1267_v13 = vrot.slane %v16388_v7, %v16172_v4 }
 0x518   :  { %10925 = vmatpush1.bf16.msra.mxu0 %v14342_v47  ;;  %v14393_v47 = vcombine.high %v7941_v1, %v7945_v2  ;;  %v7972_v2 = vld [vmem:[%s17818_s3 + $0x640] sm:$0xff] }
 0x519   :  { %11089 = vmatpush1.bf16.msra.mxu1 %v14344_v14  ;;  %10935 = vmatprep.subr.bf16.mxu0 %v14351_v15  ;;  %v7948_v14 = vld [vmem:[%s17818_s3 + $0x580] sm:$0xff] }
 0x51a   :  { %11099 = vmatprep.subr.bf16.mxu1 %v14353_v16  ;;  %v7952_v15 = vld [vmem:[%s17818_s3 + $0x5a0] sm:$0xff]  ;;  %v7949_v16 = vld [vmem:[%s17818_s3 + $0x588] sm:$0xff] }
 0x51b   :  { %10927 = vmatmul.mubr.bf16.vlgmr.msra.gmra.mrb[40].mxu0 %v16330_v17  ;;  %v14399_v24 = vcombine.high %v7948_v14, %v7952_v15  ;;  %v14401_v29 = vcombine.high %v7949_v16, %v7953_v18  ;;  %v14398_v45 = vcombine.low %v7948_v14, %v7952_v15  ;;  %v7980_v15 = vld [vmem:[%s17818_s3 + $0x680] sm:$0xff] }
 0x51c   :  { %11091 = vmatmul.mubr.bf16.vlgmr.msra.gmra.mrb[40].mxu1 %v16330_v17  ;;  %10936 = vmatpush1.bf16.msra.mxu0 %v14350_v20  ;;  %v14968_v20 = vadd.f32 %v16006_v28, %v1263_v39  ;;  %v7973_v39 = vld [vmem:[%s17818_s3 + $0x648] sm:$0xff] }
 0x51d   :  { %10967 = vmatprep.mubr.bf16.mxu0 %v16340_v40  ;;  %11100 = vmatpush1.bf16.msra.mxu1 %v14352_v26  ;;  %v14969_v26 = vadd.f32 %v16010_v35, %v1267_v13  ;;  %v7961_v35 = vld [vmem:[%s17818_s3 + $0x5e8] sm:$0xff] }
 0x51e   :  { %11131 = vmatprep.mubr.bf16.mxu1 %v16340_v40  ;;  %10937 = vmatprep.subr.bf16.mxu0 %v14359_v27  ;;  %v7760_v54 = vmax.f32 %v14968_v20, 0.0 }
 0x51f   :  { %11101 = vmatprep.subr.bf16.mxu1 %v14361_v52  ;;  %v7960_v52 = vld [vmem:[%s17818_s3 + $0x5e0] sm:$0xff] }
 0x520   :  { %10938 = vmatpush1.bf16.msra.mxu0 %v14358_v21  ;;  %v7957_v21 = vld [vmem:[%s17818_s3 + $0x5c8] sm:$0xff] }
 0x521   :  { %11102 = vmatpush1.bf16.msra.mxu1 %v14360_v62  ;;  %10939 = vmatprep.subr.bf16.mxu0 %v14367_v36  ;;  %v14409_v51 = vcombine.high %v7957_v21, %v7961_v35  ;;  %v14408_v46 = vcombine.low %v7957_v21, %v7961_v35  ;;  %v7996_v35 = vld [vmem:[%s17818_s3 + $0x700] sm:$0xff] }
 0x522   :  { %11103 = vmatprep.subr.bf16.mxu1 %v14369_v57 }
 0x524   :  { %10940 = vmatpush1.bf16.msra.mxu0 %v14366_v49  ;;  %v14400_v49 = vcombine.low %v7949_v16, %v7953_v18  ;;  %v7984_v16 = vld [vmem:[%s17818_s3 + $0x6a0] sm:$0xff]  ;;  %v7981_v18 = vld [vmem:[%s17818_s3 + $0x688] sm:$0xff] }
 0x525   :  { %11104 = vmatpush1.bf16.msra.mxu1 %v14368_v12  ;;  %10941 = vmatprep.subr.bf16.mxu0 %v14375_v25  ;;  %v14407_v12 = vcombine.high %v7956_v37, %v7960_v52  ;;  %v7761_v25 = vmax.f32 %v14969_v26, 0.0 }
 0x526   :  { %11105 = vmatprep.subr.bf16.mxu1 %v14377_v22 }
 0x528   :  { %10942 = vmatpush1.bf16.msra.mxu0 %v14374_v58  ;;  %v7965_v58 = vld [vmem:[%s17818_s3 + $0x608] sm:$0xff] }
 0x529   :  { %11106 = vmatpush1.bf16.msra.mxu1 %v14376_v61  ;;  %10943 = vmatprep.subr.bf16.mxu0 %v14383_v34  ;;  %v7969_v61 = vld [vmem:[%s17818_s3 + $0x628] sm:$0xff] }
 0x52a   :  { %11107 = vmatprep.subr.bf16.mxu1 %v14385_v63  ;;  %v14406_v63 = vcombine.low %v7956_v37, %v7960_v52  ;;  %v14417_v1 = vcombine.high %v7965_v58, %v7969_v61  ;;  %v14416_v13 = vcombine.low %v7965_v58, %v7969_v61  ;;  %v7989_v37 = vld [vmem:[%s17818_s3 + $0x6c8] sm:$0xff]  ;;  %v8016_v58 = vld [vmem:[%s17818_s3 + $0x7a0] sm:$0xff] }
 0x52b   :  { %v7993_v52 = vld [vmem:[%s17818_s3 + $0x6e8] sm:$0xff] }
 0x52c   :  { %10944 = vmatpush1.bf16.msra.mxu0 %v14382_v3  ;;  %v7976_v3 = vld [vmem:[%s17818_s3 + $0x660] sm:$0xff]  ;;  %v14441_v21 = vcombine.high %v7989_v37, %v7993_v52  ;;  %v8013_v61 = vld [vmem:[%s17818_s3 + $0x788] sm:$0xff] }
 0x52d   :  { %11108 = vmatpush1.bf16.msra.mxu1 %v14384_v8  ;;  %10945 = vmatprep.subr.bf16.mxu0 %v14391_v11  ;;  %v7977_v8 = vld [vmem:[%s17818_s3 + $0x668] sm:$0xff]  ;;  %v14422_v20 = vcombine.low %v7972_v2, %v7976_v3 }
 0x52e   :  { %v7544_v27 = vpop.f32.mrb[28].mxu0  ;;  %11109 = vmatprep.subr.bf16.mxu1 %v14393_v47  ;;  %v7585_v28 = vpop.f32.mrb[28].mxu1  ;;  %v14423_v47 = vcombine.high %v7972_v2, %v7976_v3  ;;  %v14425_v14 = vcombine.high %v7973_v39, %v7977_v8  ;;  %v8020_v3 = vld [vmem:[%s17818_s3 + $0x7c0] sm:$0xff] }
 0x52f   :  { %v7545_v43 = vadd.f32 %v7544_v27, %v16204_v44  ;;  %v7546_v38 = vpop.f32.mrb[29].mxu0  ;;  %v7587_v36 = vpop.f32.mrb[29].mxu1  ;;  %v7988_v27 = vld [vmem:[%s17818_s3 + $0x6c0] sm:$0xff] }
 0x530   :  { %v7547_v62 = vadd.f32 %v7546_v38, %v16206_v23  ;;  %v7548_v57 = vpop.f32.mrb[30].mxu0  ;;  %10946 = vmatpush1.bf16.msra.mxu0 %v14390_v19  ;;  %v7589_v48 = vpop.f32.mrb[30].mxu1  ;;  %v7964_v23 = vld [vmem:[%s17818_s3 + $0x600] sm:$0xff]  ;;  %v7985_v19 = vld [vmem:[%s17818_s3 + $0x6a8] sm:$0xff] }
 0x531   :  { %v7586_v42 = vadd.f32 %v7585_v28, %v7545_v43  ;;  %11110 = vmatpush1.bf16.msra.mxu1 %v14392_v5  ;;  %v7549_v44 = vpop.f32.mrb[31].mxu0  ;;  %10947 = vmatprep.subr.bf16.mxu0 %v14399_v24  ;;  %v7590_v50 = vpop.f32.mrb[31].mxu1  ;;  %v14415_v0 = vcombine.high %v7964_v23, %v7968_v53  ;;  %v14414_v11 = vcombine.low %v7964_v23, %v7968_v53  ;;  %v8001_v57 = vld [vmem:[%s17818_s3 + $0x728] sm:$0xff]  ;;  %v8012_v53 = vld [vmem:[%s17818_s3 + $0x780] sm:$0xff] }
 0x532   :  { %v7588_v22 = vadd.f32 %v7587_v36, %v7547_v62  ;;  %11111 = vmatprep.subr.bf16.mxu1 %v14401_v29  ;;  %v14424_v5 = vcombine.low %v7973_v39, %v7977_v8  ;;  %v14431_v24 = vcombine.high %v7980_v15, %v7984_v16  ;;  %v14433_v26 = vcombine.high %v7981_v18, %v7985_v19  ;;  %v7992_v29 = vld [vmem:[%s17818_s3 + $0x6e0] sm:$0xff]  ;;  %v7997_v36 = vld [vmem:[%s17818_s3 + $0x708] sm:$0xff] }
 0x533   :  { %v16428_v56 = vadd.f32 %v7760_v54, %v7586_v42  ;;  %v14430_v43 = vcombine.low %v7980_v15, %v7984_v16  ;;  %v14432_v28 = vcombine.low %v7981_v18, %v7985_v19  ;;  %v14439_v38 = vcombine.high %v7988_v27, %v7992_v29  ;;  %v8000_v62 = vld [vmem:[%s17818_s3 + $0x720] sm:$0xff]  ;;  %v8021_v8 = vld [vmem:[%s17818_s3 + $0x7c8] sm:$0xff] }
 0x534   :  { %v16436_v34 = vadd.f32 %v7761_v25, %v7588_v22  ;;  %10948 = vmatpush1.bf16.msra.mxu0 %v14398_v45  ;;  %v14438_v45 = vcombine.low %v7988_v27, %v7992_v29  ;;  %v14440_v54 = vcombine.low %v7989_v37, %v7993_v52  ;;  %v14447_v42 = vcombine.high %v7996_v35, %v8000_v62  ;;  %v8004_v44 = vld [vmem:[%s17818_s3 + $0x740] sm:$0xff]  ;;  %v8009_v25 = vld [vmem:[%s17818_s3 + $0x768] sm:$0xff] }
 0x535   :  { %11112 = vmatpush1.bf16.msra.mxu1 %v14400_v49  ;;  %10949 = vmatprep.subr.bf16.mxu0 %v14407_v12  ;;  %v14449_v48 = vcombine.high %v7997_v36, %v8001_v57  ;;  %v8008_v49 = vld [vmem:[%s17818_s3 + $0x760] sm:$0xff]  ;;  %v8005_v12 = vld [vmem:[%s17818_s3 + $0x748] sm:$0xff]  ;;  %v14446_v22 = vcombine.low %v7996_v35, %v8000_v62  ;;  %v14448_v50 = vcombine.low %v7997_v36, %v8001_v57 }
 0x536   :  { %11113 = vmatprep.subr.bf16.mxu1 %v14409_v51  ;;  %v14455_v51 = vcombine.high %v8004_v44, %v8008_v49  ;;  %v14457_v23 = vcombine.high %v8005_v12, %v8009_v25  ;;  %v8024_v39 = vld [vmem:[%s17818_s3 + $0x7e0] sm:$0xff]  ;;  %v8029_v19 = vld [vmem:[%s17818_s3 + $0x808] sm:$0xff]  ;;  %v16558_v57 = vpack.c.bf16 %v16436_v34, %v16436_v34 }
 0x537   :  { %v8028_v16 = vld [vmem:[%s17818_s3 + $0x800] sm:$0xff] }
 0x538   :  { %10950 = vmatpush1.bf16.msra.mxu0 %v14406_v63  ;;  %v8017_v63 = vld [vmem:[%s17818_s3 + $0x7a8] sm:$0xff]  ;;  %v8032_v18 = vld [vmem:[%s17818_s3 + $0x820] sm:$0xff] }
 0x539   :  { %11114 = vmatpush1.bf16.msra.mxu1 %v14408_v46  ;;  %10951 = vmatprep.subr.bf16.mxu0 %v14415_v0  ;;  %v14454_v46 = vcombine.low %v8004_v44, %v8008_v49  ;;  %v14456_v0 = vcombine.low %v8005_v12, %v8009_v25  ;;  %v14465_v2 = vcombine.high %v8013_v61, %v8017_v63  ;;  %v8036_v29 = vld [vmem:[%s17818_s3 + $0x840] sm:$0xff]  ;;  %v8053_v25 = vld [vmem:[%s17818_s3 + $0x8c8] sm:$0xff] }
 0x53a   :  { %11115 = vmatprep.subr.bf16.mxu1 %v14417_v1  ;;  %v14463_v1 = vcombine.high %v8012_v53, %v8016_v58  ;;  %v8040_v37 = vld [vmem:[%s17818_s3 + $0x860] sm:$0xff]  ;;  %v14478_v52 = vcombine.low %v8028_v16, %v8032_v18 }
 0x53b   :  { %v14487_v35 = vcombine.high %v8036_v29, %v8040_v37  ;;  %v8044_v62 = vld [vmem:[%s17818_s3 + $0x880] sm:$0xff] }
 0x53c   :  { %10952 = vmatpush1.bf16.msra.mxu0 %v14414_v11  ;;  %v8025_v11 = vld [vmem:[%s17818_s3 + $0x7e8] sm:$0xff]  ;;  %v8048_v36 = vld [vmem:[%s17818_s3 + $0x8a0] sm:$0xff] }
 0x53d   :  { %11116 = vmatpush1.bf16.msra.mxu1 %v14416_v13  ;;  %10953 = vmatprep.subr.bf16.mxu0 %v14423_v47  ;;  %v14462_v13 = vcombine.low %v8012_v53, %v8016_v58  ;;  %v14464_v47 = vcombine.low %v8013_v61, %v8017_v63  ;;  %v14473_v15 = vcombine.high %v8021_v8, %v8025_v11  ;;  %v8052_v49 = vld [vmem:[%s17818_s3 + $0x8c0] sm:$0xff]  ;;  %v8061_v63 = vld [vmem:[%s17818_s3 + $0x908] sm:$0xff] }
 0x53e   :  { %11117 = vmatprep.subr.bf16.mxu1 %v14425_v14  ;;  %v14471_v14 = vcombine.high %v8020_v3, %v8024_v39  ;;  %v8056_v12 = vld [vmem:[%s17818_s3 + $0x8e0] sm:$0xff] }
 0x53f   :  { %v8060_v58 = vld [vmem:[%s17818_s3 + $0x900] sm:$0xff] }
 0x540   :  { %10954 = vmatpush1.bf16.msra.mxu0 %v14422_v20  ;;  %v8033_v20 = vld [vmem:[%s17818_s3 + $0x828] sm:$0xff]  ;;  %v8064_v61 = vld [vmem:[%s17818_s3 + $0x920] sm:$0xff] }
 0x541   :  { %11118 = vmatpush1.bf16.msra.mxu1 %v14424_v5  ;;  %10955 = vmatprep.subr.bf16.mxu0 %v14431_v24  ;;  %v14470_v5 = vcombine.low %v8020_v3, %v8024_v39  ;;  %v14472_v24 = vcombine.low %v8021_v8, %v8025_v11  ;;  %v14481_v27 = vcombine.high %v8029_v19, %v8033_v20  ;;  %v8068_v39 = vld [vmem:[%s17818_s3 + $0x940] sm:$0xff]  ;;  %v8069_v11 = vld [vmem:[%s17818_s3 + $0x948] sm:$0xff] }
 0x542   :  { %11119 = vmatprep.subr.bf16.mxu1 %v14433_v26  ;;  %v14479_v26 = vcombine.high %v8028_v16, %v8032_v18  ;;  %v8072_v8 = vld [vmem:[%s17818_s3 + $0x960] sm:$0xff]  ;;  %v16610_v18 = vsub.s32 7, %v16018_v60 }
 0x543   :  { %v14519_v16 = vcombine.high %v8068_v39, %v8072_v8 }
 0x544   :  { %10956 = vmatpush1.bf16.msra.mxu0 %v14430_v43  ;;  %v8037_v43 = vld [vmem:[%s17818_s3 + $0x848] sm:$0xff] }
 0x545   :  { %11120 = vmatpush1.bf16.msra.mxu1 %v14432_v28  ;;  %10957 = vmatprep.subr.bf16.mxu0 %v14439_v38  ;;  %v8041_v28 = vld [vmem:[%s17818_s3 + $0x868] sm:$0xff]  ;;  %v16548_v38 = vpack.c.bf16 %v16084_v30, %v16084_v30 }
 0x546   :  { %11121 = vmatprep.subr.bf16.mxu1 %v14441_v21  ;;  %v14480_v21 = vcombine.low %v8029_v19, %v8033_v20  ;;  %v14489_v30 = vcombine.high %v8037_v43, %v8041_v28  ;;  %v14488_v34 = vcombine.low %v8037_v43, %v8041_v28  ;;  %v8076_v20 = vld [vmem:[%s17818_s3 + $0x980] sm:$0xff] }
 0x548   :  { %10958 = vmatpush1.bf16.msra.mxu0 %v14438_v45  ;;  %v8045_v45 = vld [vmem:[%s17818_s3 + $0x888] sm:$0xff] }
 0x549   :  { %11122 = vmatpush1.bf16.msra.mxu1 %v14440_v54  ;;  %10959 = vmatprep.subr.bf16.mxu0 %v14447_v42  ;;  %v8049_v54 = vld [vmem:[%s17818_s3 + $0x8a8] sm:$0xff]  ;;  %v14486_v42 = vcombine.low %v8036_v29, %v8040_v37  ;;  %v14518_v29 = vcombine.low %v8068_v39, %v8072_v8  ;;  %v8104_v39 = vld [vmem:[%s17818_s3 + $0xa60] sm:$0xff] }
 0x54a   :  { %11123 = vmatprep.subr.bf16.mxu1 %v14449_v48  ;;  %v14495_v48 = vcombine.high %v8044_v62, %v8048_v36  ;;  %v14497_v44 = vcombine.high %v8045_v45, %v8049_v54  ;;  %v8101_v8 = vld [vmem:[%s17818_s3 + $0xa48] sm:$0xff] }
 0x54c   :  { %10960 = vmatpush1.bf16.msra.mxu0 %v14446_v22  ;;  %v8057_v22 = vld [vmem:[%s17818_s3 + $0x8e8] sm:$0xff] }
 0x54d   :  { %11124 = vmatpush1.bf16.msra.mxu1 %v14448_v50  ;;  %10961 = vmatprep.subr.bf16.mxu0 %v14455_v51  ;;  %v14494_v50 = vcombine.low %v8044_v62, %v8048_v36  ;;  %v14496_v51 = vcombine.low %v8045_v45, %v8049_v54  ;;  %v14505_v53 = vcombine.high %v8053_v25, %v8057_v22  ;;  %v8089_v45 = vld [vmem:[%s17818_s3 + $0x9e8] sm:$0xff] }
 0x54e   :  { %11125 = vmatprep.subr.bf16.mxu1 %v14457_v23  ;;  %v14503_v23 = vcombine.high %v8052_v49, %v8056_v12 }
 0x550   :  { %10962 = vmatpush1.bf16.msra.mxu0 %v14454_v46  ;;  %v8065_v46 = vld [vmem:[%s17818_s3 + $0x928] sm:$0xff] }
 0x551   :  { %11126 = vmatpush1.bf16.msra.mxu1 %v14456_v0  ;;  %10963 = vmatprep.subr.bf16.mxu0 %v14463_v1  ;;  %v14502_v0 = vcombine.low %v8052_v49, %v8056_v12  ;;  %v14504_v1 = vcombine.low %v8053_v25, %v8057_v22  ;;  %v14513_v3 = vcombine.high %v8061_v63, %v8065_v46 }
 0x552   :  { %11127 = vmatprep.subr.bf16.mxu1 %v14465_v2  ;;  %v14511_v2 = vcombine.high %v8060_v58, %v8064_v61 }
 0x554   :  { %10964 = vmatpush1.bf16.msra.mxu0 %v14462_v13  ;;  %v8073_v13 = vld [vmem:[%s17818_s3 + $0x968] sm:$0xff] }
 0x555   :  { %11128 = vmatpush1.bf16.msra.mxu1 %v14464_v47  ;;  %10965 = vmatprep.subr.bf16.mxu0 %v14471_v14  ;;  %v14510_v47 = vcombine.low %v8060_v58, %v8064_v61  ;;  %v16607_v14 = vsub.s32 6, %v16018_v60  ;;  %v14521_v19 = vcombine.high %v8069_v11, %v8073_v13  ;;  %v8081_v60 = vld [vmem:[%s17818_s3 + $0x9a8] sm:$0xff]  ;;  %v14520_v37 = vcombine.low %v8069_v11, %v8073_v13  ;;  %v8096_v58 = vld [vmem:[%s17818_s3 + $0xa20] sm:$0xff] }
 0x556   :  { %11129 = vmatprep.subr.bf16.mxu1 %v14473_v15  ;;  %v14512_v15 = vcombine.low %v8061_v63, %v8065_v46  ;;  %v8093_v61 = vld [vmem:[%s17818_s3 + $0xa08] sm:$0xff] }
 0x557   :  { %v8097_v63 = vld [vmem:[%s17818_s3 + $0xa28] sm:$0xff] }
 0x558   :  { %10966 = vmatpush1.bf16.msra.mxu0 %v14470_v5  ;;  %v8080_v5 = vld [vmem:[%s17818_s3 + $0x9a0] sm:$0xff]  ;;  %v8105_v11 = vld [vmem:[%s17818_s3 + $0xa68] sm:$0xff] }
 0x559   :  { %11130 = vmatpush1.bf16.msra.mxu1 %v14472_v24  ;;  %10976 = vmatprep.subr.bf16.mxu0 %v14479_v26  ;;  %v1303_v24 = vrot.slane %v16180_v10, %v16607_v14  ;;  %v8077_v26 = vld [vmem:[%s17818_s3 + $0x988] sm:$0xff] }
 0x55a   :  { %11140 = vmatprep.subr.bf16.mxu1 %v14481_v27  ;;  %v1307_v27 = vrot.slane %v16180_v10, %v16610_v18  ;;  %v14529_v28 = vcombine.high %v8077_v26, %v8081_v60  ;;  %v8085_v10 = vld [vmem:[%s17818_s3 + $0x9c8] sm:$0xff]  ;;  %v14528_v25 = vcombine.low %v8077_v26, %v8081_v60  ;;  %v14552_v60 = vcombine.low %v8101_v8, %v8105_v11 }
 0x55b   :  { %10968 = vmatmul.mubr.bf16.vlgmr.msra.gmra.mrb[40].mxu0 %v16548_v38 }
 0x55c   :  { %11132 = vmatmul.mubr.bf16.vlgmr.msra.gmra.mrb[40].mxu1 %v16548_v38  ;;  %10977 = vmatpush1.bf16.msra.mxu0 %v14478_v52  ;;  %v14527_v52 = vcombine.high %v8076_v20, %v8080_v5 }
 0x55d   :  { %11008 = vmatprep.mubr.bf16.mxu0 %v16558_v57  ;;  %11141 = vmatpush1.bf16.msra.mxu1 %v14480_v21  ;;  %v8084_v21 = vld [vmem:[%s17818_s3 + $0x9c0] sm:$0xff] }
 0x55e   :  { %11172 = vmatprep.mubr.bf16.mxu1 %v16558_v57  ;;  %10978 = vmatprep.subr.bf16.mxu0 %v14487_v35  ;;  %v8088_v35 = vld [vmem:[%s17818_s3 + $0x9e0] sm:$0xff] }
 0x55f   :  { %11142 = vmatprep.subr.bf16.mxu1 %v14489_v30  ;;  %v14535_v22 = vcombine.high %v8084_v21, %v8088_v35  ;;  %v14534_v46 = vcombine.low %v8084_v21, %v8088_v35 }
 0x560   :  { %10979 = vmatpush1.bf16.msra.mxu0 %v14486_v42 }
 0x561   :  { %11143 = vmatpush1.bf16.msra.mxu1 %v14488_v34  ;;  %10980 = vmatprep.subr.bf16.mxu0 %v14495_v48  ;;  %v14526_v48 = vcombine.low %v8076_v20, %v8080_v5  ;;  %v8112_v20 = vld [vmem:[%s17818_s3 + $0xaa0] sm:$0xff]  ;;  %v8109_v5 = vld [vmem:[%s17818_s3 + $0xa88] sm:$0xff] }
 0x562   :  { %11144 = vmatprep.subr.bf16.mxu1 %v14497_v44 }
 0x564   :  { %10981 = vmatpush1.bf16.msra.mxu0 %v14494_v50 }
 0x565   :  { %11145 = vmatpush1.bf16.msra.mxu1 %v14496_v51  ;;  %10982 = vmatprep.subr.bf16.mxu0 %v14503_v23  ;;  %v14537_v23 = vcombine.high %v8085_v10, %v8089_v45 }
 0x566   :  { %11146 = vmatprep.subr.bf16.mxu1 %v14505_v53  ;;  %v8092_v53 = vld [vmem:[%s17818_s3 + $0xa00] sm:$0xff] }
 0x567   :  { %v14542_v13 = vcombine.low %v8092_v53, %v8096_v58 }
 0x568   :  { %10983 = vmatpush1.bf16.msra.mxu0 %v14502_v0  ;;  %v14536_v0 = vcombine.low %v8085_v10, %v8089_v45  ;;  %v8128_v10 = vld [vmem:[%s17818_s3 + $0xb20] sm:$0xff]  ;;  %v8125_v45 = vld [vmem:[%s17818_s3 + $0xb08] sm:$0xff] }
 0x569   :  { %11147 = vmatpush1.bf16.msra.mxu1 %v14504_v1  ;;  %10984 = vmatprep.subr.bf16.mxu0 %v14511_v2  ;;  %v14543_v1 = vcombine.high %v8092_v53, %v8096_v58  ;;  %v14545_v2 = vcombine.high %v8093_v61, %v8097_v63 }
 0x56a   :  { %11148 = vmatprep.subr.bf16.mxu1 %v14513_v3  ;;  %v8100_v3 = vld [vmem:[%s17818_s3 + $0xa40] sm:$0xff] }
 0x56b   :  { %v14550_v26 = vcombine.low %v8100_v3, %v8104_v39 }
 0x56c   :  { %10985 = vmatpush1.bf16.msra.mxu0 %v14510_v47  ;;  %v14544_v47 = vcombine.low %v8093_v61, %v8097_v63  ;;  %v8140_v63 = vld [vmem:[%s17818_s3 + $0xb80] sm:$0xff] }
 0x56d   :  { %11149 = vmatpush1.bf16.msra.mxu1 %v14512_v15  ;;  %10986 = vmatprep.subr.bf16.mxu0 %v14519_v16  ;;  %v14551_v15 = vcombine.high %v8100_v3, %v8104_v39  ;;  %v14553_v16 = vcombine.high %v8101_v8, %v8105_v11  ;;  %v8148_v11 = vld [vmem:[%s17818_s3 + $0xbc0] sm:$0xff] }
 0x56e   :  { %v7626_v43 = vpop.f32.mrb[32].mxu0  ;;  %11150 = vmatprep.subr.bf16.mxu1 %v14521_v19  ;;  %v7667_v36 = vpop.f32.mrb[32].mxu1  ;;  %v8108_v19 = vld [vmem:[%s17818_s3 + $0xa80] sm:$0xff] }
 0x56f   :  { %v7627_v62 = vadd.f32 %v7626_v43, %v1303_v24  ;;  %v7628_v30 = vpop.f32.mrb[33].mxu0  ;;  %v7669_v42 = vpop.f32.mrb[33].mxu1  ;;  %v8113_v24 = vld [vmem:[%s17818_s3 + $0xaa8] sm:$0xff]  ;;  %v14558_v21 = vcombine.low %v8108_v19, %v8112_v20 }
 0x570   :  { %v7629_v54 = vadd.f32 %v7628_v30, %v1307_v27  ;;  %v7630_v34 = vpop.f32.mrb[34].mxu0  ;;  %10987 = vmatpush1.bf16.msra.mxu0 %v14518_v29  ;;  %v7671_v49 = vpop.f32.mrb[34].mxu1  ;;  %v14559_v27 = vcombine.high %v8108_v19, %v8112_v20  ;;  %v14561_v29 = vcombine.high %v8109_v5, %v8113_v24  ;;  %v8117_v43 = vld [vmem:[%s17818_s3 + $0xac8] sm:$0xff]  ;;  %v14560_v35 = vcombine.low %v8109_v5, %v8113_v24  ;;  %v8124_v30 = vld [vmem:[%s17818_s3 + $0xb00] sm:$0xff] }
 0x571   :  { %v16640_v44 = vadd.f32 %v7667_v36, %v7627_v62  ;;  %11151 = vmatpush1.bf16.msra.mxu1 %v14520_v37  ;;  %v7631_v12 = vpop.f32.mrb[35].mxu0  ;;  %10988 = vmatprep.subr.bf16.mxu0 %v14527_v52  ;;  %v7672_v51 = vpop.f32.mrb[35].mxu1  ;;  %v8116_v37 = vld [vmem:[%s17818_s3 + $0xac0] sm:$0xff] }
 0x572   :  { %v16642_v50 = vadd.f32 %v7669_v42, %v7629_v54  ;;  %11152 = vmatprep.subr.bf16.mxu1 %v14529_v28  ;;  %v8120_v52 = vld [vmem:[%s17818_s3 + $0xae0] sm:$0xff]  ;;  %v8121_v28 = vld [vmem:[%s17818_s3 + $0xae8] sm:$0xff] }
 0x573   :  { %v14567_v62 = vcombine.high %v8116_v37, %v8120_v52  ;;  %v14569_v36 = vcombine.high %v8117_v43, %v8121_v28  ;;  %v8129_v54 = vld [vmem:[%s17818_s3 + $0xb28] sm:$0xff]  ;;  %v14566_v42 = vcombine.low %v8116_v37, %v8120_v52  ;;  %v14568_v34 = vcombine.low %v8117_v43, %v8121_v28  ;;  %v8132_v12 = vld [vmem:[%s17818_s3 + $0xb40] sm:$0xff] }
 0x574   :  { %10989 = vmatpush1.bf16.msra.mxu0 %v14526_v48  ;;  %v14575_v48 = vcombine.high %v8124_v30, %v8128_v10  ;;  %v14577_v49 = vcombine.high %v8125_v45, %v8129_v54  ;;  %v8137_v51 = vld [vmem:[%s17818_s3 + $0xb68] sm:$0xff]  ;;  %v14576_v53 = vcombine.low %v8125_v45, %v8129_v54  ;;  %v8156_v24 = vld [vmem:[%s17818_s3 + $0xc00] sm:$0xff] }
 0x575   :  { %11153 = vmatpush1.bf16.msra.mxu1 %v14528_v25  ;;  %10990 = vmatprep.subr.bf16.mxu0 %v14535_v22  ;;  %v8136_v25 = vld [vmem:[%s17818_s3 + $0xb60] sm:$0xff]  ;;  %v8133_v22 = vld [vmem:[%s17818_s3 + $0xb48] sm:$0xff] }
 0x576   :  { %11154 = vmatprep.subr.bf16.mxu1 %v14537_v23  ;;  %v14574_v23 = vcombine.low %v8124_v30, %v8128_v10  ;;  %v14583_v58 = vcombine.high %v8132_v12, %v8136_v25  ;;  %v14585_v61 = vcombine.high %v8133_v22, %v8137_v51  ;;  %v14584_v3 = vcombine.low %v8133_v22, %v8137_v51  ;;  %v8164_v28 = vld [vmem:[%s17818_s3 + $0xc40] sm:$0xff] }
 0x577   :  { %v16766_v30 = vpack.c.bf16 %v16428_v56, %v16428_v56  ;;  %v8173_v56 = vld [vmem:[%s17818_s3 + $0xc88] sm:$0xff]  ;;  %v8180_v51 = vld [vmem:[%s17818_s3 + $0xcc0] sm:$0xff] }
 0x578   :  { %10991 = vmatpush1.bf16.msra.mxu0 %v14534_v46  ;;  %v8144_v46 = vld [vmem:[%s17818_s3 + $0xba0] sm:$0xff] }
 0x579   :  { %11155 = vmatpush1.bf16.msra.mxu1 %v14536_v0  ;;  %10992 = vmatprep.subr.bf16.mxu0 %v14543_v1  ;;  %v8141_v0 = vld [vmem:[%s17818_s3 + $0xb88] sm:$0xff]  ;;  %v14591_v39 = vcombine.high %v8140_v63, %v8144_v46 }
 0x57a   :  { %11156 = vmatprep.subr.bf16.mxu1 %v14545_v2  ;;  %v8145_v1 = vld [vmem:[%s17818_s3 + $0xba8] sm:$0xff]  ;;  %v14582_v2 = vcombine.low %v8132_v12, %v8136_v25 }
 0x57b   :  { %v14593_v8 = vcombine.high %v8141_v0, %v8145_v1  ;;  %v14592_v19 = vcombine.low %v8141_v0, %v8145_v1  ;;  %v8188_v1 = vld [vmem:[%s17818_s3 + $0xd00] sm:$0xff] }
 0x57c   :  { %10993 = vmatpush1.bf16.msra.mxu0 %v14542_v13  ;;  %v8152_v13 = vld [vmem:[%s17818_s3 + $0xbe0] sm:$0xff] }
 0x57d   :  { %11157 = vmatpush1.bf16.msra.mxu1 %v14544_v47  ;;  %10994 = vmatprep.subr.bf16.mxu0 %v14551_v15  ;;  %v8149_v47 = vld [vmem:[%s17818_s3 + $0xbc8] sm:$0xff]  ;;  %v14599_v20 = vcombine.high %v8148_v11, %v8152_v13 }
 0x57e   :  { %11158 = vmatprep.subr.bf16.mxu1 %v14553_v16  ;;  %v8153_v15 = vld [vmem:[%s17818_s3 + $0xbe8] sm:$0xff]  ;;  %v14590_v16 = vcombine.low %v8140_v63, %v8144_v46 }
 0x57f   :  { %v14601_v5 = vcombine.high %v8149_v47, %v8153_v15  ;;  %v14600_v37 = vcombine.low %v8149_v47, %v8153_v15  ;;  %v8196_v15 = vld [vmem:[%s17818_s3 + $0xd40] sm:$0xff] }
 0x580   :  { %10995 = vmatpush1.bf16.msra.mxu0 %v14550_v26  ;;  %v8160_v26 = vld [vmem:[%s17818_s3 + $0xc20] sm:$0xff] }
 0x581   :  { %11159 = vmatpush1.bf16.msra.mxu1 %v14552_v60  ;;  %10996 = vmatprep.subr.bf16.mxu0 %v14559_v27  ;;  %v8157_v60 = vld [vmem:[%s17818_s3 + $0xc08] sm:$0xff]  ;;  %v14607_v52 = vcombine.high %v8156_v24, %v8160_v26 }
 0x582   :  { %11160 = vmatprep.subr.bf16.mxu1 %v14561_v29  ;;  %v8161_v27 = vld [vmem:[%s17818_s3 + $0xc28] sm:$0xff]  ;;  %v14598_v29 = vcombine.low %v8148_v11, %v8152_v13 }
 0x583   :  { %v14609_v43 = vcombine.high %v8157_v60, %v8161_v27  ;;  %v14608_v10 = vcombine.low %v8157_v60, %v8161_v27  ;;  %v1275_v27 = vrot.slane %v16388_v7, %v16610_v18 }
 0x584   :  { %10997 = vmatpush1.bf16.msra.mxu0 %v14558_v21  ;;  %v8168_v21 = vld [vmem:[%s17818_s3 + $0xc60] sm:$0xff] }
 0x585   :  { %11161 = vmatpush1.bf16.msra.mxu1 %v14560_v35  ;;  %10998 = vmatprep.subr.bf16.mxu0 %v14567_v62  ;;  %v8165_v35 = vld [vmem:[%s17818_s3 + $0xc48] sm:$0xff]  ;;  %v14615_v45 = vcombine.high %v8164_v28, %v8168_v21 }
 0x586   :  { %11162 = vmatprep.subr.bf16.mxu1 %v14569_v36  ;;  %v8169_v62 = vld [vmem:[%s17818_s3 + $0xc68] sm:$0xff]  ;;  %v14606_v36 = vcombine.low %v8156_v24, %v8160_v26  ;;  %v1271_v24 = vrot.slane %v16388_v7, %v16607_v14 }
 0x587   :  { %v14617_v54 = vcombine.high %v8165_v35, %v8169_v62  ;;  %v14616_v12 = vcombine.low %v8165_v35, %v8169_v62 }
 0x588   :  { %10999 = vmatpush1.bf16.msra.mxu0 %v14566_v42  ;;  %v8172_v42 = vld [vmem:[%s17818_s3 + $0xc80] sm:$0xff] }
 0x589   :  { %11163 = vmatpush1.bf16.msra.mxu1 %v14568_v34  ;;  %11000 = vmatprep.subr.bf16.mxu0 %v14575_v48  ;;  %v8176_v34 = vld [vmem:[%s17818_s3 + $0xca0] sm:$0xff]  ;;  %v8177_v48 = vld [vmem:[%s17818_s3 + $0xca8] sm:$0xff] }
 0x58a   :  { %11164 = vmatprep.subr.bf16.mxu1 %v14577_v49  ;;  %v14614_v49 = vcombine.low %v8164_v28, %v8168_v21  ;;  %v14623_v25 = vcombine.high %v8172_v42, %v8176_v34  ;;  %v14625_v22 = vcombine.high %v8173_v56, %v8177_v48  ;;  %v14624_v63 = vcombine.low %v8173_v56, %v8177_v48  ;;  %v8209_v28 = vld [vmem:[%s17818_s3 + $0xda8] sm:$0xff] }
 0x58b   :  { %v14970_v21 = vadd.f32 %v16008_v33, %v1271_v24  ;;  %v8213_v48 = vld [vmem:[%s17818_s3 + $0xdc8] sm:$0xff] }
 0x58c   :  { %11001 = vmatpush1.bf16.msra.mxu0 %v14574_v23  ;;  %v8184_v23 = vld [vmem:[%s17818_s3 + $0xce0] sm:$0xff]  ;;  %v8229_v24 = vld [vmem:[%s17818_s3 + $0xe48] sm:$0xff] }
 0x58d   :  { %11165 = vmatpush1.bf16.msra.mxu1 %v14576_v53  ;;  %11002 = vmatprep.subr.bf16.mxu0 %v14583_v58  ;;  %v8181_v53 = vld [vmem:[%s17818_s3 + $0xcc8] sm:$0xff]  ;;  %v14631_v46 = vcombine.high %v8180_v51, %v8184_v23 }
 0x58e   :  { %11166 = vmatprep.subr.bf16.mxu1 %v14585_v61  ;;  %v8185_v58 = vld [vmem:[%s17818_s3 + $0xce8] sm:$0xff]  ;;  %v14622_v61 = vcombine.low %v8172_v42, %v8176_v34  ;;  %v8216_v42 = vld [vmem:[%s17818_s3 + $0xde0] sm:$0xff] }
 0x58f   :  { %v14633_v0 = vcombine.high %v8181_v53, %v8185_v58  ;;  %v14632_v11 = vcombine.low %v8181_v53, %v8185_v58 }
 0x590   :  { %11003 = vmatpush1.bf16.msra.mxu0 %v14582_v2  ;;  %v8192_v2 = vld [vmem:[%s17818_s3 + $0xd20] sm:$0xff] }
 0x591   :  { %11167 = vmatpush1.bf16.msra.mxu1 %v14584_v3  ;;  %11004 = vmatprep.subr.bf16.mxu0 %v14591_v39  ;;  %v8189_v3 = vld [vmem:[%s17818_s3 + $0xd08] sm:$0xff]  ;;  %v14639_v13 = vcombine.high %v8188_v1, %v8192_v2 }
 0x592   :  { %11168 = vmatprep.subr.bf16.mxu1 %v14593_v8  ;;  %v8193_v39 = vld [vmem:[%s17818_s3 + $0xd28] sm:$0xff]  ;;  %v14630_v8 = vcombine.low %v8180_v51, %v8184_v23  ;;  %v7762_v51 = vmax.f32 %v14970_v21, 0.0 }
 0x593   :  { %v14641_v47 = vcombine.high %v8189_v3, %v8193_v39  ;;  %v14640_v26 = vcombine.low %v8189_v3, %v8193_v39  ;;  %v8224_v3 = vld [vmem:[%s17818_s3 + $0xe20] sm:$0xff]  ;;  %v8221_v39 = vld [vmem:[%s17818_s3 + $0xe08] sm:$0xff] }
 0x594   :  { %11005 = vmatpush1.bf16.msra.mxu0 %v14590_v16  ;;  %v8200_v16 = vld [vmem:[%s17818_s3 + $0xd60] sm:$0xff] }
 0x595   :  { %11169 = vmatpush1.bf16.msra.mxu1 %v14592_v19  ;;  %11006 = vmatprep.subr.bf16.mxu0 %v14599_v20  ;;  %v8197_v19 = vld [vmem:[%s17818_s3 + $0xd48] sm:$0xff]  ;;  %v14647_v60 = vcombine.high %v8196_v15, %v8200_v16  ;;  %v14646_v7 = vcombine.low %v8196_v15, %v8200_v16 }
 0x596   :  { %11170 = vmatprep.subr.bf16.mxu1 %v14601_v5  ;;  %v8201_v20 = vld [vmem:[%s17818_s3 + $0xd68] sm:$0xff]  ;;  %v14638_v5 = vcombine.low %v8188_v1, %v8192_v2 }
 0x597   :  { %v14648_v35 = vcombine.low %v8197_v19, %v8201_v20 }
 0x598   :  { %11007 = vmatpush1.bf16.msra.mxu0 %v14598_v29  ;;  %v14649_v29 = vcombine.high %v8197_v19, %v8201_v20  ;;  %v8228_v20 = vld [vmem:[%s17818_s3 + $0xe40] sm:$0xff] }
 0x599   :  { %11171 = vmatpush1.bf16.msra.mxu1 %v14600_v37  ;;  %11017 = vmatprep.subr.bf16.mxu0 %v14607_v52  ;;  %v8204_v37 = vld [vmem:[%s17818_s3 + $0xd80] sm:$0xff] }
 0x59a   :  { %11181 = vmatprep.subr.bf16.mxu1 %v14609_v43  ;;  %v8208_v52 = vld [vmem:[%s17818_s3 + $0xda0] sm:$0xff]  ;;  %v8205_v43 = vld [vmem:[%s17818_s3 + $0xd88] sm:$0xff] }
 0x59b   :  { %11009 = vmatmul.mubr.bf16.vlgmr.msra.gmra.mrb[40].mxu0 %v16766_v30  ;;  %v14655_v62 = vcombine.high %v8204_v37, %v8208_v52  ;;  %v14656_v58 = vcombine.low %v8205_v43, %v8209_v28 }
 0x59c   :  { %11173 = vmatmul.mubr.bf16.vlgmr.msra.gmra.mrb[40].mxu1 %v16766_v30  ;;  %11018 = vmatpush1.bf16.msra.mxu0 %v14606_v36  ;;  %v14971_v36 = vadd.f32 %v16012_v41, %v1275_v27  ;;  %v8217_v41 = vld [vmem:[%s17818_s3 + $0xde8] sm:$0xff] }
 0x59d   :  { %11182 = vmatpush1.bf16.msra.mxu1 %v14608_v10  ;;  %11019 = vmatprep.subr.bf16.mxu0 %v14615_v45  ;;  %v14657_v45 = vcombine.high %v8205_v43, %v8209_v28  ;;  %v14665_v1 = vcombine.high %v8213_v48, %v8217_v41  ;;  %v8240_v43 = vld [vmem:[%s17818_s3 + $0xea0] sm:$0xff]  ;;  %v8237_v28 = vld [vmem:[%s17818_s3 + $0xe88] sm:$0xff] }
 0x59e   :  { %11183 = vmatprep.subr.bf16.mxu1 %v14617_v54  ;;  %v8212_v54 = vld [vmem:[%s17818_s3 + $0xdc0] sm:$0xff] }
 0x5a0   :  { %11020 = vmatpush1.bf16.msra.mxu0 %v14614_v49 }
 0x5a1   :  { %11184 = vmatpush1.bf16.msra.mxu1 %v14616_v12  ;;  %11021 = vmatprep.subr.bf16.mxu0 %v14623_v25 }
 0x5a2   :  { %11185 = vmatprep.subr.bf16.mxu1 %v14625_v22  ;;  %v14654_v22 = vcombine.low %v8204_v37, %v8208_v52  ;;  %v8236_v52 = vld [vmem:[%s17818_s3 + $0xe80] sm:$0xff] }
 0x5a4   :  { %11022 = vmatpush1.bf16.msra.mxu0 %v14622_v61  ;;  %v14663_v61 = vcombine.high %v8212_v54, %v8216_v42 }
 0x5a5   :  { %11186 = vmatpush1.bf16.msra.mxu1 %v14624_v63  ;;  %11023 = vmatprep.subr.bf16.mxu0 %v14631_v46  ;;  %v7763_v63 = vmax.f32 %v14971_v36, 0.0 }
 0x5a6   :  { %11187 = vmatprep.subr.bf16.mxu1 %v14633_v0 }
 0x5a8   :  { %11024 = vmatpush1.bf16.msra.mxu0 %v14630_v8  ;;  %v8225_v8 = vld [vmem:[%s17818_s3 + $0xe28] sm:$0xff] }
 0x5a9   :  { %11188 = vmatpush1.bf16.msra.mxu1 %v14632_v11  ;;  %11025 = vmatprep.subr.bf16.mxu0 %v14639_v13  ;;  %v14662_v13 = vcombine.low %v8212_v54, %v8216_v42  ;;  %v14673_v19 = vcombine.high %v8221_v39, %v8225_v8  ;;  %v14672_v27 = vcombine.low %v8221_v39, %v8225_v8  ;;  %v8245_v54 = vld [vmem:[%s17818_s3 + $0xec8] sm:$0xff]  ;;  %v8272_v39 = vld [vmem:[%s17818_s3 + $0xfa0] sm:$0xff] }
 0x5aa   :  { %11189 = vmatprep.subr.bf16.mxu1 %v14641_v47  ;;  %v14664_v47 = vcombine.low %v8213_v48, %v8217_v41  ;;  %v8249_v42 = vld [vmem:[%s17818_s3 + $0xee8] sm:$0xff]  ;;  %v8252_v41 = vld [vmem:[%s17818_s3 + $0xf00] sm:$0xff] }
 0x5ab   :  { %v14697_v48 = vcombine.high %v8245_v54, %v8249_v42  ;;  %v8269_v8 = vld [vmem:[%s17818_s3 + $0xf88] sm:$0xff] }
 0x5ac   :  { %11026 = vmatpush1.bf16.msra.mxu0 %v14638_v5  ;;  %v8232_v5 = vld [vmem:[%s17818_s3 + $0xe60] sm:$0xff] }
 0x5ad   :  { %11190 = vmatpush1.bf16.msra.mxu1 %v14640_v26  ;;  %11027 = vmatprep.subr.bf16.mxu0 %v14647_v60  ;;  %v8233_v26 = vld [vmem:[%s17818_s3 + $0xe68] sm:$0xff]  ;;  %v14678_v21 = vcombine.low %v8228_v20, %v8232_v5 }
 0x5ae   :  { %v7708_v10 = vpop.f32.mrb[36].mxu0  ;;  %11191 = vmatprep.subr.bf16.mxu1 %v14649_v29  ;;  %v7749_v33 = vpop.f32.mrb[36].mxu1  ;;  %v14679_v29 = vcombine.high %v8228_v20, %v8232_v5  ;;  %v14681_v37 = vcombine.high %v8229_v24, %v8233_v26  ;;  %v8276_v20 = vld [vmem:[%s17818_s3 + $0xfc0] sm:$0xff] }
 0x5af   :  { %v7709_v34 = vadd.f32 %v7708_v10, %v16640_v44  ;;  %v7710_v56 = vpop.f32.mrb[37].mxu0  ;;  %v7751_v12 = vpop.f32.mrb[37].mxu1  ;;  %v8244_v10 = vld [vmem:[%s17818_s3 + $0xec0] sm:$0xff] }
 0x5b0   :  { %v7711_v49 = vadd.f32 %v7710_v56, %v16642_v50  ;;  %v7712_v25 = vpop.f32.mrb[38].mxu0  ;;  %11028 = vmatpush1.bf16.msra.mxu0 %v14646_v7  ;;  %v7753_v53 = vpop.f32.mrb[38].mxu1  ;;  %v8220_v50 = vld [vmem:[%s17818_s3 + $0xe00] sm:$0xff]  ;;  %v8241_v7 = vld [vmem:[%s17818_s3 + $0xea8] sm:$0xff] }
 0x5b1   :  { %v7750_v23 = vadd.f32 %v7749_v33, %v7709_v34  ;;  %11192 = vmatpush1.bf16.msra.mxu1 %v14648_v35  ;;  %v7713_v44 = vpop.f32.mrb[39].mxu0  ;;  %11029 = vmatprep.subr.bf16.mxu0 %v14655_v62  ;;  %v7754_v0 = vpop.f32.mrb[39].mxu1  ;;  %v14671_v16 = vcombine.high %v8220_v50, %v8224_v3  ;;  %v14670_v60 = vcombine.low %v8220_v50, %v8224_v3  ;;  %v8257_v25 = vld [vmem:[%s17818_s3 + $0xf28] sm:$0xff]  ;;  %v8268_v3 = vld [vmem:[%s17818_s3 + $0xf80] sm:$0xff] }
 0x5b2   :  { %v7752_v46 = vadd.f32 %v7751_v12, %v7711_v49  ;;  %11193 = vmatprep.subr.bf16.mxu1 %v14657_v45  ;;  %v14680_v35 = vcombine.low %v8229_v24, %v8233_v26  ;;  %v14687_v62 = vcombine.high %v8236_v52, %v8240_v43  ;;  %v14689_v36 = vcombine.high %v8237_v28, %v8241_v7  ;;  %v8248_v45 = vld [vmem:[%s17818_s3 + $0xee0] sm:$0xff]  ;;  %v8253_v12 = vld [vmem:[%s17818_s3 + $0xf08] sm:$0xff] }
 0x5b3   :  { %v16853_v2 = vadd.f32 %v7762_v51, %v7750_v23  ;;  %v14686_v34 = vcombine.low %v8236_v52, %v8240_v43  ;;  %v14688_v33 = vcombine.low %v8237_v28, %v8241_v7  ;;  %v14695_v56 = vcombine.high %v8244_v10, %v8248_v45  ;;  %v8256_v49 = vld [vmem:[%s17818_s3 + $0xf20] sm:$0xff]  ;;  %v8277_v24 = vld [vmem:[%s17818_s3 + $0xfc8] sm:$0xff]  ;;  %v7774_v52 = vld [vmem:[%s17818_s3 + $0x10] sm:$0xff] }
 0x5b4   :  { %v7771_v11 = vadd.f32 %v7763_v63, %v7752_v46  ;;  %11030 = vmatpush1.bf16.msra.mxu0 %v14654_v22  ;;  %v14694_v22 = vcombine.low %v8244_v10, %v8248_v45  ;;  %v14696_v51 = vcombine.low %v8245_v54, %v8249_v42  ;;  %v14703_v23 = vcombine.high %v8252_v41, %v8256_v49  ;;  %v8260_v44 = vld [vmem:[%s17818_s3 + $0xf40] sm:$0xff]  ;;  %v8265_v63 = vld [vmem:[%s17818_s3 + $0xf68] sm:$0xff]  ;;  %v7778_v43 = vld [vmem:[%s17818_s3 + $0x30] sm:$0xff] }
 0x5b5   :  { %11194 = vmatpush1.bf16.msra.mxu1 %v14656_v58  ;;  %11031 = vmatprep.subr.bf16.mxu0 %v14663_v61  ;;  %v14705_v53 = vcombine.high %v8253_v12, %v8257_v25  ;;  %v8264_v58 = vld [vmem:[%s17818_s3 + $0xf60] sm:$0xff]  ;;  %v8261_v61 = vld [vmem:[%s17818_s3 + $0xf48] sm:$0xff]  ;;  %v14702_v46 = vcombine.low %v8252_v41, %v8256_v49  ;;  %v14704_v0 = vcombine.low %v8253_v12, %v8257_v25  ;;  %v7902_v28 = vld [vmem:[%s17818_s3 + $0x410] sm:$0xff] }
 0x5b6   :  { %v16864_v15 = vpack.c.bf16 %v7771_v11, %v7771_v11  ;;  %11195 = vmatprep.subr.bf16.mxu1 %v14665_v1  ;;  %v14711_v1 = vcombine.high %v8260_v44, %v8264_v58  ;;  %v14713_v50 = vcombine.high %v8261_v61, %v8265_v63  ;;  %v8273_v11 = vld [vmem:[%s17818_s3 + $0xfa8] sm:$0xff]  ;;  %v8280_v5 = vld [vmem:[%s17818_s3 + $0xfe0] sm:$0xff]  ;;  %v7906_v7 = vld [vmem:[%s17818_s3 + $0x430] sm:$0xff]  ;;  %v14226_v54 = vcombine.low %v7774_v52, %v7778_v43 }
 0x5b7   :  { %v8281_v26 = vld [vmem:[%s17818_s3 + $0xfe8] sm:$0xff]  ;;  %v7782_v10 = vld [vmem:[%s17818_s3 + $0x50] sm:$0xff] }
 0x5b8   :  { %11032 = vmatpush1.bf16.msra.mxu0 %v14662_v13  ;;  %11049 = vmatprep.mubr.bf16.mxu0 %v16864_v15  ;;  %v14710_v13 = vcombine.low %v8260_v44, %v8264_v58  ;;  %v7786_v45 = vld [vmem:[%s17818_s3 + $0x70] sm:$0xff] }
 0x5b9   :  { %11196 = vmatpush1.bf16.msra.mxu1 %v14664_v47  ;;  %11213 = vmatprep.mubr.bf16.mxu1 %v16864_v15  ;;  %v14712_v47 = vcombine.low %v8261_v61, %v8265_v63  ;;  %v7910_v42 = vld [vmem:[%s17818_s3 + $0x450] sm:$0xff] }
 0x5ba   :  { %11033 = vmatprep.subr.bf16.mxu0 %v14671_v16  ;;  %11197 = vmatprep.subr.bf16.mxu1 %v14673_v19  ;;  %v14719_v16 = vcombine.high %v8268_v3, %v8272_v39  ;;  %v14721_v19 = vcombine.high %v8269_v8, %v8273_v11  ;;  %v7790_v41 = vld [vmem:[%s17818_s3 + $0x90] sm:$0xff] }
 0x5bb   :  { %v7794_v49 = vld [vmem:[%s17818_s3 + $0xb0] sm:$0xff] }
 0x5bc   :  { %11034 = vmatpush1.bf16.msra.mxu0 %v14670_v60  ;;  %v14718_v60 = vcombine.low %v8268_v3, %v8272_v39  ;;  %v7922_v25 = vld [vmem:[%s17818_s3 + $0x4b0] sm:$0xff] }
 0x5bd   :  { %11198 = vmatpush1.bf16.msra.mxu1 %v14672_v27  ;;  %11035 = vmatprep.subr.bf16.mxu0 %v14679_v29  ;;  %v14720_v27 = vcombine.low %v8269_v8, %v8273_v11  ;;  %v14727_v29 = vcombine.high %v8276_v20, %v8280_v5  ;;  %v7798_v44 = vld [vmem:[%s17818_s3 + $0xd0] sm:$0xff] }
 0x5be   :  { %11199 = vmatprep.subr.bf16.mxu1 %v14681_v37  ;;  %v14729_v37 = vcombine.high %v8277_v24, %v8281_v26  ;;  %v7802_v58 = vld [vmem:[%s17818_s3 + $0xf0] sm:$0xff] }
 0x5bf   :  { %v7926_v61 = vld [vmem:[%s17818_s3 + $0x4d0] sm:$0xff] }
 0x5c0   :  { %11036 = vmatpush1.bf16.msra.mxu0 %v14678_v21  ;;  %v14726_v21 = vcombine.low %v8276_v20, %v8280_v5  ;;  %v7930_v63 = vld [vmem:[%s17818_s3 + $0x4f0] sm:$0xff] }
 0x5c1   :  { %11200 = vmatpush1.bf16.msra.mxu1 %v14680_v35  ;;  %11037 = vmatprep.subr.bf16.mxu0 %v14687_v62  ;;  %v14728_v35 = vcombine.low %v8277_v24, %v8281_v26  ;;  %v14227_v62 = vcombine.high %v7774_v52, %v7778_v43  ;;  %v7806_v3 = vld [vmem:[%s17818_s3 + $0x110] sm:$0xff] }
 0x5c2   :  { %11201 = vmatprep.subr.bf16.mxu1 %v14689_v36  ;;  %v14355_v36 = vcombine.high %v7902_v28, %v7906_v7  ;;  %v7810_v39 = vld [vmem:[%s17818_s3 + $0x130] sm:$0xff] }
 0x5c3   :  { %v7934_v8 = vld [vmem:[%s17818_s3 + $0x510] sm:$0xff] }
 0x5c4   :  { %11038 = vmatpush1.bf16.msra.mxu0 %v14686_v34  ;;  %v7914_v34 = vld [vmem:[%s17818_s3 + $0x470] sm:$0xff] }
 0x5c5   :  { %11202 = vmatpush1.bf16.msra.mxu1 %v14688_v33  ;;  %11039 = vmatprep.subr.bf16.mxu0 %v14695_v56  ;;  %v16978_v33 = vpack.c.bf16 %v16853_v2, %v16853_v2  ;;  %v14354_v56 = vcombine.low %v7902_v28, %v7906_v7  ;;  %v14363_v12 = vcombine.high %v7910_v42, %v7914_v34  ;;  %v7918_v2 = vld [vmem:[%s17818_s3 + $0x490] sm:$0xff] }
 0x5c6   :  { %11203 = vmatprep.subr.bf16.mxu1 %v14697_v48  ;;  %v14235_v48 = vcombine.high %v7782_v10, %v7786_v45  ;;  %v7938_v11 = vld [vmem:[%s17818_s3 + $0x530] sm:$0xff] }
 0x5c7   :  { %v7814_v20 = vld [vmem:[%s17818_s3 + $0x150] sm:$0xff] }
 0x5c8   :  { %11040 = vmatpush1.bf16.msra.mxu0 %v14694_v22  ;;  %v14234_v22 = vcombine.low %v7782_v10, %v7786_v45  ;;  %v7818_v5 = vld [vmem:[%s17818_s3 + $0x170] sm:$0xff] }
 0x5c9   :  { %11204 = vmatpush1.bf16.msra.mxu1 %v14696_v51  ;;  %11041 = vmatprep.subr.bf16.mxu0 %v14703_v23  ;;  %v14362_v51 = vcombine.low %v7910_v42, %v7914_v34  ;;  %v14243_v23 = vcombine.high %v7790_v41, %v7794_v49  ;;  %v7942_v24 = vld [vmem:[%s17818_s3 + $0x550] sm:$0xff] }
 0x5ca   :  { %11205 = vmatprep.subr.bf16.mxu1 %v14705_v53  ;;  %v14371_v53 = vcombine.high %v7918_v2, %v7922_v25  ;;  %v7946_v26 = vld [vmem:[%s17818_s3 + $0x570] sm:$0xff] }
 0x5cb   :  { %v7822_v52 = vld [vmem:[%s17818_s3 + $0x190] sm:$0xff] }
 0x5cc   :  { %11042 = vmatpush1.bf16.msra.mxu0 %v14702_v46  ;;  %v14242_v46 = vcombine.low %v7790_v41, %v7794_v49  ;;  %v7826_v43 = vld [vmem:[%s17818_s3 + $0x1b0] sm:$0xff] }
 0x5cd   :  { %11206 = vmatpush1.bf16.msra.mxu1 %v14704_v0  ;;  %11043 = vmatprep.subr.bf16.mxu0 %v14711_v1  ;;  %v14370_v0 = vcombine.low %v7918_v2, %v7922_v25  ;;  %v14251_v1 = vcombine.high %v7798_v44, %v7802_v58  ;;  %v7950_v28 = vld [vmem:[%s17818_s3 + $0x590] sm:$0xff]  ;;  %v14274_v34 = vcombine.low %v7822_v52, %v7826_v43 }
 0x5ce   :  { %11207 = vmatprep.subr.bf16.mxu1 %v14713_v50  ;;  %v14379_v50 = vcombine.high %v7926_v61, %v7930_v63  ;;  %v7954_v7 = vld [vmem:[%s17818_s3 + $0x5b0] sm:$0xff] }
 0x5cf   :  { %v7830_v10 = vld [vmem:[%s17818_s3 + $0x1d0] sm:$0xff] }
 0x5d0   :  { %11044 = vmatpush1.bf16.msra.mxu0 %v14710_v13  ;;  %v14250_v13 = vcombine.low %v7798_v44, %v7802_v58  ;;  %v7834_v45 = vld [vmem:[%s17818_s3 + $0x1f0] sm:$0xff] }
 0x5d1   :  { %11208 = vmatpush1.bf16.msra.mxu1 %v14712_v47  ;;  %11045 = vmatprep.subr.bf16.mxu0 %v14719_v16  ;;  %v14378_v47 = vcombine.low %v7926_v61, %v7930_v63  ;;  %v14259_v16 = vcombine.high %v7806_v3, %v7810_v39  ;;  %v7962_v42 = vld [vmem:[%s17818_s3 + $0x5f0] sm:$0xff] }
 0x5d2   :  { %11209 = vmatprep.subr.bf16.mxu1 %v14721_v19  ;;  %v14387_v19 = vcombine.high %v7934_v8, %v7938_v11  ;;  %v7838_v49 = vld [vmem:[%s17818_s3 + $0x210] sm:$0xff] }
 0x5d3   :  { %v7966_v2 = vld [vmem:[%s17818_s3 + $0x610] sm:$0xff] }
 0x5d4   :  { %11046 = vmatpush1.bf16.msra.mxu0 %v14718_v60  ;;  %v14258_v60 = vcombine.low %v7806_v3, %v7810_v39  ;;  %v7970_v25 = vld [vmem:[%s17818_s3 + $0x630] sm:$0xff] }
 0x5d5   :  { %11210 = vmatpush1.bf16.msra.mxu1 %v14720_v27  ;;  %11047 = vmatprep.subr.bf16.mxu0 %v14727_v29  ;;  %v14386_v27 = vcombine.low %v7934_v8, %v7938_v11  ;;  %v14267_v29 = vcombine.high %v7814_v20, %v7818_v5  ;;  %v7846_v44 = vld [vmem:[%s17818_s3 + $0x250] sm:$0xff] }
 0x5d6   :  { %11211 = vmatprep.subr.bf16.mxu1 %v14729_v37  ;;  %v14395_v37 = vcombine.high %v7942_v24, %v7946_v26  ;;  %v7850_v58 = vld [vmem:[%s17818_s3 + $0x270] sm:$0xff] }
 0x5d7   :  { %v7974_v61 = vld [vmem:[%s17818_s3 + $0x650] sm:$0xff] }
 0x5d8   :  { %11048 = vmatpush1.bf16.msra.mxu0 %v14726_v21  ;;  %v14266_v21 = vcombine.low %v7814_v20, %v7818_v5  ;;  %v7978_v63 = vld [vmem:[%s17818_s3 + $0x670] sm:$0xff] }
 0x5d9   :  { %11212 = vmatpush1.bf16.msra.mxu1 %v14728_v35  ;;  %11222 = vmatprep.subr.bf16.mxu0 %v14227_v62  ;;  %v14394_v35 = vcombine.low %v7942_v24, %v7946_v26  ;;  %v14275_v62 = vcombine.high %v7822_v52, %v7826_v43  ;;  %v7854_v3 = vld [vmem:[%s17818_s3 + $0x290] sm:$0xff] }
 0x5da   :  { %11263 = vmatprep.subr.bf16.mxu1 %v14355_v36  ;;  %v14403_v36 = vcombine.high %v7950_v28, %v7954_v7  ;;  %v7858_v39 = vld [vmem:[%s17818_s3 + $0x2b0] sm:$0xff] }
 0x5db   :  { %11050 = vmatmul.mubr.bf16.vlgmr.msra.gmra.mrb[40].mxu0 %v16978_v33  ;;  %v7982_v8 = vld [vmem:[%s17818_s3 + $0x690] sm:$0xff] }
 0x5dc   :  { %11214 = vmatmul.mubr.bf16.vlgmr.msra.gmra.mrb[40].mxu1 %v16978_v33  ;;  %11223 = vmatpush1.bf16.msra.mxu0 %v14226_v54  ;;  %v7958_v54 = vld [vmem:[%s17818_s3 + $0x5d0] sm:$0xff] }
 0x5dd   :  { %11254 = vmatprep.mubr.bf16.mxu0 %v16120_v31  ;;  %11264 = vmatpush1.bf16.msra.mxu1 %v14354_v56  ;;  %v14402_v56 = vcombine.low %v7950_v28, %v7954_v7  ;;  %v14411_v41 = vcombine.high %v7958_v54, %v7962_v42  ;;  %v7986_v11 = vld [vmem:[%s17818_s3 + $0x6b0] sm:$0xff] }
 0x5de   :  { %11295 = vmatprep.mubr.bf16.mxu1 %v16340_v40  ;;  %11224 = vmatprep.subr.bf16.mxu0 %v14235_v48  ;;  %v14283_v48 = vcombine.high %v7830_v10, %v7834_v45  ;;  %v7862_v20 = vld [vmem:[%s17818_s3 + $0x2d0] sm:$0xff] }
 0x5df   :  { %11265 = vmatprep.subr.bf16.mxu1 %v14363_v12  ;;  %v7842_v12 = vld [vmem:[%s17818_s3 + $0x230] sm:$0xff] }
 0x5e0   :  { %11225 = vmatpush1.bf16.msra.mxu0 %v14234_v22  ;;  %v14282_v22 = vcombine.low %v7830_v10, %v7834_v45  ;;  %v7866_v5 = vld [vmem:[%s17818_s3 + $0x2f0] sm:$0xff] }
 0x5e1   :  { %11266 = vmatpush1.bf16.msra.mxu1 %v14362_v51  ;;  %11226 = vmatprep.subr.bf16.mxu0 %v14243_v23  ;;  %v14410_v51 = vcombine.low %v7958_v54, %v7962_v42  ;;  %v14291_v23 = vcombine.high %v7838_v49, %v7842_v12  ;;  %v7990_v24 = vld [vmem:[%s17818_s3 + $0x6d0] sm:$0xff] }
 0x5e2   :  { %11267 = vmatprep.subr.bf16.mxu1 %v14371_v53  ;;  %v14419_v53 = vcombine.high %v7966_v2, %v7970_v25  ;;  %v7994_v26 = vld [vmem:[%s17818_s3 + $0x6f0] sm:$0xff] }
 0x5e3   :  { %v7870_v52 = vld [vmem:[%s17818_s3 + $0x310] sm:$0xff] }
 0x5e4   :  { %11227 = vmatpush1.bf16.msra.mxu0 %v14242_v46  ;;  %v14290_v46 = vcombine.low %v7838_v49, %v7842_v12  ;;  %v7874_v43 = vld [vmem:[%s17818_s3 + $0x330] sm:$0xff] }
 0x5e5   :  { %11268 = vmatpush1.bf16.msra.mxu1 %v14370_v0  ;;  %11228 = vmatprep.subr.bf16.mxu0 %v14251_v1  ;;  %v14418_v0 = vcombine.low %v7966_v2, %v7970_v25  ;;  %v14299_v1 = vcombine.high %v7846_v44, %v7850_v58  ;;  %v7998_v28 = vld [vmem:[%s17818_s3 + $0x710] sm:$0xff] }
 0x5e6   :  { %11269 = vmatprep.subr.bf16.mxu1 %v14379_v50  ;;  %v14427_v50 = vcombine.high %v7974_v61, %v7978_v63  ;;  %v8002_v7 = vld [vmem:[%s17818_s3 + $0x730] sm:$0xff] }
 0x5e7   :  { %v7878_v10 = vld [vmem:[%s17818_s3 + $0x350] sm:$0xff] }
 0x5e8   :  { %11229 = vmatpush1.bf16.msra.mxu0 %v14250_v13  ;;  %v14298_v13 = vcombine.low %v7846_v44, %v7850_v58  ;;  %v7882_v45 = vld [vmem:[%s17818_s3 + $0x370] sm:$0xff] }
 0x5e9   :  { %11270 = vmatpush1.bf16.msra.mxu1 %v14378_v47  ;;  %11230 = vmatprep.subr.bf16.mxu0 %v14259_v16  ;;  %v14426_v47 = vcombine.low %v7974_v61, %v7978_v63  ;;  %v14307_v16 = vcombine.high %v7854_v3, %v7858_v39  ;;  %v8006_v54 = vld [vmem:[%s17818_s3 + $0x750] sm:$0xff] }
 0x5ea   :  { %11271 = vmatprep.subr.bf16.mxu1 %v14387_v19  ;;  %v14435_v19 = vcombine.high %v7982_v8, %v7986_v11  ;;  %v8010_v42 = vld [vmem:[%s17818_s3 + $0x770] sm:$0xff] }
 0x5eb   :  { %v7886_v49 = vld [vmem:[%s17818_s3 + $0x390] sm:$0xff] }
 0x5ec   :  { %11231 = vmatpush1.bf16.msra.mxu0 %v14258_v60  ;;  %v14306_v60 = vcombine.low %v7854_v3, %v7858_v39  ;;  %v7890_v12 = vld [vmem:[%s17818_s3 + $0x3b0] sm:$0xff] }
 0x5ed   :  { %11272 = vmatpush1.bf16.msra.mxu1 %v14386_v27  ;;  %11232 = vmatprep.subr.bf16.mxu0 %v14267_v29  ;;  %v14434_v27 = vcombine.low %v7982_v8, %v7986_v11  ;;  %v14315_v29 = vcombine.high %v7862_v20, %v7866_v5  ;;  %v8014_v2 = vld [vmem:[%s17818_s3 + $0x790] sm:$0xff] }
 0x5ee   :  { %11273 = vmatprep.subr.bf16.mxu1 %v14395_v37  ;;  %v14443_v37 = vcombine.high %v7990_v24, %v7994_v26  ;;  %v8018_v25 = vld [vmem:[%s17818_s3 + $0x7b0] sm:$0xff] }
 0x5ef   :  { %v7894_v44 = vld [vmem:[%s17818_s3 + $0x3d0] sm:$0xff] }
 0x5f0   :  { %11233 = vmatpush1.bf16.msra.mxu0 %v14266_v21  ;;  %v14314_v21 = vcombine.low %v7862_v20, %v7866_v5  ;;  %v7898_v58 = vld [vmem:[%s17818_s3 + $0x3f0] sm:$0xff] }
 0x5f1   :  { %11274 = vmatpush1.bf16.msra.mxu1 %v14394_v35  ;;  %11234 = vmatprep.subr.bf16.mxu0 %v14275_v62  ;;  %v14442_v35 = vcombine.low %v7990_v24, %v7994_v26  ;;  %v14323_v62 = vcombine.high %v7870_v52, %v7874_v43  ;;  %v8022_v61 = vld [vmem:[%s17818_s3 + $0x7d0] sm:$0xff] }
 0x5f2   :  { %11275 = vmatprep.subr.bf16.mxu1 %v14403_v36  ;;  %v14451_v36 = vcombine.high %v7998_v28, %v8002_v7  ;;  %v8026_v63 = vld [vmem:[%s17818_s3 + $0x7f0] sm:$0xff] }
 0x5f3   :  { %v8030_v3 = vld [vmem:[%s17818_s3 + $0x810] sm:$0xff] }
 0x5f4   :  { %11235 = vmatpush1.bf16.msra.mxu0 %v14274_v34  ;;  %v14322_v34 = vcombine.low %v7870_v52, %v7874_v43  ;;  %v8034_v39 = vld [vmem:[%s17818_s3 + $0x830] sm:$0xff] }
 0x5f5   :  { %11276 = vmatpush1.bf16.msra.mxu1 %v14402_v56  ;;  %11236 = vmatprep.subr.bf16.mxu0 %v14283_v48  ;;  %v14450_v56 = vcombine.low %v7998_v28, %v8002_v7  ;;  %v14331_v48 = vcombine.high %v7878_v10, %v7882_v45  ;;  %v8158_v8 = vld [vmem:[%s17818_s3 + $0xc10] sm:$0xff]  ;;  %v14482_v24 = vcombine.low %v8030_v3, %v8034_v39 }
 0x5f6   :  { %11277 = vmatprep.subr.bf16.mxu1 %v14411_v41  ;;  %v14459_v41 = vcombine.high %v8006_v54, %v8010_v42  ;;  %v8162_v11 = vld [vmem:[%s17818_s3 + $0xc30] sm:$0xff] }
 0x5f7   :  { %v8038_v20 = vld [vmem:[%s17818_s3 + $0x850] sm:$0xff] }
 0x5f8   :  { %11237 = vmatpush1.bf16.msra.mxu0 %v14282_v22  ;;  %v14330_v22 = vcombine.low %v7878_v10, %v7882_v45  ;;  %v8042_v5 = vld [vmem:[%s17818_s3 + $0x870] sm:$0xff] }
 0x5f9   :  { %11278 = vmatpush1.bf16.msra.mxu1 %v14410_v51  ;;  %11238 = vmatprep.subr.bf16.mxu0 %v14291_v23  ;;  %v14458_v51 = vcombine.low %v8006_v54, %v8010_v42  ;;  %v14339_v23 = vcombine.high %v7886_v49, %v7890_v12  ;;  %v8166_v26 = vld [vmem:[%s17818_s3 + $0xc50] sm:$0xff] }
 0x5fa   :  { %11279 = vmatprep.subr.bf16.mxu1 %v14419_v53  ;;  %v14467_v53 = vcombine.high %v8014_v2, %v8018_v25  ;;  %v8050_v52 = vld [vmem:[%s17818_s3 + $0x8b0] sm:$0xff] }
 0x5fb   :  { %v8174_v28 = vld [vmem:[%s17818_s3 + $0xc90] sm:$0xff] }
 0x5fc   :  { %11239 = vmatpush1.bf16.msra.mxu0 %v14290_v46  ;;  %v14338_v46 = vcombine.low %v7886_v49, %v7890_v12  ;;  %v8178_v7 = vld [vmem:[%s17818_s3 + $0xcb0] sm:$0xff] }
 0x5fd   :  { %11280 = vmatpush1.bf16.msra.mxu1 %v14418_v0  ;;  %11240 = vmatprep.subr.bf16.mxu0 %v14299_v1  ;;  %v14466_v0 = vcombine.low %v8014_v2, %v8018_v25  ;;  %v14347_v1 = vcombine.high %v7894_v44, %v7898_v58  ;;  %v8054_v10 = vld [vmem:[%s17818_s3 + $0x8d0] sm:$0xff] }
 0x5fe   :  { %11281 = vmatprep.subr.bf16.mxu1 %v14427_v50  ;;  %v14475_v50 = vcombine.high %v8022_v61, %v8026_v63  ;;  %v8058_v45 = vld [vmem:[%s17818_s3 + $0x8f0] sm:$0xff] }
 0x5ff   :  { %v8182_v54 = vld [vmem:[%s17818_s3 + $0xcd0] sm:$0xff] }
 0x600   :  { %11241 = vmatpush1.bf16.msra.mxu0 %v14298_v13  ;;  %v14346_v13 = vcombine.low %v7894_v44, %v7898_v58  ;;  %v8186_v42 = vld [vmem:[%s17818_s3 + $0xcf0] sm:$0xff] }
 0x601   :  { %11282 = vmatpush1.bf16.msra.mxu1 %v14426_v47  ;;  %11242 = vmatprep.subr.bf16.mxu0 %v14307_v16  ;;  %v14474_v47 = vcombine.low %v8022_v61, %v8026_v63  ;;  %v14483_v16 = vcombine.high %v8030_v3, %v8034_v39  ;;  %v8062_v49 = vld [vmem:[%s17818_s3 + $0x910] sm:$0xff] }
 0x602   :  { %11283 = vmatprep.subr.bf16.mxu1 %v14435_v19  ;;  %v14611_v19 = vcombine.high %v8158_v8, %v8162_v11  ;;  %v8066_v12 = vld [vmem:[%s17818_s3 + $0x930] sm:$0xff] }
 0x603   :  { %v8190_v2 = vld [vmem:[%s17818_s3 + $0xd10] sm:$0xff] }
 0x604   :  { %11243 = vmatpush1.bf16.msra.mxu0 %v14306_v60  ;;  %v8170_v60 = vld [vmem:[%s17818_s3 + $0xc70] sm:$0xff] }
 0x605   :  { %11284 = vmatpush1.bf16.msra.mxu1 %v14434_v27  ;;  %11244 = vmatprep.subr.bf16.mxu0 %v14315_v29  ;;  %v14610_v27 = vcombine.low %v8158_v8, %v8162_v11  ;;  %v14491_v29 = vcombine.high %v8038_v20, %v8042_v5  ;;  %v14619_v43 = vcombine.high %v8166_v26, %v8170_v60  ;;  %v8194_v25 = vld [vmem:[%s17818_s3 + $0xd30] sm:$0xff] }
 0x606   :  { %11285 = vmatprep.subr.bf16.mxu1 %v14443_v37  ;;  %v8046_v37 = vld [vmem:[%s17818_s3 + $0x890] sm:$0xff] }
 0x607   :  { %v8070_v44 = vld [vmem:[%s17818_s3 + $0x950] sm:$0xff] }
 0x608   :  { %11245 = vmatpush1.bf16.msra.mxu0 %v14314_v21  ;;  %v14490_v21 = vcombine.low %v8038_v20, %v8042_v5  ;;  %v8074_v58 = vld [vmem:[%s17818_s3 + $0x970] sm:$0xff] }
 0x609   :  { %11286 = vmatpush1.bf16.msra.mxu1 %v14442_v35  ;;  %11246 = vmatprep.subr.bf16.mxu0 %v14323_v62  ;;  %v14618_v35 = vcombine.low %v8166_v26, %v8170_v60  ;;  %v14499_v62 = vcombine.high %v8046_v37, %v8050_v52  ;;  %v8198_v61 = vld [vmem:[%s17818_s3 + $0xd50] sm:$0xff] }
 0x60a   :  { %11287 = vmatprep.subr.bf16.mxu1 %v14451_v36  ;;  %v14627_v36 = vcombine.high %v8174_v28, %v8178_v7  ;;  %v8202_v63 = vld [vmem:[%s17818_s3 + $0xd70] sm:$0xff] }
 0x60b   :  { %v8078_v3 = vld [vmem:[%s17818_s3 + $0x990] sm:$0xff] }
 0x60c   :  { %11247 = vmatpush1.bf16.msra.mxu0 %v14322_v34  ;;  %v14498_v34 = vcombine.low %v8046_v37, %v8050_v52  ;;  %v8082_v39 = vld [vmem:[%s17818_s3 + $0x9b0] sm:$0xff] }
 0x60d   :  { %11288 = vmatpush1.bf16.msra.mxu1 %v14450_v56  ;;  %11248 = vmatprep.subr.bf16.mxu0 %v14331_v48  ;;  %v14626_v56 = vcombine.low %v8174_v28, %v8178_v7  ;;  %v14507_v48 = vcombine.high %v8054_v10, %v8058_v45  ;;  %v8206_v8 = vld [vmem:[%s17818_s3 + $0xd90] sm:$0xff]  ;;  %v14530_v60 = vcombine.low %v8078_v3, %v8082_v39 }
 0x60e   :  { %11289 = vmatprep.subr.bf16.mxu1 %v14459_v41  ;;  %v14635_v41 = vcombine.high %v8182_v54, %v8186_v42  ;;  %v8210_v11 = vld [vmem:[%s17818_s3 + $0xdb0] sm:$0xff] }
 0x60f   :  { %v8086_v20 = vld [vmem:[%s17818_s3 + $0x9d0] sm:$0xff] }
 0x610   :  { %11249 = vmatpush1.bf16.msra.mxu0 %v14330_v22  ;;  %v14506_v22 = vcombine.low %v8054_v10, %v8058_v45  ;;  %v8090_v5 = vld [vmem:[%s17818_s3 + $0x9f0] sm:$0xff] }
 0x611   :  { %11290 = vmatpush1.bf16.msra.mxu1 %v14458_v51  ;;  %11250 = vmatprep.subr.bf16.mxu0 %v14339_v23  ;;  %v14634_v51 = vcombine.low %v8182_v54, %v8186_v42  ;;  %v14515_v23 = vcombine.high %v8062_v49, %v8066_v12  ;;  %v8218_v26 = vld [vmem:[%s17818_s3 + $0xdf0] sm:$0xff] }
 0x612   :  { %11291 = vmatprep.subr.bf16.mxu1 %v14467_v53  ;;  %v14643_v53 = vcombine.high %v8190_v2, %v8194_v25  ;;  %v8094_v52 = vld [vmem:[%s17818_s3 + $0xa10] sm:$0xff] }
 0x613   :  { %v8222_v28 = vld [vmem:[%s17818_s3 + $0xe10] sm:$0xff] }
 0x614   :  { %11251 = vmatpush1.bf16.msra.mxu0 %v14338_v46  ;;  %v14514_v46 = vcombine.low %v8062_v49, %v8066_v12  ;;  %v8226_v7 = vld [vmem:[%s17818_s3 + $0xe30] sm:$0xff] }
 0x615   :  { %11292 = vmatpush1.bf16.msra.mxu1 %v14466_v0  ;;  %11252 = vmatprep.subr.bf16.mxu0 %v14347_v1  ;;  %v14642_v0 = vcombine.low %v8190_v2, %v8194_v25  ;;  %v14523_v1 = vcombine.high %v8070_v44, %v8074_v58  ;;  %v8102_v10 = vld [vmem:[%s17818_s3 + $0xa50] sm:$0xff] }
 0x616   :  { %11293 = vmatprep.subr.bf16.mxu1 %v14475_v50  ;;  %v14651_v50 = vcombine.high %v8198_v61, %v8202_v63  ;;  %v8106_v45 = vld [vmem:[%s17818_s3 + $0xa70] sm:$0xff] }
 0x617   :  { %v8230_v54 = vld [vmem:[%s17818_s3 + $0xe50] sm:$0xff] }
 0x618   :  { %11253 = vmatpush1.bf16.msra.mxu0 %v14346_v13  ;;  %v14522_v13 = vcombine.low %v8070_v44, %v8074_v58  ;;  %v8234_v42 = vld [vmem:[%s17818_s3 + $0xe70] sm:$0xff] }
 0x619   :  { %11294 = vmatpush1.bf16.msra.mxu1 %v14474_v47  ;;  %11304 = vmatprep.subr.bf16.mxu0 %v14483_v16  ;;  %v14650_v47 = vcombine.low %v8198_v61, %v8202_v63  ;;  %v14531_v16 = vcombine.high %v8078_v3, %v8082_v39  ;;  %v8110_v49 = vld [vmem:[%s17818_s3 + $0xa90] sm:$0xff] }
 0x61a   :  { %11345 = vmatprep.subr.bf16.mxu1 %v14611_v19  ;;  %v14659_v19 = vcombine.high %v8206_v8, %v8210_v11  ;;  %v8114_v12 = vld [vmem:[%s17818_s3 + $0xab0] sm:$0xff] }
 0x61b   :  { %11255 = vmatmul.mubr.bf16.vlgmr.msra.gmra.mrb[44].mxu0 %v16330_v17  ;;  %v8238_v2 = vld [vmem:[%s17818_s3 + $0xe90] sm:$0xff] }
 0x61c   :  { %11296 = vmatmul.mubr.bf16.vlgmr.msra.gmra.mrb[44].mxu1 %v16548_v38  ;;  %11305 = vmatpush1.bf16.msra.mxu0 %v14482_v24  ;;  %v8214_v24 = vld [vmem:[%s17818_s3 + $0xdd0] sm:$0xff] }
 0x61d   :  { %11336 = vmatprep.mubr.bf16.mxu0 %v16558_v57  ;;  %11346 = vmatpush1.bf16.msra.mxu1 %v14610_v27  ;;  %v14658_v27 = vcombine.low %v8206_v8, %v8210_v11  ;;  %v14667_v37 = vcombine.high %v8214_v24, %v8218_v26  ;;  %v8242_v25 = vld [vmem:[%s17818_s3 + $0xeb0] sm:$0xff] }
 0x61e   :  { %11377 = vmatprep.mubr.bf16.mxu1 %v16864_v15  ;;  %11306 = vmatprep.subr.bf16.mxu0 %v14491_v29  ;;  %v14539_v29 = vcombine.high %v8086_v20, %v8090_v5  ;;  %v8118_v44 = vld [vmem:[%s17818_s3 + $0xad0] sm:$0xff] }
 0x61f   :  { %11347 = vmatprep.subr.bf16.mxu1 %v14619_v43  ;;  %v8098_v43 = vld [vmem:[%s17818_s3 + $0xa30] sm:$0xff] }
 0x620   :  { %11307 = vmatpush1.bf16.msra.mxu0 %v14490_v21  ;;  %v14538_v21 = vcombine.low %v8086_v20, %v8090_v5  ;;  %v8122_v58 = vld [vmem:[%s17818_s3 + $0xaf0] sm:$0xff] }
 0x621   :  { %11348 = vmatpush1.bf16.msra.mxu1 %v14618_v35  ;;  %11308 = vmatprep.subr.bf16.mxu0 %v14499_v62  ;;  %v14666_v35 = vcombine.low %v8214_v24, %v8218_v26  ;;  %v14547_v62 = vcombine.high %v8094_v52, %v8098_v43  ;;  %v8246_v61 = vld [vmem:[%s17818_s3 + $0xed0] sm:$0xff] }
 0x622   :  { %11349 = vmatprep.subr.bf16.mxu1 %v14627_v36  ;;  %v14675_v36 = vcombine.high %v8222_v28, %v8226_v7  ;;  %v8250_v63 = vld [vmem:[%s17818_s3 + $0xef0] sm:$0xff] }
 0x623   :  { %v8126_v3 = vld [vmem:[%s17818_s3 + $0xb10] sm:$0xff] }
 0x624   :  { %11309 = vmatpush1.bf16.msra.mxu0 %v14498_v34  ;;  %v14546_v34 = vcombine.low %v8094_v52, %v8098_v43  ;;  %v8130_v39 = vld [vmem:[%s17818_s3 + $0xb30] sm:$0xff] }
 0x625   :  { %11350 = vmatpush1.bf16.msra.mxu1 %v14626_v56  ;;  %11310 = vmatprep.subr.bf16.mxu0 %v14507_v48  ;;  %v14674_v56 = vcombine.low %v8222_v28, %v8226_v7  ;;  %v14555_v48 = vcombine.high %v8102_v10, %v8106_v45  ;;  %v8254_v8 = vld [vmem:[%s17818_s3 + $0xf10] sm:$0xff] }
 0x626   :  { %11351 = vmatprep.subr.bf16.mxu1 %v14635_v41  ;;  %v14683_v41 = vcombine.high %v8230_v54, %v8234_v42  ;;  %v8258_v11 = vld [vmem:[%s17818_s3 + $0xf30] sm:$0xff] }
 0x627   :  { %v8134_v20 = vld [vmem:[%s17818_s3 + $0xb50] sm:$0xff] }
 0x628   :  { %11311 = vmatpush1.bf16.msra.mxu0 %v14506_v22  ;;  %v14554_v22 = vcombine.low %v8102_v10, %v8106_v45  ;;  %v8138_v5 = vld [vmem:[%s17818_s3 + $0xb70] sm:$0xff] }
 0x629   :  { %11352 = vmatpush1.bf16.msra.mxu1 %v14634_v51  ;;  %11312 = vmatprep.subr.bf16.mxu0 %v14515_v23  ;;  %v14682_v51 = vcombine.low %v8230_v54, %v8234_v42  ;;  %v14563_v23 = vcombine.high %v8110_v49, %v8114_v12  ;;  %v8262_v24 = vld [vmem:[%s17818_s3 + $0xf50] sm:$0xff] }
 0x62a   :  { %11353 = vmatprep.subr.bf16.mxu1 %v14643_v53  ;;  %v14691_v53 = vcombine.high %v8238_v2, %v8242_v25  ;;  %v8266_v26 = vld [vmem:[%s17818_s3 + $0xf70] sm:$0xff] }
 0x62b   :  { %v8142_v52 = vld [vmem:[%s17818_s3 + $0xb90] sm:$0xff] }
 0x62c   :  { %11313 = vmatpush1.bf16.msra.mxu0 %v14514_v46  ;;  %v14562_v46 = vcombine.low %v8110_v49, %v8114_v12  ;;  %v8146_v43 = vld [vmem:[%s17818_s3 + $0xbb0] sm:$0xff]  ;;  %v7775_v49 = vld [vmem:[%s17818_s3 + $0x18] sm:$0xff] }
 0x62d   :  { %11354 = vmatpush1.bf16.msra.mxu1 %v14642_v0  ;;  %11314 = vmatprep.subr.bf16.mxu0 %v14523_v1  ;;  %v14690_v0 = vcombine.low %v8238_v2, %v8242_v25  ;;  %v14571_v1 = vcombine.high %v8118_v44, %v8122_v58  ;;  %v8270_v28 = vld [vmem:[%s17818_s3 + $0xf90] sm:$0xff]  ;;  %v7779_v12 = vld [vmem:[%s17818_s3 + $0x38] sm:$0xff] }
 0x62e   :  { %11355 = vmatprep.subr.bf16.mxu1 %v14651_v50  ;;  %v14699_v50 = vcombine.high %v8246_v61, %v8250_v63  ;;  %v8274_v7 = vld [vmem:[%s17818_s3 + $0xfb0] sm:$0xff]  ;;  %v7903_v2 = vld [vmem:[%s17818_s3 + $0x418] sm:$0xff] }
 0x62f   :  { %v8150_v10 = vld [vmem:[%s17818_s3 + $0xbd0] sm:$0xff]  ;;  %v7907_v25 = vld [vmem:[%s17818_s3 + $0x438] sm:$0xff] }
 0x630   :  { %11315 = vmatpush1.bf16.msra.mxu0 %v14522_v13  ;;  %v14570_v13 = vcombine.low %v8118_v44, %v8122_v58  ;;  %v8154_v45 = vld [vmem:[%s17818_s3 + $0xbf0] sm:$0xff]  ;;  %v7783_v44 = vld [vmem:[%s17818_s3 + $0x58] sm:$0xff] }
 0x631   :  { %11356 = vmatpush1.bf16.msra.mxu1 %v14650_v47  ;;  %11316 = vmatprep.subr.bf16.mxu0 %v14531_v16  ;;  %v14698_v47 = vcombine.low %v8246_v61, %v8250_v63  ;;  %v14579_v16 = vcombine.high %v8126_v3, %v8130_v39  ;;  %v8278_v54 = vld [vmem:[%s17818_s3 + $0xfd0] sm:$0xff]  ;;  %v7787_v58 = vld [vmem:[%s17818_s3 + $0x78] sm:$0xff]  ;;  %v14228_v61 = vcombine.low %v7775_v49, %v7779_v12 }
 0x632   :  { %11357 = vmatprep.subr.bf16.mxu1 %v14659_v19  ;;  %v14707_v19 = vcombine.high %v8254_v8, %v8258_v11  ;;  %v8282_v42 = vld [vmem:[%s17818_s3 + $0xff0] sm:$0xff]  ;;  %v7911_v63 = vld [vmem:[%s17818_s3 + $0x458] sm:$0xff] }
 0x634   :  { %11317 = vmatpush1.bf16.msra.mxu0 %v14530_v60  ;;  %v14578_v60 = vcombine.low %v8126_v3, %v8130_v39  ;;  %v7795_v3 = vld [vmem:[%s17818_s3 + $0xb8] sm:$0xff] }
 0x635   :  { %11358 = vmatpush1.bf16.msra.mxu1 %v14658_v27  ;;  %11318 = vmatprep.subr.bf16.mxu0 %v14539_v29  ;;  %v14706_v27 = vcombine.low %v8254_v8, %v8258_v11  ;;  %v14587_v29 = vcombine.high %v8134_v20, %v8138_v5  ;;  %v7919_v8 = vld [vmem:[%s17818_s3 + $0x498] sm:$0xff] }
 0x636   :  { %11359 = vmatprep.subr.bf16.mxu1 %v14667_v37  ;;  %v14715_v37 = vcombine.high %v8262_v24, %v8266_v26  ;;  %v7923_v11 = vld [vmem:[%s17818_s3 + $0x4b8] sm:$0xff] }
 0x638   :  { %11319 = vmatpush1.bf16.msra.mxu0 %v14538_v21  ;;  %v14586_v21 = vcombine.low %v8134_v20, %v8138_v5  ;;  %v7799_v20 = vld [vmem:[%s17818_s3 + $0xd8] sm:$0xff] }
 0x639   :  { %11360 = vmatpush1.bf16.msra.mxu1 %v14666_v35  ;;  %11320 = vmatprep.subr.bf16.mxu0 %v14547_v62  ;;  %v14714_v35 = vcombine.low %v8262_v24, %v8266_v26  ;;  %v14595_v62 = vcombine.high %v8142_v52, %v8146_v43  ;;  %v7803_v5 = vld [vmem:[%s17818_s3 + $0xf8] sm:$0xff]  ;;  %v14372_v26 = vcombine.low %v7919_v8, %v7923_v11 }
 0x63a   :  { %11361 = vmatprep.subr.bf16.mxu1 %v14675_v36  ;;  %v14723_v36 = vcombine.high %v8270_v28, %v8274_v7  ;;  %v7931_v24 = vld [vmem:[%s17818_s3 + $0x4f8] sm:$0xff] }
 0x63c   :  { %11321 = vmatpush1.bf16.msra.mxu0 %v14546_v34  ;;  %v14594_v34 = vcombine.low %v8142_v52, %v8146_v43  ;;  %v7935_v52 = vld [vmem:[%s17818_s3 + $0x518] sm:$0xff] }
 0x63d   :  { %11362 = vmatpush1.bf16.msra.mxu1 %v14674_v56  ;;  %11322 = vmatprep.subr.bf16.mxu0 %v14555_v48  ;;  %v14722_v56 = vcombine.low %v8270_v28, %v8274_v7  ;;  %v14603_v48 = vcombine.high %v8150_v10, %v8154_v45  ;;  %v7939_v43 = vld [vmem:[%s17818_s3 + $0x538] sm:$0xff]  ;;  %v14252_v28 = vcombine.low %v7799_v20, %v7803_v5 }
 0x63e   :  { %11363 = vmatprep.subr.bf16.mxu1 %v14683_v41  ;;  %v14731_v41 = vcombine.high %v8278_v54, %v8282_v42 }
 0x640   :  { %11323 = vmatpush1.bf16.msra.mxu0 %v14554_v22  ;;  %v14602_v22 = vcombine.low %v8150_v10, %v8154_v45  ;;  %v7943_v10 = vld [vmem:[%s17818_s3 + $0x558] sm:$0xff] }
 0x641   :  { %11364 = vmatpush1.bf16.msra.mxu1 %v14682_v51  ;;  %11324 = vmatprep.subr.bf16.mxu0 %v14563_v23  ;;  %v14730_v51 = vcombine.low %v8278_v54, %v8282_v42  ;;  %v14229_v23 = vcombine.high %v7775_v49, %v7779_v12  ;;  %v7947_v45 = vld [vmem:[%s17818_s3 + $0x578] sm:$0xff]  ;;  %v14388_v42 = vcombine.low %v7935_v52, %v7939_v43 }
 0x642   :  { %11365 = vmatprep.subr.bf16.mxu1 %v14691_v53  ;;  %v14357_v53 = vcombine.high %v7903_v2, %v7907_v25  ;;  %v7951_v49 = vld [vmem:[%s17818_s3 + $0x598] sm:$0xff] }
 0x643   :  { %v7955_v12 = vld [vmem:[%s17818_s3 + $0x5b8] sm:$0xff] }
 0x644   :  { %11325 = vmatpush1.bf16.msra.mxu0 %v14562_v46  ;;  %v7915_v46 = vld [vmem:[%s17818_s3 + $0x478] sm:$0xff] }
 0x645   :  { %11366 = vmatpush1.bf16.msra.mxu1 %v14690_v0  ;;  %11326 = vmatprep.subr.bf16.mxu0 %v14571_v1  ;;  %v14356_v0 = vcombine.low %v7903_v2, %v7907_v25  ;;  %v14237_v1 = vcombine.high %v7783_v44, %v7787_v58  ;;  %v14365_v39 = vcombine.high %v7911_v63, %v7915_v46 }
 0x646   :  { %11367 = vmatprep.subr.bf16.mxu1 %v14699_v50  ;;  %v7791_v50 = vld [vmem:[%s17818_s3 + $0x98] sm:$0xff]  ;;  %v14396_v25 = vcombine.low %v7943_v10, %v7947_v45 }
 0x648   :  { %11327 = vmatpush1.bf16.msra.mxu0 %v14570_v13  ;;  %v14236_v13 = vcombine.low %v7783_v44, %v7787_v58  ;;  %v7959_v44 = vld [vmem:[%s17818_s3 + $0x5d8] sm:$0xff] }
 0x649   :  { %11368 = vmatpush1.bf16.msra.mxu1 %v14698_v47  ;;  %11328 = vmatprep.subr.bf16.mxu0 %v14579_v16  ;;  %v14364_v47 = vcombine.low %v7911_v63, %v7915_v46  ;;  %v14245_v16 = vcombine.high %v7791_v50, %v7795_v3  ;;  %v7963_v58 = vld [vmem:[%s17818_s3 + $0x5f8] sm:$0xff]  ;;  %v14404_v63 = vcombine.low %v7951_v49, %v7955_v12 }
 0x64a   :  { %11369 = vmatprep.subr.bf16.mxu1 %v14707_v19  ;;  %v14373_v19 = vcombine.high %v7919_v8, %v7923_v11  ;;  %v14412_v11 = vcombine.low %v7959_v44, %v7963_v58 }
 0x64c   :  { %11329 = vmatpush1.bf16.msra.mxu0 %v14578_v60  ;;  %v14253_v60 = vcombine.high %v7799_v20, %v7803_v5  ;;  %v7975_v20 = vld [vmem:[%s17818_s3 + $0x658] sm:$0xff] }
 0x64d   :  { %11370 = vmatpush1.bf16.msra.mxu1 %v14706_v27  ;;  %11330 = vmatprep.subr.bf16.mxu0 %v14587_v29  ;;  %v7807_v29 = vld [vmem:[%s17818_s3 + $0x118] sm:$0xff] }
 0x64e   :  { %11371 = vmatprep.subr.bf16.mxu1 %v14715_v37  ;;  %v7811_v37 = vld [vmem:[%s17818_s3 + $0x138] sm:$0xff] }
 0x64f   :  { %v14260_v54 = vcombine.low %v7807_v29, %v7811_v37  ;;  %v7979_v5 = vld [vmem:[%s17818_s3 + $0x678] sm:$0xff] }
 0x650   :  { %11331 = vmatpush1.bf16.msra.mxu0 %v14586_v21  ;;  %v14261_v21 = vcombine.high %v7807_v29, %v7811_v37  ;;  %v7983_v29 = vld [vmem:[%s17818_s3 + $0x698] sm:$0xff] }
 0x651   :  { %11372 = vmatpush1.bf16.msra.mxu1 %v14714_v35  ;;  %11332 = vmatprep.subr.bf16.mxu0 %v14595_v62  ;;  %v14389_v35 = vcombine.high %v7935_v52, %v7939_v43  ;;  %v7815_v62 = vld [vmem:[%s17818_s3 + $0x158] sm:$0xff]  ;;  %v14428_v43 = vcombine.low %v7975_v20, %v7979_v5 }
 0x652   :  { %11373 = vmatprep.subr.bf16.mxu1 %v14723_v36  ;;  %v7819_v36 = vld [vmem:[%s17818_s3 + $0x178] sm:$0xff] }
 0x653   :  { %v14268_v2 = vcombine.low %v7815_v62, %v7819_v36  ;;  %v7987_v37 = vld [vmem:[%s17818_s3 + $0x6b8] sm:$0xff] }
 0x654   :  { %11333 = vmatpush1.bf16.msra.mxu0 %v14594_v34  ;;  %v14269_v34 = vcombine.high %v7815_v62, %v7819_v36  ;;  %v7991_v62 = vld [vmem:[%s17818_s3 + $0x6d8] sm:$0xff] }
 0x655   :  { %11374 = vmatpush1.bf16.msra.mxu1 %v14722_v56  ;;  %11334 = vmatprep.subr.bf16.mxu0 %v14603_v48  ;;  %v14397_v56 = vcombine.high %v7943_v10, %v7947_v45  ;;  %v7823_v48 = vld [vmem:[%s17818_s3 + $0x198] sm:$0xff]  ;;  %v14436_v45 = vcombine.low %v7983_v29, %v7987_v37 }
 0x656   :  { %11375 = vmatprep.subr.bf16.mxu1 %v14731_v41  ;;  %v7827_v41 = vld [vmem:[%s17818_s3 + $0x1b8] sm:$0xff] }
 0x657   :  { %v7995_v36 = vld [vmem:[%s17818_s3 + $0x6f8] sm:$0xff] }
 0x658   :  { %11335 = vmatpush1.bf16.msra.mxu0 %v14602_v22  ;;  %v14277_v22 = vcombine.high %v7823_v48, %v7827_v41 }
 0x659   :  { %11376 = vmatpush1.bf16.msra.mxu1 %v14730_v51  ;;  %11386 = vmatprep.subr.bf16.mxu0 %v14229_v23  ;;  %v14405_v51 = vcombine.high %v7951_v49, %v7955_v12  ;;  %v7831_v23 = vld [vmem:[%s17818_s3 + $0x1d8] sm:$0xff]  ;;  %v14444_v12 = vcombine.low %v7991_v62, %v7995_v36 }
 0x65a   :  { %11427 = vmatprep.subr.bf16.mxu1 %v14357_v53  ;;  %v7835_v53 = vld [vmem:[%s17818_s3 + $0x1f8] sm:$0xff] }
 0x65b   :  { %11337 = vmatmul.mubr.bf16.vlgmr.msra.gmra.mrb[48].mxu0 %v16766_v30  ;;  %v14285_v46 = vcombine.high %v7831_v23, %v7835_v53  ;;  %v14284_v8 = vcombine.low %v7831_v23, %v7835_v53  ;;  %v8007_v23 = vld [vmem:[%s17818_s3 + $0x758] sm:$0xff] }
 0x65c   :  { %11378 = vmatmul.mubr.bf16.vlgmr.msra.gmra.mrb[48].mxu1 %v16978_v33  ;;  %11387 = vmatpush1.bf16.msra.mxu0 %v14228_v61  ;;  %v14276_v61 = vcombine.low %v7823_v48, %v7827_v41  ;;  %v7999_v48 = vld [vmem:[%s17818_s3 + $0x718] sm:$0xff] }
 0x65d   :  { %11418 = vmatprep.mubr.bf16.mxu0 %v16120_v31  ;;  %11428 = vmatpush1.bf16.msra.mxu1 %v14356_v0  ;;  %v7927_v31 = vld [vmem:[%s17818_s3 + $0x4d8] sm:$0xff]  ;;  %v14413_v0 = vcombine.high %v7959_v44, %v7963_v58 }
 0x65e   :  { %11459 = vmatprep.mubr.bf16.mxu1 %v16340_v40  ;;  %11388 = vmatprep.subr.bf16.mxu0 %v14237_v1  ;;  %v14244_v40 = vcombine.low %v7791_v50, %v7795_v3  ;;  %v14381_v27 = vcombine.high %v7927_v31, %v7931_v24  ;;  %v14380_v7 = vcombine.low %v7927_v31, %v7931_v24  ;;  %v7839_v1 = vld [vmem:[%s17818_s3 + $0x218] sm:$0xff] }
 0x65f   :  { %11429 = vmatprep.subr.bf16.mxu1 %v14365_v39  ;;  %v7843_v50 = vld [vmem:[%s17818_s3 + $0x238] sm:$0xff] }
 0x660   :  { %11389 = vmatpush1.bf16.msra.mxu0 %v14236_v13  ;;  %v7967_v3 = vld [vmem:[%s17818_s3 + $0x618] sm:$0xff]  ;;  %v14293_v13 = vcombine.high %v7839_v1, %v7843_v50  ;;  %v14292_v31 = vcombine.low %v7839_v1, %v7843_v50 }
 0x661   :  { %11430 = vmatpush1.bf16.msra.mxu1 %v14364_v47  ;;  %11390 = vmatprep.subr.bf16.mxu0 %v14245_v16  ;;  %v7971_v39 = vld [vmem:[%s17818_s3 + $0x638] sm:$0xff] }
 0x662   :  { %11431 = vmatprep.subr.bf16.mxu1 %v14373_v19  ;;  %v14421_v47 = vcombine.high %v7967_v3, %v7971_v39  ;;  %v7847_v16 = vld [vmem:[%s17818_s3 + $0x258] sm:$0xff]  ;;  %v14420_v24 = vcombine.low %v7967_v3, %v7971_v39 }
 0x663   :  { %v7851_v19 = vld [vmem:[%s17818_s3 + $0x278] sm:$0xff] }
 0x664   :  { %11391 = vmatpush1.bf16.msra.mxu0 %v14244_v40  ;;  %v14301_v40 = vcombine.high %v7847_v16, %v7851_v19  ;;  %v14300_v52 = vcombine.low %v7847_v16, %v7851_v19  ;;  %v8003_v41 = vld [vmem:[%s17818_s3 + $0x738] sm:$0xff] }
 0x665   :  { %11432 = vmatpush1.bf16.msra.mxu1 %v14372_v26  ;;  %11392 = vmatprep.subr.bf16.mxu0 %v14253_v60  ;;  %v14429_v26 = vcombine.high %v7975_v20, %v7979_v5  ;;  %v7855_v60 = vld [vmem:[%s17818_s3 + $0x298] sm:$0xff]  ;;  %v14452_v58 = vcombine.low %v7999_v48, %v8003_v41 }
 0x666   :  { %11433 = vmatprep.subr.bf16.mxu1 %v14381_v27  ;;  %v7859_v27 = vld [vmem:[%s17818_s3 + $0x2b8] sm:$0xff] }
 0x667   :  { %v14308_v10 = vcombine.low %v7855_v60, %v7859_v27  ;;  %v8011_v53 = vld [vmem:[%s17818_s3 + $0x778] sm:$0xff] }
 0x668   :  { %11393 = vmatpush1.bf16.msra.mxu0 %v14252_v28  ;;  %v14309_v28 = vcombine.high %v7855_v60, %v7859_v27  ;;  %v8015_v1 = vld [vmem:[%s17818_s3 + $0x798] sm:$0xff]  ;;  %v14460_v39 = vcombine.low %v8007_v23, %v8011_v53 }
 0x669   :  { %11434 = vmatpush1.bf16.msra.mxu1 %v14380_v7  ;;  %11394 = vmatprep.subr.bf16.mxu0 %v14261_v21  ;;  %v14437_v7 = vcombine.high %v7983_v29, %v7987_v37  ;;  %v7863_v21 = vld [vmem:[%s17818_s3 + $0x2d8] sm:$0xff] }
 0x66a   :  { %11435 = vmatprep.subr.bf16.mxu1 %v14389_v35  ;;  %v7867_v35 = vld [vmem:[%s17818_s3 + $0x2f8] sm:$0xff] }
 0x66b   :  { %v14316_v49 = vcombine.low %v7863_v21, %v7867_v35  ;;  %v8019_v50 = vld [vmem:[%s17818_s3 + $0x7b8] sm:$0xff] }
 0x66c   :  { %11395 = vmatpush1.bf16.msra.mxu0 %v14260_v54  ;;  %v14317_v54 = vcombine.high %v7863_v21, %v7867_v35  ;;  %v8023_v16 = vld [vmem:[%s17818_s3 + $0x7d8] sm:$0xff]  ;;  %v14468_v5 = vcombine.low %v8015_v1, %v8019_v50 }
 0x66d   :  { %11436 = vmatpush1.bf16.msra.mxu1 %v14388_v42  ;;  %11396 = vmatprep.subr.bf16.mxu0 %v14269_v34  ;;  %v14445_v42 = vcombine.high %v7991_v62, %v7995_v36  ;;  %v7871_v34 = vld [vmem:[%s17818_s3 + $0x318] sm:$0xff] }
 0x66e   :  { %11437 = vmatprep.subr.bf16.mxu1 %v14397_v56  ;;  %v7875_v56 = vld [vmem:[%s17818_s3 + $0x338] sm:$0xff] }
 0x66f   :  { %v14324_v44 = vcombine.low %v7871_v34, %v7875_v56  ;;  %v8027_v19 = vld [vmem:[%s17818_s3 + $0x7f8] sm:$0xff] }
 0x670   :  { %11397 = vmatpush1.bf16.msra.mxu0 %v14268_v2  ;;  %v14325_v2 = vcombine.high %v7871_v34, %v7875_v56  ;;  %v8159_v60 = vld [vmem:[%s17818_s3 + $0xc18] sm:$0xff]  ;;  %v14476_v37 = vcombine.low %v8023_v16, %v8027_v19 }
 0x671   :  { %11438 = vmatpush1.bf16.msra.mxu1 %v14396_v25  ;;  %11398 = vmatprep.subr.bf16.mxu0 %v14277_v22  ;;  %v14453_v25 = vcombine.high %v7999_v48, %v8003_v41  ;;  %v7879_v22 = vld [vmem:[%s17818_s3 + $0x358] sm:$0xff] }
 0x672   :  { %11439 = vmatprep.subr.bf16.mxu1 %v14405_v51  ;;  %v7883_v51 = vld [vmem:[%s17818_s3 + $0x378] sm:$0xff] }
 0x673   :  { %v14332_v3 = vcombine.low %v7879_v22, %v7883_v51  ;;  %v8163_v27 = vld [vmem:[%s17818_s3 + $0xc38] sm:$0xff] }
 0x674   :  { %11399 = vmatpush1.bf16.msra.mxu0 %v14276_v61  ;;  %v14333_v61 = vcombine.high %v7879_v22, %v7883_v51  ;;  %v8167_v35 = vld [vmem:[%s17818_s3 + $0xc58] sm:$0xff]  ;;  %v14612_v36 = vcombine.low %v8159_v60, %v8163_v27 }
 0x675   :  { %11440 = vmatpush1.bf16.msra.mxu1 %v14404_v63  ;;  %11400 = vmatprep.subr.bf16.mxu0 %v14285_v46  ;;  %v14461_v63 = vcombine.high %v8007_v23, %v8011_v53  ;;  %v7887_v46 = vld [vmem:[%s17818_s3 + $0x398] sm:$0xff] }
 0x676   :  { %11441 = vmatprep.subr.bf16.mxu1 %v14413_v0  ;;  %v7891_v0 = vld [vmem:[%s17818_s3 + $0x3b8] sm:$0xff] }
 0x677   :  { %v14340_v20 = vcombine.low %v7887_v46, %v7891_v0  ;;  %v8171_v62 = vld [vmem:[%s17818_s3 + $0xc78] sm:$0xff] }
 0x678   :  { %11401 = vmatpush1.bf16.msra.mxu0 %v14284_v8  ;;  %v14341_v8 = vcombine.high %v7887_v46, %v7891_v0  ;;  %v8175_v34 = vld [vmem:[%s17818_s3 + $0xc98] sm:$0xff]  ;;  %v14620_v41 = vcombine.low %v8167_v35, %v8171_v62 }
 0x679   :  { %11442 = vmatpush1.bf16.msra.mxu1 %v14412_v11  ;;  %11402 = vmatprep.subr.bf16.mxu0 %v14293_v13  ;;  %v14469_v11 = vcombine.high %v8015_v1, %v8019_v50  ;;  %v7895_v13 = vld [vmem:[%s17818_s3 + $0x3d8] sm:$0xff] }
 0x67a   :  { %11443 = vmatprep.subr.bf16.mxu1 %v14421_v47  ;;  %v7899_v47 = vld [vmem:[%s17818_s3 + $0x3f8] sm:$0xff] }
 0x67b   :  { %v14348_v29 = vcombine.low %v7895_v13, %v7899_v47  ;;  %v8179_v56 = vld [vmem:[%s17818_s3 + $0xcb8] sm:$0xff] }
 0x67c   :  { %11403 = vmatpush1.bf16.msra.mxu0 %v14292_v31  ;;  %v14349_v31 = vcombine.high %v7895_v13, %v7899_v47  ;;  %v8063_v23 = vld [vmem:[%s17818_s3 + $0x918] sm:$0xff] }
 0x67d   :  { %11444 = vmatpush1.bf16.msra.mxu1 %v14420_v24  ;;  %11404 = vmatprep.subr.bf16.mxu0 %v14301_v40  ;;  %v14477_v24 = vcombine.high %v8023_v16, %v8027_v19  ;;  %v8031_v40 = vld [vmem:[%s17818_s3 + $0x818] sm:$0xff] }
 0x67e   :  { %11445 = vmatprep.subr.bf16.mxu1 %v14429_v26  ;;  %v8035_v26 = vld [vmem:[%s17818_s3 + $0x838] sm:$0xff] }
 0x67f   :  { %v14484_v21 = vcombine.low %v8031_v40, %v8035_v26  ;;  %v8067_v53 = vld [vmem:[%s17818_s3 + $0x938] sm:$0xff] }
 0x680   :  { %11405 = vmatpush1.bf16.msra.mxu0 %v14300_v52  ;;  %v14485_v52 = vcombine.high %v8031_v40, %v8035_v26  ;;  %v14517_v46 = vcombine.high %v8063_v23, %v8067_v53  ;;  %v8071_v1 = vld [vmem:[%s17818_s3 + $0x958] sm:$0xff] }
 0x681   :  { %11446 = vmatpush1.bf16.msra.mxu1 %v14428_v43  ;;  %11406 = vmatprep.subr.bf16.mxu0 %v14309_v28  ;;  %v14613_v43 = vcombine.high %v8159_v60, %v8163_v27  ;;  %v8039_v28 = vld [vmem:[%s17818_s3 + $0x858] sm:$0xff] }
 0x682   :  { %11447 = vmatprep.subr.bf16.mxu1 %v14437_v7  ;;  %v8043_v7 = vld [vmem:[%s17818_s3 + $0x878] sm:$0xff] }
 0x683   :  { %v14492_v48 = vcombine.low %v8039_v28, %v8043_v7  ;;  %v8075_v50 = vld [vmem:[%s17818_s3 + $0x978] sm:$0xff] }
 0x684   :  { %11407 = vmatpush1.bf16.msra.mxu0 %v14308_v10  ;;  %v14493_v10 = vcombine.high %v8039_v28, %v8043_v7  ;;  %v14525_v13 = vcombine.high %v8071_v1, %v8075_v50  ;;  %v8079_v16 = vld [vmem:[%s17818_s3 + $0x998] sm:$0xff] }
 0x685   :  { %11448 = vmatpush1.bf16.msra.mxu1 %v14436_v45  ;;  %11408 = vmatprep.subr.bf16.mxu0 %v14317_v54  ;;  %v8047_v45 = vld [vmem:[%s17818_s3 + $0x898] sm:$0xff] }
 0x686   :  { %11449 = vmatprep.subr.bf16.mxu1 %v14445_v42  ;;  %v8051_v54 = vld [vmem:[%s17818_s3 + $0x8b8] sm:$0xff]  ;;  %v14621_v42 = vcombine.high %v8167_v35, %v8171_v62 }
 0x687   :  { %v8083_v19 = vld [vmem:[%s17818_s3 + $0x9b8] sm:$0xff] }
 0x688   :  { %11409 = vmatpush1.bf16.msra.mxu0 %v14316_v49  ;;  %v14501_v49 = vcombine.high %v8047_v45, %v8051_v54  ;;  %v14533_v40 = vcombine.high %v8079_v16, %v8083_v19  ;;  %v8087_v27 = vld [vmem:[%s17818_s3 + $0x9d8] sm:$0xff]  ;;  %v14532_v35 = vcombine.low %v8079_v16, %v8083_v19 }
 0x689   :  { %11450 = vmatpush1.bf16.msra.mxu1 %v14444_v12  ;;  %11410 = vmatprep.subr.bf16.mxu0 %v14325_v2  ;;  %v8055_v12 = vld [vmem:[%s17818_s3 + $0x8d8] sm:$0xff] }
 0x68a   :  { %11451 = vmatprep.subr.bf16.mxu1 %v14453_v25  ;;  %v8059_v2 = vld [vmem:[%s17818_s3 + $0x8f8] sm:$0xff]  ;;  %v14628_v25 = vcombine.low %v8175_v34, %v8179_v56 }
 0x68b   :  { %v14509_v22 = vcombine.high %v8055_v12, %v8059_v2  ;;  %v8219_v28 = vld [vmem:[%s17818_s3 + $0xdf8] sm:$0xff] }
 0x68c   :  { %11411 = vmatpush1.bf16.msra.mxu0 %v14324_v44  ;;  %v8191_v44 = vld [vmem:[%s17818_s3 + $0xd18] sm:$0xff] }
 0x68d   :  { %11452 = vmatpush1.bf16.msra.mxu1 %v14452_v58  ;;  %11412 = vmatprep.subr.bf16.mxu0 %v14333_v61  ;;  %v8195_v58 = vld [vmem:[%s17818_s3 + $0xd38] sm:$0xff]  ;;  %v14508_v61 = vcombine.low %v8055_v12, %v8059_v2 }
 0x68e   :  { %11453 = vmatprep.subr.bf16.mxu1 %v14461_v63  ;;  %v14645_v0 = vcombine.high %v8191_v44, %v8195_v58 }
 0x690   :  { %11413 = vmatpush1.bf16.msra.mxu0 %v14332_v3  ;;  %v8199_v3 = vld [vmem:[%s17818_s3 + $0xd58] sm:$0xff] }
 0x691   :  { %11454 = vmatpush1.bf16.msra.mxu1 %v14460_v39  ;;  %11414 = vmatprep.subr.bf16.mxu0 %v14341_v8  ;;  %v8203_v39 = vld [vmem:[%s17818_s3 + $0xd78] sm:$0xff]  ;;  %v14516_v8 = vcombine.low %v8063_v23, %v8067_v53 }
 0x692   :  { %11455 = vmatprep.subr.bf16.mxu1 %v14469_v11  ;;  %v14644_v11 = vcombine.low %v8191_v44, %v8195_v58  ;;  %v14653_v47 = vcombine.high %v8199_v3, %v8203_v39  ;;  %v8111_v44 = vld [vmem:[%s17818_s3 + $0xa98] sm:$0xff] }
 0x693   :  { %v8115_v58 = vld [vmem:[%s17818_s3 + $0xab8] sm:$0xff] }
 0x694   :  { %11415 = vmatpush1.bf16.msra.mxu0 %v14340_v20  ;;  %v8207_v20 = vld [vmem:[%s17818_s3 + $0xd98] sm:$0xff] }
 0x695   :  { %11456 = vmatpush1.bf16.msra.mxu1 %v14468_v5  ;;  %11416 = vmatprep.subr.bf16.mxu0 %v14349_v31  ;;  %v8211_v5 = vld [vmem:[%s17818_s3 + $0xdb8] sm:$0xff]  ;;  %v14524_v31 = vcombine.low %v8071_v1, %v8075_v50  ;;  %v14565_v1 = vcombine.high %v8111_v44, %v8115_v58 }
 0x696   :  { %11457 = vmatprep.subr.bf16.mxu1 %v14477_v24  ;;  %v14652_v24 = vcombine.low %v8199_v3, %v8203_v39  ;;  %v14661_v60 = vcombine.high %v8207_v20, %v8211_v5  ;;  %v8119_v3 = vld [vmem:[%s17818_s3 + $0xad8] sm:$0xff] }
 0x697   :  { %v8123_v39 = vld [vmem:[%s17818_s3 + $0xaf8] sm:$0xff] }
 0x698   :  { %11417 = vmatpush1.bf16.msra.mxu0 %v14348_v29  ;;  %v8091_v29 = vld [vmem:[%s17818_s3 + $0x9f8] sm:$0xff]  ;;  %v14573_v16 = vcombine.high %v8119_v3, %v8123_v39 }
 0x699   :  { %11458 = vmatpush1.bf16.msra.mxu1 %v14476_v37  ;;  %11468 = vmatprep.subr.bf16.mxu0 %v14485_v52 }
 0x69a   :  { %11509 = vmatprep.subr.bf16.mxu1 %v14613_v43  ;;  %v8215_v43 = vld [vmem:[%s17818_s3 + $0xdd8] sm:$0xff] }
 0x69b   :  { %11419 = vmatmul.mubr.bf16.vlgmr.msra.gmra.mrb[52].mxu0 %v16330_v17  ;;  %v14629_v17 = vcombine.high %v8175_v34, %v8179_v56  ;;  %v8095_v34 = vld [vmem:[%s17818_s3 + $0xa18] sm:$0xff] }
 0x69c   :  { %11460 = vmatmul.mubr.bf16.vlgmr.msra.gmra.mrb[52].mxu1 %v16548_v38  ;;  %11469 = vmatpush1.bf16.msra.mxu0 %v14484_v21  ;;  %v8183_v38 = vld [vmem:[%s17818_s3 + $0xcd8] sm:$0xff] }
 0x69d   :  { %11500 = vmatprep.mubr.bf16.mxu0 %v16558_v57  ;;  %11510 = vmatpush1.bf16.msra.mxu1 %v14612_v36  ;;  %v8187_v57 = vld [vmem:[%s17818_s3 + $0xcf8] sm:$0xff] }
 0x69e   :  { %11541 = vmatprep.mubr.bf16.mxu1 %v16864_v15  ;;  %11470 = vmatprep.subr.bf16.mxu0 %v14493_v10  ;;  %v14500_v15 = vcombine.low %v8047_v45, %v8051_v54  ;;  %v14637_v51 = vcombine.high %v8183_v38, %v8187_v57  ;;  %v14636_v63 = vcombine.low %v8183_v38, %v8187_v57  ;;  %v8099_v56 = vld [vmem:[%s17818_s3 + $0xa38] sm:$0xff] }
 0x69f   :  { %11511 = vmatprep.subr.bf16.mxu1 %v14621_v42  ;;  %v14660_v10 = vcombine.low %v8207_v20, %v8211_v5  ;;  %v14541_v45 = vcombine.high %v8087_v27, %v8091_v29  ;;  %v14669_v42 = vcombine.high %v8215_v43, %v8219_v28  ;;  %v14549_v12 = vcombine.high %v8095_v34, %v8099_v56  ;;  %v8103_v38 = vld [vmem:[%s17818_s3 + $0xa58] sm:$0xff] }
 0x6a0   :  { %11471 = vmatpush1.bf16.msra.mxu0 %v14492_v48  ;;  %v8223_v48 = vld [vmem:[%s17818_s3 + $0xe18] sm:$0xff] }
 0x6a1   :  { %11512 = vmatpush1.bf16.msra.mxu1 %v14620_v41  ;;  %11472 = vmatprep.subr.bf16.mxu0 %v14501_v49  ;;  %v8227_v41 = vld [vmem:[%s17818_s3 + $0xe38] sm:$0xff]  ;;  %v14540_v49 = vcombine.low %v8087_v27, %v8091_v29 }
 0x6a2   :  { %11513 = vmatprep.subr.bf16.mxu1 %v14629_v17  ;;  %v14668_v17 = vcombine.low %v8215_v43, %v8219_v28  ;;  %v14677_v2 = vcombine.high %v8223_v48, %v8227_v41  ;;  %v8107_v57 = vld [vmem:[%s17818_s3 + $0xa78] sm:$0xff] }
 0x6a3   :  { %v14557_v23 = vcombine.high %v8103_v38, %v8107_v57  ;;  %v8127_v20 = vld [vmem:[%s17818_s3 + $0xb18] sm:$0xff] }
 0x6a4   :  { %11473 = vmatpush1.bf16.msra.mxu0 %v14500_v15  ;;  %v8231_v15 = vld [vmem:[%s17818_s3 + $0xe58] sm:$0xff] }
 0x6a5   :  { %11514 = vmatpush1.bf16.msra.mxu1 %v14628_v25  ;;  %11474 = vmatprep.subr.bf16.mxu0 %v14509_v22  ;;  %v8235_v25 = vld [vmem:[%s17818_s3 + $0xe78] sm:$0xff]  ;;  %v14548_v22 = vcombine.low %v8095_v34, %v8099_v56 }
 0x6a6   :  { %11515 = vmatprep.subr.bf16.mxu1 %v14637_v51  ;;  %v14676_v51 = vcombine.low %v8223_v48, %v8227_v41  ;;  %v14685_v53 = vcombine.high %v8231_v15, %v8235_v25  ;;  %v8131_v5 = vld [vmem:[%s17818_s3 + $0xb38] sm:$0xff] }
 0x6a7   :  { %v14581_v27 = vcombine.high %v8127_v20, %v8131_v5  ;;  %v8135_v43 = vld [vmem:[%s17818_s3 + $0xb58] sm:$0xff] }
 0x6a8   :  { %11475 = vmatpush1.bf16.msra.mxu0 %v14508_v61  ;;  %v8239_v61 = vld [vmem:[%s17818_s3 + $0xe98] sm:$0xff] }
 0x6a9   :  { %11516 = vmatpush1.bf16.msra.mxu1 %v14636_v63  ;;  %11476 = vmatprep.subr.bf16.mxu0 %v14517_v46  ;;  %v8243_v63 = vld [vmem:[%s17818_s3 + $0xeb8] sm:$0xff]  ;;  %v14556_v46 = vcombine.low %v8103_v38, %v8107_v57 }
 0x6aa   :  { %11517 = vmatprep.subr.bf16.mxu1 %v14645_v0  ;;  %v14684_v0 = vcombine.low %v8231_v15, %v8235_v25  ;;  %v14693_v50 = vcombine.high %v8239_v61, %v8243_v63  ;;  %v8139_v28 = vld [vmem:[%s17818_s3 + $0xb78] sm:$0xff] }
 0x6ab   :  { %v8271_v34 = vld [vmem:[%s17818_s3 + $0xf98] sm:$0xff]  ;;  %v14588_v48 = vcombine.low %v8135_v43, %v8139_v28 }
 0x6ac   :  { %11477 = vmatpush1.bf16.msra.mxu0 %v14516_v8  ;;  %v8247_v8 = vld [vmem:[%s17818_s3 + $0xed8] sm:$0xff] }
 0x6ad   :  { %11518 = vmatpush1.bf16.msra.mxu1 %v14644_v11  ;;  %11478 = vmatprep.subr.bf16.mxu0 %v14525_v13  ;;  %v8251_v11 = vld [vmem:[%s17818_s3 + $0xef8] sm:$0xff]  ;;  %v14564_v13 = vcombine.low %v8111_v44, %v8115_v58  ;;  %v15080_v58 = vld [vmem:[#allocation7 + $0xc] ss:$16 sps:$4 sm:$0xff]  }
 0x6ae   :  { %v17632_v26 = vpop.f32.mrb[40].mxu0  ;;  %11519 = vmatprep.subr.bf16.mxu1 %v14653_v47  ;;  %v14692_v47 = vcombine.low %v8239_v61, %v8243_v63  ;;  %v14701_v19 = vcombine.high %v8247_v8, %v8251_v11  ;;  %v8275_v56 = vld [vmem:[%s17818_s3 + $0xfb8] sm:$0xff]  ;;  %v15078_v63 = vld [vmem:[#allocation7 + $0x8] ss:$16 sps:$4 sm:$0xff]  }
 0x6af   :  { %v17640_v37 = vpop.f32.mrb[40].mxu1  ;;  %v17642_v52 = vpop.f32.mrb[41].mxu0  ;;  %v8279_v38 = vld [vmem:[%s17818_s3 + $0xfd8] sm:$0xff]  ;;  %v14724_v25 = vcombine.low %v8271_v34, %v8275_v56 }
 0x6b0   :  { %v17650_v7 = vpop.f32.mrb[41].mxu1  ;;  %v11055_v21 = vpop.f32.mrb[42].mxu0  ;;  %11479 = vmatpush1.bf16.msra.mxu0 %v14524_v31  ;;  %v8255_v31 = vld [vmem:[%s17818_s3 + $0xf18] sm:$0xff] }
 0x6b1   :  { %v11219_v62 = vpop.f32.mrb[42].mxu1  ;;  %11520 = vmatpush1.bf16.msra.mxu1 %v14652_v24  ;;  %v11056_v36 = vpop.f32.mrb[43].mxu0  ;;  %11480 = vmatprep.subr.bf16.mxu0 %v14533_v40  ;;  %v8259_v24 = vld [vmem:[%s17818_s3 + $0xf38] sm:$0xff]  ;;  %v14572_v40 = vcombine.low %v8119_v3, %v8123_v39  ;;  %v15092_v39 = vld [vmem:[#allocation7 + $0x4c] ss:$16 sps:$4 sm:$0xff]  }
 0x6b2   :  { %v11220_v54 = vpop.f32.mrb[43].mxu1  ;;  %11521 = vmatprep.subr.bf16.mxu1 %v14661_v60  ;;  %v14700_v60 = vcombine.low %v8247_v8, %v8251_v11  ;;  %v14709_v29 = vcombine.high %v8255_v31, %v8259_v24  ;;  %v8263_v21 = vld [vmem:[%s17818_s3 + $0xf58] sm:$0xff]  ;;  %v14580_v62 = vcombine.low %v8127_v20, %v8131_v5  ;;  %v14708_v36 = vcombine.low %v8255_v31, %v8259_v24  ;;  %v15090_v11 = vld [vmem:[#allocation7 + $0x48] ss:$16 sps:$4 sm:$0xff]  }
 0x6b3   :  { %v8143_v54 = vld [vmem:[%s17818_s3 + $0xb98] sm:$0xff]  ;;  %v15102_v5 = vld [vmem:[#allocation7 + $0x88] ss:$16 sps:$4 sm:$0xff]  }
 0x6b4   :  { %11481 = vmatpush1.bf16.msra.mxu0 %v14532_v35  ;;  %v8267_v35 = vld [vmem:[%s17818_s3 + $0xf78] sm:$0xff]  ;;  %v17750_v24 = vld [vmem:[#allocation6] sm:$0xff] }
 0x6b5   :  { %11522 = vmatpush1.bf16.msra.mxu1 %v14660_v10  ;;  %11482 = vmatprep.subr.bf16.mxu0 %v14541_v45  ;;  %v14589_v10 = vcombine.high %v8135_v43, %v8139_v28  ;;  %v14717_v45 = vcombine.high %v8263_v21, %v8267_v35  ;;  %v14716_v41 = vcombine.low %v8263_v21, %v8267_v35  ;;  %v8283_v57 = vld [vmem:[%s17818_s3 + $0xff8] sm:$0xff]  ;;  %v15108_v43 = vld [vmem:[#allocation7 + $0xa8] ss:$16 sps:$4 sm:$0xff]   ;;  %v15116_v35 = vld [vmem:[#allocation7 + $0xcc] ss:$16 sps:$4 sm:$0xff]  }
 0x6b6   :  { %11523 = vmatprep.subr.bf16.mxu1 %v14669_v42  ;;  %v8147_v42 = vld [vmem:[%s17818_s3 + $0xbb8] sm:$0xff] }
 0x6b7   :  { %v14596_v15 = vcombine.low %v8143_v54, %v8147_v42  ;;  %v15077_v44 = vld [vmem:[#allocation7 + $0x4] ss:$16 sps:$4 sm:$0xff]   ;;  %v15075_v61 = vld [vmem:[#allocation7] ss:$16 sps:$4 sm:$0xff]  }
 0x6b8   :  { %11483 = vmatpush1.bf16.msra.mxu0 %v14540_v49  ;;  %v14597_v49 = vcombine.high %v8143_v54, %v8147_v42  ;;  %v15089_v3 = vld [vmem:[#allocation7 + $0x44] ss:$16 sps:$4 sm:$0xff]   ;;  %v15087_v8 = vld [vmem:[#allocation7 + $0x40] ss:$16 sps:$4 sm:$0xff]  }
 0x6b9   :  { %11524 = vmatpush1.bf16.msra.mxu1 %v14668_v17  ;;  %11484 = vmatprep.subr.bf16.mxu0 %v14549_v12  ;;  %v14725_v17 = vcombine.high %v8271_v34, %v8275_v56  ;;  %v8151_v12 = vld [vmem:[%s17818_s3 + $0xbd8] sm:$0xff] }
 0x6ba   :  { %11525 = vmatprep.subr.bf16.mxu1 %v14677_v2  ;;  %v8155_v2 = vld [vmem:[%s17818_s3 + $0xbf8] sm:$0xff] }
 0x6bb   :  { %v15099_v20 = vld [vmem:[#allocation7 + $0x80] ss:$16 sps:$4 sm:$0xff]   ;;  %v15107_v31 = vld [vmem:[#allocation7 + $0xa4] ss:$16 sps:$4 sm:$0xff]  }
 0x6bc   :  { %11485 = vmatpush1.bf16.msra.mxu0 %v14548_v22  ;;  %v14605_v22 = vcombine.high %v8151_v12, %v8155_v2  ;;  %v15113_v28 = vld [vmem:[#allocation7 + $0xc4] ss:$16 sps:$4 sm:$0xff]  }
 0x6bd   :  { %11526 = vmatpush1.bf16.msra.mxu1 %v14676_v51  ;;  %11486 = vmatprep.subr.bf16.mxu0 %v14557_v23  ;;  %v14733_v51 = vcombine.high %v8279_v38, %v8283_v57  ;;  %v14604_v23 = vcombine.low %v8151_v12, %v8155_v2  ;;  %v15122_v12 = vld [vmem:[#allocation7 + $0xec] ss:$16 sps:$4 sm:$0xff]   ;;  %v15117_v2 = vld [vmem:[#allocation7 + $0xe0] ss:$16 sps:$4 sm:$0xff]  }
 0x6be   :  { %11527 = vmatprep.subr.bf16.mxu1 %v14685_v53  ;;  %v14732_v53 = vcombine.low %v8279_v38, %v8283_v57  ;;  %v15120_v38 = vld [vmem:[#allocation7 + $0xe8] ss:$16 sps:$4 sm:$0xff]   ;;  %v15125_v57 = vld [vmem:[#allocation7 + $0x104] ss:$16 sps:$4 sm:$0xff]  }
 0x6c0   :  { %11487 = vmatpush1.bf16.msra.mxu0 %v14556_v46  ;;  %v15083_v46 = vld [vmem:[#allocation7 + $0x24] ss:$16 sps:$4 sm:$0xff]  }
 0x6c1   :  { %11528 = vmatpush1.bf16.msra.mxu1 %v14684_v0  ;;  %11488 = vmatprep.subr.bf16.mxu0 %v14565_v1  ;;  %v15086_v0 = vld [vmem:[#allocation7 + $0x2c] ss:$16 sps:$4 sm:$0xff]   ;;  %v15081_v1 = vld [vmem:[#allocation7 + $0x20] ss:$16 sps:$4 sm:$0xff]  }
 0x6c2   :  { %11529 = vmatprep.subr.bf16.mxu1 %v14693_v50  ;;  %v15084_v50 = vld [vmem:[#allocation7 + $0x28] ss:$16 sps:$4 sm:$0xff]  }
 0x6c4   :  { %11489 = vmatpush1.bf16.msra.mxu0 %v14564_v13  ;;  %v15095_v13 = vld [vmem:[#allocation7 + $0x64] ss:$16 sps:$4 sm:$0xff]  }
 0x6c5   :  { %11530 = vmatpush1.bf16.msra.mxu1 %v14692_v47  ;;  %11490 = vmatprep.subr.bf16.mxu0 %v14573_v16  ;;  %v15098_v47 = vld [vmem:[#allocation7 + $0x6c] ss:$16 sps:$4 sm:$0xff]   ;;  %v15101_v16 = vld [vmem:[#allocation7 + $0x84] ss:$16 sps:$4 sm:$0xff]  }
 0x6c6   :  { %11531 = vmatprep.subr.bf16.mxu1 %v14701_v19  ;;  %v15104_v19 = vld [vmem:[#allocation7 + $0x8c] ss:$16 sps:$4 sm:$0xff]  }
 0x6c8   :  { %11491 = vmatpush1.bf16.msra.mxu0 %v14572_v40  ;;  %v15110_v40 = vld [vmem:[#allocation7 + $0xac] ss:$16 sps:$4 sm:$0xff]  }
 0x6c9   :  { %11532 = vmatpush1.bf16.msra.mxu1 %v14700_v60  ;;  %11492 = vmatprep.subr.bf16.mxu0 %v14581_v27  ;;  %v8313_v60 = vrot.slane %v17750_v24, %v16169_v32  ;;  %v8317_v27 = vrot.slane %v17750_v24, %v16172_v4  ;;  %v15111_v32 = vld [vmem:[#allocation7 + $0xc0] ss:$16 sps:$4 sm:$0xff]  }
 0x6ca   :  { %11533 = vmatprep.subr.bf16.mxu1 %v14709_v29  ;;  %v15105_v29 = vld [vmem:[#allocation7 + $0xa0] ss:$16 sps:$4 sm:$0xff]  }
 0x6cc   :  { %11493 = vmatpush1.bf16.msra.mxu0 %v14580_v62 }
 0x6cd   :  { %11534 = vmatpush1.bf16.msra.mxu1 %v14708_v36  ;;  %11494 = vmatprep.subr.bf16.mxu0 %v14589_v10 }
 0x6ce   :  { %11535 = vmatprep.subr.bf16.mxu1 %v14717_v45 }
 0x6d0   :  { %11495 = vmatpush1.bf16.msra.mxu0 %v14588_v48  ;;  %v15114_v48 = vld [vmem:[#allocation7 + $0xc8] ss:$16 sps:$4 sm:$0xff]  }
 0x6d1   :  { %11536 = vmatpush1.bf16.msra.mxu1 %v14716_v41  ;;  %11496 = vmatprep.subr.bf16.mxu0 %v14597_v49  ;;  %v15119_v41 = vld [vmem:[#allocation7 + $0xe4] ss:$16 sps:$4 sm:$0xff]  }
 0x6d2   :  { %11537 = vmatprep.subr.bf16.mxu1 %v14725_v17 }
 0x6d4   :  { %11497 = vmatpush1.bf16.msra.mxu0 %v14596_v15  ;;  %v15128_v15 = vld [vmem:[#allocation7 + $0x10c] ss:$16 sps:$4 sm:$0xff]  }
 0x6d5   :  { %11538 = vmatpush1.bf16.msra.mxu1 %v14724_v25  ;;  %11498 = vmatprep.subr.bf16.mxu0 %v14605_v22  ;;  %v15123_v25 = vld [vmem:[#allocation7 + $0x100] ss:$16 sps:$4 sm:$0xff]   ;;  %v15126_v22 = vld [vmem:[#allocation7 + $0x108] ss:$16 sps:$4 sm:$0xff]  }
 0x6d6   :  { %11539 = vmatprep.subr.bf16.mxu1 %v14733_v51  ;;  %v15131_v51 = vld [vmem:[#allocation7 + $0x124] ss:$16 sps:$4 sm:$0xff]  }
 0x6d8   :  { %11499 = vmatpush1.bf16.msra.mxu0 %v14604_v23  ;;  %v15134_v23 = vld [vmem:[#allocation7 + $0x12c] ss:$16 sps:$4 sm:$0xff]  }
 0x6d9   :  { %11540 = vmatpush1.bf16.msra.mxu1 %v14732_v53  ;;  %12352 = vmatprep.subr.bf16.mxu0 %v15077_v44  ;;  %v15129_v53 = vld [vmem:[#allocation7 + $0x120] ss:$16 sps:$4 sm:$0xff]   ;;  %v15132_v44 = vld [vmem:[#allocation7 + $0x128] ss:$16 sps:$4 sm:$0xff]  }
 0x6da   :  { %12434 = vmatprep.subr.bf16.mxu1 %v15080_v58  ;;  %v15137_v58 = vld [vmem:[#allocation7 + $0x144] ss:$16 sps:$4 sm:$0xff]  }
 0x6db   :  { %11501 = vmatmul.mubr.bf16.vlgmr.msra.gmra.mrb[56].mxu0 %v16766_v30  ;;  %v15093_v30 = vld [vmem:[#allocation7 + $0x60] ss:$16 sps:$4 sm:$0xff]  }
 0x6dc   :  { %11542 = vmatmul.mubr.bf16.vlgmr.msra.gmra.mrb[56].mxu1 %v16978_v33  ;;  %12353 = vmatpush1.bf16.msra.mxu0 %v15075_v61  ;;  %v15096_v33 = vld [vmem:[#allocation7 + $0x68] ss:$16 sps:$4 sm:$0xff]   ;;  %v15140_v61 = vld [vmem:[#allocation7 + $0x14c] ss:$16 sps:$4 sm:$0xff]  }
 0x6dd   :  { %12435 = vmatpush1.bf16.msra.mxu1 %v15078_v63  ;;  %12354 = vmatprep.subr.bf16.mxu0 %v15083_v46  ;;  %v15135_v63 = vld [vmem:[#allocation7 + $0x140] ss:$16 sps:$4 sm:$0xff]   ;;  %v15138_v46 = vld [vmem:[#allocation7 + $0x148] ss:$16 sps:$4 sm:$0xff]  }
 0x6de   :  { %12436 = vmatprep.subr.bf16.mxu1 %v15086_v0  ;;  %v15143_v0 = vld [vmem:[#allocation7 + $0x164] ss:$16 sps:$4 sm:$0xff]  }
 0x6e0   :  { %12355 = vmatpush1.bf16.msra.mxu0 %v15081_v1  ;;  %v15146_v1 = vld [vmem:[#allocation7 + $0x16c] ss:$16 sps:$4 sm:$0xff]  }
 0x6e1   :  { %12437 = vmatpush1.bf16.msra.mxu1 %v15084_v50  ;;  %12356 = vmatprep.subr.bf16.mxu0 %v15089_v3  ;;  %v15141_v50 = vld [vmem:[#allocation7 + $0x160] ss:$16 sps:$4 sm:$0xff]   ;;  %v15144_v3 = vld [vmem:[#allocation7 + $0x168] ss:$16 sps:$4 sm:$0xff]  }
 0x6e2   :  { %12438 = vmatprep.subr.bf16.mxu1 %v15092_v39  ;;  %v15149_v39 = vld [vmem:[#allocation7 + $0x184] ss:$16 sps:$4 sm:$0xff]  }
 0x6e4   :  { %12357 = vmatpush1.bf16.msra.mxu0 %v15087_v8  ;;  %v15152_v8 = vld [vmem:[#allocation7 + $0x18c] ss:$16 sps:$4 sm:$0xff]  }
 0x6e5   :  { %12439 = vmatpush1.bf16.msra.mxu1 %v15090_v11  ;;  %12358 = vmatprep.subr.bf16.mxu0 %v15095_v13  ;;  %v15147_v11 = vld [vmem:[#allocation7 + $0x180] ss:$16 sps:$4 sm:$0xff]   ;;  %v15150_v13 = vld [vmem:[#allocation7 + $0x188] ss:$16 sps:$4 sm:$0xff]  }
 0x6e6   :  { %12440 = vmatprep.subr.bf16.mxu1 %v15098_v47  ;;  %v15155_v47 = vld [vmem:[#allocation7 + $0x1a4] ss:$16 sps:$4 sm:$0xff]  }
 0x6e8   :  { %12359 = vmatpush1.bf16.msra.mxu0 %v15093_v30  ;;  %v15158_v30 = vld [vmem:[#allocation7 + $0x1ac] ss:$16 sps:$4 sm:$0xff]  }
 0x6e9   :  { %12441 = vmatpush1.bf16.msra.mxu1 %v15096_v33  ;;  %12360 = vmatprep.subr.bf16.mxu0 %v15101_v16  ;;  %v15153_v33 = vld [vmem:[#allocation7 + $0x1a0] ss:$16 sps:$4 sm:$0xff]   ;;  %v15156_v16 = vld [vmem:[#allocation7 + $0x1a8] ss:$16 sps:$4 sm:$0xff]  }
 0x6ea   :  { %12442 = vmatprep.subr.bf16.mxu1 %v15104_v19  ;;  %v15161_v19 = vld [vmem:[#allocation7 + $0x1c4] ss:$16 sps:$4 sm:$0xff]  }
 0x6ec   :  { %12361 = vmatpush1.bf16.msra.mxu0 %v15099_v20  ;;  %v15164_v20 = vld [vmem:[#allocation7 + $0x1cc] ss:$16 sps:$4 sm:$0xff]  }
 0x6ed   :  { %12443 = vmatpush1.bf16.msra.mxu1 %v15102_v5  ;;  %12362 = vmatprep.subr.bf16.mxu0 %v15107_v31  ;;  %v15159_v5 = vld [vmem:[#allocation7 + $0x1c0] ss:$16 sps:$4 sm:$0xff]   ;;  %v15162_v31 = vld [vmem:[#allocation7 + $0x1c8] ss:$16 sps:$4 sm:$0xff]  }
 0x6ee   :  { %v11256_v21 = vpop.f32.mrb[44].mxu0  ;;  %12444 = vmatprep.subr.bf16.mxu1 %v15110_v40  ;;  %v15167_v40 = vld [vmem:[#allocation7 + $0x1e4] ss:$16 sps:$4 sm:$0xff]  }
 0x6ef   :  { %v11257_v62 = vadd.f32 %v11256_v21, %v8313_v60  ;;  %v11297_v36 = vpop.f32.mrb[44].mxu1  ;;  %v11258_v10 = vpop.f32.mrb[45].mxu0  ;;  %v15170_v60 = vld [vmem:[#allocation7 + $0x1ec] ss:$16 sps:$4 sm:$0xff]   ;;  %v8297_v21 = vrot.slane %v17750_v24, %v16023_v6 }
 0x6f0   :  { %v11259_v45 = vadd.f32 %v11258_v10, %v8317_v27  ;;  %v11299_v54 = vpop.f32.mrb[45].mxu1  ;;  %v11260_v42 = vpop.f32.mrb[46].mxu0  ;;  %12363 = vmatpush1.bf16.msra.mxu0 %v15105_v29  ;;  %v15165_v27 = vld [vmem:[#allocation7 + $0x1e0] ss:$16 sps:$4 sm:$0xff]   ;;  %v15168_v29 = vld [vmem:[#allocation7 + $0x1e8] ss:$16 sps:$4 sm:$0xff]  }
 0x6f1   :  { %v17756_v34 = vadd.f32 %v11297_v36, %v11257_v62  ;;  %v11301_v4 = vpop.f32.mrb[46].mxu1  ;;  %v11261_v56 = vpop.f32.mrb[47].mxu0  ;;  %12445 = vmatpush1.bf16.msra.mxu1 %v15108_v43  ;;  %12364 = vmatprep.subr.bf16.mxu0 %v15113_v28  ;;  %v15173_v43 = vld [vmem:[#allocation7 + $0x204] ss:$16 sps:$4 sm:$0xff]   ;;  %v15176_v28 = vld [vmem:[#allocation7 + $0x20c] ss:$16 sps:$4 sm:$0xff]   ;;  %v14972_v62 = vadd.f32 %v17632_v26, %v8297_v21 }
 0x6f2   :  { %v17758_v49 = vadd.f32 %v11299_v54, %v11259_v45  ;;  %v11302_v17 = vpop.f32.mrb[47].mxu1  ;;  %12446 = vmatprep.subr.bf16.mxu1 %v15116_v35  ;;  %v8301_v35 = vrot.slane %v17750_v24, %v16026_v9  ;;  %v15222_v21 = vld [vmem:[#allocation7 + $0x308] ss:$16 sps:$4 sm:$0xff]  }
 0x6f4   :  { %12365 = vmatpush1.bf16.msra.mxu0 %v15111_v32  ;;  %v14973_v36 = vadd.f32 %v17642_v52, %v8301_v35  ;;  %v15171_v52 = vld [vmem:[#allocation7 + $0x200] ss:$16 sps:$4 sm:$0xff]   ;;  %v15227_v35 = vld [vmem:[#allocation7 + $0x324] ss:$16 sps:$4 sm:$0xff]  }
 0x6f5   :  { %12447 = vmatpush1.bf16.msra.mxu1 %v15114_v48  ;;  %12366 = vmatprep.subr.bf16.mxu0 %v15119_v41  ;;  %v11550_v48 = vmax.f32 %v14972_v62, 0.0  ;;  %v15230_v62 = vld [vmem:[#allocation7 + $0x32c] ss:$16 sps:$4 sm:$0xff]  }
 0x6f6   :  { %12448 = vmatprep.subr.bf16.mxu1 %v15122_v12 }
 0x6f8   :  { %12367 = vmatpush1.bf16.msra.mxu0 %v15117_v2  ;;  %v11551_v2 = vmax.f32 %v14973_v36, 0.0  ;;  %v15225_v36 = vld [vmem:[#allocation7 + $0x320] ss:$16 sps:$4 sm:$0xff]  }
 0x6f9   :  { %12449 = vmatpush1.bf16.msra.mxu1 %v15120_v38  ;;  %12368 = vmatprep.subr.bf16.mxu0 %v15125_v57 }
 0x6fa   :  { %12450 = vmatprep.subr.bf16.mxu1 %v15128_v15 }
 0x6fc   :  { %12369 = vmatpush1.bf16.msra.mxu0 %v15123_v25 }
 0x6fd   :  { %12451 = vmatpush1.bf16.msra.mxu1 %v15126_v22  ;;  %12370 = vmatprep.subr.bf16.mxu0 %v15131_v51  ;;  %v15174_v22 = vld [vmem:[#allocation7 + $0x208] ss:$16 sps:$4 sm:$0xff]  }
 0x6fe   :  { %12452 = vmatprep.subr.bf16.mxu1 %v15134_v23  ;;  %v15182_v23 = vld [vmem:[#allocation7 + $0x22c] ss:$16 sps:$4 sm:$0xff]  }
 0x700   :  { %12371 = vmatpush1.bf16.msra.mxu0 %v15129_v53  ;;  %v15180_v53 = vld [vmem:[#allocation7 + $0x228] ss:$16 sps:$4 sm:$0xff]  }
 0x701   :  { %12453 = vmatpush1.bf16.msra.mxu1 %v15132_v44  ;;  %12372 = vmatprep.subr.bf16.mxu0 %v15137_v58  ;;  %v15185_v44 = vld [vmem:[#allocation7 + $0x244] ss:$16 sps:$4 sm:$0xff]   ;;  %v15188_v58 = vld [vmem:[#allocation7 + $0x24c] ss:$16 sps:$4 sm:$0xff]  }
 0x702   :  { %12454 = vmatprep.subr.bf16.mxu1 %v15140_v61  ;;  %v15183_v61 = vld [vmem:[#allocation7 + $0x240] ss:$16 sps:$4 sm:$0xff]  }
 0x704   :  { %12373 = vmatpush1.bf16.msra.mxu0 %v15135_v63  ;;  %v15186_v63 = vld [vmem:[#allocation7 + $0x248] ss:$16 sps:$4 sm:$0xff]  }
 0x705   :  { %12455 = vmatpush1.bf16.msra.mxu1 %v15138_v46  ;;  %12374 = vmatprep.subr.bf16.mxu0 %v15143_v0  ;;  %v15191_v46 = vld [vmem:[#allocation7 + $0x264] ss:$16 sps:$4 sm:$0xff]   ;;  %v15194_v0 = vld [vmem:[#allocation7 + $0x26c] ss:$16 sps:$4 sm:$0xff]  }
 0x706   :  { %12456 = vmatprep.subr.bf16.mxu1 %v15146_v1  ;;  %v15189_v1 = vld [vmem:[#allocation7 + $0x260] ss:$16 sps:$4 sm:$0xff]  }
 0x708   :  { %12375 = vmatpush1.bf16.msra.mxu0 %v15141_v50  ;;  %v15192_v50 = vld [vmem:[#allocation7 + $0x268] ss:$16 sps:$4 sm:$0xff]  }
 0x709   :  { %12457 = vmatpush1.bf16.msra.mxu1 %v15144_v3  ;;  %12376 = vmatprep.subr.bf16.mxu0 %v15149_v39  ;;  %v15197_v3 = vld [vmem:[#allocation7 + $0x284] ss:$16 sps:$4 sm:$0xff]   ;;  %v15200_v39 = vld [vmem:[#allocation7 + $0x28c] ss:$16 sps:$4 sm:$0xff]  }
 0x70a   :  { %12458 = vmatprep.subr.bf16.mxu1 %v15152_v8  ;;  %v15195_v8 = vld [vmem:[#allocation7 + $0x280] ss:$16 sps:$4 sm:$0xff]  }
 0x70c   :  { %12377 = vmatpush1.bf16.msra.mxu0 %v15147_v11  ;;  %v15198_v11 = vld [vmem:[#allocation7 + $0x288] ss:$16 sps:$4 sm:$0xff]  }
 0x70d   :  { %12459 = vmatpush1.bf16.msra.mxu1 %v15150_v13  ;;  %12378 = vmatprep.subr.bf16.mxu0 %v15155_v47  ;;  %v15203_v13 = vld [vmem:[#allocation7 + $0x2a4] ss:$16 sps:$4 sm:$0xff]   ;;  %v15206_v47 = vld [vmem:[#allocation7 + $0x2ac] ss:$16 sps:$4 sm:$0xff]  }
 0x70e   :  { %12460 = vmatprep.subr.bf16.mxu1 %v15158_v30  ;;  %v15201_v30 = vld [vmem:[#allocation7 + $0x2a0] ss:$16 sps:$4 sm:$0xff]  }
 0x710   :  { %12379 = vmatpush1.bf16.msra.mxu0 %v15153_v33  ;;  %v15204_v33 = vld [vmem:[#allocation7 + $0x2a8] ss:$16 sps:$4 sm:$0xff]  }
 0x711   :  { %12461 = vmatpush1.bf16.msra.mxu1 %v15156_v16  ;;  %12380 = vmatprep.subr.bf16.mxu0 %v15161_v19  ;;  %v15209_v16 = vld [vmem:[#allocation7 + $0x2c4] ss:$16 sps:$4 sm:$0xff]   ;;  %v15212_v19 = vld [vmem:[#allocation7 + $0x2cc] ss:$16 sps:$4 sm:$0xff]  }
 0x712   :  { %12462 = vmatprep.subr.bf16.mxu1 %v15164_v20  ;;  %v15207_v20 = vld [vmem:[#allocation7 + $0x2c0] ss:$16 sps:$4 sm:$0xff]  }
 0x714   :  { %12381 = vmatpush1.bf16.msra.mxu0 %v15159_v5  ;;  %v15210_v5 = vld [vmem:[#allocation7 + $0x2c8] ss:$16 sps:$4 sm:$0xff]  }
 0x715   :  { %12463 = vmatpush1.bf16.msra.mxu1 %v15162_v31  ;;  %12382 = vmatprep.subr.bf16.mxu0 %v15167_v40  ;;  %v15215_v31 = vld [vmem:[#allocation7 + $0x2e4] ss:$16 sps:$4 sm:$0xff]   ;;  %v15218_v40 = vld [vmem:[#allocation7 + $0x2ec] ss:$16 sps:$4 sm:$0xff]  }
 0x716   :  { %12464 = vmatprep.subr.bf16.mxu1 %v15170_v60  ;;  %v15213_v60 = vld [vmem:[#allocation7 + $0x2e0] ss:$16 sps:$4 sm:$0xff]  }
 0x718   :  { %12383 = vmatpush1.bf16.msra.mxu0 %v15165_v27  ;;  %v15216_v27 = vld [vmem:[#allocation7 + $0x2e8] ss:$16 sps:$4 sm:$0xff]  }
 0x719   :  { %12465 = vmatpush1.bf16.msra.mxu1 %v15168_v29  ;;  %12393 = vmatprep.subr.bf16.mxu0 %v15173_v43  ;;  %v15221_v29 = vld [vmem:[#allocation7 + $0x304] ss:$16 sps:$4 sm:$0xff]   ;;  %v15224_v43 = vld [vmem:[#allocation7 + $0x30c] ss:$16 sps:$4 sm:$0xff]  }
 0x71a   :  { %12475 = vmatprep.subr.bf16.mxu1 %v15176_v28  ;;  %v15219_v28 = vld [vmem:[#allocation7 + $0x300] ss:$16 sps:$4 sm:$0xff]  }
 0x72e   :  { %v11338_v10 = vpop.f32.mrb[48].mxu0 }
 0x72f   :  { %v11339_v45 = vadd.f32 %v11338_v10, %v17756_v34  ;;  %v11379_v54 = vpop.f32.mrb[48].mxu1  ;;  %v11340_v42 = vpop.f32.mrb[49].mxu0  ;;  %v15179_v34 = vld [vmem:[#allocation7 + $0x224] ss:$16 sps:$4 sm:$0xff]   ;;  %v15228_v10 = vld [vmem:[#allocation7 + $0x328] ss:$16 sps:$4 sm:$0xff]  }
 0x730   :  { %v11341_v32 = vadd.f32 %v11340_v42, %v17758_v49  ;;  %v11381_v4 = vpop.f32.mrb[49].mxu1  ;;  %v11342_v56 = vpop.f32.mrb[50].mxu0  ;;  %v15177_v49 = vld [vmem:[#allocation7 + $0x220] ss:$16 sps:$4 sm:$0xff]  }
 0x731   :  { %v11380_v41 = vadd.f32 %v11379_v54, %v11339_v45  ;;  %v11383_v17 = vpop.f32.mrb[50].mxu1  ;;  %v11343_v12 = vpop.f32.mrb[51].mxu0  ;;  %v15233_v45 = vld [vmem:[#allocation7 + $0x344] ss:$16 sps:$4 sm:$0xff]   ;;  %v15236_v54 = vld [vmem:[#allocation7 + $0x34c] ss:$16 sps:$4 sm:$0xff]  }
 0x732   :  { %v11382_v38 = vadd.f32 %v11381_v4, %v11341_v32  ;;  %v11384_v57 = vpop.f32.mrb[51].mxu1  ;;  %v15231_v42 = vld [vmem:[#allocation7 + $0x340] ss:$16 sps:$4 sm:$0xff]   ;;  %v15234_v32 = vld [vmem:[#allocation7 + $0x348] ss:$16 sps:$4 sm:$0xff]  }
 0x733   :  { %v11554_v15 = vadd.f32 %v11550_v48, %v11380_v41  ;;  %v15239_v4 = vld [vmem:[#allocation7 + $0x364] ss:$16 sps:$4 sm:$0xff]   ;;  %v15242_v56 = vld [vmem:[#allocation7 + $0x36c] ss:$16 sps:$4 sm:$0xff]   ;;  %v15237_v48 = vld [vmem:[#allocation7 + $0x360] ss:$16 sps:$4 sm:$0xff]  }
 0x734   :  { %v11555_v26 = vadd.f32 %v11551_v2, %v11382_v38  ;;  %v15240_v41 = vld [vmem:[#allocation7 + $0x368] ss:$16 sps:$4 sm:$0xff]   ;;  %v15245_v17 = vld [vmem:[#allocation7 + $0x384] ss:$16 sps:$4 sm:$0xff]   ;;  %v15248_v12 = vld [vmem:[#allocation7 + $0x38c] ss:$16 sps:$4 sm:$0xff]  }
 0x735   :  { %v11687_v51 = vpack.c.bf16 %v11554_v15, %v11554_v15  ;;  %v15243_v2 = vld [vmem:[#allocation7 + $0x380] ss:$16 sps:$4 sm:$0xff]   ;;  %v15246_v38 = vld [vmem:[#allocation7 + $0x388] ss:$16 sps:$4 sm:$0xff]   ;;  %v15251_v57 = vld [vmem:[#allocation7 + $0x3a4] ss:$16 sps:$4 sm:$0xff]  }
 0x736   :  { %v11688_v25 = vpack.c.bf16 %v11555_v26, %v11555_v26  ;;  %v15254_v15 = vld [vmem:[#allocation7 + $0x3ac] ss:$16 sps:$4 sm:$0xff]   ;;  %v15249_v26 = vld [vmem:[#allocation7 + $0x3a0] ss:$16 sps:$4 sm:$0xff]  }
 0x738   :  { %12384 = vmatprep.mubr.bf16.mxu0 %v11688_v25  ;;  %12466 = vmatprep.mubr.bf16.mxu1 %v11688_v25  ;;  %v15252_v25 = vld [vmem:[#allocation7 + $0x3a8] ss:$16 sps:$4 sm:$0xff]  }
 0x739   :  { %12385 = vmatmul.mubr.bf16.vlgmr.msra.gmra.mrb[60].mxu0 %v11687_v51  ;;  %12467 = vmatmul.mubr.bf16.vlgmr.msra.gmra.mrb[60].mxu1 %v11687_v51  ;;  %v15260_v51 = vld [vmem:[#allocation7 + $0x3cc] ss:$16 sps:$4 sm:$0xff]  }
 0x73a   :  { %12394 = vmatpush1.bf16.msra.mxu0 %v15171_v52  ;;  %12476 = vmatpush1.bf16.msra.mxu1 %v15174_v22  ;;  %v8321_v52 = vrot.slane %v17750_v24, %v16607_v14  ;;  %v15257_v22 = vld [vmem:[#allocation7 + $0x3c4] ss:$16 sps:$4 sm:$0xff]  }
 0x73b   :  { %12395 = vmatprep.subr.bf16.mxu0 %v15179_v34  ;;  %12477 = vmatprep.subr.bf16.mxu1 %v15182_v23  ;;  %v8325_v34 = vrot.slane %v17750_v24, %v16610_v18 }
 0x73e   :  { %12396 = vmatpush1.bf16.msra.mxu0 %v15177_v49  ;;  %12478 = vmatpush1.bf16.msra.mxu1 %v15180_v53  ;;  %v15255_v49 = vld [vmem:[#allocation7 + $0x3c0] ss:$16 sps:$4 sm:$0xff]   ;;  %v15258_v53 = vld [vmem:[#allocation7 + $0x3c8] ss:$16 sps:$4 sm:$0xff]  }
 0x73f   :  { %12397 = vmatprep.subr.bf16.mxu0 %v15185_v44  ;;  %12479 = vmatprep.subr.bf16.mxu1 %v15188_v58 }
 0x742   :  { %12398 = vmatpush1.bf16.msra.mxu0 %v15183_v61  ;;  %12480 = vmatpush1.bf16.msra.mxu1 %v15186_v63  ;;  %v15263_v63 = vld [vmem:[#allocation7 + $0x3e4] ss:$16 sps:$4 sm:$0xff]  }
 0x743   :  { %12399 = vmatprep.subr.bf16.mxu0 %v15191_v46  ;;  %12481 = vmatprep.subr.bf16.mxu1 %v15194_v0  ;;  %v15266_v46 = vld [vmem:[#allocation7 + $0x3ec] ss:$16 sps:$4 sm:$0xff]  }
 0x746   :  { %12400 = vmatpush1.bf16.msra.mxu0 %v15189_v1  ;;  %12482 = vmatpush1.bf16.msra.mxu1 %v15192_v50 }
 0x747   :  { %12401 = vmatprep.subr.bf16.mxu0 %v15197_v3  ;;  %12483 = vmatprep.subr.bf16.mxu1 %v15200_v39 }
 0x74a   :  { %12402 = vmatpush1.bf16.msra.mxu0 %v15195_v8  ;;  %12484 = vmatpush1.bf16.msra.mxu1 %v15198_v11  ;;  %v15261_v11 = vld [vmem:[#allocation7 + $0x3e0] ss:$16 sps:$4 sm:$0xff]  }
 0x74b   :  { %12403 = vmatprep.subr.bf16.mxu0 %v15203_v13  ;;  %12485 = vmatprep.subr.bf16.mxu1 %v15206_v47  ;;  %v15264_v13 = vld [vmem:[#allocation7 + $0x3e8] ss:$16 sps:$4 sm:$0xff]  }
 0x74c   :  { %v15269_v47 = vld [vmem:[#allocation10 + $0x4] ss:$8 sps:$4 sm:$0xff]  }
 0x74e   :  { %12404 = vmatpush1.bf16.msra.mxu0 %v15201_v30  ;;  %12486 = vmatpush1.bf16.msra.mxu1 %v15204_v33  ;;  %v8305_v30 = vrot.slane %v17750_v24, %v16059_v55  ;;  %v8309_v33 = vrot.slane %v17750_v24, %v16062_v59 }
 0x74f   :  { %12405 = vmatprep.subr.bf16.mxu0 %v15209_v16  ;;  %12487 = vmatprep.subr.bf16.mxu1 %v15212_v19 }
 0x750   :  { %v14974_v16 = vadd.f32 %v17640_v37, %v8305_v30  ;;  %v14975_v19 = vadd.f32 %v17650_v7, %v8309_v33  ;;  %v15267_v37 = vld [vmem:[#allocation10] ss:$8 sps:$4 sm:$0xff]   ;;  %v15272_v7 = vld [vmem:[#allocation10 + $0x14] ss:$8 sps:$4 sm:$0xff]  }
 0x751   :  { %v15318_v30 = vld [vmem:[#allocation13 + $0x10] ss:$8 sps:$4 sm:$0xff]   ;;  %v15323_v33 = vld [vmem:[#allocation13 + $0x24] ss:$8 sps:$4 sm:$0xff]  }
 0x752   :  { %12406 = vmatpush1.bf16.msra.mxu0 %v15207_v20  ;;  %12488 = vmatpush1.bf16.msra.mxu1 %v15210_v5 }
 0x753   :  { %12407 = vmatprep.subr.bf16.mxu0 %v15215_v31  ;;  %12489 = vmatprep.subr.bf16.mxu1 %v15218_v40 }
 0x756   :  { %12408 = vmatpush1.bf16.msra.mxu0 %v15213_v60  ;;  %12490 = vmatpush1.bf16.msra.mxu1 %v15216_v27 }
 0x757   :  { %12409 = vmatprep.subr.bf16.mxu0 %v15221_v29  ;;  %12491 = vmatprep.subr.bf16.mxu1 %v15224_v43  ;;  %v11552_v43 = vmax.f32 %v14974_v16, 0.0  ;;  %v15321_v16 = vld [vmem:[#allocation13 + $0x20] ss:$8 sps:$4 sm:$0xff]  }
 0x75a   :  { %12410 = vmatpush1.bf16.msra.mxu0 %v15219_v28  ;;  %12492 = vmatpush1.bf16.msra.mxu1 %v15222_v21 }
 0x75b   :  { %12411 = vmatprep.subr.bf16.mxu0 %v15227_v35  ;;  %12493 = vmatprep.subr.bf16.mxu1 %v15230_v62  ;;  %v11553_v62 = vmax.f32 %v14975_v19, 0.0  ;;  %v15326_v19 = vld [vmem:[#allocation13 + $0x34] ss:$8 sps:$4 sm:$0xff]  }
 0x75e   :  { %12412 = vmatpush1.bf16.msra.mxu0 %v15225_v36  ;;  %12494 = vmatpush1.bf16.msra.mxu1 %v15228_v10 }
 0x75f   :  { %12413 = vmatprep.subr.bf16.mxu0 %v15233_v45  ;;  %12495 = vmatprep.subr.bf16.mxu1 %v15236_v54 }
 0x762   :  { %12414 = vmatpush1.bf16.msra.mxu0 %v15231_v42  ;;  %12496 = vmatpush1.bf16.msra.mxu1 %v15234_v32  ;;  %v15270_v32 = vld [vmem:[#allocation10 + $0x10] ss:$8 sps:$4 sm:$0xff]  }
 0x763   :  { %12415 = vmatprep.subr.bf16.mxu0 %v15239_v4  ;;  %12497 = vmatprep.subr.bf16.mxu1 %v15242_v56  ;;  %v15275_v4 = vld [vmem:[#allocation10 + $0x24] ss:$8 sps:$4 sm:$0xff]   ;;  %v15273_v56 = vld [vmem:[#allocation10 + $0x20] ss:$8 sps:$4 sm:$0xff]  }
 0x766   :  { %12416 = vmatpush1.bf16.msra.mxu0 %v15237_v48  ;;  %12498 = vmatpush1.bf16.msra.mxu1 %v15240_v41  ;;  %v15278_v48 = vld [vmem:[#allocation10 + $0x34] ss:$8 sps:$4 sm:$0xff]   ;;  %v15276_v41 = vld [vmem:[#allocation10 + $0x30] ss:$8 sps:$4 sm:$0xff]  }
 0x767   :  { %12417 = vmatprep.subr.bf16.mxu0 %v15245_v17  ;;  %12499 = vmatprep.subr.bf16.mxu1 %v15248_v12  ;;  %v15281_v17 = vld [vmem:[#allocation10 + $0x44] ss:$8 sps:$4 sm:$0xff]   ;;  %v15279_v12 = vld [vmem:[#allocation10 + $0x40] ss:$8 sps:$4 sm:$0xff]  }
 0x76a   :  { %12418 = vmatpush1.bf16.msra.mxu0 %v15243_v2  ;;  %12500 = vmatpush1.bf16.msra.mxu1 %v15246_v38  ;;  %v15284_v2 = vld [vmem:[#allocation10 + $0x54] ss:$8 sps:$4 sm:$0xff]   ;;  %v15282_v38 = vld [vmem:[#allocation10 + $0x50] ss:$8 sps:$4 sm:$0xff]  }
 0x76b   :  { %12419 = vmatprep.subr.bf16.mxu0 %v15251_v57  ;;  %12501 = vmatprep.subr.bf16.mxu1 %v15254_v15  ;;  %v15287_v57 = vld [vmem:[#allocation10 + $0x64] ss:$8 sps:$4 sm:$0xff]   ;;  %v15285_v15 = vld [vmem:[#allocation10 + $0x60] ss:$8 sps:$4 sm:$0xff]  }
 0x76e   :  { %v11420_v23 = vpop.f32.mrb[52].mxu0  ;;  %12420 = vmatpush1.bf16.msra.mxu0 %v15249_v26  ;;  %12502 = vmatpush1.bf16.msra.mxu1 %v15252_v25  ;;  %v15290_v26 = vld [vmem:[#allocation10 + $0x74] ss:$8 sps:$4 sm:$0xff]   ;;  %v15288_v25 = vld [vmem:[#allocation10 + $0x70] ss:$8 sps:$4 sm:$0xff]  }
 0x76f   :  { %v11421_v44 = vadd.f32 %v11420_v23, %v8321_v52  ;;  %v11461_v58 = vpop.f32.mrb[52].mxu1  ;;  %v11422_v61 = vpop.f32.mrb[53].mxu0  ;;  %12421 = vmatprep.subr.bf16.mxu0 %v15257_v22  ;;  %12503 = vmatprep.subr.bf16.mxu1 %v15260_v51  ;;  %v15293_v52 = vld [vmem:[#allocation10 + $0x84] ss:$8 sps:$4 sm:$0xff]   ;;  %v15291_v22 = vld [vmem:[#allocation10 + $0x80] ss:$8 sps:$4 sm:$0xff]  }
 0x770   :  { %v11423_v14 = vadd.f32 %v11422_v61, %v8325_v34  ;;  %v11463_v0 = vpop.f32.mrb[53].mxu1  ;;  %v11424_v1 = vpop.f32.mrb[54].mxu0  ;;  %v15296_v51 = vld [vmem:[#allocation10 + $0x94] ss:$8 sps:$4 sm:$0xff]   ;;  %v15294_v34 = vld [vmem:[#allocation10 + $0x90] ss:$8 sps:$4 sm:$0xff]  }
 0x771   :  { %v11462_v50 = vadd.f32 %v11461_v58, %v11421_v44  ;;  %v11465_v3 = vpop.f32.mrb[54].mxu1  ;;  %v11425_v39 = vpop.f32.mrb[55].mxu0  ;;  %v15299_v23 = vld [vmem:[#allocation10 + $0xa4] ss:$8 sps:$4 sm:$0xff]   ;;  %v15300_v44 = vld [vmem:[#allocation10 + $0xb0] ss:$8 sps:$4 sm:$0xff]  }
 0x772   :  { %v11464_v8 = vadd.f32 %v11463_v0, %v11423_v14  ;;  %v11466_v18 = vpop.f32.mrb[55].mxu1  ;;  %12422 = vmatpush1.bf16.msra.mxu0 %v15255_v49  ;;  %12504 = vmatpush1.bf16.msra.mxu1 %v15258_v53  ;;  %v15297_v49 = vld [vmem:[#allocation10 + $0xa0] ss:$8 sps:$4 sm:$0xff]   ;;  %v15302_v53 = vld [vmem:[#allocation10 + $0xb4] ss:$8 sps:$4 sm:$0xff]  }
 0x773   :  { %12423 = vmatprep.subr.bf16.mxu0 %v15263_v63  ;;  %12505 = vmatprep.subr.bf16.mxu1 %v15266_v46  ;;  %v15305_v58 = vld [vmem:[#allocation10 + $0xc4] ss:$8 sps:$4 sm:$0xff]   ;;  %v15303_v61 = vld [vmem:[#allocation10 + $0xc0] ss:$8 sps:$4 sm:$0xff]   ;;  %v15308_v63 = vld [vmem:[#allocation10 + $0xd4] ss:$8 sps:$4 sm:$0xff]  }
 0x774   :  { %v15306_v46 = vld [vmem:[#allocation10 + $0xd0] ss:$8 sps:$4 sm:$0xff]   ;;  %v15311_v3 = vld [vmem:[#allocation10 + $0xe4] ss:$8 sps:$4 sm:$0xff]   ;;  %v15309_v39 = vld [vmem:[#allocation10 + $0xe0] ss:$8 sps:$4 sm:$0xff]  }
 0x775   :  { %v15312_v18 = vld [vmem:[#allocation10 + $0xf0] ss:$8 sps:$4 sm:$0xff]  }
 0x776   :  { %12424 = vmatpush1.bf16.msra.mxu0 %v15261_v11  ;;  %12506 = vmatpush1.bf16.msra.mxu1 %v15264_v13  ;;  %v15315_v11 = vld [vmem:[#allocation13] ss:$8 sps:$4 sm:$0xff]   ;;  %v15317_v13 = vld [vmem:[#allocation13 + $0x4] ss:$8 sps:$4 sm:$0xff]  }
 0x777   :  { %12726 = vmatprep.subr.bf16.mxu0 %v15269_v47  ;;  %v15320_v47 = vld [vmem:[#allocation13 + $0x14] ss:$8 sps:$4 sm:$0xff]   ;;  %12878 = vmatprep.subr.bf16.mxu1 %v15317_v13  ;;  %v15351_v13 = vld [vmem:[#allocation16 + $0x40] ss:$8 sps:$4 sm:$0xff]  }
 0x7ae   :  { %v11502_v20 = vpop.f32.mrb[56].mxu0 }
 0x7af   :  { %v11503_v5 = vadd.f32 %v11502_v20, %v11462_v50  ;;  %v11543_v31 = vpop.f32.mrb[56].mxu1  ;;  %v11504_v40 = vpop.f32.mrb[57].mxu0  ;;  %v15324_v20 = vld [vmem:[#allocation13 + $0x30] ss:$8 sps:$4 sm:$0xff]  }
 0x7b0   :  { %v11505_v60 = vadd.f32 %v11504_v40, %v11464_v8  ;;  %v11545_v27 = vpop.f32.mrb[57].mxu1  ;;  %v11506_v29 = vpop.f32.mrb[58].mxu0  ;;  %v15314_v8 = vld [vmem:[#allocation10 + $0xf4] ss:$8 sps:$4 sm:$0xff]  }
 0x7b1   :  { %v11544_v28 = vadd.f32 %v11543_v31, %v11503_v5  ;;  %v11547_v21 = vpop.f32.mrb[58].mxu1  ;;  %v11507_v35 = vpop.f32.mrb[59].mxu0  ;;  %v15329_v5 = vld [vmem:[#allocation13 + $0x44] ss:$8 sps:$4 sm:$0xff]   ;;  %v15327_v31 = vld [vmem:[#allocation13 + $0x40] ss:$8 sps:$4 sm:$0xff]  }
 0x7b2   :  { %v11546_v36 = vadd.f32 %v11545_v27, %v11505_v60  ;;  %v11548_v10 = vpop.f32.mrb[59].mxu1  ;;  %v15332_v40 = vld [vmem:[#allocation13 + $0x54] ss:$8 sps:$4 sm:$0xff]   ;;  %v15330_v60 = vld [vmem:[#allocation13 + $0x50] ss:$8 sps:$4 sm:$0xff]  }
 0x7b3   :  { %v11556_v45 = vadd.f32 %v11552_v43, %v11544_v28  ;;  %v11686_v27 = vld [vmem:[#allocation9] sm:$0xf] }
 0x7b4   :  { %v11557_v24 = vadd.f32 %v11553_v62, %v11546_v36  ;;  %v11703_v29 = vrot.slane %v11686_v27, %v16059_v55  ;;  %v11707_v43 = vrot.slane %v11686_v27, %v16062_v59  ;;  %v11695_v28 = vrot.slane %v11686_v27, %v16023_v6 }
 0x7b5   :  { %v11689_v42 = vpack.c.bf16 %v11556_v45, %v11556_v45  ;;  %v11699_v21 = vrot.slane %v11686_v27, %v16026_v9  ;;  %v15366_v27 = vld [vmem:[%s17828_s13 + $0x18] sm:$0xff]  }
 0x7b6   :  { %v11690_v54 = vpack.c.bf16 %v11557_v24, %v11557_v24 }
 0x7b8   :  { %12425 = vmatprep.mubr.bf16.mxu0 %v11690_v54  ;;  %12507 = vmatprep.mubr.bf16.mxu1 %v11690_v54 }
 0x7b9   :  { %12426 = vmatmul.mubr.bf16.vlgmr.msra.gmra.mrb[60].mxu0 %v11689_v42  ;;  %12508 = vmatmul.mubr.bf16.vlgmr.msra.gmra.mrb[64].mxu1 %v11689_v42 }
 0x7ba   :  { %12727 = vmatpush1.bf16.msra.mxu0 %v15267_v37  ;;  %12879 = vmatpush1.bf16.msra.mxu1 %v15315_v11  ;;  %v15353_v11 = vld [vmem:[#allocation16 + $0x44] ss:$8 sps:$4 sm:$0xff]  }
 0x7bb   :  { %12728 = vmatprep.subr.bf16.mxu0 %v15272_v7  ;;  %12880 = vmatprep.subr.bf16.mxu1 %v15320_v47  ;;  %v15356_v47 = vld [vmem:[#allocation16 + $0x54] ss:$8 sps:$4 sm:$0xff]  }
 0x7be   :  { %12729 = vmatpush1.bf16.msra.mxu0 %v15270_v32  ;;  %12881 = vmatpush1.bf16.msra.mxu1 %v15318_v30  ;;  %v15354_v30 = vld [vmem:[#allocation16 + $0x50] ss:$8 sps:$4 sm:$0xff]  }
 0x7bf   :  { %12730 = vmatprep.subr.bf16.mxu0 %v15275_v4  ;;  %12882 = vmatprep.subr.bf16.mxu1 %v15323_v33  ;;  %v15359_v33 = vld [vmem:[#allocation16 + $0x64] ss:$8 sps:$4 sm:$0xff]  }
 0x7c2   :  { %12731 = vmatpush1.bf16.msra.mxu0 %v15273_v56  ;;  %12883 = vmatpush1.bf16.msra.mxu1 %v15321_v16  ;;  %v15357_v16 = vld [vmem:[#allocation16 + $0x60] ss:$8 sps:$4 sm:$0xff]  }
 0x7c3   :  { %12732 = vmatprep.subr.bf16.mxu0 %v15278_v48  ;;  %12884 = vmatprep.subr.bf16.mxu1 %v15326_v19  ;;  %v15362_v19 = vld [vmem:[#allocation16 + $0x74] ss:$8 sps:$4 sm:$0xff]  }
 0x7c6   :  { %12733 = vmatpush1.bf16.msra.mxu0 %v15276_v41  ;;  %12885 = vmatpush1.bf16.msra.mxu1 %v15324_v20  ;;  %v15360_v20 = vld [vmem:[#allocation16 + $0x70] ss:$8 sps:$4 sm:$0xff]  }
 0x7c7   :  { %12734 = vmatprep.subr.bf16.mxu0 %v15281_v17  ;;  %12886 = vmatprep.subr.bf16.mxu1 %v15329_v5  ;;  %v15363_v5 = vld [vmem:[%s17828_s13] sm:$0xff]  }
 0x7ca   :  { %12735 = vmatpush1.bf16.msra.mxu0 %v15279_v12  ;;  %12887 = vmatpush1.bf16.msra.mxu1 %v15327_v31  ;;  %v15670_v31 = vmov 0.0  }
 0x7cb   :  { %12736 = vmatprep.subr.bf16.mxu0 %v15284_v2  ;;  %12888 = vmatprep.subr.bf16.mxu1 %v15332_v40  ;;  %v15364_v40 = vld [vmem:[%s17828_s13 + $0x8] sm:$0xff]  }
 0x7ce   :  { %12737 = vmatpush1.bf16.msra.mxu0 %v15282_v38  ;;  %12889 = vmatpush1.bf16.msra.mxu1 %v15330_v60  ;;  %v15335_v38 = vld [vmem:[#allocation13 + $0x64] ss:$8 sps:$4 sm:$0xff]   ;;  %v15365_v60 = vld [vmem:[%s17828_s13 + $0x10] sm:$0xff]  }
 0x7cf   :  { %12738 = vmatprep.subr.bf16.mxu0 %v15287_v57  ;;  %v15333_v57 = vld [vmem:[#allocation13 + $0x60] ss:$8 sps:$4 sm:$0xff]   ;;  %12890 = vmatprep.subr.bf16.mxu1 %v15335_v38 }
 0x7d2   :  { %12739 = vmatpush1.bf16.msra.mxu0 %v15285_v15  ;;  %12891 = vmatpush1.bf16.msra.mxu1 %v15333_v57  ;;  %v15338_v15 = vld [vmem:[#allocation13 + $0x74] ss:$8 sps:$4 sm:$0xff]  }
 0x7d3   :  { %12740 = vmatprep.subr.bf16.mxu0 %v15290_v26  ;;  %v15336_v26 = vld [vmem:[#allocation13 + $0x70] ss:$8 sps:$4 sm:$0xff]   ;;  %12892 = vmatprep.subr.bf16.mxu1 %v15338_v15 }
 0x7d6   :  { %12741 = vmatpush1.bf16.msra.mxu0 %v15288_v25  ;;  %12893 = vmatpush1.bf16.msra.mxu1 %v15336_v26  ;;  %v15669_v25 = vmov 0  }
 0x7d7   :  { %12742 = vmatprep.subr.bf16.mxu0 %v15293_v52  ;;  %12910 = vmatprep.mubr.bf16.mxu1 %v15669_v25  ;;  %v15341_v52 = vld [vmem:[#allocation16 + $0x4] ss:$8 sps:$4 sm:$0xff]  }
 0x7d8   :  { %13030 = vmatprep.subr.bf16.mxu1 %v15341_v52 }
 0x7da   :  { %12743 = vmatpush1.bf16.msra.mxu0 %v15291_v22  ;;  %v12552_v22 = vld [vmem:[#allocation12] sm:$0x3] }
 0x7db   :  { %12744 = vmatprep.subr.bf16.mxu0 %v15296_v51  ;;  %v12559_v51 = vrot.slane %v12552_v22, %v16023_v6 }
 0x7de   :  { %12745 = vmatpush1.bf16.msra.mxu0 %v15294_v34  ;;  %v12563_v34 = vrot.slane %v12552_v22, %v16026_v9 }
 0x7df   :  { %12746 = vmatprep.subr.bf16.mxu0 %v15299_v23 }
 0x7e2   :  { %12747 = vmatpush1.bf16.msra.mxu0 %v15297_v49 }
 0x7e3   :  { %12748 = vmatprep.subr.bf16.mxu0 %v15302_v53 }
 0x7e6   :  { %12749 = vmatpush1.bf16.msra.mxu0 %v15300_v44 }
 0x7e7   :  { %12750 = vmatprep.subr.bf16.mxu0 %v15305_v58 }
 0x7ea   :  { %12751 = vmatpush1.bf16.msra.mxu0 %v15303_v61 }
 0x7eb   :  { %12752 = vmatprep.subr.bf16.mxu0 %v15308_v63 }
 0x7ee   :  { %12753 = vmatpush1.bf16.msra.mxu0 %v15306_v46 }
 0x7ef   :  { %12754 = vmatprep.subr.bf16.mxu0 %v15311_v3  ;;  %v15347_v3 = vld [vmem:[#allocation16 + $0x24] ss:$8 sps:$4 sm:$0xff]  }
 0x7f2   :  { %12755 = vmatpush1.bf16.msra.mxu0 %v15309_v39  ;;  %v15345_v39 = vld [vmem:[#allocation16 + $0x20] ss:$8 sps:$4 sm:$0xff]  }
 0x7f3   :  { %12756 = vmatprep.subr.bf16.mxu0 %v15314_v8  ;;  %v15350_v8 = vld [vmem:[#allocation16 + $0x34] ss:$8 sps:$4 sm:$0xff]  }
 0x7f6   :  { %12757 = vmatpush1.bf16.msra.mxu0 %v15312_v18  ;;  %v15348_v18 = vld [vmem:[#allocation16 + $0x30] ss:$8 sps:$4 sm:$0xff]  }
 0x7f7   :  { %14944 = vmatprep.subr.bf16.mxu0 %v15670_v31 }
 0x80c   :  { %v12468_v14 = vpop.f32.mrb[60].mxu1 }
 0x80d   :  { %v12470_v0 = vpop.f32.mrb[61].mxu1  ;;  %v12469_v35 = vadd.f32 %v12468_v14, %v11703_v29  ;;  %v15339_v14 = vld [vmem:[#allocation16] ss:$8 sps:$4 sm:$0xff]  }
 0x80e   :  { %v12472_v1 = vpop.f32.mrb[62].mxu1  ;;  %v12471_v62 = vadd.f32 %v12470_v0, %v11707_v43  ;;  %v15367_v29 = vld [vmem:[%s17828_s13 + $0x20] sm:$0xff]   ;;  %v15368_v43 = vld [vmem:[%s17828_s13 + $0x28] sm:$0xff]  }
 0x80f   :  { %v12473_v50 = vpop.f32.mrb[63].mxu1  ;;  %v15344_v1 = vld [vmem:[#allocation16 + $0x14] ss:$8 sps:$4 sm:$0xff]  }
 0x810   :  { %v15342_v50 = vld [vmem:[#allocation16 + $0x10] ss:$8 sps:$4 sm:$0xff]  }
 0x88c   :  { %v12427_v36 = vpop.f32.mrb[60].mxu0  ;;  %v12509_v10 = vpop.f32.mrb[64].mxu1 }
 0x88d   :  { %v14976_v45 = vadd.f32 %v12427_v36, %v11695_v28  ;;  %v12510_v24 = vadd.f32 %v12509_v10, %v12469_v35  ;;  %v12429_v54 = vpop.f32.mrb[61].mxu0  ;;  %v12511_v37 = vpop.f32.mrb[65].mxu1  ;;  %v12785_v28 = vld [vmem:[#allocation15] sm:$0x3] }
 0x88e   :  { %v14977_v42 = vadd.f32 %v12429_v54, %v11699_v21  ;;  %v12512_v7 = vadd.f32 %v12511_v37, %v12471_v62  ;;  %v12431_v32 = vpop.f32.mrb[62].mxu0  ;;  %v12513_v4 = vpop.f32.mrb[66].mxu1  ;;  %v12791_v21 = vrot.slane %v12785_v28, %v16023_v6  ;;  %v12795_v35 = vrot.slane %v12785_v28, %v16026_v9 }
 0x88f   :  { %v12516_v56 = vmax.f32 %v14976_v45, 0.0  ;;  %v12432_v55 = vpop.f32.mrb[63].mxu0  ;;  %v12514_v48 = vpop.f32.mrb[67].mxu1  ;;  %v15369_v32 = vld [vmem:[%s17828_s13 + $0x30] sm:$0xff]   ;;  %v15370_v4 = vld [vmem:[%s17828_s13 + $0x38] sm:$0xff]  }
 0x890   :  { %v12517_v59 = vmax.f32 %v14977_v42, 0.0 }
 0x891   :  { %v12518_v41 = vadd.f32 %v12516_v56, %v12510_v24  ;;  %v12937_v56 = vld [vmem:[#allocation18] sm:$0x3] }
 0x892   :  { %v12519_v17 = vadd.f32 %v12517_v59, %v12512_v7  ;;  %v12943_v55 = vrot.slane %v12937_v56, %v16023_v6  ;;  %v12947_v48 = vrot.slane %v12937_v56, %v16026_v9 }
 0x893   :  { %v12553_v2 = vpack.c.bf16 %v12518_v41, %v12518_v41 }
 0x894   :  { %v12554_v12 = vpack.c.bf16 %v12519_v17, %v12519_v17 }
 0x896   :  { %12758 = vmatprep.mubr.bf16.mxu0 %v12554_v12 }
 0x897   :  { %12759 = vmatmul.mubr.bf16.vlgmr.msra.gmra.mrb[64].mxu0 %v12553_v2 }
 0x898   :  { %14945 = vmatpush3.bf16.msra.mxu0 %v15363_v5  ;;  %14960 = vmatprep.mubr.msk.bf16.mxu0 %vm15671_vm0, %v15670_v31 }
 0x899   :  { %14946 = vmatprep.subr.bf16.mxu0 %v15670_v31 }
 0x89c   :  { %14947 = vmatpush3.bf16.msra.mxu0 %v15364_v40 }
 0x89d   :  { %14948 = vmatprep.subr.bf16.mxu0 %v15670_v31 }
 0x8a0   :  { %14949 = vmatpush3.bf16.msra.mxu0 %v15365_v60 }
 0x8a1   :  { %14950 = vmatprep.subr.bf16.mxu0 %v15670_v31 }
 0x8a4   :  { %14951 = vmatpush3.bf16.msra.mxu0 %v15366_v27 }
 0x8a5   :  { %14952 = vmatprep.subr.bf16.mxu0 %v15670_v31 }
 0x8a8   :  { %14953 = vmatpush3.bf16.msra.mxu0 %v15367_v29 }
 0x8a9   :  { %14954 = vmatprep.subr.bf16.mxu0 %v15670_v31 }
 0x8ac   :  { %14955 = vmatpush3.bf16.msra.mxu0 %v15368_v43 }
 0x8ad   :  { %14956 = vmatprep.subr.bf16.mxu0 %v15670_v31 }
 0x8b0   :  { %14957 = vmatpush3.bf16.msra.mxu0 %v15369_v32 }
 0x8b1   :  { %14958 = vmatprep.subr.bf16.mxu0 %v15670_v31 }
 0x8b4   :  { %14959 = vmatpush3.bf16.msra.mxu0 %v15370_v4 }
 0x96a   :  { %v12760_v23 = vpop.f32.mrb[64].mxu0 }
 0x96b   :  { %v12761_v49 = vadd.f32 %v12760_v23, %v12559_v51  ;;  %v12762_v53 = vpop.f32.mrb[65].mxu0 }
 0x96c   :  { %v12763_v44 = vadd.f32 %v12762_v53, %v12563_v34  ;;  %v12764_v58 = vpop.f32.mrb[66].mxu0 }
 0x96d   :  { %v12767_v61 = vmax.f32 %v12761_v49, 0.0  ;;  %v12765_v63 = vpop.f32.mrb[67].mxu0 }
 0x96f   :  { %v12768_v46 = vadd.f32 %v12767_v61, %v12763_v44 }
 0x971   :  { %v12786_v0 = vpack.c.bf16 %v12768_v46, %v12768_v46 }
 0x973   :  { %12911 = vmatmul.mubr.bf16.vlgmr.msra.gmra.mrb[68].mxu1 %v12786_v0 }
 0x974   :  { %13031 = vmatpush1.bf16.msra.mxu1 %v15339_v14  ;;  %13062 = vmatprep.mubr.bf16.mxu1 %v15669_v25  ;;  %v14926_v25 = vld [vmem:[#allocation19] ss:$0 sm:$0xff] }
 0x975   :  { %13032 = vmatprep.subr.bf16.mxu1 %v15344_v1 }
 0x978   :  { %13033 = vmatpush1.bf16.msra.mxu1 %v15342_v50 }
 0x979   :  { %13034 = vmatprep.subr.bf16.mxu1 %v15347_v3 }
 0x97c   :  { %13035 = vmatpush1.bf16.msra.mxu1 %v15345_v39 }
 0x97d   :  { %13036 = vmatprep.subr.bf16.mxu1 %v15350_v8 }
 0x980   :  { %13037 = vmatpush1.bf16.msra.mxu1 %v15348_v18 }
 0x981   :  { %13038 = vmatprep.subr.bf16.mxu1 %v15353_v11 }
 0x984   :  { %13039 = vmatpush1.bf16.msra.mxu1 %v15351_v13 }
 0x985   :  { %13040 = vmatprep.subr.bf16.mxu1 %v15356_v47 }
 0x988   :  { %13041 = vmatpush1.bf16.msra.mxu1 %v15354_v30 }
 0x989   :  { %13042 = vmatprep.subr.bf16.mxu1 %v15359_v33 }
 0x98c   :  { %13043 = vmatpush1.bf16.msra.mxu1 %v15357_v16 }
 0x98d   :  { %13044 = vmatprep.subr.bf16.mxu1 %v15362_v19 }
 0x990   :  { %13045 = vmatpush1.bf16.msra.mxu1 %v15360_v20 }
 0xa46   :  { %v12912_v62 = vpop.f32.mrb[68].mxu1 }
 0xa47   :  { %v12913_v36 = vadd.f32 %v12912_v62, %v12791_v21  ;;  %v12914_v10 = vpop.f32.mrb[69].mxu1 }
 0xa48   :  { %v12915_v45 = vadd.f32 %v12914_v10, %v12795_v35  ;;  %v12916_v24 = vpop.f32.mrb[70].mxu1 }
 0xa49   :  { %v12919_v54 = vmax.f32 %v12913_v36, 0.0  ;;  %v12917_v37 = vpop.f32.mrb[71].mxu1 }
 0xa4b   :  { %v12920_v42 = vadd.f32 %v12919_v54, %v12915_v45 }
 0xa4d   :  { %v12938_v7 = vpack.c.bf16 %v12920_v42, %v12920_v42 }
 0xa4f   :  { %13063 = vmatmul.mubr.bf16.vlgmr.msra.gmra.mrb[72].mxu1 %v12938_v7 }
 0xb22   :  { %v13064_v59 = vpop.f32.mrb[72].mxu1 }
 0xb23   :  { %v13065_v41 = vadd.f32 %v13064_v59, %v12943_v55  ;;  %v13066_v17 = vpop.f32.mrb[73].mxu1 }
 0xb24   :  { %v13067_v12 = vadd.f32 %v13066_v17, %v12947_v48  ;;  %v13068_v2 = vpop.f32.mrb[74].mxu1 }
 0xb25   :  { %v13071_v38 = vmax.f32 %v13065_v41, 0.0  ;;  %v13069_v57 = vpop.f32.mrb[75].mxu1 }
 0xb27   :  { %v13072_v15 = vadd.f32 %v13071_v38, %v13067_v12 }
 0xb29   :  { %v13090_v26 = vpack.c.bf16 %v13072_v15, %v13072_v15 }
 0xb2b   :  { %14961 = vmatmul.mubr.bf16.vlgmr.msra.gmra.mrb[68].mxu0 %v13090_v26 }
 0xbfe   :  { %v13179_v52 = vpop.f32.mrb[68].mxu0 }
 0xbff   :  { %v13180_v22 = vadd.f32 %v14926_v25, %v13179_v52  ;;  %v14962_v51 = vpop.f32.mrb[69].mxu0 }
 0xc00   :  { %v13182_v34 = vpop.f32.mrb[70].mxu0 }
 0xc01   :  { %13186 = vst.msk [vmem:[%s17830_s15] sm:$0xff] %vm13185_vm1, %v13180_v22  ;;  %v14963_v6 = vpop.f32.mrb[71].mxu0 }
 0xc02   :  { %13191 = vsyncpa [#allocation3], 1 }
 0xc03   :  { %13192 = vsyncpa [#allocation5], 1 }
 0xc04   :  { %13193 = vsyncpa [#allocation8], 1 }
 0xc05   :  { %13194 = vsyncpa [#allocation11], 1 }
 0xc06   :  { %13195 = vsyncpa [#allocation14], 1 }
 0xc07   :  { %13196 = vsyncpa [#allocation17], 1 }
 0xc08   :  { %13197 = vsyncpa [#allocation20], 1 }

</bundles_post_ra>
